<compile_context>
chip_gen: v7x
topology: tpu7x:2x2x1
jax: 0.10.0
libtpu: 0.0.40
codegen_flags: <defaults>
</compile_context>

<pallas_src>
import jax
import jax.numpy as jnp
from jax.experimental import pallas as pl
from jax.experimental.pallas import tpu as pltpu

D_MODEL = 512
NHEAD = 8
DFF = 2048
HEAD_DIM = D_MODEL // NHEAD
LN_EPS = 1e-5


def _layer_norm(x, gamma, beta):
    # LayerNorm over last dim (biased variance, eps=1e-5) — matches nn.LayerNorm.
    mean = jnp.mean(x, axis=-1, keepdims=True)
    var = jnp.mean((x - mean) ** 2, axis=-1, keepdims=True)
    return (x - mean) * jax.lax.rsqrt(var + LN_EPS) * gamma + beta


def encoder_layer_kernel(x_ref,
                         wq_ref, wk_ref, wv_ref,
                         bq_ref, bk_ref, bv_ref,
                         wo_ref, bo_ref,
                         g1_ref, be1_ref,
                         w1_ref, bf1_ref,
                         w2_ref, bf2_ref,
                         g2_ref, be2_ref,
                         o_ref,
                         ctx_ref):
    Bt, S, D = x_ref.shape
    n = Bt * S

    x = x_ref[...].reshape(n, D)            # (n, D) f32, kept for the residual
    xb = x.astype(jnp.bfloat16)             # bf16 copy feeding the MXU

    # --- QKV projections: bf16 MXU inputs, f32 accumulation ---
    # 1/sqrt(head_dim) is already folded into wq/bq at pack time.
    q = jnp.dot(xb, wq_ref[...], preferred_element_type=jnp.float32) + bq_ref[...]
    k = jnp.dot(xb, wk_ref[...], preferred_element_type=jnp.float32) + bk_ref[...]
    v = jnp.dot(xb, wv_ref[...], preferred_element_type=jnp.float32) + bv_ref[...]

    qb = q.astype(jnp.bfloat16)
    kb = k.astype(jnp.bfloat16)
    vb = v.astype(jnp.bfloat16)

    # --- self-attention: one batched (over Bt) contraction per head,
    #     context written straight into a lane-aligned VMEM scratch ---
    for h in range(NHEAD):                  # static unroll over 8 heads
        lo = h * HEAD_DIM
        hi = lo + HEAD_DIM
        qh = qb[:, lo:hi].reshape(Bt, S, HEAD_DIM)
        kh = kb[:, lo:hi].reshape(Bt, S, HEAD_DIM)
        vh = vb[:, lo:hi].reshape(Bt, S, HEAD_DIM)

        s = jnp.einsum("bqd,bkd->bqk", qh, kh,
                       preferred_element_type=jnp.float32)      # (Bt, S, S) f32
        s = s - jnp.max(s, axis=-1, keepdims=True)
        p = jnp.exp(s)
        p = p * pl.reciprocal(jnp.sum(p, axis=-1, keepdims=True), approx=True)
        ch = jnp.einsum("bqk,bkd->bqd", p.astype(jnp.bfloat16), vh,
                        preferred_element_type=jnp.float32)      # (Bt, S, hd)
        ctx_ref[:, lo:hi] = ch.reshape(n, HEAD_DIM)

    attn = jnp.dot(ctx_ref[...].astype(jnp.bfloat16), wo_ref[...],
                   preferred_element_type=jnp.float32) + bo_ref[...]

    # --- residual + norm1 (f32) ---
    x1 = _layer_norm(x + attn, g1_ref[...], be1_ref[...])

    # --- feed-forward (bf16 matmuls, f32 accumulate, ReLU in f32) ---
    h1 = jnp.dot(x1.astype(jnp.bfloat16), w1_ref[...],
                 preferred_element_type=jnp.float32) + bf1_ref[...]
    h1 = jnp.maximum(h1, 0.0)
    ff = jnp.dot(h1.astype(jnp.bfloat16), w2_ref[...],
                 preferred_element_type=jnp.float32) + bf2_ref[...]

    # --- residual + norm2 ---
    o_ref[...] = _layer_norm(x1 + ff, g2_ref[...], be2_ref[...]).reshape(Bt, S, D)


def _pick_block_batch(B, S):
    """Smallest divisor of B giving >=256 MXU rows per step, else the whole batch."""
    for bt in range(1, B + 1):
        if B % bt == 0 and bt * S >= 256:
            return bt
    return B


def encoder_layer(x, params, block_batch=None):
    B, S, D = x.shape
    assert D == D_MODEL
    Bt = block_batch if block_batch is not None else _pick_block_batch(B, S)
    assert B % Bt == 0

    def full_spec(a):
        nd = a.ndim
        return pl.BlockSpec(a.shape, lambda b, _nd=nd: (0,) * _nd)

    in_specs = [pl.BlockSpec((Bt, S, D), lambda b: (b, 0, 0))]
    in_specs += [full_spec(p) for p in params]

    return pl.pallas_call(
        encoder_layer_kernel,
        out_shape=jax.ShapeDtypeStruct((B, S, D), jnp.float32),
        grid=(B // Bt,),
        in_specs=in_specs,
        out_specs=pl.BlockSpec((Bt, S, D), lambda b: (b, 0, 0)),
        scratch_shapes=[pltpu.VMEM((Bt * S, D_MODEL), jnp.float32)],
        compiler_params=pltpu.CompilerParams(
            # Batch tiles are independent -> "parallel" lets v7x shard the grid
            # across its two TensorCores; neutral on v5e/v6e.
            dimension_semantics=("parallel",),
            # 48 MiB fits v7x's 64 MiB physical VMEM with headroom; kernel needs
            # ~14 MiB (bf16 weights double-buffered + small activation tiles).
            vmem_limit_bytes=48 * 1024 * 1024,
        ),
    )(x, *params)


def make_params(key):
    """Deterministic synthetic parameters with nn.MultiheadAttention-style shapes."""
    ks = jax.random.split(key, 8)
    s = 0.02
    in_proj_w = jax.random.normal(ks[0], (3 * D_MODEL, D_MODEL), jnp.float32) * s
    in_proj_b = jax.random.normal(ks[1], (3 * D_MODEL,), jnp.float32) * s
    wo = jax.random.normal(ks[2], (D_MODEL, D_MODEL), jnp.float32) * s
    bo = jax.random.normal(ks[3], (D_MODEL,), jnp.float32) * s
    w1 = jax.random.normal(ks[4], (DFF, D_MODEL), jnp.float32) * s
    b1 = jax.random.normal(ks[5], (DFF,), jnp.float32) * s
    w2 = jax.random.normal(ks[6], (D_MODEL, DFF), jnp.float32) * s
    b2 = jax.random.normal(ks[7], (D_MODEL,), jnp.float32) * s
    g1 = jnp.ones((D_MODEL,), jnp.float32)
    be1 = jnp.zeros((D_MODEL,), jnp.float32)
    g2 = jnp.ones((D_MODEL,), jnp.float32)
    be2 = jnp.zeros((D_MODEL,), jnp.float32)
    return dict(in_proj_w=in_proj_w, in_proj_b=in_proj_b, wo=wo, bo=bo,
                w1=w1, b1=b1, w2=w2, b2=b2, g1=g1, be1=be1, g2=g2, be2=be2)


def pack_params_for_kernel(p):
    """Pre-transpose weights, fold 1/sqrt(head_dim) into Wq/bq, cast weights to bf16."""
    D = D_MODEL
    scale = 1.0 / (HEAD_DIM ** 0.5)
    wq, wk, wv = p["in_proj_w"][:D], p["in_proj_w"][D:2 * D], p["in_proj_w"][2 * D:]
    bq, bk, bv = p["in_proj_b"][:D], p["in_proj_b"][D:2 * D], p["in_proj_b"][2 * D:]
    row = lambda a: a.reshape(1, -1).astype(jnp.float32)
    w = lambda a: a.astype(jnp.bfloat16)
    return [
        w(wq.T * scale), w(wk.T), w(wv.T),     # (D, D) bf16, pre-transposed
        row(bq * scale), row(bk), row(bv),     # (1, D) f32
        w(p["wo"].T), row(p["bo"]),            # (D, D) bf16, (1, D) f32
        row(p["g1"]), row(p["be1"]),           # (1, D) f32
        w(p["w1"].T), row(p["b1"]),            # (D, DFF) bf16, (1, DFF) f32
        w(p["w2"].T), row(p["b2"]),            # (DFF, D) bf16, (1, D) f32
        row(p["g2"]), row(p["be2"]),           # (1, D) f32
    ]


def reference(x, p):
    """Pure-JAX f32 reference mirroring torch semantics."""
    B, S, D = x.shape
    wq, wk, wv = p["in_proj_w"][:D], p["in_proj_w"][D:2 * D], p["in_proj_w"][2 * D:]
    bq, bk, bv = p["in_proj_b"][:D], p["in_proj_b"][D:2 * D], p["in_proj_b"][2 * D:]
    q = x @ wq.T + bq
    k = x @ wk.T + bk
    v = x @ wv.T + bv
    qh = q.reshape(B, S, NHEAD, HEAD_DIM).transpose(0, 2, 1, 3)
    kh = k.reshape(B, S, NHEAD, HEAD_DIM).transpose(0, 2, 1, 3)
    vh = v.reshape(B, S, NHEAD, HEAD_DIM).transpose(0, 2, 1, 3)
    s = jnp.einsum("bhqd,bhkd->bhqk", qh, kh) / (HEAD_DIM ** 0.5)
    a = jax.nn.softmax(s, axis=-1)
    o = jnp.einsum("bhqk,bhkd->bhqd", a, vh).transpose(0, 2, 1, 3).reshape(B, S, D)
    attn = o @ p["wo"].T + p["bo"]

    def ln(y, g, b):
        m = jnp.mean(y, -1, keepdims=True)
        var = jnp.mean((y - m) ** 2, -1, keepdims=True)
        return (y - m) / jnp.sqrt(var + LN_EPS) * g + b

    x1 = ln(x + attn, p["g1"], p["be1"])
    ff = jnp.maximum(x1 @ p["w1"].T + p["b1"], 0.0) @ p["w2"].T + p["b2"]
    return ln(x1 + ff, p["g2"], p["be2"])


if __name__ == "__main__":
    B, S = 2, 16
    key = jax.random.PRNGKey(0)
    kx, kp = jax.random.split(key)
    x = jax.random.normal(kx, (B, S, D_MODEL), jnp.float32)
    params = make_params(kp)
    kernel_params = pack_params_for_kernel(params)

    out = encoder_layer(x, kernel_params)
    out = jax.block_until_ready(out)

    ref = jax.block_until_ready(reference(x, params))
    assert out.shape == (B, S, D_MODEL)
    assert bool(jnp.all(jnp.isfinite(out)))
    # bf16 MXU inputs (f32 accumulation) -> slightly looser tolerance than pure f32.
    assert bool(jnp.allclose(out, ref, atol=3e-2, rtol=3e-2)), "mismatch vs reference"

    print("KERNEL_OK")
</pallas_src>

<mosaic_0001>
module attributes {stable_mosaic.version = 11 : i64} {
  func.func @encoder_layer_kernel(%arg0: i32, %arg1: memref<2x16x512xf32, #tpu.memory_space<vmem>>, %arg2: memref<512x512xbf16, #tpu.memory_space<vmem>>, %arg3: memref<512x512xbf16, #tpu.memory_space<vmem>>, %arg4: memref<512x512xbf16, #tpu.memory_space<vmem>>, %arg5: memref<1x512xf32, #tpu.memory_space<vmem>>, %arg6: memref<1x512xf32, #tpu.memory_space<vmem>>, %arg7: memref<1x512xf32, #tpu.memory_space<vmem>>, %arg8: memref<512x512xbf16, #tpu.memory_space<vmem>>, %arg9: memref<1x512xf32, #tpu.memory_space<vmem>>, %arg10: memref<1x512xf32, #tpu.memory_space<vmem>>, %arg11: memref<1x512xf32, #tpu.memory_space<vmem>>, %arg12: memref<512x2048xbf16, #tpu.memory_space<vmem>>, %arg13: memref<1x2048xf32, #tpu.memory_space<vmem>>, %arg14: memref<2048x512xbf16, #tpu.memory_space<vmem>>, %arg15: memref<1x512xf32, #tpu.memory_space<vmem>>, %arg16: memref<1x512xf32, #tpu.memory_space<vmem>>, %arg17: memref<1x512xf32, #tpu.memory_space<vmem>>, %arg18: memref<2x16x512xf32, #tpu.memory_space<vmem>>, %arg19: memref<32x512xf32, #tpu.memory_space<vmem>>) attributes {dimension_semantics = [#tpu.dimension_semantics<parallel>], iteration_bounds = array<i64: 1>, scalar_prefetch = 0 : i64, scratch_operands = 1 : i64, tpu.core_type = #tpu.core_type<tc>, window_params = [{transform_indices = @transform_0, window_bounds = array<i64: 2, 16, 512>}, {pipeline_mode = #tpu.pipeline_mode<synchronous>, transform_indices = @transform_1, window_bounds = array<i64: 512, 512>}, {pipeline_mode = #tpu.pipeline_mode<synchronous>, transform_indices = @transform_2, window_bounds = array<i64: 512, 512>}, {pipeline_mode = #tpu.pipeline_mode<synchronous>, transform_indices = @transform_3, window_bounds = array<i64: 512, 512>}, {pipeline_mode = #tpu.pipeline_mode<synchronous>, transform_indices = @transform_4, window_bounds = array<i64: 1, 512>}, {pipeline_mode = #tpu.pipeline_mode<synchronous>, transform_indices = @transform_5, window_bounds = array<i64: 1, 512>}, {pipeline_mode = #tpu.pipeline_mode<synchronous>, transform_indices = @transform_6, window_bounds = array<i64: 1, 512>}, {pipeline_mode = #tpu.pipeline_mode<synchronous>, transform_indices = @transform_7, window_bounds = array<i64: 512, 512>}, {pipeline_mode = #tpu.pipeline_mode<synchronous>, transform_indices = @transform_8, window_bounds = array<i64: 1, 512>}, {pipeline_mode = #tpu.pipeline_mode<synchronous>, transform_indices = @transform_9, window_bounds = array<i64: 1, 512>}, {pipeline_mode = #tpu.pipeline_mode<synchronous>, transform_indices = @transform_10, window_bounds = array<i64: 1, 512>}, {pipeline_mode = #tpu.pipeline_mode<synchronous>, transform_indices = @transform_11, window_bounds = array<i64: 512, 2048>}, {pipeline_mode = #tpu.pipeline_mode<synchronous>, transform_indices = @transform_12, window_bounds = array<i64: 1, 2048>}, {pipeline_mode = #tpu.pipeline_mode<synchronous>, transform_indices = @transform_13, window_bounds = array<i64: 2048, 512>}, {pipeline_mode = #tpu.pipeline_mode<synchronous>, transform_indices = @transform_14, window_bounds = array<i64: 1, 512>}, {pipeline_mode = #tpu.pipeline_mode<synchronous>, transform_indices = @transform_15, window_bounds = array<i64: 1, 512>}, {pipeline_mode = #tpu.pipeline_mode<synchronous>, transform_indices = @transform_16, window_bounds = array<i64: 1, 512>}, {transform_indices = @transform_17, window_bounds = array<i64: 2, 16, 512>}]} {
    %c0 = arith.constant 0 : index
    %c0_0 = arith.constant 0 : index
    %c0_1 = arith.constant 0 : index
    %0 = vector.load %arg1[%c0, %c0_0, %c0_1] : memref<2x16x512xf32, #tpu.memory_space<vmem>>, vector<2x16x512xf32>
    %1 = vector.shape_cast %0 : vector<2x16x512xf32> to vector<32x512xf32>
    %2 = arith.truncf %1 : vector<32x512xf32> to vector<32x512xbf16>
    %c0_2 = arith.constant 0 : index
    %c0_3 = arith.constant 0 : index
    %3 = vector.load %arg2[%c0_2, %c0_3] : memref<512x512xbf16, #tpu.memory_space<vmem>>, vector<512x512xbf16>
    %cst = arith.constant dense<0.000000e+00> : vector<32x512xf32>
    %4 = tpu.matmul %2, %3, %cst {dimension_numbers = #tpu.dot_dimension_numbers<[1], [0], [0], [1], [0, 0, 1, 1], [], []>} : vector<32x512xbf16>, vector<512x512xbf16>, vector<32x512xf32> -> vector<32x512xf32>
    %c0_4 = arith.constant 0 : index
    %c0_5 = arith.constant 0 : index
    %5 = vector.load %arg5[%c0_4, %c0_5] : memref<1x512xf32, #tpu.memory_space<vmem>>, vector<1x512xf32>
    %6 = vector.broadcast %5 : vector<1x512xf32> to vector<32x512xf32>
    %7 = arith.addf %4, %6 : vector<32x512xf32>
    %c0_6 = arith.constant 0 : index
    %c0_7 = arith.constant 0 : index
    %8 = vector.load %arg3[%c0_6, %c0_7] : memref<512x512xbf16, #tpu.memory_space<vmem>>, vector<512x512xbf16>
    %cst_8 = arith.constant dense<0.000000e+00> : vector<32x512xf32>
    %9 = tpu.matmul %2, %8, %cst_8 {dimension_numbers = #tpu.dot_dimension_numbers<[1], [0], [0], [1], [0, 0, 1, 1], [], []>} : vector<32x512xbf16>, vector<512x512xbf16>, vector<32x512xf32> -> vector<32x512xf32>
    %c0_9 = arith.constant 0 : index
    %c0_10 = arith.constant 0 : index
    %10 = vector.load %arg6[%c0_9, %c0_10] : memref<1x512xf32, #tpu.memory_space<vmem>>, vector<1x512xf32>
    %11 = vector.broadcast %10 : vector<1x512xf32> to vector<32x512xf32>
    %12 = arith.addf %9, %11 : vector<32x512xf32>
    %c0_11 = arith.constant 0 : index
    %c0_12 = arith.constant 0 : index
    %13 = vector.load %arg4[%c0_11, %c0_12] : memref<512x512xbf16, #tpu.memory_space<vmem>>, vector<512x512xbf16>
    %cst_13 = arith.constant dense<0.000000e+00> : vector<32x512xf32>
    %14 = tpu.matmul %2, %13, %cst_13 {dimension_numbers = #tpu.dot_dimension_numbers<[1], [0], [0], [1], [0, 0, 1, 1], [], []>} : vector<32x512xbf16>, vector<512x512xbf16>, vector<32x512xf32> -> vector<32x512xf32>
    %c0_14 = arith.constant 0 : index
    %c0_15 = arith.constant 0 : index
    %15 = vector.load %arg7[%c0_14, %c0_15] : memref<1x512xf32, #tpu.memory_space<vmem>>, vector<1x512xf32>
    %16 = vector.broadcast %15 : vector<1x512xf32> to vector<32x512xf32>
    %17 = arith.addf %14, %16 : vector<32x512xf32>
    %18 = arith.truncf %7 : vector<32x512xf32> to vector<32x512xbf16>
    %19 = arith.truncf %12 : vector<32x512xf32> to vector<32x512xbf16>
    %20 = arith.truncf %17 : vector<32x512xf32> to vector<32x512xbf16>
    %21 = vector.extract_strided_slice %18 {offsets = [0, 0], sizes = [32, 64], strides = [1, 1]} : vector<32x512xbf16> to vector<32x64xbf16>
    %22 = vector.shape_cast %21 : vector<32x64xbf16> to vector<2x16x64xbf16>
    %23 = vector.extract_strided_slice %19 {offsets = [0, 0], sizes = [32, 64], strides = [1, 1]} : vector<32x512xbf16> to vector<32x64xbf16>
    %24 = vector.shape_cast %23 : vector<32x64xbf16> to vector<2x16x64xbf16>
    %25 = vector.extract_strided_slice %20 {offsets = [0, 0], sizes = [32, 64], strides = [1, 1]} : vector<32x512xbf16> to vector<32x64xbf16>
    %26 = vector.shape_cast %25 : vector<32x64xbf16> to vector<2x16x64xbf16>
    "tpu.trace_start"() <{level = 10 : i32, message = "bqd,bkd->bqk"}> : () -> ()
    %cst_16 = arith.constant dense<0.000000e+00> : vector<2x16x16xf32>
    %27 = tpu.matmul %22, %24, %cst_16 {dimension_numbers = #tpu.dot_dimension_numbers<[2], [2], [1], [1], [0, 0, 0, 1, 1, 1], [0], [0]>} : vector<2x16x64xbf16>, vector<2x16x64xbf16>, vector<2x16x16xf32> -> vector<2x16x16xf32>
    "tpu.trace_stop"() : () -> ()
    %cst_17 = arith.constant dense<0xFF800000> : vector<2x16xf32>
    %28 = vector.multi_reduction <maximumf>, %27, %cst_17 [2] : vector<2x16x16xf32> to vector<2x16xf32>
    %29 = vector.shape_cast %28 : vector<2x16xf32> to vector<2x16x1xf32>
    %30 = vector.broadcast %29 : vector<2x16x1xf32> to vector<2x16x16xf32>
    %31 = arith.subf %27, %30 : vector<2x16x16xf32>
    %32 = math.exp %31 : vector<2x16x16xf32>
    %cst_18 = arith.constant dense<0.000000e+00> : vector<2x16xf32>
    %33 = vector.multi_reduction <add>, %32, %cst_18 [2] : vector<2x16x16xf32> to vector<2x16xf32>
    %34 = vector.shape_cast %33 : vector<2x16xf32> to vector<2x16x1xf32>
    %35 = tpu.reciprocal %34 {approx = true} : vector<2x16x1xf32> -> vector<2x16x1xf32>
    %36 = vector.broadcast %35 : vector<2x16x1xf32> to vector<2x16x16xf32>
    %37 = arith.mulf %32, %36 : vector<2x16x16xf32>
    %38 = arith.truncf %37 : vector<2x16x16xf32> to vector<2x16x16xbf16>
    "tpu.trace_start"() <{level = 10 : i32, message = "bqk,bkd->bqd"}> : () -> ()
    %cst_19 = arith.constant dense<0.000000e+00> : vector<2x16x64xf32>
    %39 = tpu.matmul %38, %26, %cst_19 {dimension_numbers = #tpu.dot_dimension_numbers<[2], [1], [1], [2], [0, 0, 0, 1, 1, 2], [0], [0]>} : vector<2x16x16xbf16>, vector<2x16x64xbf16>, vector<2x16x64xf32> -> vector<2x16x64xf32>
    "tpu.trace_stop"() : () -> ()
    %40 = vector.shape_cast %39 : vector<2x16x64xf32> to vector<32x64xf32>
    %c0_20 = arith.constant 0 : index
    %c0_21 = arith.constant 0 : index
    %41 = vector.load %arg19[%c0_20, %c0_21] : memref<32x512xf32, #tpu.memory_space<vmem>>, vector<32x64xf32>
    tpu.vector_store %arg19[%c0_20, %c0_21], %40 {strides = array<i32>} : memref<32x512xf32, #tpu.memory_space<vmem>>, vector<32x64xf32>,
    %42 = vector.extract_strided_slice %18 {offsets = [0, 64], sizes = [32, 64], strides = [1, 1]} : vector<32x512xbf16> to vector<32x64xbf16>
    %43 = vector.shape_cast %42 : vector<32x64xbf16> to vector<2x16x64xbf16>
    %44 = vector.extract_strided_slice %19 {offsets = [0, 64], sizes = [32, 64], strides = [1, 1]} : vector<32x512xbf16> to vector<32x64xbf16>
    %45 = vector.shape_cast %44 : vector<32x64xbf16> to vector<2x16x64xbf16>
    %46 = vector.extract_strided_slice %20 {offsets = [0, 64], sizes = [32, 64], strides = [1, 1]} : vector<32x512xbf16> to vector<32x64xbf16>
    %47 = vector.shape_cast %46 : vector<32x64xbf16> to vector<2x16x64xbf16>
    "tpu.trace_start"() <{level = 10 : i32, message = "bqd,bkd->bqk"}> : () -> ()
    %cst_22 = arith.constant dense<0.000000e+00> : vector<2x16x16xf32>
    %48 = tpu.matmul %43, %45, %cst_22 {dimension_numbers = #tpu.dot_dimension_numbers<[2], [2], [1], [1], [0, 0, 0, 1, 1, 1], [0], [0]>} : vector<2x16x64xbf16>, vector<2x16x64xbf16>, vector<2x16x16xf32> -> vector<2x16x16xf32>
    "tpu.trace_stop"() : () -> ()
    %cst_23 = arith.constant dense<0xFF800000> : vector<2x16xf32>
    %49 = vector.multi_reduction <maximumf>, %48, %cst_23 [2] : vector<2x16x16xf32> to vector<2x16xf32>
    %50 = vector.shape_cast %49 : vector<2x16xf32> to vector<2x16x1xf32>
    %51 = vector.broadcast %50 : vector<2x16x1xf32> to vector<2x16x16xf32>
    %52 = arith.subf %48, %51 : vector<2x16x16xf32>
    %53 = math.exp %52 : vector<2x16x16xf32>
    %cst_24 = arith.constant dense<0.000000e+00> : vector<2x16xf32>
    %54 = vector.multi_reduction <add>, %53, %cst_24 [2] : vector<2x16x16xf32> to vector<2x16xf32>
    %55 = vector.shape_cast %54 : vector<2x16xf32> to vector<2x16x1xf32>
    %56 = tpu.reciprocal %55 {approx = true} : vector<2x16x1xf32> -> vector<2x16x1xf32>
    %57 = vector.broadcast %56 : vector<2x16x1xf32> to vector<2x16x16xf32>
    %58 = arith.mulf %53, %57 : vector<2x16x16xf32>
    %59 = arith.truncf %58 : vector<2x16x16xf32> to vector<2x16x16xbf16>
    "tpu.trace_start"() <{level = 10 : i32, message = "bqk,bkd->bqd"}> : () -> ()
    %cst_25 = arith.constant dense<0.000000e+00> : vector<2x16x64xf32>
    %60 = tpu.matmul %59, %47, %cst_25 {dimension_numbers = #tpu.dot_dimension_numbers<[2], [1], [1], [2], [0, 0, 0, 1, 1, 2], [0], [0]>} : vector<2x16x16xbf16>, vector<2x16x64xbf16>, vector<2x16x64xf32> -> vector<2x16x64xf32>
    "tpu.trace_stop"() : () -> ()
    %61 = vector.shape_cast %60 : vector<2x16x64xf32> to vector<32x64xf32>
    %c0_26 = arith.constant 0 : index
    %c64 = arith.constant 64 : index
    %62 = vector.load %arg19[%c0_26, %c64] : memref<32x512xf32, #tpu.memory_space<vmem>>, vector<32x64xf32>
    tpu.vector_store %arg19[%c0_26, %c64], %61 {strides = array<i32>} : memref<32x512xf32, #tpu.memory_space<vmem>>, vector<32x64xf32>,
    %63 = vector.extract_strided_slice %18 {offsets = [0, 128], sizes = [32, 64], strides = [1, 1]} : vector<32x512xbf16> to vector<32x64xbf16>
    %64 = vector.shape_cast %63 : vector<32x64xbf16> to vector<2x16x64xbf16>
    %65 = vector.extract_strided_slice %19 {offsets = [0, 128], sizes = [32, 64], strides = [1, 1]} : vector<32x512xbf16> to vector<32x64xbf16>
    %66 = vector.shape_cast %65 : vector<32x64xbf16> to vector<2x16x64xbf16>
    %67 = vector.extract_strided_slice %20 {offsets = [0, 128], sizes = [32, 64], strides = [1, 1]} : vector<32x512xbf16> to vector<32x64xbf16>
    %68 = vector.shape_cast %67 : vector<32x64xbf16> to vector<2x16x64xbf16>
    "tpu.trace_start"() <{level = 10 : i32, message = "bqd,bkd->bqk"}> : () -> ()
    %cst_27 = arith.constant dense<0.000000e+00> : vector<2x16x16xf32>
    %69 = tpu.matmul %64, %66, %cst_27 {dimension_numbers = #tpu.dot_dimension_numbers<[2], [2], [1], [1], [0, 0, 0, 1, 1, 1], [0], [0]>} : vector<2x16x64xbf16>, vector<2x16x64xbf16>, vector<2x16x16xf32> -> vector<2x16x16xf32>
    "tpu.trace_stop"() : () -> ()
    %cst_28 = arith.constant dense<0xFF800000> : vector<2x16xf32>
    %70 = vector.multi_reduction <maximumf>, %69, %cst_28 [2] : vector<2x16x16xf32> to vector<2x16xf32>
    %71 = vector.shape_cast %70 : vector<2x16xf32> to vector<2x16x1xf32>
    %72 = vector.broadcast %71 : vector<2x16x1xf32> to vector<2x16x16xf32>
    %73 = arith.subf %69, %72 : vector<2x16x16xf32>
    %74 = math.exp %73 : vector<2x16x16xf32>
    %cst_29 = arith.constant dense<0.000000e+00> : vector<2x16xf32>
    %75 = vector.multi_reduction <add>, %74, %cst_29 [2] : vector<2x16x16xf32> to vector<2x16xf32>
    %76 = vector.shape_cast %75 : vector<2x16xf32> to vector<2x16x1xf32>
    %77 = tpu.reciprocal %76 {approx = true} : vector<2x16x1xf32> -> vector<2x16x1xf32>
    %78 = vector.broadcast %77 : vector<2x16x1xf32> to vector<2x16x16xf32>
    %79 = arith.mulf %74, %78 : vector<2x16x16xf32>
    %80 = arith.truncf %79 : vector<2x16x16xf32> to vector<2x16x16xbf16>
    "tpu.trace_start"() <{level = 10 : i32, message = "bqk,bkd->bqd"}> : () -> ()
    %cst_30 = arith.constant dense<0.000000e+00> : vector<2x16x64xf32>
    %81 = tpu.matmul %80, %68, %cst_30 {dimension_numbers = #tpu.dot_dimension_numbers<[2], [1], [1], [2], [0, 0, 0, 1, 1, 2], [0], [0]>} : vector<2x16x16xbf16>, vector<2x16x64xbf16>, vector<2x16x64xf32> -> vector<2x16x64xf32>
    "tpu.trace_stop"() : () -> ()
    %82 = vector.shape_cast %81 : vector<2x16x64xf32> to vector<32x64xf32>
    %c0_31 = arith.constant 0 : index
    %c128 = arith.constant 128 : index
    %83 = vector.load %arg19[%c0_31, %c128] : memref<32x512xf32, #tpu.memory_space<vmem>>, vector<32x64xf32>
    tpu.vector_store %arg19[%c0_31, %c128], %82 {strides = array<i32>} : memref<32x512xf32, #tpu.memory_space<vmem>>, vector<32x64xf32>,
    %84 = vector.extract_strided_slice %18 {offsets = [0, 192], sizes = [32, 64], strides = [1, 1]} : vector<32x512xbf16> to vector<32x64xbf16>
    %85 = vector.shape_cast %84 : vector<32x64xbf16> to vector<2x16x64xbf16>
    %86 = vector.extract_strided_slice %19 {offsets = [0, 192], sizes = [32, 64], strides = [1, 1]} : vector<32x512xbf16> to vector<32x64xbf16>
    %87 = vector.shape_cast %86 : vector<32x64xbf16> to vector<2x16x64xbf16>
    %88 = vector.extract_strided_slice %20 {offsets = [0, 192], sizes = [32, 64], strides = [1, 1]} : vector<32x512xbf16> to vector<32x64xbf16>
    %89 = vector.shape_cast %88 : vector<32x64xbf16> to vector<2x16x64xbf16>
    "tpu.trace_start"() <{level = 10 : i32, message = "bqd,bkd->bqk"}> : () -> ()
    %cst_32 = arith.constant dense<0.000000e+00> : vector<2x16x16xf32>
    %90 = tpu.matmul %85, %87, %cst_32 {dimension_numbers = #tpu.dot_dimension_numbers<[2], [2], [1], [1], [0, 0, 0, 1, 1, 1], [0], [0]>} : vector<2x16x64xbf16>, vector<2x16x64xbf16>, vector<2x16x16xf32> -> vector<2x16x16xf32>
    "tpu.trace_stop"() : () -> ()
    %cst_33 = arith.constant dense<0xFF800000> : vector<2x16xf32>
    %91 = vector.multi_reduction <maximumf>, %90, %cst_33 [2] : vector<2x16x16xf32> to vector<2x16xf32>
    %92 = vector.shape_cast %91 : vector<2x16xf32> to vector<2x16x1xf32>
    %93 = vector.broadcast %92 : vector<2x16x1xf32> to vector<2x16x16xf32>
    %94 = arith.subf %90, %93 : vector<2x16x16xf32>
    %95 = math.exp %94 : vector<2x16x16xf32>
    %cst_34 = arith.constant dense<0.000000e+00> : vector<2x16xf32>
    %96 = vector.multi_reduction <add>, %95, %cst_34 [2] : vector<2x16x16xf32> to vector<2x16xf32>
    %97 = vector.shape_cast %96 : vector<2x16xf32> to vector<2x16x1xf32>
    %98 = tpu.reciprocal %97 {approx = true} : vector<2x16x1xf32> -> vector<2x16x1xf32>
    %99 = vector.broadcast %98 : vector<2x16x1xf32> to vector<2x16x16xf32>
    %100 = arith.mulf %95, %99 : vector<2x16x16xf32>
    %101 = arith.truncf %100 : vector<2x16x16xf32> to vector<2x16x16xbf16>
    "tpu.trace_start"() <{level = 10 : i32, message = "bqk,bkd->bqd"}> : () -> ()
    %cst_35 = arith.constant dense<0.000000e+00> : vector<2x16x64xf32>
    %102 = tpu.matmul %101, %89, %cst_35 {dimension_numbers = #tpu.dot_dimension_numbers<[2], [1], [1], [2], [0, 0, 0, 1, 1, 2], [0], [0]>} : vector<2x16x16xbf16>, vector<2x16x64xbf16>, vector<2x16x64xf32> -> vector<2x16x64xf32>
    "tpu.trace_stop"() : () -> ()
    %103 = vector.shape_cast %102 : vector<2x16x64xf32> to vector<32x64xf32>
    %c0_36 = arith.constant 0 : index
    %c192 = arith.constant 192 : index
    %104 = vector.load %arg19[%c0_36, %c192] : memref<32x512xf32, #tpu.memory_space<vmem>>, vector<32x64xf32>
    tpu.vector_store %arg19[%c0_36, %c192], %103 {strides = array<i32>} : memref<32x512xf32, #tpu.memory_space<vmem>>, vector<32x64xf32>,
    %105 = vector.extract_strided_slice %18 {offsets = [0, 256], sizes = [32, 64], strides = [1, 1]} : vector<32x512xbf16> to vector<32x64xbf16>
    %106 = vector.shape_cast %105 : vector<32x64xbf16> to vector<2x16x64xbf16>
    %107 = vector.extract_strided_slice %19 {offsets = [0, 256], sizes = [32, 64], strides = [1, 1]} : vector<32x512xbf16> to vector<32x64xbf16>
    %108 = vector.shape_cast %107 : vector<32x64xbf16> to vector<2x16x64xbf16>
    %109 = vector.extract_strided_slice %20 {offsets = [0, 256], sizes = [32, 64], strides = [1, 1]} : vector<32x512xbf16> to vector<32x64xbf16>
    %110 = vector.shape_cast %109 : vector<32x64xbf16> to vector<2x16x64xbf16>
    "tpu.trace_start"() <{level = 10 : i32, message = "bqd,bkd->bqk"}> : () -> ()
    %cst_37 = arith.constant dense<0.000000e+00> : vector<2x16x16xf32>
    %111 = tpu.matmul %106, %108, %cst_37 {dimension_numbers = #tpu.dot_dimension_numbers<[2], [2], [1], [1], [0, 0, 0, 1, 1, 1], [0], [0]>} : vector<2x16x64xbf16>, vector<2x16x64xbf16>, vector<2x16x16xf32> -> vector<2x16x16xf32>
    "tpu.trace_stop"() : () -> ()
    %cst_38 = arith.constant dense<0xFF800000> : vector<2x16xf32>
    %112 = vector.multi_reduction <maximumf>, %111, %cst_38 [2] : vector<2x16x16xf32> to vector<2x16xf32>
    %113 = vector.shape_cast %112 : vector<2x16xf32> to vector<2x16x1xf32>
    %114 = vector.broadcast %113 : vector<2x16x1xf32> to vector<2x16x16xf32>
    %115 = arith.subf %111, %114 : vector<2x16x16xf32>
    %116 = math.exp %115 : vector<2x16x16xf32>
    %cst_39 = arith.constant dense<0.000000e+00> : vector<2x16xf32>
    %117 = vector.multi_reduction <add>, %116, %cst_39 [2] : vector<2x16x16xf32> to vector<2x16xf32>
    %118 = vector.shape_cast %117 : vector<2x16xf32> to vector<2x16x1xf32>
    %119 = tpu.reciprocal %118 {approx = true} : vector<2x16x1xf32> -> vector<2x16x1xf32>
    %120 = vector.broadcast %119 : vector<2x16x1xf32> to vector<2x16x16xf32>
    %121 = arith.mulf %116, %120 : vector<2x16x16xf32>
    %122 = arith.truncf %121 : vector<2x16x16xf32> to vector<2x16x16xbf16>
    "tpu.trace_start"() <{level = 10 : i32, message = "bqk,bkd->bqd"}> : () -> ()
    %cst_40 = arith.constant dense<0.000000e+00> : vector<2x16x64xf32>
    %123 = tpu.matmul %122, %110, %cst_40 {dimension_numbers = #tpu.dot_dimension_numbers<[2], [1], [1], [2], [0, 0, 0, 1, 1, 2], [0], [0]>} : vector<2x16x16xbf16>, vector<2x16x64xbf16>, vector<2x16x64xf32> -> vector<2x16x64xf32>
    "tpu.trace_stop"() : () -> ()
    %124 = vector.shape_cast %123 : vector<2x16x64xf32> to vector<32x64xf32>
    %c0_41 = arith.constant 0 : index
    %c256 = arith.constant 256 : index
    %125 = vector.load %arg19[%c0_41, %c256] : memref<32x512xf32, #tpu.memory_space<vmem>>, vector<32x64xf32>
    tpu.vector_store %arg19[%c0_41, %c256], %124 {strides = array<i32>} : memref<32x512xf32, #tpu.memory_space<vmem>>, vector<32x64xf32>,
    %126 = vector.extract_strided_slice %18 {offsets = [0, 320], sizes = [32, 64], strides = [1, 1]} : vector<32x512xbf16> to vector<32x64xbf16>
    %127 = vector.shape_cast %126 : vector<32x64xbf16> to vector<2x16x64xbf16>
    %128 = vector.extract_strided_slice %19 {offsets = [0, 320], sizes = [32, 64], strides = [1, 1]} : vector<32x512xbf16> to vector<32x64xbf16>
    %129 = vector.shape_cast %128 : vector<32x64xbf16> to vector<2x16x64xbf16>
    %130 = vector.extract_strided_slice %20 {offsets = [0, 320], sizes = [32, 64], strides = [1, 1]} : vector<32x512xbf16> to vector<32x64xbf16>
    %131 = vector.shape_cast %130 : vector<32x64xbf16> to vector<2x16x64xbf16>
    "tpu.trace_start"() <{level = 10 : i32, message = "bqd,bkd->bqk"}> : () -> ()
    %cst_42 = arith.constant dense<0.000000e+00> : vector<2x16x16xf32>
    %132 = tpu.matmul %127, %129, %cst_42 {dimension_numbers = #tpu.dot_dimension_numbers<[2], [2], [1], [1], [0, 0, 0, 1, 1, 1], [0], [0]>} : vector<2x16x64xbf16>, vector<2x16x64xbf16>, vector<2x16x16xf32> -> vector<2x16x16xf32>
    "tpu.trace_stop"() : () -> ()
    %cst_43 = arith.constant dense<0xFF800000> : vector<2x16xf32>
    %133 = vector.multi_reduction <maximumf>, %132, %cst_43 [2] : vector<2x16x16xf32> to vector<2x16xf32>
    %134 = vector.shape_cast %133 : vector<2x16xf32> to vector<2x16x1xf32>
    %135 = vector.broadcast %134 : vector<2x16x1xf32> to vector<2x16x16xf32>
    %136 = arith.subf %132, %135 : vector<2x16x16xf32>
    %137 = math.exp %136 : vector<2x16x16xf32>
    %cst_44 = arith.constant dense<0.000000e+00> : vector<2x16xf32>
    %138 = vector.multi_reduction <add>, %137, %cst_44 [2] : vector<2x16x16xf32> to vector<2x16xf32>
    %139 = vector.shape_cast %138 : vector<2x16xf32> to vector<2x16x1xf32>
    %140 = tpu.reciprocal %139 {approx = true} : vector<2x16x1xf32> -> vector<2x16x1xf32>
    %141 = vector.broadcast %140 : vector<2x16x1xf32> to vector<2x16x16xf32>
    %142 = arith.mulf %137, %141 : vector<2x16x16xf32>
    %143 = arith.truncf %142 : vector<2x16x16xf32> to vector<2x16x16xbf16>
    "tpu.trace_start"() <{level = 10 : i32, message = "bqk,bkd->bqd"}> : () -> ()
    %cst_45 = arith.constant dense<0.000000e+00> : vector<2x16x64xf32>
    %144 = tpu.matmul %143, %131, %cst_45 {dimension_numbers = #tpu.dot_dimension_numbers<[2], [1], [1], [2], [0, 0, 0, 1, 1, 2], [0], [0]>} : vector<2x16x16xbf16>, vector<2x16x64xbf16>, vector<2x16x64xf32> -> vector<2x16x64xf32>
    "tpu.trace_stop"() : () -> ()
    %145 = vector.shape_cast %144 : vector<2x16x64xf32> to vector<32x64xf32>
    %c0_46 = arith.constant 0 : index
    %c320 = arith.constant 320 : index
    %146 = vector.load %arg19[%c0_46, %c320] : memref<32x512xf32, #tpu.memory_space<vmem>>, vector<32x64xf32>
    tpu.vector_store %arg19[%c0_46, %c320], %145 {strides = array<i32>} : memref<32x512xf32, #tpu.memory_space<vmem>>, vector<32x64xf32>,
    %147 = vector.extract_strided_slice %18 {offsets = [0, 384], sizes = [32, 64], strides = [1, 1]} : vector<32x512xbf16> to vector<32x64xbf16>
    %148 = vector.shape_cast %147 : vector<32x64xbf16> to vector<2x16x64xbf16>
    %149 = vector.extract_strided_slice %19 {offsets = [0, 384], sizes = [32, 64], strides = [1, 1]} : vector<32x512xbf16> to vector<32x64xbf16>
    %150 = vector.shape_cast %149 : vector<32x64xbf16> to vector<2x16x64xbf16>
    %151 = vector.extract_strided_slice %20 {offsets = [0, 384], sizes = [32, 64], strides = [1, 1]} : vector<32x512xbf16> to vector<32x64xbf16>
    %152 = vector.shape_cast %151 : vector<32x64xbf16> to vector<2x16x64xbf16>
    "tpu.trace_start"() <{level = 10 : i32, message = "bqd,bkd->bqk"}> : () -> ()
    %cst_47 = arith.constant dense<0.000000e+00> : vector<2x16x16xf32>
    %153 = tpu.matmul %148, %150, %cst_47 {dimension_numbers = #tpu.dot_dimension_numbers<[2], [2], [1], [1], [0, 0, 0, 1, 1, 1], [0], [0]>} : vector<2x16x64xbf16>, vector<2x16x64xbf16>, vector<2x16x16xf32> -> vector<2x16x16xf32>
    "tpu.trace_stop"() : () -> ()
    %cst_48 = arith.constant dense<0xFF800000> : vector<2x16xf32>
    %154 = vector.multi_reduction <maximumf>, %153, %cst_48 [2] : vector<2x16x16xf32> to vector<2x16xf32>
    %155 = vector.shape_cast %154 : vector<2x16xf32> to vector<2x16x1xf32>
    %156 = vector.broadcast %155 : vector<2x16x1xf32> to vector<2x16x16xf32>
    %157 = arith.subf %153, %156 : vector<2x16x16xf32>
    %158 = math.exp %157 : vector<2x16x16xf32>
    %cst_49 = arith.constant dense<0.000000e+00> : vector<2x16xf32>
    %159 = vector.multi_reduction <add>, %158, %cst_49 [2] : vector<2x16x16xf32> to vector<2x16xf32>
    %160 = vector.shape_cast %159 : vector<2x16xf32> to vector<2x16x1xf32>
    %161 = tpu.reciprocal %160 {approx = true} : vector<2x16x1xf32> -> vector<2x16x1xf32>
    %162 = vector.broadcast %161 : vector<2x16x1xf32> to vector<2x16x16xf32>
    %163 = arith.mulf %158, %162 : vector<2x16x16xf32>
    %164 = arith.truncf %163 : vector<2x16x16xf32> to vector<2x16x16xbf16>
    "tpu.trace_start"() <{level = 10 : i32, message = "bqk,bkd->bqd"}> : () -> ()
    %cst_50 = arith.constant dense<0.000000e+00> : vector<2x16x64xf32>
    %165 = tpu.matmul %164, %152, %cst_50 {dimension_numbers = #tpu.dot_dimension_numbers<[2], [1], [1], [2], [0, 0, 0, 1, 1, 2], [0], [0]>} : vector<2x16x16xbf16>, vector<2x16x64xbf16>, vector<2x16x64xf32> -> vector<2x16x64xf32>
    "tpu.trace_stop"() : () -> ()
    %166 = vector.shape_cast %165 : vector<2x16x64xf32> to vector<32x64xf32>
    %c0_51 = arith.constant 0 : index
    %c384 = arith.constant 384 : index
    %167 = vector.load %arg19[%c0_51, %c384] : memref<32x512xf32, #tpu.memory_space<vmem>>, vector<32x64xf32>
    tpu.vector_store %arg19[%c0_51, %c384], %166 {strides = array<i32>} : memref<32x512xf32, #tpu.memory_space<vmem>>, vector<32x64xf32>,
    %168 = vector.extract_strided_slice %18 {offsets = [0, 448], sizes = [32, 64], strides = [1, 1]} : vector<32x512xbf16> to vector<32x64xbf16>
    %169 = vector.shape_cast %168 : vector<32x64xbf16> to vector<2x16x64xbf16>
    %170 = vector.extract_strided_slice %19 {offsets = [0, 448], sizes = [32, 64], strides = [1, 1]} : vector<32x512xbf16> to vector<32x64xbf16>
    %171 = vector.shape_cast %170 : vector<32x64xbf16> to vector<2x16x64xbf16>
    %172 = vector.extract_strided_slice %20 {offsets = [0, 448], sizes = [32, 64], strides = [1, 1]} : vector<32x512xbf16> to vector<32x64xbf16>
    %173 = vector.shape_cast %172 : vector<32x64xbf16> to vector<2x16x64xbf16>
    "tpu.trace_start"() <{level = 10 : i32, message = "bqd,bkd->bqk"}> : () -> ()
    %cst_52 = arith.constant dense<0.000000e+00> : vector<2x16x16xf32>
    %174 = tpu.matmul %169, %171, %cst_52 {dimension_numbers = #tpu.dot_dimension_numbers<[2], [2], [1], [1], [0, 0, 0, 1, 1, 1], [0], [0]>} : vector<2x16x64xbf16>, vector<2x16x64xbf16>, vector<2x16x16xf32> -> vector<2x16x16xf32>
    "tpu.trace_stop"() : () -> ()
    %cst_53 = arith.constant dense<0xFF800000> : vector<2x16xf32>
    %175 = vector.multi_reduction <maximumf>, %174, %cst_53 [2] : vector<2x16x16xf32> to vector<2x16xf32>
    %176 = vector.shape_cast %175 : vector<2x16xf32> to vector<2x16x1xf32>
    %177 = vector.broadcast %176 : vector<2x16x1xf32> to vector<2x16x16xf32>
    %178 = arith.subf %174, %177 : vector<2x16x16xf32>
    %179 = math.exp %178 : vector<2x16x16xf32>
    %cst_54 = arith.constant dense<0.000000e+00> : vector<2x16xf32>
    %180 = vector.multi_reduction <add>, %179, %cst_54 [2] : vector<2x16x16xf32> to vector<2x16xf32>
    %181 = vector.shape_cast %180 : vector<2x16xf32> to vector<2x16x1xf32>
    %182 = tpu.reciprocal %181 {approx = true} : vector<2x16x1xf32> -> vector<2x16x1xf32>
    %183 = vector.broadcast %182 : vector<2x16x1xf32> to vector<2x16x16xf32>
    %184 = arith.mulf %179, %183 : vector<2x16x16xf32>
    %185 = arith.truncf %184 : vector<2x16x16xf32> to vector<2x16x16xbf16>
    "tpu.trace_start"() <{level = 10 : i32, message = "bqk,bkd->bqd"}> : () -> ()
    %cst_55 = arith.constant dense<0.000000e+00> : vector<2x16x64xf32>
    %186 = tpu.matmul %185, %173, %cst_55 {dimension_numbers = #tpu.dot_dimension_numbers<[2], [1], [1], [2], [0, 0, 0, 1, 1, 2], [0], [0]>} : vector<2x16x16xbf16>, vector<2x16x64xbf16>, vector<2x16x64xf32> -> vector<2x16x64xf32>
    "tpu.trace_stop"() : () -> ()
    %187 = vector.shape_cast %186 : vector<2x16x64xf32> to vector<32x64xf32>
    %c0_56 = arith.constant 0 : index
    %c448 = arith.constant 448 : index
    %188 = vector.load %arg19[%c0_56, %c448] : memref<32x512xf32, #tpu.memory_space<vmem>>, vector<32x64xf32>
    tpu.vector_store %arg19[%c0_56, %c448], %187 {strides = array<i32>} : memref<32x512xf32, #tpu.memory_space<vmem>>, vector<32x64xf32>,
    %c0_57 = arith.constant 0 : index
    %c0_58 = arith.constant 0 : index
    %189 = vector.load %arg19[%c0_57, %c0_58] : memref<32x512xf32, #tpu.memory_space<vmem>>, vector<32x512xf32>
    %190 = arith.truncf %189 : vector<32x512xf32> to vector<32x512xbf16>
    %c0_59 = arith.constant 0 : index
    %c0_60 = arith.constant 0 : index
    %191 = vector.load %arg8[%c0_59, %c0_60] : memref<512x512xbf16, #tpu.memory_space<vmem>>, vector<512x512xbf16>
    %cst_61 = arith.constant dense<0.000000e+00> : vector<32x512xf32>
    %192 = tpu.matmul %190, %191, %cst_61 {dimension_numbers = #tpu.dot_dimension_numbers<[1], [0], [0], [1], [0, 0, 1, 1], [], []>} : vector<32x512xbf16>, vector<512x512xbf16>, vector<32x512xf32> -> vector<32x512xf32>
    %c0_62 = arith.constant 0 : index
    %c0_63 = arith.constant 0 : index
    %193 = vector.load %arg9[%c0_62, %c0_63] : memref<1x512xf32, #tpu.memory_space<vmem>>, vector<1x512xf32>
    %194 = vector.broadcast %193 : vector<1x512xf32> to vector<32x512xf32>
    %195 = arith.addf %192, %194 : vector<32x512xf32>
    %196 = arith.addf %1, %195 : vector<32x512xf32>
    %c0_64 = arith.constant 0 : index
    %c0_65 = arith.constant 0 : index
    %197 = vector.load %arg10[%c0_64, %c0_65] : memref<1x512xf32, #tpu.memory_space<vmem>>, vector<1x512xf32>
    %c0_66 = arith.constant 0 : index
    %c0_67 = arith.constant 0 : index
    %198 = vector.load %arg11[%c0_66, %c0_67] : memref<1x512xf32, #tpu.memory_space<vmem>>, vector<1x512xf32>
    %cst_68 = arith.constant dense<0.000000e+00> : vector<32xf32>
    %199 = vector.multi_reduction <add>, %196, %cst_68 [1] : vector<32x512xf32> to vector<32xf32>
    %200 = vector.shape_cast %199 : vector<32xf32> to vector<32x1xf32>
    %cst_69 = arith.constant 5.120000e+02 : f32
    %201 = vector.broadcast %cst_69 : f32 to vector<32x1xf32>
    %202 = arith.divf %200, %201 : vector<32x1xf32>
    %203 = vector.broadcast %202 : vector<32x1xf32> to vector<32x512xf32>
    %204 = arith.subf %196, %203 : vector<32x512xf32>
    %205 = arith.mulf %204, %204 : vector<32x512xf32>
    %cst_70 = arith.constant dense<0.000000e+00> : vector<32xf32>
    %206 = vector.multi_reduction <add>, %205, %cst_70 [1] : vector<32x512xf32> to vector<32xf32>
    %207 = vector.shape_cast %206 : vector<32xf32> to vector<32x1xf32>
    %cst_71 = arith.constant 5.120000e+02 : f32
    %208 = vector.broadcast %cst_71 : f32 to vector<32x1xf32>
    %209 = arith.divf %207, %208 : vector<32x1xf32>
    %210 = vector.broadcast %202 : vector<32x1xf32> to vector<32x512xf32>
    %211 = arith.subf %196, %210 : vector<32x512xf32>
    %cst_72 = arith.constant 9.99999974E-6 : f32
    %212 = vector.broadcast %cst_72 : f32 to vector<32x1xf32>
    %213 = arith.addf %209, %212 : vector<32x1xf32>
    %214 = math.rsqrt %213 : vector<32x1xf32>
    %215 = vector.broadcast %214 : vector<32x1xf32> to vector<32x512xf32>
    %216 = arith.mulf %211, %215 : vector<32x512xf32>
    %217 = vector.broadcast %197 : vector<1x512xf32> to vector<32x512xf32>
    %218 = arith.mulf %216, %217 : vector<32x512xf32>
    %219 = vector.broadcast %198 : vector<1x512xf32> to vector<32x512xf32>
    %220 = arith.addf %218, %219 : vector<32x512xf32>
    %221 = arith.truncf %220 : vector<32x512xf32> to vector<32x512xbf16>
    %c0_73 = arith.constant 0 : index
    %c0_74 = arith.constant 0 : index
    %222 = vector.load %arg12[%c0_73, %c0_74] : memref<512x2048xbf16, #tpu.memory_space<vmem>>, vector<512x2048xbf16>
    %cst_75 = arith.constant dense<0.000000e+00> : vector<32x2048xf32>
    %223 = tpu.matmul %221, %222, %cst_75 {dimension_numbers = #tpu.dot_dimension_numbers<[1], [0], [0], [1], [0, 0, 1, 1], [], []>} : vector<32x512xbf16>, vector<512x2048xbf16>, vector<32x2048xf32> -> vector<32x2048xf32>
    %c0_76 = arith.constant 0 : index
    %c0_77 = arith.constant 0 : index
    %224 = vector.load %arg13[%c0_76, %c0_77] : memref<1x2048xf32, #tpu.memory_space<vmem>>, vector<1x2048xf32>
    %225 = vector.broadcast %224 : vector<1x2048xf32> to vector<32x2048xf32>
    %226 = arith.addf %223, %225 : vector<32x2048xf32>
    %cst_78 = arith.constant 0.000000e+00 : f32
    %227 = vector.broadcast %cst_78 : f32 to vector<32x2048xf32>
    %228 = arith.maximumf %226, %227 : vector<32x2048xf32>
    %229 = arith.truncf %228 : vector<32x2048xf32> to vector<32x2048xbf16>
    %c0_79 = arith.constant 0 : index
    %c0_80 = arith.constant 0 : index
    %230 = vector.load %arg14[%c0_79, %c0_80] : memref<2048x512xbf16, #tpu.memory_space<vmem>>, vector<2048x512xbf16>
    %cst_81 = arith.constant dense<0.000000e+00> : vector<32x512xf32>
    %231 = tpu.matmul %229, %230, %cst_81 {dimension_numbers = #tpu.dot_dimension_numbers<[1], [0], [0], [1], [0, 0, 1, 1], [], []>} : vector<32x2048xbf16>, vector<2048x512xbf16>, vector<32x512xf32> -> vector<32x512xf32>
    %c0_82 = arith.constant 0 : index
    %c0_83 = arith.constant 0 : index
    %232 = vector.load %arg15[%c0_82, %c0_83] : memref<1x512xf32, #tpu.memory_space<vmem>>, vector<1x512xf32>
    %233 = vector.broadcast %232 : vector<1x512xf32> to vector<32x512xf32>
    %234 = arith.addf %231, %233 : vector<32x512xf32>
    %235 = arith.addf %220, %234 : vector<32x512xf32>
    %c0_84 = arith.constant 0 : index
    %c0_85 = arith.constant 0 : index
    %236 = vector.load %arg16[%c0_84, %c0_85] : memref<1x512xf32, #tpu.memory_space<vmem>>, vector<1x512xf32>
    %c0_86 = arith.constant 0 : index
    %c0_87 = arith.constant 0 : index
    %237 = vector.load %arg17[%c0_86, %c0_87] : memref<1x512xf32, #tpu.memory_space<vmem>>, vector<1x512xf32>
    %cst_88 = arith.constant dense<0.000000e+00> : vector<32xf32>
    %238 = vector.multi_reduction <add>, %235, %cst_88 [1] : vector<32x512xf32> to vector<32xf32>
    %239 = vector.shape_cast %238 : vector<32xf32> to vector<32x1xf32>
    %cst_89 = arith.constant 5.120000e+02 : f32
    %240 = vector.broadcast %cst_89 : f32 to vector<32x1xf32>
    %241 = arith.divf %239, %240 : vector<32x1xf32>
    %242 = vector.broadcast %241 : vector<32x1xf32> to vector<32x512xf32>
    %243 = arith.subf %235, %242 : vector<32x512xf32>
    %244 = arith.mulf %243, %243 : vector<32x512xf32>
    %cst_90 = arith.constant dense<0.000000e+00> : vector<32xf32>
    %245 = vector.multi_reduction <add>, %244, %cst_90 [1] : vector<32x512xf32> to vector<32xf32>
    %246 = vector.shape_cast %245 : vector<32xf32> to vector<32x1xf32>
    %cst_91 = arith.constant 5.120000e+02 : f32
    %247 = vector.broadcast %cst_91 : f32 to vector<32x1xf32>
    %248 = arith.divf %246, %247 : vector<32x1xf32>
    %249 = vector.broadcast %241 : vector<32x1xf32> to vector<32x512xf32>
    %250 = arith.subf %235, %249 : vector<32x512xf32>
    %cst_92 = arith.constant 9.99999974E-6 : f32
    %251 = vector.broadcast %cst_92 : f32 to vector<32x1xf32>
    %252 = arith.addf %248, %251 : vector<32x1xf32>
    %253 = math.rsqrt %252 : vector<32x1xf32>
    %254 = vector.broadcast %253 : vector<32x1xf32> to vector<32x512xf32>
    %255 = arith.mulf %250, %254 : vector<32x512xf32>
    %256 = vector.broadcast %236 : vector<1x512xf32> to vector<32x512xf32>
    %257 = arith.mulf %255, %256 : vector<32x512xf32>
    %258 = vector.broadcast %237 : vector<1x512xf32> to vector<32x512xf32>
    %259 = arith.addf %257, %258 : vector<32x512xf32>
    %260 = vector.shape_cast %259 : vector<32x512xf32> to vector<2x16x512xf32>
    %c0_93 = arith.constant 0 : index
    %c0_94 = arith.constant 0 : index
    %c0_95 = arith.constant 0 : index
    %261 = vector.load %arg18[%c0_93, %c0_94, %c0_95] : memref<2x16x512xf32, #tpu.memory_space<vmem>>, vector<2x16x512xf32>
    tpu.vector_store %arg18[%c0_93, %c0_94, %c0_95], %260 {strides = array<i32>} : memref<2x16x512xf32, #tpu.memory_space<vmem>>, vector<2x16x512xf32>,
    return
  }
  func.func @transform_0(%arg0: i32) -> (i32, i32, i32) {
    %c0_i32 = arith.constant 0 : i32
    %c0_i32_0 = arith.constant 0 : i32
    %c0_i32_1 = arith.constant 0 : i32
    return %arg0, %c0_i32, %c0_i32_0 : i32, i32, i32
  }
  func.func @transform_1(%arg0: i32) -> (i32, i32) {
    %c0_i32 = arith.constant 0 : i32
    %c0_i32_0 = arith.constant 0 : i32
    %c0_i32_1 = arith.constant 0 : i32
    return %c0_i32, %c0_i32_0 : i32, i32
  }
  func.func @transform_2(%arg0: i32) -> (i32, i32) {
    %c0_i32 = arith.constant 0 : i32
    %c0_i32_0 = arith.constant 0 : i32
    %c0_i32_1 = arith.constant 0 : i32
    return %c0_i32, %c0_i32_0 : i32, i32
  }
  func.func @transform_3(%arg0: i32) -> (i32, i32) {
    %c0_i32 = arith.constant 0 : i32
    %c0_i32_0 = arith.constant 0 : i32
    %c0_i32_1 = arith.constant 0 : i32
    return %c0_i32, %c0_i32_0 : i32, i32
  }
  func.func @transform_4(%arg0: i32) -> (i32, i32) {
    %c0_i32 = arith.constant 0 : i32
    %c0_i32_0 = arith.constant 0 : i32
    %c0_i32_1 = arith.constant 0 : i32
    return %c0_i32, %c0_i32_0 : i32, i32
  }
  func.func @transform_5(%arg0: i32) -> (i32, i32) {
    %c0_i32 = arith.constant 0 : i32
    %c0_i32_0 = arith.constant 0 : i32
    %c0_i32_1 = arith.constant 0 : i32
    return %c0_i32, %c0_i32_0 : i32, i32
  }
  func.func @transform_6(%arg0: i32) -> (i32, i32) {
    %c0_i32 = arith.constant 0 : i32
    %c0_i32_0 = arith.constant 0 : i32
    %c0_i32_1 = arith.constant 0 : i32
    return %c0_i32, %c0_i32_0 : i32, i32
  }
  func.func @transform_7(%arg0: i32) -> (i32, i32) {
    %c0_i32 = arith.constant 0 : i32
    %c0_i32_0 = arith.constant 0 : i32
    %c0_i32_1 = arith.constant 0 : i32
    return %c0_i32, %c0_i32_0 : i32, i32
  }
  func.func @transform_8(%arg0: i32) -> (i32, i32) {
    %c0_i32 = arith.constant 0 : i32
    %c0_i32_0 = arith.constant 0 : i32
    %c0_i32_1 = arith.constant 0 : i32
    return %c0_i32, %c0_i32_0 : i32, i32
  }
  func.func @transform_9(%arg0: i32) -> (i32, i32) {
    %c0_i32 = arith.constant 0 : i32
    %c0_i32_0 = arith.constant 0 : i32
    %c0_i32_1 = arith.constant 0 : i32
    return %c0_i32, %c0_i32_0 : i32, i32
  }
  func.func @transform_10(%arg0: i32) -> (i32, i32) {
    %c0_i32 = arith.constant 0 : i32
    %c0_i32_0 = arith.constant 0 : i32
    %c0_i32_1 = arith.constant 0 : i32
    return %c0_i32, %c0_i32_0 : i32, i32
  }
  func.func @transform_11(%arg0: i32) -> (i32, i32) {
    %c0_i32 = arith.constant 0 : i32
    %c0_i32_0 = arith.constant 0 : i32
    %c0_i32_1 = arith.constant 0 : i32
    return %c0_i32, %c0_i32_0 : i32, i32
  }
  func.func @transform_12(%arg0: i32) -> (i32, i32) {
    %c0_i32 = arith.constant 0 : i32
    %c0_i32_0 = arith.constant 0 : i32
    %c0_i32_1 = arith.constant 0 : i32
    return %c0_i32, %c0_i32_0 : i32, i32
  }
  func.func @transform_13(%arg0: i32) -> (i32, i32) {
    %c0_i32 = arith.constant 0 : i32
    %c0_i32_0 = arith.constant 0 : i32
    %c0_i32_1 = arith.constant 0 : i32
    return %c0_i32, %c0_i32_0 : i32, i32
  }
  func.func @transform_14(%arg0: i32) -> (i32, i32) {
    %c0_i32 = arith.constant 0 : i32
    %c0_i32_0 = arith.constant 0 : i32
    %c0_i32_1 = arith.constant 0 : i32
    return %c0_i32, %c0_i32_0 : i32, i32
  }
  func.func @transform_15(%arg0: i32) -> (i32, i32) {
    %c0_i32 = arith.constant 0 : i32
    %c0_i32_0 = arith.constant 0 : i32
    %c0_i32_1 = arith.constant 0 : i32
    return %c0_i32, %c0_i32_0 : i32, i32
  }
  func.func @transform_16(%arg0: i32) -> (i32, i32) {
    %c0_i32 = arith.constant 0 : i32
    %c0_i32_0 = arith.constant 0 : i32
    %c0_i32_1 = arith.constant 0 : i32
    return %c0_i32, %c0_i32_0 : i32, i32
  }
  func.func @transform_17(%arg0: i32) -> (i32, i32, i32) {
    %c0_i32 = arith.constant 0 : i32
    %c0_i32_0 = arith.constant 0 : i32
    %c0_i32_1 = arith.constant 0 : i32
    return %arg0, %c0_i32, %c0_i32_0 : i32, i32, i32
  }
}

</mosaic_0001>

<bundles_post_ra>
// kernel: tpu_custom_call.1
= control target key start
LH: loop header
LB: loop body
LE: loop exit
PB: predicated region body
PF: predicated region fallthrough
CT: control target
= control target key end

     0   :  { %s20831_s0 = inlined_call_operand.hbm [shape: f32[2,16,512], index: 0, kind: input, shape index: {}]   ;;  %s20832_s1 = inlined_call_operand.hbm [shape: bf16[512,512], index: 1, kind: input, shape index: {}]   ;;  %s20833_s2 = inlined_call_operand.hbm [shape: bf16[512,512], index: 2, kind: input, shape index: {}]   ;;  %s20834_s3 = inlined_call_operand.hbm [shape: bf16[512,512], index: 3, kind: input, shape index: {}]   ;;  %s20835_s4 = inlined_call_operand.hbm [shape: f32[1,512], index: 4, kind: input, shape index: {}]   ;;  %s20836_s5 = inlined_call_operand.hbm [shape: f32[1,512], index: 5, kind: input, shape index: {}]   ;;  %s20837_s6 = inlined_call_operand.hbm [shape: f32[1,512], index: 6, kind: input, shape index: {}]   ;;  %s20838_s7 = inlined_call_operand.hbm [shape: bf16[512,512], index: 7, kind: input, shape index: {}]   ;;  %s20839_s8 = inlined_call_operand.hbm [shape: f32[1,512], index: 8, kind: input, shape index: {}]   ;;  %s20840_s9 = inlined_call_operand.hbm [shape: f32[1,512], index: 9, kind: input, shape index: {}]   ;;  %s20841_s10 = inlined_call_operand.hbm [shape: f32[1,512], index: 10, kind: input, shape index: {}]   ;;  %s20842_s11 = inlined_call_operand.hbm [shape: bf16[512,2048], index: 11, kind: input, shape index: {}]   ;;  %s20843_s12 = inlined_call_operand.hbm [shape: f32[1,2048], index: 12, kind: input, shape index: {}]   ;;  %s20844_s13 = inlined_call_operand.hbm [shape: bf16[2048,512], index: 13, kind: input, shape index: {}]   ;;  %s20845_s14 = inlined_call_operand.hbm [shape: f32[1,512], index: 14, kind: input, shape index: {}]   ;;  %s20846_s15 = inlined_call_operand.hbm [shape: f32[1,512], index: 15, kind: input, shape index: {}]   ;;  %s20847_s16 = inlined_call_operand.hbm [shape: f32[1,512], index: 16, kind: input, shape index: {}]   ;;  %s20848_s17 = inlined_call_operand.hbm [shape: f32[2,16,512], index: 17, kind: output, shape index: {}]  }
   0x1   :  { %20863 = sst [smem:[#allocation47_spill]] %s20831_s0 }
   0x2   :  { %20864 = sst [smem:[#allocation48_spill]] %s20832_s1 }
   0x3   :  { %20865 = sst [smem:[#allocation49_spill]] %s20847_s16 }
   0x4   :  { %20866 = sst [smem:[#allocation50_spill]] %s20848_s17 }
   0x5   :  { %22 = vsyncpa [#allocation4], 0 }
   0x6   :  { %23 = vsyncpa [#allocation7], 0 }
   0x7   :  { %24 = vsyncpa [#allocation10], 0 }
   0x8   :  { %25 = vsyncpa [#allocation13], 0 }
   0x9   :  { %26 = vsyncpa [#allocation16], 0 }
   0xa   :  { %27 = vsyncpa [#allocation19], 0 }
   0xb   :  { %28 = vsyncpa [#allocation22], 0 }
   0xc   :  { %29 = vsyncpa [#allocation25], 0 }
   0xd   :  { %30 = vsyncpa [#allocation28], 0 }
   0xe   :  { %31 = vsyncpa [#allocation5], 0  ;;  %s19181_s24 = smov [#allocation6]   ;;  %s20867_s28 = sld [smem:[#allocation48_spill]] }
   0xf   :  { %s49_s25 = sshll.u32 %s19181_s24, 4  ;;  %s50_s25 = int_to_ptr.vmem [resolvable:$true] %s49_s25 }
  0x14   :  { %s18765_s29 = scalar_lea.hbm %s20867_s28, 16384 }
  0x15   :  { %p18766_p0 = scmp.ne.s32.totalorder %s20867_s28, %s18765_s29  ;;  %p18769_p1 = scmp.lt.u32.totalorder %s18765_s29, %s20867_s28 }
  0x17   :  { %p18771_p2 = pnand %p18769_p1, %p18766_p0 }
  0x19   :  { %18774 = shalt.err (!%p18771_p2)
}
  0x1a   :  { %s18775_s1 = scalar_lea.vmem %s50_s25, 16384  ;;  %p18780_p4 = scmp.lt.s32.totalorder %s50_s25, %s50_s25 }
  0x1b   :  { %p18776_p3 = scmp.ne.s32.totalorder %s50_s25, %s18775_s1  ;;  %p18781_p5 = scmp.lt.s32.totalorder %s18775_s1, %s18775_s1 }
  0x1d   :  { %p18782_p6 = por %p18781_p5, %p18780_p4 }
  0x1f   :  { %p18783_p7 = pnand %p18782_p6, %p18776_p3 }
  0x21   :  { %18786 = shalt.err (!%p18783_p7)
}
  0x22   :  { %s19182_s20 = smov 256   ;;  %s19183_s21 = smov 16  }
  0x23   :  { %55 = dma.hbm_to_vmem [thread:$0]  %s20867_s28, 16384, %s50_s25, [#allocation7], %s19182_s20, %s19182_s20, %s19183_s21  }
  0x24   :  { %s19184_s24 = smov [#allocation9]   ;;  %s19185_s27 = smov [#allocation12]  }
  0x25   :  { %s73_s26 = sshll.u32 %s19184_s24, 4  ;;  %s96_s29 = sshll.u32 %s19185_s27, 4  ;;  %s74_s26 = int_to_ptr.vmem [resolvable:$true] %s73_s26  ;;  %s97_s29 = int_to_ptr.vmem [resolvable:$true] %s96_s29 }
  0x26   :  { %s18787_s18 = scalar_lea.hbm %s20834_s3, 16384 }
  0x27   :  { %p18788_p8 = scmp.ne.s32.totalorder %s20834_s3, %s18787_s18  ;;  %p18791_p9 = scmp.lt.u32.totalorder %s18787_s18, %s20834_s3 }
  0x29   :  { %p18793_p10 = pnand %p18791_p9, %p18788_p8 }
  0x2b   :  { %18796 = shalt.err (!%p18793_p10)
}
  0x2c   :  { %s18797_s25 = scalar_lea.vmem %s74_s26, 16384  ;;  %p18802_p12 = scmp.lt.s32.totalorder %s74_s26, %s74_s26 }
  0x2d   :  { %p18798_p11 = scmp.ne.s32.totalorder %s74_s26, %s18797_s25  ;;  %p18803_p13 = scmp.lt.s32.totalorder %s18797_s25, %s18797_s25 }
  0x2f   :  { %p18804_p0 = por %p18803_p13, %p18802_p12 }
  0x31   :  { %p18805_p1 = pnand %p18804_p0, %p18798_p11 }
  0x33   :  { %18808 = shalt.err (!%p18805_p1)
}
  0x34   :  { %79 = dma.hbm_to_vmem [thread:$0]  %s20834_s3, 16384, %s74_s26, [#allocation10], %s19182_s20, %s19182_s20, %s19183_s21  }
  0x35   :  { %s18809_s17 = scalar_lea.hbm %s20836_s5, 64 }
  0x36   :  { %p18810_p2 = scmp.ne.s32.totalorder %s20836_s5, %s18809_s17  ;;  %p18813_p3 = scmp.lt.u32.totalorder %s18809_s17, %s20836_s5 }
  0x38   :  { %p18815_p4 = pnand %p18813_p3, %p18810_p2 }
  0x3a   :  { %18818 = shalt.err (!%p18815_p4)
}
  0x3b   :  { %s18819_s18 = scalar_lea.vmem %s97_s29, 64  ;;  %p18824_p6 = scmp.lt.s32.totalorder %s97_s29, %s97_s29 }
  0x3c   :  { %p18820_p5 = scmp.ne.s32.totalorder %s97_s29, %s18819_s18  ;;  %p18825_p7 = scmp.lt.s32.totalorder %s18819_s18, %s18819_s18 }
  0x3e   :  { %p18826_p8 = por %p18825_p7, %p18824_p6 }
  0x40   :  { %p18827_p9 = pnand %p18826_p8, %p18820_p5 }
  0x42   :  { %18830 = shalt.err (!%p18827_p9)
}
  0x43   :  { %99 = dma.hbm_to_vmem [thread:$0]  %s20836_s5, 64, %s97_s29, [#allocation13]  }
  0x44   :  { %s19186_s19 = smov [#allocation15]   ;;  %s19187_s25 = smov [#allocation18]  }
  0x45   :  { %s115_s1 = sshll.u32 %s19186_s19, 4  ;;  %s138_s28 = sshll.u32 %s19187_s25, 4  ;;  %s116_s1 = int_to_ptr.vmem [resolvable:$true] %s115_s1  ;;  %s139_s28 = int_to_ptr.vmem [resolvable:$true] %s138_s28 }
  0x46   :  { %s18831_s16 = scalar_lea.hbm %s20838_s7, 16384 }
  0x47   :  { %p18832_p10 = scmp.ne.s32.totalorder %s20838_s7, %s18831_s16  ;;  %p18835_p11 = scmp.lt.u32.totalorder %s18831_s16, %s20838_s7 }
  0x49   :  { %p18837_p12 = pnand %p18835_p11, %p18832_p10 }
  0x4b   :  { %18840 = shalt.err (!%p18837_p12)
}
  0x4c   :  { %s18841_s5 = scalar_lea.vmem %s116_s1, 16384  ;;  %p18846_p0 = scmp.lt.s32.totalorder %s116_s1, %s116_s1 }
  0x4d   :  { %p18842_p13 = scmp.ne.s32.totalorder %s116_s1, %s18841_s5  ;;  %p18847_p1 = scmp.lt.s32.totalorder %s18841_s5, %s18841_s5 }
  0x4f   :  { %p18848_p2 = por %p18847_p1, %p18846_p0 }
  0x51   :  { %p18849_p3 = pnand %p18848_p2, %p18842_p13 }
  0x53   :  { %18852 = shalt.err (!%p18849_p3)
}
  0x54   :  { %121 = dma.hbm_to_vmem [thread:$0]  %s20838_s7, 16384, %s116_s1, [#allocation16], %s19182_s20, %s19182_s20, %s19183_s21  }
  0x55   :  { %s18853_s26 = scalar_lea.hbm %s20840_s9, 64 }
  0x56   :  { %p18854_p4 = scmp.ne.s32.totalorder %s20840_s9, %s18853_s26  ;;  %p18857_p5 = scmp.lt.u32.totalorder %s18853_s26, %s20840_s9 }
  0x58   :  { %p18859_p6 = pnand %p18857_p5, %p18854_p4 }
  0x5a   :  { %18862 = shalt.err (!%p18859_p6)
}
  0x5b   :  { %s18863_s16 = scalar_lea.vmem %s139_s28, 64  ;;  %p18868_p8 = scmp.lt.s32.totalorder %s139_s28, %s139_s28 }
  0x5c   :  { %p18864_p7 = scmp.ne.s32.totalorder %s139_s28, %s18863_s16  ;;  %p18869_p9 = scmp.lt.s32.totalorder %s18863_s16, %s18863_s16 }
  0x5e   :  { %p18870_p10 = por %p18869_p9, %p18868_p8 }
  0x60   :  { %p18871_p11 = pnand %p18870_p10, %p18864_p7 }
  0x62   :  { %18874 = shalt.err (!%p18871_p11)
}
  0x63   :  { %141 = dma.hbm_to_vmem [thread:$0]  %s20840_s9, 64, %s139_s28, [#allocation19]  }
  0x64   :  { %s19188_s17 = smov [#allocation21]   ;;  %s18875_s5 = scalar_lea.hbm %s20842_s11, 65536 }
  0x65   :  { %s157_s24 = sshll.u32 %s19188_s17, 4  ;;  %p18876_p12 = scmp.ne.s32.totalorder %s20842_s11, %s18875_s5  ;;  %s158_s24 = int_to_ptr.vmem [resolvable:$true] %s157_s24 }
  0x66   :  { %p18879_p13 = scmp.lt.u32.totalorder %s18875_s5, %s20842_s11 }
  0x68   :  { %p18881_p0 = pnand %p18879_p13, %p18876_p12 }
  0x6a   :  { %18884 = shalt.err (!%p18881_p0)
}
  0x6b   :  { %s18885_s26 = scalar_lea.vmem %s158_s24, 65536  ;;  %p18890_p2 = scmp.lt.s32.totalorder %s158_s24, %s158_s24 }
  0x6c   :  { %p18886_p1 = scmp.ne.s32.totalorder %s158_s24, %s18885_s26  ;;  %p18891_p3 = scmp.lt.s32.totalorder %s18885_s26, %s18885_s26 }
  0x6e   :  { %p18892_p4 = por %p18891_p3, %p18890_p2 }
  0x70   :  { %p18893_p5 = pnand %p18892_p4, %p18886_p1 }
  0x72   :  { %18896 = shalt.err (!%p18893_p5)
}
  0x73   :  { %s19189_s9 = smov 1024   ;;  %s19190_s28 = smov 64  }
  0x74   :  { %163 = dma.hbm_to_vmem [thread:$0]  %s20842_s11, 65536, %s158_s24, [#allocation22], %s19189_s9, %s19189_s9, %s19190_s28  }
  0x75   :  { %s19191_s22 = smov [#allocation24]   ;;  %s19192_s16 = smov [#allocation27]  }
  0x76   :  { %s179_s23 = sshll.u32 %s19191_s22, 4  ;;  %s202_s7 = sshll.u32 %s19192_s16, 4  ;;  %s180_s23 = int_to_ptr.vmem [resolvable:$true] %s179_s23  ;;  %s203_s7 = int_to_ptr.vmem [resolvable:$true] %s202_s7 }
  0x77   :  { %s18897_s27 = scalar_lea.hbm %s20844_s13, 65536 }
  0x78   :  { %p18898_p6 = scmp.ne.s32.totalorder %s20844_s13, %s18897_s27  ;;  %p18901_p7 = scmp.lt.u32.totalorder %s18897_s27, %s20844_s13 }
  0x7a   :  { %p18903_p8 = pnand %p18901_p7, %p18898_p6 }
  0x7c   :  { %18906 = shalt.err (!%p18903_p8)
}
  0x7d   :  { %s18907_s11 = scalar_lea.vmem %s180_s23, 65536  ;;  %p18912_p10 = scmp.lt.s32.totalorder %s180_s23, %s180_s23 }
  0x7e   :  { %p18908_p9 = scmp.ne.s32.totalorder %s180_s23, %s18907_s11  ;;  %p18913_p11 = scmp.lt.s32.totalorder %s18907_s11, %s18907_s11 }
  0x80   :  { %p18914_p12 = por %p18913_p11, %p18912_p10 }
  0x82   :  { %p18915_p13 = pnand %p18914_p12, %p18908_p9 }
  0x84   :  { %18918 = shalt.err (!%p18915_p13)
}
  0x85   :  { %185 = dma.hbm_to_vmem [thread:$0]  %s20844_s13, 65536, %s180_s23, [#allocation25], %s19182_s20, %s19182_s20, %s19183_s21  }
  0x86   :  { %s18919_s9 = scalar_lea.hbm %s20846_s15, 64 }
  0x87   :  { %p18920_p0 = scmp.ne.s32.totalorder %s20846_s15, %s18919_s9  ;;  %p18923_p1 = scmp.lt.u32.totalorder %s18919_s9, %s20846_s15 }
  0x89   :  { %p18925_p2 = pnand %p18923_p1, %p18920_p0 }
  0x8b   :  { %18928 = shalt.err (!%p18925_p2)
}
  0x8c   :  { %s18929_s1 = scalar_lea.vmem %s203_s7, 64  ;;  %p18934_p4 = scmp.lt.s32.totalorder %s203_s7, %s203_s7 }
  0x8d   :  { %p18930_p3 = scmp.ne.s32.totalorder %s203_s7, %s18929_s1  ;;  %p18935_p5 = scmp.lt.s32.totalorder %s18929_s1, %s18929_s1 }
  0x8f   :  { %p18936_p6 = por %p18935_p5, %p18934_p4 }
  0x91   :  { %p18937_p7 = pnand %p18936_p6, %p18930_p3 }
  0x93   :  { %18940 = shalt.err (!%p18937_p7)
}
  0x94   :  { %205 = dma.hbm_to_vmem [thread:$0]  %s20846_s15, 64, %s203_s7, [#allocation28]  }
  0x95   :  { %s19193_s17 = smov [#allocation3]   ;;  %s20868_s29 = sld [smem:[#allocation47_spill]] }
  0x96   :  { %s37_s27 = sshll.u32 %s19193_s17, 4  ;;  %s38_s27 = int_to_ptr.vmem [resolvable:$true] %s37_s27 }
  0x9b   :  { %s18941_s30 = scalar_lea.hbm %s20868_s29, 2048 }
  0x9c   :  { %p18942_p8 = scmp.ne.s32.totalorder %s20868_s29, %s18941_s30  ;;  %p18945_p9 = scmp.lt.u32.totalorder %s18941_s30, %s20868_s29 }
  0x9e   :  { %p18947_p10 = pnand %p18945_p9, %p18942_p8 }
  0xa0   :  { %18950 = shalt.err (!%p18947_p10)
}
  0xa1   :  { %s18951_s26 = scalar_lea.vmem %s38_s27, 2048  ;;  %p18956_p12 = scmp.lt.s32.totalorder %s38_s27, %s38_s27 }
  0xa2   :  { %p18952_p11 = scmp.ne.s32.totalorder %s38_s27, %s18951_s26  ;;  %p18957_p13 = scmp.lt.s32.totalorder %s18951_s26, %s18951_s26 }
  0xa4   :  { %p18958_p0 = por %p18957_p13, %p18956_p12 }
  0xa6   :  { %p18959_p1 = pnand %p18958_p0, %p18952_p11 }
  0xa8   :  { %18962 = shalt.err (!%p18959_p1)
}
  0xa9   :  { %s19194_s15 = smov 512   ;;  %s19195_s7 = smov 32  }
  0xaa   :  { %43 = dma.hbm_to_vmem [thread:$0]  %s20868_s29, 2048, %s38_s27, [#allocation4], %s19194_s15, %s19194_s15, %s19195_s7  }
  0xab   :  { %s19196_s25 = smov [#allocation8]   ;;  %s19197_s16 = smov [#allocation11]  }
  0xac   :  { %s61_s22 = sshll.u32 %s19196_s25, 4  ;;  %s86_s1 = sshll.u32 %s19197_s16, 4  ;;  %s62_s22 = int_to_ptr.vmem [resolvable:$true] %s61_s22  ;;  %s87_s1 = int_to_ptr.vmem [resolvable:$true] %s86_s1 }
  0xad   :  { %s18963_s17 = scalar_lea.hbm %s20833_s2, 16384 }
  0xae   :  { %p18964_p2 = scmp.ne.s32.totalorder %s20833_s2, %s18963_s17  ;;  %p18967_p3 = scmp.lt.u32.totalorder %s18963_s17, %s20833_s2 }
  0xb0   :  { %p18969_p4 = pnand %p18967_p3, %p18964_p2 }
  0xb2   :  { %18972 = shalt.err (!%p18969_p4)
}
  0xb3   :  { %s18973_s27 = scalar_lea.vmem %s62_s22, 16384  ;;  %p18978_p6 = scmp.lt.s32.totalorder %s62_s22, %s62_s22 }
  0xb4   :  { %p18974_p5 = scmp.ne.s32.totalorder %s62_s22, %s18973_s27  ;;  %p18979_p7 = scmp.lt.s32.totalorder %s18973_s27, %s18973_s27 }
  0xb6   :  { %p18980_p8 = por %p18979_p7, %p18978_p6 }
  0xb8   :  { %p18981_p9 = pnand %p18980_p8, %p18974_p5 }
  0xba   :  { %18984 = shalt.err (!%p18981_p9)
}
  0xbb   :  { %67 = dma.hbm_to_vmem [thread:$0]  %s20833_s2, 16384, %s62_s22, [#allocation7], %s19182_s20, %s19182_s20, %s19183_s21  }
  0xbc   :  { %s18985_s26 = scalar_lea.hbm %s20835_s4, 64 }
  0xbd   :  { %p18986_p10 = scmp.ne.s32.totalorder %s20835_s4, %s18985_s26  ;;  %p18989_p11 = scmp.lt.u32.totalorder %s18985_s26, %s20835_s4 }
  0xbf   :  { %p18991_p12 = pnand %p18989_p11, %p18986_p10 }
  0xc1   :  { %18994 = shalt.err (!%p18991_p12)
}
  0xc2   :  { %s18995_s13 = scalar_lea.vmem %s87_s1, 64  ;;  %p19000_p0 = scmp.lt.s32.totalorder %s87_s1, %s87_s1 }
  0xc3   :  { %p18996_p13 = scmp.ne.s32.totalorder %s87_s1, %s18995_s13  ;;  %p19001_p1 = scmp.lt.s32.totalorder %s18995_s13, %s18995_s13 }
  0xc5   :  { %p19002_p2 = por %p19001_p1, %p19000_p0 }
  0xc7   :  { %p19003_p3 = pnand %p19002_p2, %p18996_p13 }
  0xc9   :  { %19006 = shalt.err (!%p19003_p3)
}
  0xca   :  { %89 = dma.hbm_to_vmem [thread:$0]  %s20835_s4, 64, %s87_s1, [#allocation10]  }
  0xcb   :  { %s19198_s21 = smov [#allocation14]   ;;  %s19199_s23 = smov [#allocation17]  }
  0xcc   :  { %s106_s22 = sshll.u32 %s19198_s21, 4  ;;  %s128_s17 = sshll.u32 %s19199_s23, 4  ;;  %s107_s22 = int_to_ptr.vmem [resolvable:$true] %s106_s22  ;;  %s129_s17 = int_to_ptr.vmem [resolvable:$true] %s128_s17 }
  0xcd   :  { %s19007_s30 = scalar_lea.hbm %s20837_s6, 64 }
  0xce   :  { %p19008_p4 = scmp.ne.s32.totalorder %s20837_s6, %s19007_s30  ;;  %p19011_p5 = scmp.lt.u32.totalorder %s19007_s30, %s20837_s6 }
  0xd0   :  { %p19013_p6 = pnand %p19011_p5, %p19008_p4 }
  0xd2   :  { %19016 = shalt.err (!%p19013_p6)
}
  0xd3   :  { %s19017_s4 = scalar_lea.vmem %s107_s22, 64  ;;  %p19022_p8 = scmp.lt.s32.totalorder %s107_s22, %s107_s22 }
  0xd4   :  { %p19018_p7 = scmp.ne.s32.totalorder %s107_s22, %s19017_s4  ;;  %p19023_p9 = scmp.lt.s32.totalorder %s19017_s4, %s19017_s4 }
  0xd6   :  { %p19024_p10 = por %p19023_p9, %p19022_p8 }
  0xd8   :  { %p19025_p11 = pnand %p19024_p10, %p19018_p7 }
  0xda   :  { %19028 = shalt.err (!%p19025_p11)
}
  0xdb   :  { %109 = dma.hbm_to_vmem [thread:$0]  %s20837_s6, 64, %s107_s22, [#allocation13]  }
  0xdc   :  { %s19029_s9 = scalar_lea.hbm %s20839_s8, 64 }
  0xdd   :  { %p19030_p12 = scmp.ne.s32.totalorder %s20839_s8, %s19029_s9  ;;  %p19033_p13 = scmp.lt.u32.totalorder %s19029_s9, %s20839_s8 }
  0xdf   :  { %p19035_p0 = pnand %p19033_p13, %p19030_p12 }
  0xe1   :  { %19038 = shalt.err (!%p19035_p0)
}
  0xe2   :  { %s19039_s2 = scalar_lea.vmem %s129_s17, 64  ;;  %p19044_p2 = scmp.lt.s32.totalorder %s129_s17, %s129_s17 }
  0xe3   :  { %p19040_p1 = scmp.ne.s32.totalorder %s129_s17, %s19039_s2  ;;  %p19045_p3 = scmp.lt.s32.totalorder %s19039_s2, %s19039_s2 }
  0xe5   :  { %p19046_p4 = por %p19045_p3, %p19044_p2 }
  0xe7   :  { %p19047_p5 = pnand %p19046_p4, %p19040_p1 }
  0xe9   :  { %19050 = shalt.err (!%p19047_p5)
}
  0xea   :  { %131 = dma.hbm_to_vmem [thread:$0]  %s20839_s8, 64, %s129_s17, [#allocation16]  }
  0xeb   :  { %s19200_s21 = smov [#allocation20]   ;;  %s19201_s23 = smov [#allocation23]  }
  0xec   :  { %s148_s22 = sshll.u32 %s19200_s21, 4  ;;  %s170_s0 = sshll.u32 %s19201_s23, 4  ;;  %s149_s22 = int_to_ptr.vmem [resolvable:$true] %s148_s22  ;;  %s171_s0 = int_to_ptr.vmem [resolvable:$true] %s170_s0 }
  0xed   :  { %s19051_s11 = scalar_lea.hbm %s20841_s10, 64 }
  0xee   :  { %p19052_p6 = scmp.ne.s32.totalorder %s20841_s10, %s19051_s11  ;;  %p19055_p7 = scmp.lt.u32.totalorder %s19051_s11, %s20841_s10 }
  0xf0   :  { %p19057_p8 = pnand %p19055_p7, %p19052_p6 }
  0xf2   :  { %19060 = shalt.err (!%p19057_p8)
}
  0xf3   :  { %s19061_s8 = scalar_lea.vmem %s149_s22, 64  ;;  %p19066_p10 = scmp.lt.s32.totalorder %s149_s22, %s149_s22 }
  0xf4   :  { %p19062_p9 = scmp.ne.s32.totalorder %s149_s22, %s19061_s8  ;;  %p19067_p11 = scmp.lt.s32.totalorder %s19061_s8, %s19061_s8 }
  0xf6   :  { %p19068_p12 = por %p19067_p11, %p19066_p10 }
  0xf8   :  { %p19069_p13 = pnand %p19068_p12, %p19062_p9 }
  0xfa   :  { %19072 = shalt.err (!%p19069_p13)
}
  0xfb   :  { %151 = dma.hbm_to_vmem [thread:$0]  %s20841_s10, 64, %s149_s22, [#allocation19]  }
  0xfc   :  { %s19073_s26 = scalar_lea.hbm %s20843_s12, 256 }
  0xfd   :  { %p19074_p0 = scmp.ne.s32.totalorder %s20843_s12, %s19073_s26  ;;  %p19077_p1 = scmp.lt.u32.totalorder %s19073_s26, %s20843_s12 }
  0xff   :  { %p19079_p2 = pnand %p19077_p1, %p19074_p0 }
 0x101   :  { %19082 = shalt.err (!%p19079_p2)
}
 0x102   :  { %s19083_s13 = scalar_lea.vmem %s171_s0, 256  ;;  %p19088_p4 = scmp.lt.s32.totalorder %s171_s0, %s171_s0 }
 0x103   :  { %p19084_p3 = scmp.ne.s32.totalorder %s171_s0, %s19083_s13  ;;  %p19089_p5 = scmp.lt.s32.totalorder %s19083_s13, %s19083_s13 }
 0x105   :  { %p19090_p6 = por %p19089_p5, %p19088_p4 }
 0x107   :  { %p19091_p7 = pnand %p19090_p6, %p19084_p3 }
 0x109   :  { %19094 = shalt.err (!%p19091_p7)
}
 0x10a   :  { %173 = dma.hbm_to_vmem [thread:$0]  %s20843_s12, 256, %s171_s0, [#allocation22]  }
 0x10b   :  { %s19202_s6 = smov [#allocation26]   ;;  %s19203_s21 = smov [#allocation29]  }
 0x10c   :  { %s192_s20 = sshll.u32 %s19202_s6, 4  ;;  %s212_s22 = sshll.u32 %s19203_s21, 4  ;;  %s193_s20 = int_to_ptr.vmem [resolvable:$true] %s192_s20  ;;  %s213_s22 = int_to_ptr.vmem [resolvable:$true] %s212_s22 }
 0x10d   :  { %s19095_s30 = scalar_lea.hbm %s20845_s14, 64 }
 0x10e   :  { %p19096_p8 = scmp.ne.s32.totalorder %s20845_s14, %s19095_s30  ;;  %p19099_p9 = scmp.lt.u32.totalorder %s19095_s30, %s20845_s14 }
 0x110   :  { %p19101_p10 = pnand %p19099_p9, %p19096_p8 }
 0x112   :  { %19104 = shalt.err (!%p19101_p10)
}
 0x113   :  { %s19105_s12 = scalar_lea.vmem %s193_s20, 64  ;;  %p19110_p12 = scmp.lt.s32.totalorder %s193_s20, %s193_s20 }
 0x114   :  { %p19106_p11 = scmp.ne.s32.totalorder %s193_s20, %s19105_s12  ;;  %p19111_p13 = scmp.lt.s32.totalorder %s19105_s12, %s19105_s12 }
 0x116   :  { %p19112_p0 = por %p19111_p13, %p19110_p12 }
 0x118   :  { %p19113_p1 = pnand %p19112_p0, %p19106_p11 }
 0x11a   :  { %19116 = shalt.err (!%p19113_p1)
}
 0x11b   :  { %195 = dma.hbm_to_vmem [thread:$0]  %s20845_s14, 64, %s193_s20, [#allocation25]  }
 0x11c   :  { %s20869_s1 = sld [smem:[#allocation49_spill]] }
 0x122   :  { %s19117_s18 = scalar_lea.hbm %s20869_s1, 64 }
 0x123   :  { %p19118_p2 = scmp.ne.s32.totalorder %s20869_s1, %s19117_s18  ;;  %p19121_p3 = scmp.lt.u32.totalorder %s19117_s18, %s20869_s1 }
 0x125   :  { %p19123_p4 = pnand %p19121_p3, %p19118_p2 }
 0x127   :  { %19126 = shalt.err (!%p19123_p4)
}
 0x128   :  { %s19127_s25 = scalar_lea.vmem %s213_s22, 64  ;;  %p19132_p6 = scmp.lt.s32.totalorder %s213_s22, %s213_s22 }
 0x129   :  { %p19128_p5 = scmp.ne.s32.totalorder %s213_s22, %s19127_s25  ;;  %p19133_p7 = scmp.lt.s32.totalorder %s19127_s25, %s19127_s25 }
 0x12b   :  { %p19134_p8 = por %p19133_p7, %p19132_p6 }
 0x12d   :  { %p19135_p9 = pnand %p19134_p8, %p19128_p5 }
 0x12f   :  { %19138 = shalt.err (!%p19135_p9)
}
 0x130   :  { %215 = dma.hbm_to_vmem [thread:$0]  %s20869_s1, 64, %s213_s22, [#allocation28]  }
 0x131   :  { %19161 = dma.done.wait [#allocation4], 2048  }
 0x132   :  { %19162 = vsyncadd [#allocation4], 4294965248 }
 0x133   :  { %19163 = dma.done.wait [#allocation7], 32768  }
 0x134   :  { %19164 = vsyncadd [#allocation7], 4294934528 }
 0x135   :  { %19165 = dma.done.wait [#allocation10], 16448  }
 0x136   :  { %19166 = vsyncadd [#allocation10], 4294950848 }
 0x137   :  { %19167 = dma.done.wait [#allocation13], 128  }
 0x138   :  { %19168 = vsyncadd [#allocation13], 4294967168 }
 0x139   :  { %19169 = dma.done.wait [#allocation16], 16448  }
 0x13a   :  { %19170 = vsyncadd [#allocation16], 4294950848 }
 0x13b   :  { %19171 = dma.done.wait [#allocation19], 128  }
 0x13c   :  { %19172 = vsyncadd [#allocation19], 4294967168 }
 0x13d   :  { %19173 = dma.done.wait [#allocation22], 65792  }
 0x13e   :  { %19174 = vsyncadd [#allocation22], 4294901504 }
 0x13f   :  { %19175 = dma.done.wait [#allocation25], 65600  }
 0x140   :  { %19176 = vsyncadd [#allocation25], 4294901696 }
 0x141   :  { %19177 = dma.done.wait [#allocation28], 128  }
 0x142   :  { %19178 = vsyncadd [#allocation28], 4294967168  ;;  %v17069_v0 = vld [vmem:[#allocation6 + $0x4] ss:$16 sps:$4 sm:$0xff]   ;;  %v17071_v1 = vld [vmem:[#allocation6] ss:$16 sps:$4 sm:$0xff]  }
 0x143   :  { %1082 = vmatprep.subr.bf16.mxu0 %v17069_v0  ;;  %v17072_v2 = vld [vmem:[#allocation6 + $0x24] ss:$16 sps:$4 sm:$0xff]   ;;  %v17074_v3 = vld [vmem:[#allocation6 + $0x20] ss:$16 sps:$4 sm:$0xff]   ;;  %v269_v13 = vld [vmem:[#allocation3 + $0x8] sm:$0xff]  ;;  %vm19205_vm0 = vmmov 0  }
 0x144   :  { %1083 = vmatpush1.bf16.msra.mxu0 %v17071_v1  ;;  %v17075_v4 = vld [vmem:[#allocation6 + $0x44] ss:$16 sps:$4 sm:$0xff]   ;;  %v17077_v5 = vld [vmem:[#allocation6 + $0x40] ss:$16 sps:$4 sm:$0xff]   ;;  %v273_v14 = vld [vmem:[#allocation3 + $0x28] sm:$0xff]  ;;  %vm3322_vm1 = vcmask 523264  }
 0x145   :  { %1084 = vmatprep.subr.bf16.mxu0 %v17072_v2  ;;  %v17078_v6 = vld [vmem:[#allocation6 + $0x64] ss:$16 sps:$4 sm:$0xff]   ;;  %v17080_v7 = vld [vmem:[#allocation6 + $0x60] ss:$16 sps:$4 sm:$0xff]   ;;  %v19520_v15 = vpack.c.bf16 %v273_v14, %v269_v13  ;;  %v17126_v19 = vld [vmem:[#allocation6 + $0xc] ss:$16 sps:$4 sm:$0xff]  }
 0x146   :  { %v17081_v8 = vld [vmem:[#allocation6 + $0x84] ss:$16 sps:$4 sm:$0xff]   ;;  %v17083_v9 = vld [vmem:[#allocation6 + $0x80] ss:$16 sps:$4 sm:$0xff]   ;;  %v17128_v20 = vld [vmem:[#allocation6 + $0x8] ss:$16 sps:$4 sm:$0xff]   ;;  %1188 = vmatprep.subr.bf16.mxu1 %v17126_v19 }
 0x147   :  { %v17084_v10 = vld [vmem:[#allocation6 + $0xa4] ss:$16 sps:$4 sm:$0xff]   ;;  %v17086_v11 = vld [vmem:[#allocation6 + $0xa0] ss:$16 sps:$4 sm:$0xff]   ;;  %1114 = vmatprep.mubr.bf16.mxu0 %v19520_v15  ;;  %1220 = vmatprep.mubr.bf16.mxu1 %v19520_v15  ;;  %v17132_v22 = vld [vmem:[#allocation6 + $0x2c] ss:$16 sps:$4 sm:$0xff]  }
 0x148   :  { %1085 = vmatpush1.bf16.msra.mxu0 %v17074_v3  ;;  %v17087_v12 = vld [vmem:[#allocation6 + $0xc4] ss:$16 sps:$4 sm:$0xff]   ;;  %v17089_v16 = vld [vmem:[#allocation6 + $0xc0] ss:$16 sps:$4 sm:$0xff]   ;;  %1189 = vmatpush1.bf16.msra.mxu1 %v17128_v20  ;;  %v17134_v23 = vld [vmem:[#allocation6 + $0x28] ss:$16 sps:$4 sm:$0xff]  }
 0x149   :  { %1086 = vmatprep.subr.bf16.mxu0 %v17075_v4  ;;  %v17090_v17 = vld [vmem:[#allocation6 + $0xe4] ss:$16 sps:$4 sm:$0xff]   ;;  %v17092_v18 = vld [vmem:[#allocation6 + $0xe0] ss:$16 sps:$4 sm:$0xff]   ;;  %1190 = vmatprep.subr.bf16.mxu1 %v17132_v22  ;;  %v17138_v26 = vld [vmem:[#allocation6 + $0x4c] ss:$16 sps:$4 sm:$0xff]  }
 0x14a   :  { %v17093_v21 = vld [vmem:[#allocation6 + $0x104] ss:$16 sps:$4 sm:$0xff]   ;;  %v17095_v24 = vld [vmem:[#allocation6 + $0x100] ss:$16 sps:$4 sm:$0xff]   ;;  %v17140_v27 = vld [vmem:[#allocation6 + $0x48] ss:$16 sps:$4 sm:$0xff]  }
 0x14b   :  { %v17096_v25 = vld [vmem:[#allocation6 + $0x124] ss:$16 sps:$4 sm:$0xff]   ;;  %v17098_v28 = vld [vmem:[#allocation6 + $0x120] ss:$16 sps:$4 sm:$0xff]   ;;  %v17144_v29 = vld [vmem:[#allocation6 + $0x6c] ss:$16 sps:$4 sm:$0xff]  }
 0x14c   :  { %1087 = vmatpush1.bf16.msra.mxu0 %v17077_v5  ;;  %1191 = vmatpush1.bf16.msra.mxu1 %v17134_v23  ;;  %v17099_v30 = vld [vmem:[#allocation6 + $0x144] ss:$16 sps:$4 sm:$0xff]   ;;  %v17146_v31 = vld [vmem:[#allocation6 + $0x68] ss:$16 sps:$4 sm:$0xff]   ;;  %v17101_v32 = vld [vmem:[#allocation6 + $0x140] ss:$16 sps:$4 sm:$0xff]  }
 0x14d   :  { %1088 = vmatprep.subr.bf16.mxu0 %v17078_v6  ;;  %1192 = vmatprep.subr.bf16.mxu1 %v17138_v26  ;;  %v17150_v33 = vld [vmem:[#allocation6 + $0x8c] ss:$16 sps:$4 sm:$0xff]   ;;  %v17102_v34 = vld [vmem:[#allocation6 + $0x164] ss:$16 sps:$4 sm:$0xff]   ;;  %v17152_v35 = vld [vmem:[#allocation6 + $0x88] ss:$16 sps:$4 sm:$0xff]  }
 0x14e   :  { %v17104_v36 = vld [vmem:[#allocation6 + $0x160] ss:$16 sps:$4 sm:$0xff]   ;;  %v17156_v37 = vld [vmem:[#allocation6 + $0xac] ss:$16 sps:$4 sm:$0xff]   ;;  %v17105_v38 = vld [vmem:[#allocation6 + $0x184] ss:$16 sps:$4 sm:$0xff]  }
 0x14f   :  { %v17158_v39 = vld [vmem:[#allocation6 + $0xa8] ss:$16 sps:$4 sm:$0xff]   ;;  %v17107_v40 = vld [vmem:[#allocation6 + $0x180] ss:$16 sps:$4 sm:$0xff]   ;;  %v17162_v41 = vld [vmem:[#allocation6 + $0xcc] ss:$16 sps:$4 sm:$0xff]  }
 0x150   :  { %1089 = vmatpush1.bf16.msra.mxu0 %v17080_v7  ;;  %1193 = vmatpush1.bf16.msra.mxu1 %v17140_v27  ;;  %v17108_v42 = vld [vmem:[#allocation6 + $0x1a4] ss:$16 sps:$4 sm:$0xff]   ;;  %v17164_v43 = vld [vmem:[#allocation6 + $0xc8] ss:$16 sps:$4 sm:$0xff]   ;;  %v17110_v44 = vld [vmem:[#allocation6 + $0x1a0] ss:$16 sps:$4 sm:$0xff]  }
 0x151   :  { %1090 = vmatprep.subr.bf16.mxu0 %v17081_v8  ;;  %1194 = vmatprep.subr.bf16.mxu1 %v17144_v29  ;;  %v17168_v45 = vld [vmem:[#allocation6 + $0xec] ss:$16 sps:$4 sm:$0xff]   ;;  %v17111_v46 = vld [vmem:[#allocation6 + $0x1c4] ss:$16 sps:$4 sm:$0xff]   ;;  %v17170_v47 = vld [vmem:[#allocation6 + $0xe8] ss:$16 sps:$4 sm:$0xff]  }
 0x152   :  { %v17113_v48 = vld [vmem:[#allocation6 + $0x1c0] ss:$16 sps:$4 sm:$0xff]   ;;  %v17174_v49 = vld [vmem:[#allocation6 + $0x10c] ss:$16 sps:$4 sm:$0xff]   ;;  %v17114_v50 = vld [vmem:[#allocation6 + $0x1e4] ss:$16 sps:$4 sm:$0xff]  }
 0x153   :  { %v17116_v51 = vld [vmem:[#allocation6 + $0x1e0] ss:$16 sps:$4 sm:$0xff]   ;;  %v17119_v52 = vld [vmem:[#allocation6 + $0x204] ss:$16 sps:$4 sm:$0xff]   ;;  %v17176_v54 = vld [vmem:[#allocation6 + $0x108] ss:$16 sps:$4 sm:$0xff]  }
 0x154   :  { %1091 = vmatpush1.bf16.msra.mxu0 %v17083_v9  ;;  %1195 = vmatpush1.bf16.msra.mxu1 %v17146_v31  ;;  %v268_v53 = vld [vmem:[#allocation3] sm:$0xff]  ;;  %v17180_v56 = vld [vmem:[#allocation6 + $0x12c] ss:$16 sps:$4 sm:$0xff]   ;;  %v17182_v60 = vld [vmem:[#allocation6 + $0x128] ss:$16 sps:$4 sm:$0xff]   ;;  %vm3417_vm2 = vcmask 130048  }
 0x155   :  { %1092 = vmatprep.subr.bf16.mxu0 %v17084_v10  ;;  %1196 = vmatprep.subr.bf16.mxu1 %v17150_v33  ;;  %v272_v55 = vld [vmem:[#allocation3 + $0x20] sm:$0xff]  ;;  %v277_v57 = vld [vmem:[#allocation3 + $0x48] sm:$0xff]  ;;  %v271_v7 = vld [vmem:[#allocation3 + $0x18] sm:$0xff]  ;;  %vm3820_vm3 = vcmask 1048064  }
 0x156   :  { %v281_v58 = vld [vmem:[#allocation3 + $0x68] sm:$0xff]  ;;  %v19524_v59 = vpack.c.bf16 %v272_v55, %v268_v53  ;;  %v17117_v61 = vld [vmem:[#allocation6 + $0x200] ss:$16 sps:$4 sm:$0xff]   ;;  %v17122_v63 = vld [vmem:[#allocation6 + $0x224] ss:$16 sps:$4 sm:$0xff]  }
 0x157   :  { %v17186_v62 = vld [vmem:[#allocation6 + $0x14c] ss:$16 sps:$4 sm:$0xff]   ;;  %v19526_v0 = vpack.c.bf16 %v281_v58, %v277_v57  ;;  %v17120_v1 = vld [vmem:[#allocation6 + $0x220] ss:$16 sps:$4 sm:$0xff]   ;;  %v17125_v2 = vld [vmem:[#allocation6 + $0x244] ss:$16 sps:$4 sm:$0xff]  }
 0x158   :  { %1093 = vmatpush1.bf16.msra.mxu0 %v17086_v11  ;;  %1197 = vmatpush1.bf16.msra.mxu1 %v17152_v35  ;;  %v17188_v3 = vld [vmem:[#allocation6 + $0x148] ss:$16 sps:$4 sm:$0xff]   ;;  %v17192_v4 = vld [vmem:[#allocation6 + $0x16c] ss:$16 sps:$4 sm:$0xff]   ;;  %v276_v5 = vld [vmem:[#allocation3 + $0x40] sm:$0xff] }
 0x159   :  { %1094 = vmatprep.subr.bf16.mxu0 %v17087_v12  ;;  %1198 = vmatprep.subr.bf16.mxu1 %v17156_v37  ;;  %v280_v6 = vld [vmem:[#allocation3 + $0x60] sm:$0xff]  ;;  %v275_v8 = vld [vmem:[#allocation3 + $0x38] sm:$0xff] }
 0x15a   :  { %v17194_v9 = vld [vmem:[#allocation6 + $0x168] ss:$16 sps:$4 sm:$0xff]   ;;  %v19530_v10 = vpack.c.bf16 %v280_v6, %v276_v5  ;;  %v17123_v11 = vld [vmem:[#allocation6 + $0x240] ss:$16 sps:$4 sm:$0xff]   ;;  %v17198_v12 = vld [vmem:[#allocation6 + $0x18c] ss:$16 sps:$4 sm:$0xff]   ;;  %v19532_v14 = vpack.c.bf16 %v275_v8, %v271_v7 }
 0x15b   :  { %v17131_v13 = vld [vmem:[#allocation6 + $0x264] ss:$16 sps:$4 sm:$0xff]   ;;  %v17206_v20 = vld [vmem:[#allocation6 + $0x1a8] ss:$16 sps:$4 sm:$0xff]   ;;  %v17207_v22 = vld [vmem:[#allocation6 + $0x1cc] ss:$16 sps:$4 sm:$0xff]  }
 0x15c   :  { %1095 = vmatpush1.bf16.msra.mxu0 %v17089_v16  ;;  %1199 = vmatpush1.bf16.msra.mxu1 %v17158_v39  ;;  %v17200_v16 = vld [vmem:[#allocation6 + $0x188] ss:$16 sps:$4 sm:$0xff]   ;;  %v17137_v19 = vld [vmem:[#allocation6 + $0x284] ss:$16 sps:$4 sm:$0xff]   ;;  %v17213_v26 = vld [vmem:[#allocation6 + $0x1ec] ss:$16 sps:$4 sm:$0xff]  }
 0x15d   :  { %1096 = vmatprep.subr.bf16.mxu0 %v17090_v17  ;;  %1200 = vmatprep.subr.bf16.mxu1 %v17162_v41  ;;  %v17129_v17 = vld [vmem:[#allocation6 + $0x260] ss:$16 sps:$4 sm:$0xff]   ;;  %v17143_v23 = vld [vmem:[#allocation6 + $0x2a4] ss:$16 sps:$4 sm:$0xff]   ;;  %v17263_v58 = vld [vmem:[#allocation6 + $0x2ec] ss:$16 sps:$4 sm:$0xff]  }
 0x15e   :  { %v17149_v27 = vld [vmem:[#allocation6 + $0x2c4] ss:$16 sps:$4 sm:$0xff]   ;;  %v17147_v29 = vld [vmem:[#allocation6 + $0x2c0] ss:$16 sps:$4 sm:$0xff]   ;;  %v17267_v6 = vld [vmem:[#allocation6 + $0x308] ss:$16 sps:$4 sm:$0xff]  }
 0x15f   :  { %v17155_v31 = vld [vmem:[#allocation6 + $0x2e4] ss:$16 sps:$4 sm:$0xff]   ;;  %v17153_v33 = vld [vmem:[#allocation6 + $0x2e0] ss:$16 sps:$4 sm:$0xff]   ;;  %v279_v7 = vld [vmem:[#allocation3 + $0x58] sm:$0xff] }
 0x160   :  { %1097 = vmatpush1.bf16.msra.mxu0 %v17092_v18  ;;  %1201 = vmatpush1.bf16.msra.mxu1 %v17164_v43  ;;  %v17204_v18 = vld [vmem:[#allocation6 + $0x1ac] ss:$16 sps:$4 sm:$0xff]   ;;  %v17161_v35 = vld [vmem:[#allocation6 + $0x304] ss:$16 sps:$4 sm:$0xff]   ;;  %v17159_v37 = vld [vmem:[#allocation6 + $0x300] ss:$16 sps:$4 sm:$0xff]  }
 0x161   :  { %1098 = vmatprep.subr.bf16.mxu0 %v17093_v21  ;;  %1202 = vmatprep.subr.bf16.mxu1 %v17168_v45  ;;  %v17135_v21 = vld [vmem:[#allocation6 + $0x280] ss:$16 sps:$4 sm:$0xff]   ;;  %v17167_v39 = vld [vmem:[#allocation6 + $0x324] ss:$16 sps:$4 sm:$0xff]   ;;  %v17275_v8 = vld [vmem:[#allocation6 + $0x32c] ss:$16 sps:$4 sm:$0xff]  }
 0x162   :  { %v17165_v41 = vld [vmem:[#allocation6 + $0x320] ss:$16 sps:$4 sm:$0xff]   ;;  %v17173_v43 = vld [vmem:[#allocation6 + $0x344] ss:$16 sps:$4 sm:$0xff]  }
 0x163   :  { %v17171_v45 = vld [vmem:[#allocation6 + $0x340] ss:$16 sps:$4 sm:$0xff]   ;;  %v17191_v55 = vld [vmem:[#allocation6 + $0x3a4] ss:$16 sps:$4 sm:$0xff]  }
 0x164   :  { %1099 = vmatpush1.bf16.msra.mxu0 %v17095_v24  ;;  %1203 = vmatpush1.bf16.msra.mxu1 %v17170_v47  ;;  %v17212_v24 = vld [vmem:[#allocation6 + $0x1c8] ss:$16 sps:$4 sm:$0xff]   ;;  %v17179_v47 = vld [vmem:[#allocation6 + $0x364] ss:$16 sps:$4 sm:$0xff]   ;;  %v17183_v53 = vld [vmem:[#allocation6 + $0x380] ss:$16 sps:$4 sm:$0xff]  }
 0x165   :  { %1100 = vmatprep.subr.bf16.mxu0 %v17096_v25  ;;  %1204 = vmatprep.subr.bf16.mxu1 %v17174_v49  ;;  %v17141_v25 = vld [vmem:[#allocation6 + $0x2a0] ss:$16 sps:$4 sm:$0xff]   ;;  %v17211_v5 = vld [vmem:[#allocation8 + $0x4] ss:$16 sps:$4 sm:$0xff]  }
 0x166   :  { %v17177_v49 = vld [vmem:[#allocation6 + $0x360] ss:$16 sps:$4 sm:$0xff]  }
 0x167   :  { %v17189_v57 = vld [vmem:[#allocation6 + $0x3a0] ss:$16 sps:$4 sm:$0xff]  }
 0x168   :  { %1101 = vmatpush1.bf16.msra.mxu0 %v17098_v28  ;;  %1205 = vmatpush1.bf16.msra.mxu1 %v17176_v54  ;;  %v17218_v28 = vld [vmem:[#allocation6 + $0x1e8] ss:$16 sps:$4 sm:$0xff]   ;;  %v17257_v54 = vld [vmem:[#allocation6 + $0x2cc] ss:$16 sps:$4 sm:$0xff]  }
 0x169   :  { %1102 = vmatprep.subr.bf16.mxu0 %v17099_v30  ;;  %1206 = vmatprep.subr.bf16.mxu1 %v17180_v56  ;;  %v17221_v30 = vld [vmem:[#allocation6 + $0x20c] ss:$16 sps:$4 sm:$0xff]   ;;  %v17255_v56 = vld [vmem:[#allocation6 + $0x2c8] ss:$16 sps:$4 sm:$0xff]  }
 0x16c   :  { %1103 = vmatpush1.bf16.msra.mxu0 %v17101_v32  ;;  %1207 = vmatpush1.bf16.msra.mxu1 %v17182_v60  ;;  %v17219_v32 = vld [vmem:[#allocation6 + $0x208] ss:$16 sps:$4 sm:$0xff]   ;;  %v17197_v60 = vld [vmem:[#allocation6 + $0x3c4] ss:$16 sps:$4 sm:$0xff]  }
 0x16d   :  { %1104 = vmatprep.subr.bf16.mxu0 %v17102_v34  ;;  %1208 = vmatprep.subr.bf16.mxu1 %v17186_v62  ;;  %v17227_v34 = vld [vmem:[#allocation6 + $0x22c] ss:$16 sps:$4 sm:$0xff]   ;;  %v17195_v62 = vld [vmem:[#allocation6 + $0x3c0] ss:$16 sps:$4 sm:$0xff]  }
 0x170   :  { %1105 = vmatpush1.bf16.msra.mxu0 %v17104_v36  ;;  %1209 = vmatpush1.bf16.msra.mxu1 %v17188_v3  ;;  %v17225_v36 = vld [vmem:[#allocation6 + $0x228] ss:$16 sps:$4 sm:$0xff]   ;;  %v270_v3 = vld [vmem:[#allocation3 + $0x10] sm:$0xff] }
 0x171   :  { %1106 = vmatprep.subr.bf16.mxu0 %v17105_v38  ;;  %1210 = vmatprep.subr.bf16.mxu1 %v17192_v4  ;;  %v17233_v38 = vld [vmem:[#allocation6 + $0x24c] ss:$16 sps:$4 sm:$0xff]   ;;  %v274_v4 = vld [vmem:[#allocation3 + $0x30] sm:$0xff] }
 0x174   :  { %1107 = vmatpush1.bf16.msra.mxu0 %v17107_v40  ;;  %1211 = vmatpush1.bf16.msra.mxu1 %v17194_v9  ;;  %v17231_v40 = vld [vmem:[#allocation6 + $0x248] ss:$16 sps:$4 sm:$0xff]  }
 0x175   :  { %1108 = vmatprep.subr.bf16.mxu0 %v17108_v42  ;;  %1212 = vmatprep.subr.bf16.mxu1 %v17198_v12  ;;  %v17239_v42 = vld [vmem:[#allocation6 + $0x26c] ss:$16 sps:$4 sm:$0xff]   ;;  %v17273_v12 = vld [vmem:[#allocation6 + $0x328] ss:$16 sps:$4 sm:$0xff]  }
 0x176   :  { %v283_v9 = vld [vmem:[#allocation3 + $0x78] sm:$0xff] }
 0x178   :  { %1109 = vmatpush1.bf16.msra.mxu0 %v17110_v44  ;;  %1213 = vmatpush1.bf16.msra.mxu1 %v17200_v16  ;;  %v17237_v44 = vld [vmem:[#allocation6 + $0x268] ss:$16 sps:$4 sm:$0xff]   ;;  %v17217_v16 = vld [vmem:[#allocation8 + $0x24] ss:$16 sps:$4 sm:$0xff]  }
 0x179   :  { %1110 = vmatprep.subr.bf16.mxu0 %v17111_v46  ;;  %1214 = vmatprep.subr.bf16.mxu1 %v17204_v18  ;;  %v17245_v46 = vld [vmem:[#allocation6 + $0x28c] ss:$16 sps:$4 sm:$0xff]  }
 0x17a   :  { %v17281_v18 = vld [vmem:[#allocation6 + $0x34c] ss:$16 sps:$4 sm:$0xff]  }
 0x17c   :  { %1111 = vmatpush1.bf16.msra.mxu0 %v17113_v48  ;;  %1215 = vmatpush1.bf16.msra.mxu1 %v17206_v20  ;;  %v17243_v48 = vld [vmem:[#allocation6 + $0x288] ss:$16 sps:$4 sm:$0xff]   ;;  %v278_v20 = vld [vmem:[#allocation3 + $0x50] sm:$0xff] }
 0x17d   :  { %1112 = vmatprep.subr.bf16.mxu0 %v17114_v50  ;;  %1216 = vmatprep.subr.bf16.mxu1 %v17207_v22  ;;  %v17251_v50 = vld [vmem:[#allocation6 + $0x2ac] ss:$16 sps:$4 sm:$0xff]   ;;  %v282_v22 = vld [vmem:[#allocation3 + $0x70] sm:$0xff] }
 0x180   :  { %1113 = vmatpush1.bf16.msra.mxu0 %v17116_v51  ;;  %1217 = vmatpush1.bf16.msra.mxu1 %v17212_v24  ;;  %v17185_v51 = vld [vmem:[#allocation6 + $0x384] ss:$16 sps:$4 sm:$0xff]  }
 0x181   :  { %1135 = vmatprep.subr.bf16.mxu0 %v17119_v52  ;;  %1218 = vmatprep.subr.bf16.mxu1 %v17213_v26  ;;  %v17249_v52 = vld [vmem:[#allocation6 + $0x2a8] ss:$16 sps:$4 sm:$0xff]   ;;  %v17224_v24 = vld [vmem:[#allocation8 + $0x44] ss:$16 sps:$4 sm:$0xff]  }
 0x182   :  { %v17285_v26 = vld [vmem:[#allocation6 + $0x368] ss:$16 sps:$4 sm:$0xff]  }
 0x183   :  { %1115 = vmatmul.mubr.bf16.vlgmr.msra.gmra.mrb[0].mxu0 %v19524_v59 }
 0x184   :  { %1136 = vmatpush1.bf16.msra.mxu0 %v17117_v61  ;;  %1124 = vmatprep.mubr.bf16.mxu0 %v19526_v0  ;;  %v17261_v61 = vld [vmem:[#allocation6 + $0x2e8] ss:$16 sps:$4 sm:$0xff]  }
 0x185   :  { %1137 = vmatprep.subr.bf16.mxu0 %v17122_v63  ;;  %1219 = vmatpush1.bf16.msra.mxu1 %v17218_v28  ;;  %v17269_v63 = vld [vmem:[#allocation6 + $0x30c] ss:$16 sps:$4 sm:$0xff]  }
 0x186   :  { %1241 = vmatprep.subr.bf16.mxu1 %v17221_v30  ;;  %v17293_v28 = vld [vmem:[#allocation6 + $0x38c] ss:$16 sps:$4 sm:$0xff]   ;;  %v17291_v30 = vld [vmem:[#allocation6 + $0x388] ss:$16 sps:$4 sm:$0xff]  }
 0x188   :  { %1138 = vmatpush1.bf16.msra.mxu0 %v17120_v1  ;;  %1221 = vmatmul.mubr.bf16.vlgmr.msra.gmra.mrb[0].mxu1 %v19524_v59  ;;  %v17203_v1 = vld [vmem:[#allocation6 + $0x3e4] ss:$16 sps:$4 sm:$0xff]  }
 0x189   :  { %1139 = vmatprep.subr.bf16.mxu0 %v17125_v2  ;;  %1242 = vmatpush1.bf16.msra.mxu1 %v17219_v32  ;;  %v17201_v2 = vld [vmem:[#allocation6 + $0x3e0] ss:$16 sps:$4 sm:$0xff]   ;;  %v17299_v32 = vld [vmem:[#allocation6 + $0x3ac] ss:$16 sps:$4 sm:$0xff]  }
 0x18a   :  { %1230 = vmatprep.mubr.bf16.mxu1 %v19526_v0  ;;  %1243 = vmatprep.subr.bf16.mxu1 %v17227_v34  ;;  %v17297_v34 = vld [vmem:[#allocation6 + $0x3a8] ss:$16 sps:$4 sm:$0xff]  }
 0x18b   :  { %1125 = vmatmul.mubr.bf16.gmra.mrb[4].mxu0 %v19530_v10 }
 0x18c   :  { %1140 = vmatpush1.bf16.msra.mxu0 %v17123_v11  ;;  %1167 = vmatprep.mubr.bf16.mxu0 %v19532_v14  ;;  %v19540_v11 = vpack.c.bf16 %v274_v4, %v270_v3  ;;  %v17284_v3 = vld [vmem:[#allocation8 + $0x184] ss:$16 sps:$4 sm:$0xff]   ;;  %v17348_v4 = vld [vmem:[#allocation8 + $0xa8] ss:$16 sps:$4 sm:$0xff]  }
 0x18d   :  { %1141 = vmatprep.subr.bf16.mxu0 %v17131_v13  ;;  %1244 = vmatpush1.bf16.msra.mxu1 %v17225_v36  ;;  %v17209_v13 = vld [vmem:[#allocation8] ss:$16 sps:$4 sm:$0xff]   ;;  %v17305_v36 = vld [vmem:[#allocation6 + $0x3cc] ss:$16 sps:$4 sm:$0xff]  }
 0x18e   :  { %1245 = vmatprep.subr.bf16.mxu1 %v17233_v38  ;;  %v17303_v38 = vld [vmem:[#allocation6 + $0x3c8] ss:$16 sps:$4 sm:$0xff]  }
 0x190   :  { %1142 = vmatpush1.bf16.msra.mxu0 %v17129_v17  ;;  %1231 = vmatmul.mubr.bf16.gmra.mrb[4].mxu1 %v19530_v10  ;;  %v19542_v17 = vpack.c.bf16 %v283_v9, %v279_v7  ;;  %v17290_v7 = vld [vmem:[#allocation8 + $0x1a4] ss:$16 sps:$4 sm:$0xff]   ;;  %v17288_v9 = vld [vmem:[#allocation8 + $0x1a0] ss:$16 sps:$4 sm:$0xff]  }
 0x191   :  { %1143 = vmatprep.subr.bf16.mxu0 %v17137_v19  ;;  %1246 = vmatpush1.bf16.msra.mxu1 %v17231_v40  ;;  %v17215_v19 = vld [vmem:[#allocation8 + $0x20] ss:$16 sps:$4 sm:$0xff]   ;;  %v17311_v40 = vld [vmem:[#allocation6 + $0x3ec] ss:$16 sps:$4 sm:$0xff]  }
 0x192   :  { %1273 = vmatprep.mubr.bf16.mxu1 %v19532_v14  ;;  %1247 = vmatprep.subr.bf16.mxu1 %v17239_v42  ;;  %v17309_v42 = vld [vmem:[#allocation6 + $0x3e8] ss:$16 sps:$4 sm:$0xff]  }
 0x194   :  { %1144 = vmatpush1.bf16.msra.mxu0 %v17135_v21  ;;  %v17279_v21 = vld [vmem:[#allocation6 + $0x348] ss:$16 sps:$4 sm:$0xff]  }
 0x195   :  { %1145 = vmatprep.subr.bf16.mxu0 %v17143_v23  ;;  %1248 = vmatpush1.bf16.msra.mxu1 %v17237_v44  ;;  %v17287_v23 = vld [vmem:[#allocation6 + $0x36c] ss:$16 sps:$4 sm:$0xff]  }
 0x196   :  { %1249 = vmatprep.subr.bf16.mxu1 %v17245_v46  ;;  %v17320_v44 = vld [vmem:[#allocation8 + $0xc] ss:$16 sps:$4 sm:$0xff]   ;;  %v17318_v46 = vld [vmem:[#allocation8 + $0x8] ss:$16 sps:$4 sm:$0xff]  }
 0x198   :  { %1146 = vmatpush1.bf16.msra.mxu0 %v17141_v25  ;;  %v19546_v25 = vpack.c.bf16 %v282_v22, %v278_v20  ;;  %v17302_v20 = vld [vmem:[#allocation8 + $0x1e4] ss:$16 sps:$4 sm:$0xff]   ;;  %v17300_v22 = vld [vmem:[#allocation8 + $0x1e0] ss:$16 sps:$4 sm:$0xff]  }
 0x199   :  { %1147 = vmatprep.subr.bf16.mxu0 %v17149_v27  ;;  %1250 = vmatpush1.bf16.msra.mxu1 %v17243_v48  ;;  %v17222_v27 = vld [vmem:[#allocation8 + $0x40] ss:$16 sps:$4 sm:$0xff]   ;;  %v17326_v48 = vld [vmem:[#allocation8 + $0x2c] ss:$16 sps:$4 sm:$0xff]  }
 0x19a   :  { %1251 = vmatprep.subr.bf16.mxu1 %v17251_v50  ;;  %v17324_v50 = vld [vmem:[#allocation8 + $0x28] ss:$16 sps:$4 sm:$0xff]  }
 0x19c   :  { %1148 = vmatpush1.bf16.msra.mxu0 %v17147_v29  ;;  %v17230_v29 = vld [vmem:[#allocation8 + $0x64] ss:$16 sps:$4 sm:$0xff]  }
 0x19d   :  { %1149 = vmatprep.subr.bf16.mxu0 %v17155_v31  ;;  %1252 = vmatpush1.bf16.msra.mxu1 %v17249_v52  ;;  %v17228_v31 = vld [vmem:[#allocation8 + $0x60] ss:$16 sps:$4 sm:$0xff]   ;;  %v17332_v52 = vld [vmem:[#allocation8 + $0x4c] ss:$16 sps:$4 sm:$0xff]  }
 0x19e   :  { %1253 = vmatprep.subr.bf16.mxu1 %v17257_v54  ;;  %v17330_v54 = vld [vmem:[#allocation8 + $0x48] ss:$16 sps:$4 sm:$0xff]  }
 0x1a0   :  { %1150 = vmatpush1.bf16.msra.mxu0 %v17153_v33  ;;  %v17236_v33 = vld [vmem:[#allocation8 + $0x84] ss:$16 sps:$4 sm:$0xff]  }
 0x1a1   :  { %1151 = vmatprep.subr.bf16.mxu0 %v17161_v35  ;;  %1254 = vmatpush1.bf16.msra.mxu1 %v17255_v56  ;;  %v17234_v35 = vld [vmem:[#allocation8 + $0x80] ss:$16 sps:$4 sm:$0xff]   ;;  %v17338_v56 = vld [vmem:[#allocation8 + $0x6c] ss:$16 sps:$4 sm:$0xff]  }
 0x1a2   :  { %1255 = vmatprep.subr.bf16.mxu1 %v17263_v58  ;;  %v17336_v58 = vld [vmem:[#allocation8 + $0x68] ss:$16 sps:$4 sm:$0xff]  }
 0x1a4   :  { %1152 = vmatpush1.bf16.msra.mxu0 %v17159_v37  ;;  %v17242_v37 = vld [vmem:[#allocation8 + $0xa4] ss:$16 sps:$4 sm:$0xff]  }
 0x1a5   :  { %1153 = vmatprep.subr.bf16.mxu0 %v17167_v39  ;;  %1256 = vmatpush1.bf16.msra.mxu1 %v17261_v61  ;;  %v17240_v39 = vld [vmem:[#allocation8 + $0xa0] ss:$16 sps:$4 sm:$0xff]   ;;  %v17344_v61 = vld [vmem:[#allocation8 + $0x8c] ss:$16 sps:$4 sm:$0xff]  }
 0x1a6   :  { %1257 = vmatprep.subr.bf16.mxu1 %v17269_v63  ;;  %v17342_v63 = vld [vmem:[#allocation8 + $0x88] ss:$16 sps:$4 sm:$0xff]  }
 0x1a8   :  { %1154 = vmatpush1.bf16.msra.mxu0 %v17165_v41  ;;  %v17248_v41 = vld [vmem:[#allocation8 + $0xc4] ss:$16 sps:$4 sm:$0xff]  }
 0x1a9   :  { %1155 = vmatprep.subr.bf16.mxu0 %v17173_v43  ;;  %1258 = vmatpush1.bf16.msra.mxu1 %v17267_v6  ;;  %v17246_v43 = vld [vmem:[#allocation8 + $0xc0] ss:$16 sps:$4 sm:$0xff]   ;;  %v17356_v6 = vld [vmem:[#allocation8 + $0xcc] ss:$16 sps:$4 sm:$0xff]  }
 0x1aa   :  { %1259 = vmatprep.subr.bf16.mxu1 %v17275_v8  ;;  %v17354_v8 = vld [vmem:[#allocation8 + $0xc8] ss:$16 sps:$4 sm:$0xff]  }
 0x1ac   :  { %1156 = vmatpush1.bf16.msra.mxu0 %v17171_v45  ;;  %v17254_v45 = vld [vmem:[#allocation8 + $0xe4] ss:$16 sps:$4 sm:$0xff]  }
 0x1ad   :  { %1157 = vmatprep.subr.bf16.mxu0 %v17179_v47  ;;  %1260 = vmatpush1.bf16.msra.mxu1 %v17273_v12  ;;  %v17252_v47 = vld [vmem:[#allocation8 + $0xe0] ss:$16 sps:$4 sm:$0xff]   ;;  %v17362_v12 = vld [vmem:[#allocation8 + $0xec] ss:$16 sps:$4 sm:$0xff]  }
 0x1ae   :  { %1261 = vmatprep.subr.bf16.mxu1 %v17281_v18  ;;  %v17294_v18 = vld [vmem:[#allocation8 + $0x1c0] ss:$16 sps:$4 sm:$0xff]  }
 0x1b0   :  { %1158 = vmatpush1.bf16.msra.mxu0 %v17177_v49  ;;  %v17260_v49 = vld [vmem:[#allocation8 + $0x104] ss:$16 sps:$4 sm:$0xff]  }
 0x1b1   :  { %1159 = vmatprep.subr.bf16.mxu0 %v17185_v51  ;;  %1262 = vmatpush1.bf16.msra.mxu1 %v17279_v21  ;;  %v17258_v51 = vld [vmem:[#allocation8 + $0x100] ss:$16 sps:$4 sm:$0xff]   ;;  %v17366_v21 = vld [vmem:[#allocation8 + $0x108] ss:$16 sps:$4 sm:$0xff]  }
 0x1b2   :  { %1263 = vmatprep.subr.bf16.mxu1 %v17287_v23  ;;  %v17374_v23 = vld [vmem:[#allocation8 + $0x12c] ss:$16 sps:$4 sm:$0xff]  }
 0x1b4   :  { %1160 = vmatpush1.bf16.msra.mxu0 %v17183_v53  ;;  %v17266_v53 = vld [vmem:[#allocation8 + $0x124] ss:$16 sps:$4 sm:$0xff]  }
 0x1b5   :  { %1161 = vmatprep.subr.bf16.mxu0 %v17191_v55  ;;  %1264 = vmatpush1.bf16.msra.mxu1 %v17285_v26  ;;  %v17264_v55 = vld [vmem:[#allocation8 + $0x120] ss:$16 sps:$4 sm:$0xff]   ;;  %v17372_v26 = vld [vmem:[#allocation8 + $0x128] ss:$16 sps:$4 sm:$0xff]  }
 0x1b6   :  { %1265 = vmatprep.subr.bf16.mxu1 %v17293_v28  ;;  %v17380_v28 = vld [vmem:[#allocation8 + $0x14c] ss:$16 sps:$4 sm:$0xff]  }
 0x1b8   :  { %1162 = vmatpush1.bf16.msra.mxu0 %v17189_v57  ;;  %v17272_v57 = vld [vmem:[#allocation8 + $0x144] ss:$16 sps:$4 sm:$0xff]  }
 0x1b9   :  { %1163 = vmatprep.subr.bf16.mxu0 %v17197_v60  ;;  %1266 = vmatpush1.bf16.msra.mxu1 %v17291_v30  ;;  %v17270_v60 = vld [vmem:[#allocation8 + $0x140] ss:$16 sps:$4 sm:$0xff]   ;;  %v17378_v30 = vld [vmem:[#allocation8 + $0x148] ss:$16 sps:$4 sm:$0xff]  }
 0x1ba   :  { %1267 = vmatprep.subr.bf16.mxu1 %v17299_v32  ;;  %v17386_v32 = vld [vmem:[#allocation8 + $0x16c] ss:$16 sps:$4 sm:$0xff]  }
 0x1bc   :  { %1164 = vmatpush1.bf16.msra.mxu0 %v17195_v62  ;;  %v17278_v62 = vld [vmem:[#allocation8 + $0x164] ss:$16 sps:$4 sm:$0xff]  }
 0x1bd   :  { %1165 = vmatprep.subr.bf16.mxu0 %v17203_v1  ;;  %1268 = vmatpush1.bf16.msra.mxu1 %v17297_v34  ;;  %v17276_v1 = vld [vmem:[#allocation8 + $0x160] ss:$16 sps:$4 sm:$0xff]   ;;  %v17384_v34 = vld [vmem:[#allocation8 + $0x168] ss:$16 sps:$4 sm:$0xff]  }
 0x1be   :  { %1269 = vmatprep.subr.bf16.mxu1 %v17305_v36  ;;  %v17392_v36 = vld [vmem:[#allocation8 + $0x18c] ss:$16 sps:$4 sm:$0xff]  }
 0x1c0   :  { %1166 = vmatpush1.bf16.msra.mxu0 %v17201_v2  ;;  %v17350_v2 = vld [vmem:[#allocation8 + $0xac] ss:$16 sps:$4 sm:$0xff]  }
 0x1c1   :  { %2084 = vmatprep.subr.bf16.mxu0 %v17211_v5  ;;  %1270 = vmatpush1.bf16.msra.mxu1 %v17303_v38  ;;  %v17282_v5 = vld [vmem:[#allocation8 + $0x180] ss:$16 sps:$4 sm:$0xff]  }
 0x1c2   :  { %1271 = vmatprep.subr.bf16.mxu1 %v17311_v40  ;;  %v17321_v38 = vld [vmem:[#allocation8 + $0x260] ss:$16 sps:$4 sm:$0xff]   ;;  %v17398_v40 = vld [vmem:[#allocation8 + $0x1ac] ss:$16 sps:$4 sm:$0xff]  }
 0x1c3   :  { %1168 = vmatmul.mubr.bf16.vlgmr.msra.gmra.mrb[0].mxu0 %v19540_v11 }
 0x1c4   :  { %2085 = vmatpush1.bf16.msra.mxu0 %v17209_v13  ;;  %1177 = vmatprep.mubr.bf16.mxu0 %v19542_v17  ;;  %v17296_v13 = vld [vmem:[#allocation8 + $0x1c4] ss:$16 sps:$4 sm:$0xff]  }
 0x1c5   :  { %2086 = vmatprep.subr.bf16.mxu0 %v17217_v16  ;;  %1272 = vmatpush1.bf16.msra.mxu1 %v17309_v42  ;;  %v17360_v16 = vld [vmem:[#allocation8 + $0xe8] ss:$16 sps:$4 sm:$0xff]  }
 0x1c6   :  { %2190 = vmatprep.subr.bf16.mxu1 %v17320_v44  ;;  %v17396_v42 = vld [vmem:[#allocation8 + $0x1a8] ss:$16 sps:$4 sm:$0xff]   ;;  %v17401_v44 = vld [vmem:[#allocation8 + $0x1cc] ss:$16 sps:$4 sm:$0xff]  }
 0x1c8   :  { %2087 = vmatpush1.bf16.msra.mxu0 %v17215_v19  ;;  %1274 = vmatmul.mubr.bf16.vlgmr.msra.gmra.mrb[0].mxu1 %v19540_v11  ;;  %v17368_v19 = vld [vmem:[#allocation8 + $0x10c] ss:$16 sps:$4 sm:$0xff]  }
 0x1c9   :  { %2088 = vmatprep.subr.bf16.mxu0 %v17224_v24  ;;  %2191 = vmatpush1.bf16.msra.mxu1 %v17318_v46  ;;  %v17308_v24 = vld [vmem:[#allocation8 + $0x204] ss:$16 sps:$4 sm:$0xff]   ;;  %v17333_v46 = vld [vmem:[#allocation8 + $0x2a0] ss:$16 sps:$4 sm:$0xff]  }
 0x1ca   :  { %1283 = vmatprep.mubr.bf16.mxu1 %v19542_v17  ;;  %2192 = vmatprep.subr.bf16.mxu1 %v17326_v48  ;;  %v17404_v48 = vld [vmem:[#allocation8 + $0x1ec] ss:$16 sps:$4 sm:$0xff]  }
 0x1cb   :  { %1178 = vmatmul.mubr.bf16.gmra.mrb[4].mxu0 %v19546_v25 }
 0x1cc   :  { %2089 = vmatpush1.bf16.msra.mxu0 %v17222_v27  ;;  %2116 = vmatprep.mubr.bf16.mxu0 %v19520_v15  ;;  %v17306_v27 = vld [vmem:[#allocation8 + $0x200] ss:$16 sps:$4 sm:$0xff]  }
 0x1cd   :  { %2090 = vmatprep.subr.bf16.mxu0 %v17230_v29  ;;  %2193 = vmatpush1.bf16.msra.mxu1 %v17324_v50  ;;  %v17314_v29 = vld [vmem:[#allocation8 + $0x224] ss:$16 sps:$4 sm:$0xff]   ;;  %v17339_v50 = vld [vmem:[#allocation8 + $0x2c0] ss:$16 sps:$4 sm:$0xff]  }
 0x1ce   :  { %2194 = vmatprep.subr.bf16.mxu1 %v17332_v52  ;;  %v17407_v52 = vld [vmem:[#allocation8 + $0x20c] ss:$16 sps:$4 sm:$0xff]  }
 0x1d0   :  { %2091 = vmatpush1.bf16.msra.mxu0 %v17228_v31  ;;  %1284 = vmatmul.mubr.bf16.gmra.mrb[4].mxu1 %v19546_v25  ;;  %v17312_v31 = vld [vmem:[#allocation8 + $0x220] ss:$16 sps:$4 sm:$0xff]  }
 0x1d1   :  { %2092 = vmatprep.subr.bf16.mxu0 %v17236_v33  ;;  %2195 = vmatpush1.bf16.msra.mxu1 %v17330_v54  ;;  %v17317_v33 = vld [vmem:[#allocation8 + $0x244] ss:$16 sps:$4 sm:$0xff]   ;;  %v17345_v54 = vld [vmem:[#allocation8 + $0x2e0] ss:$16 sps:$4 sm:$0xff]  }
 0x1d2   :  { %2222 = vmatprep.mubr.bf16.mxu1 %v19520_v15  ;;  %2196 = vmatprep.subr.bf16.mxu1 %v17338_v56  ;;  %v17410_v56 = vld [vmem:[#allocation8 + $0x22c] ss:$16 sps:$4 sm:$0xff]  }
 0x1d4   :  { %2093 = vmatpush1.bf16.msra.mxu0 %v17234_v35  ;;  %v17315_v35 = vld [vmem:[#allocation8 + $0x240] ss:$16 sps:$4 sm:$0xff]  }
 0x1d5   :  { %2094 = vmatprep.subr.bf16.mxu0 %v17242_v37  ;;  %2197 = vmatpush1.bf16.msra.mxu1 %v17336_v58  ;;  %v17323_v37 = vld [vmem:[#allocation8 + $0x264] ss:$16 sps:$4 sm:$0xff]   ;;  %v17351_v58 = vld [vmem:[#allocation8 + $0x300] ss:$16 sps:$4 sm:$0xff]  }
 0x1d6   :  { %2198 = vmatprep.subr.bf16.mxu1 %v17344_v61  ;;  %v17413_v61 = vld [vmem:[#allocation8 + $0x24c] ss:$16 sps:$4 sm:$0xff]  }
 0x1d8   :  { %2095 = vmatpush1.bf16.msra.mxu0 %v17240_v39  ;;  %v17390_v39 = vld [vmem:[#allocation8 + $0x188] ss:$16 sps:$4 sm:$0xff]  }
 0x1d9   :  { %2096 = vmatprep.subr.bf16.mxu0 %v17248_v41  ;;  %2199 = vmatpush1.bf16.msra.mxu1 %v17342_v63  ;;  %v17329_v41 = vld [vmem:[#allocation8 + $0x284] ss:$16 sps:$4 sm:$0xff]   ;;  %v17411_v63 = vld [vmem:[#allocation8 + $0x248] ss:$16 sps:$4 sm:$0xff]  }
 0x1da   :  { %2200 = vmatprep.subr.bf16.mxu1 %v17350_v2  ;;  %v17419_v2 = vld [vmem:[#allocation8 + $0x26c] ss:$16 sps:$4 sm:$0xff]  }
 0x1dc   :  { %2097 = vmatpush1.bf16.msra.mxu0 %v17246_v43  ;;  %v17327_v43 = vld [vmem:[#allocation8 + $0x280] ss:$16 sps:$4 sm:$0xff]  }
 0x1dd   :  { %2098 = vmatprep.subr.bf16.mxu0 %v17254_v45  ;;  %2201 = vmatpush1.bf16.msra.mxu1 %v17348_v4  ;;  %v17335_v45 = vld [vmem:[#allocation8 + $0x2a4] ss:$16 sps:$4 sm:$0xff]   ;;  %v17417_v4 = vld [vmem:[#allocation8 + $0x268] ss:$16 sps:$4 sm:$0xff]  }
 0x1de   :  { %2202 = vmatprep.subr.bf16.mxu1 %v17356_v6  ;;  %v17425_v6 = vld [vmem:[#allocation8 + $0x28c] ss:$16 sps:$4 sm:$0xff]  }
 0x1e0   :  { %2099 = vmatpush1.bf16.msra.mxu0 %v17252_v47  ;;  %v17399_v47 = vld [vmem:[#allocation8 + $0x1c8] ss:$16 sps:$4 sm:$0xff]  }
 0x1e1   :  { %2100 = vmatprep.subr.bf16.mxu0 %v17260_v49  ;;  %2203 = vmatpush1.bf16.msra.mxu1 %v17354_v8  ;;  %v17341_v49 = vld [vmem:[#allocation8 + $0x2c4] ss:$16 sps:$4 sm:$0xff]   ;;  %v17423_v8 = vld [vmem:[#allocation8 + $0x288] ss:$16 sps:$4 sm:$0xff]  }
 0x1e2   :  { %2204 = vmatprep.subr.bf16.mxu1 %v17362_v12  ;;  %v17377_v12 = vld [vmem:[#allocation8 + $0x384] ss:$16 sps:$4 sm:$0xff]  }
 0x1e4   :  { %2101 = vmatpush1.bf16.msra.mxu0 %v17258_v51  ;;  %v17402_v51 = vld [vmem:[#allocation8 + $0x1e8] ss:$16 sps:$4 sm:$0xff]  }
 0x1e5   :  { %2102 = vmatprep.subr.bf16.mxu0 %v17266_v53  ;;  %2205 = vmatpush1.bf16.msra.mxu1 %v17360_v16  ;;  %v17347_v53 = vld [vmem:[#allocation8 + $0x2e4] ss:$16 sps:$4 sm:$0xff]   ;;  %v17429_v16 = vld [vmem:[#allocation8 + $0x2a8] ss:$16 sps:$4 sm:$0xff]  }
 0x1e6   :  { %2206 = vmatprep.subr.bf16.mxu1 %v17368_v19  ;;  %v17383_v19 = vld [vmem:[#allocation8 + $0x3a4] ss:$16 sps:$4 sm:$0xff]  }
 0x1e8   :  { %2103 = vmatpush1.bf16.msra.mxu0 %v17264_v55  ;;  %v17405_v55 = vld [vmem:[#allocation8 + $0x208] ss:$16 sps:$4 sm:$0xff]  }
 0x1e9   :  { %2104 = vmatprep.subr.bf16.mxu0 %v17272_v57  ;;  %2207 = vmatpush1.bf16.msra.mxu1 %v17366_v21  ;;  %v17353_v57 = vld [vmem:[#allocation8 + $0x304] ss:$16 sps:$4 sm:$0xff]   ;;  %v17435_v21 = vld [vmem:[#allocation8 + $0x2c8] ss:$16 sps:$4 sm:$0xff]  }
 0x1ea   :  { %2208 = vmatprep.subr.bf16.mxu1 %v17374_v23  ;;  %v17389_v23 = vld [vmem:[#allocation8 + $0x3c4] ss:$16 sps:$4 sm:$0xff]  }
 0x1ec   :  { %2105 = vmatpush1.bf16.msra.mxu0 %v17270_v60  ;;  %v17408_v60 = vld [vmem:[#allocation8 + $0x228] ss:$16 sps:$4 sm:$0xff]  }
 0x1ed   :  { %2106 = vmatprep.subr.bf16.mxu0 %v17278_v62  ;;  %2209 = vmatpush1.bf16.msra.mxu1 %v17372_v26  ;;  %v17359_v62 = vld [vmem:[#allocation8 + $0x324] ss:$16 sps:$4 sm:$0xff]   ;;  %v17441_v26 = vld [vmem:[#allocation8 + $0x2e8] ss:$16 sps:$4 sm:$0xff]  }
 0x1ee   :  { %2210 = vmatprep.subr.bf16.mxu1 %v17380_v28  ;;  %v17395_v28 = vld [vmem:[#allocation8 + $0x3e4] ss:$16 sps:$4 sm:$0xff]  }
 0x1f0   :  { %2107 = vmatpush1.bf16.msra.mxu0 %v17276_v1  ;;  %v17357_v1 = vld [vmem:[#allocation8 + $0x320] ss:$16 sps:$4 sm:$0xff]  }
 0x1f1   :  { %2108 = vmatprep.subr.bf16.mxu0 %v17284_v3  ;;  %2211 = vmatpush1.bf16.msra.mxu1 %v17378_v30  ;;  %v17365_v3 = vld [vmem:[#allocation8 + $0x344] ss:$16 sps:$4 sm:$0xff]   ;;  %v17447_v30 = vld [vmem:[#allocation8 + $0x308] ss:$16 sps:$4 sm:$0xff]  }
 0x1f2   :  { %2212 = vmatprep.subr.bf16.mxu1 %v17386_v32  ;;  %v17416_v32 = vld [vmem:[#allocation9 + $0x4] ss:$16 sps:$4 sm:$0xff]  }
 0x1f4   :  { %2109 = vmatpush1.bf16.msra.mxu0 %v17282_v5  ;;  %v17363_v5 = vld [vmem:[#allocation8 + $0x340] ss:$16 sps:$4 sm:$0xff]  }
 0x1f5   :  { %2110 = vmatprep.subr.bf16.mxu0 %v17290_v7  ;;  %2213 = vmatpush1.bf16.msra.mxu1 %v17384_v34  ;;  %v17371_v7 = vld [vmem:[#allocation8 + $0x364] ss:$16 sps:$4 sm:$0xff]   ;;  %v17453_v34 = vld [vmem:[#allocation8 + $0x328] ss:$16 sps:$4 sm:$0xff]  }
 0x1f6   :  { %2214 = vmatprep.subr.bf16.mxu1 %v17392_v36  ;;  %v17422_v36 = vld [vmem:[#allocation9 + $0x24] ss:$16 sps:$4 sm:$0xff]  }
 0x1f8   :  { %2111 = vmatpush1.bf16.msra.mxu0 %v17288_v9  ;;  %v17369_v9 = vld [vmem:[#allocation8 + $0x360] ss:$16 sps:$4 sm:$0xff]  }
 0x1f9   :  { %2112 = vmatprep.subr.bf16.mxu0 %v17296_v13  ;;  %2215 = vmatpush1.bf16.msra.mxu1 %v17390_v39  ;;  %v17431_v13 = vld [vmem:[#allocation8 + $0x2ac] ss:$16 sps:$4 sm:$0xff]   ;;  %v17420_v39 = vld [vmem:[#allocation9 + $0x20] ss:$16 sps:$4 sm:$0xff]  }
 0x1fa   :  { %2216 = vmatprep.subr.bf16.mxu1 %v17398_v40  ;;  %v17467_v40 = vld [vmem:[#allocation8 + $0x36c] ss:$16 sps:$4 sm:$0xff]  }
 0x1fc   :  { %2113 = vmatpush1.bf16.msra.mxu0 %v17294_v18  ;;  %v17375_v18 = vld [vmem:[#allocation8 + $0x380] ss:$16 sps:$4 sm:$0xff]  }
 0x1fd   :  { %2114 = vmatprep.subr.bf16.mxu0 %v17302_v20  ;;  %2217 = vmatpush1.bf16.msra.mxu1 %v17396_v42  ;;  %v17437_v20 = vld [vmem:[#allocation8 + $0x2cc] ss:$16 sps:$4 sm:$0xff]   ;;  %v17465_v42 = vld [vmem:[#allocation8 + $0x368] ss:$16 sps:$4 sm:$0xff]  }
 0x1fe   :  { %2218 = vmatprep.subr.bf16.mxu1 %v17401_v44  ;;  %v17473_v44 = vld [vmem:[#allocation8 + $0x38c] ss:$16 sps:$4 sm:$0xff]  }
 0x200   :  { %2115 = vmatpush1.bf16.msra.mxu0 %v17300_v22  ;;  %v17381_v22 = vld [vmem:[#allocation8 + $0x3a0] ss:$16 sps:$4 sm:$0xff]  }
 0x201   :  { %2137 = vmatprep.subr.bf16.mxu0 %v17308_v24  ;;  %2219 = vmatpush1.bf16.msra.mxu1 %v17399_v47  ;;  %v17443_v24 = vld [vmem:[#allocation8 + $0x2ec] ss:$16 sps:$4 sm:$0xff]   ;;  %v17440_v47 = vld [vmem:[#allocation9 + $0x84] ss:$16 sps:$4 sm:$0xff]  }
 0x202   :  { %2220 = vmatprep.subr.bf16.mxu1 %v17404_v48  ;;  %v17471_v48 = vld [vmem:[#allocation8 + $0x388] ss:$16 sps:$4 sm:$0xff]  }
 0x203   :  { %2117 = vmatmul.mubr.bf16.vlgmr.msra.gmra.mrb[8].mxu0 %v19524_v59 }
 0x204   :  { %2138 = vmatpush1.bf16.msra.mxu0 %v17306_v27  ;;  %2126 = vmatprep.mubr.bf16.mxu0 %v19526_v0  ;;  %v17387_v27 = vld [vmem:[#allocation8 + $0x3c0] ss:$16 sps:$4 sm:$0xff]  }
 0x205   :  { %2139 = vmatprep.subr.bf16.mxu0 %v17314_v29  ;;  %2221 = vmatpush1.bf16.msra.mxu1 %v17402_v51  ;;  %v17449_v29 = vld [vmem:[#allocation8 + $0x30c] ss:$16 sps:$4 sm:$0xff]   ;;  %v17446_v51 = vld [vmem:[#allocation9 + $0xa4] ss:$16 sps:$4 sm:$0xff]  }
 0x206   :  { %2243 = vmatprep.subr.bf16.mxu1 %v17407_v52  ;;  %v17477_v52 = vld [vmem:[#allocation8 + $0x3a8] ss:$16 sps:$4 sm:$0xff]  }
 0x208   :  { %2140 = vmatpush1.bf16.msra.mxu0 %v17312_v31  ;;  %2223 = vmatmul.mubr.bf16.vlgmr.msra.gmra.mrb[8].mxu1 %v19524_v59  ;;  %v17393_v31 = vld [vmem:[#allocation8 + $0x3e0] ss:$16 sps:$4 sm:$0xff]  }
 0x209   :  { %2141 = vmatprep.subr.bf16.mxu0 %v17317_v33  ;;  %2244 = vmatpush1.bf16.msra.mxu1 %v17405_v55  ;;  %v17455_v33 = vld [vmem:[#allocation8 + $0x32c] ss:$16 sps:$4 sm:$0xff]   ;;  %v17452_v55 = vld [vmem:[#allocation9 + $0xc4] ss:$16 sps:$4 sm:$0xff]  }
 0x20a   :  { %2232 = vmatprep.mubr.bf16.mxu1 %v19526_v0  ;;  %2245 = vmatprep.subr.bf16.mxu1 %v17410_v56  ;;  %v17483_v56 = vld [vmem:[#allocation8 + $0x3c8] ss:$16 sps:$4 sm:$0xff]  }
 0x20b   :  { %2127 = vmatmul.mubr.bf16.gmra.mrb[12].mxu0 %v19530_v10 }
 0x20c   :  { %2142 = vmatpush1.bf16.msra.mxu0 %v17315_v35  ;;  %2169 = vmatprep.mubr.bf16.mxu0 %v19532_v14  ;;  %v17414_v35 = vld [vmem:[#allocation9] ss:$16 sps:$4 sm:$0xff]  }
 0x20d   :  { %2143 = vmatprep.subr.bf16.mxu0 %v17323_v37  ;;  %2246 = vmatpush1.bf16.msra.mxu1 %v17408_v60  ;;  %v17461_v37 = vld [vmem:[#allocation8 + $0x34c] ss:$16 sps:$4 sm:$0xff]   ;;  %v17458_v60 = vld [vmem:[#allocation9 + $0xe4] ss:$16 sps:$4 sm:$0xff]  }
 0x20e   :  { %2247 = vmatprep.subr.bf16.mxu1 %v17413_v61  ;;  %v17489_v61 = vld [vmem:[#allocation8 + $0x3e8] ss:$16 sps:$4 sm:$0xff]  }
 0x210   :  { %2144 = vmatpush1.bf16.msra.mxu0 %v17321_v38  ;;  %2233 = vmatmul.mubr.bf16.gmra.mrb[12].mxu1 %v19530_v10  ;;  %v17459_v38 = vld [vmem:[#allocation8 + $0x348] ss:$16 sps:$4 sm:$0xff]  }
 0x211   :  { %2145 = vmatprep.subr.bf16.mxu0 %v17329_v41  ;;  %2248 = vmatpush1.bf16.msra.mxu1 %v17411_v63  ;;  %v17428_v41 = vld [vmem:[#allocation9 + $0x44] ss:$16 sps:$4 sm:$0xff]   ;;  %v17495_v63 = vld [vmem:[#allocation9 + $0x8] ss:$16 sps:$4 sm:$0xff]  }
 0x212   :  { %2275 = vmatprep.mubr.bf16.mxu1 %v19532_v14  ;;  %2249 = vmatprep.subr.bf16.mxu1 %v17419_v2  ;;  %v17503_v2 = vld [vmem:[#allocation9 + $0x2c] ss:$16 sps:$4 sm:$0xff]  }
 0x214   :  { %2146 = vmatpush1.bf16.msra.mxu0 %v17327_v43  ;;  %v17426_v43 = vld [vmem:[#allocation9 + $0x40] ss:$16 sps:$4 sm:$0xff]  }
 0x215   :  { %2147 = vmatprep.subr.bf16.mxu0 %v17335_v45  ;;  %2250 = vmatpush1.bf16.msra.mxu1 %v17417_v4  ;;  %v17434_v45 = vld [vmem:[#allocation9 + $0x64] ss:$16 sps:$4 sm:$0xff]   ;;  %v17501_v4 = vld [vmem:[#allocation9 + $0x28] ss:$16 sps:$4 sm:$0xff]  }
 0x216   :  { %2251 = vmatprep.subr.bf16.mxu1 %v17425_v6  ;;  %v17509_v6 = vld [vmem:[#allocation9 + $0x4c] ss:$16 sps:$4 sm:$0xff]  }
 0x218   :  { %2148 = vmatpush1.bf16.msra.mxu0 %v17333_v46  ;;  %v17432_v46 = vld [vmem:[#allocation9 + $0x60] ss:$16 sps:$4 sm:$0xff]  }
 0x219   :  { %2149 = vmatprep.subr.bf16.mxu0 %v17341_v49  ;;  %2252 = vmatpush1.bf16.msra.mxu1 %v17423_v8  ;;  %v17479_v49 = vld [vmem:[#allocation8 + $0x3ac] ss:$16 sps:$4 sm:$0xff]   ;;  %v17507_v8 = vld [vmem:[#allocation9 + $0x48] ss:$16 sps:$4 sm:$0xff]  }
 0x21a   :  { %2253 = vmatprep.subr.bf16.mxu1 %v17431_v13  ;;  %v17476_v13 = vld [vmem:[#allocation9 + $0x144] ss:$16 sps:$4 sm:$0xff]  }
 0x21c   :  { %2150 = vmatpush1.bf16.msra.mxu0 %v17339_v50  ;;  %v17438_v50 = vld [vmem:[#allocation9 + $0x80] ss:$16 sps:$4 sm:$0xff]  }
 0x21d   :  { %2151 = vmatprep.subr.bf16.mxu0 %v17347_v53  ;;  %2254 = vmatpush1.bf16.msra.mxu1 %v17429_v16  ;;  %v17485_v53 = vld [vmem:[#allocation8 + $0x3cc] ss:$16 sps:$4 sm:$0xff]   ;;  %v17513_v16 = vld [vmem:[#allocation9 + $0x68] ss:$16 sps:$4 sm:$0xff]  }
 0x21e   :  { %2255 = vmatprep.subr.bf16.mxu1 %v17437_v20  ;;  %v17482_v20 = vld [vmem:[#allocation9 + $0x164] ss:$16 sps:$4 sm:$0xff]  }
 0x220   :  { %2152 = vmatpush1.bf16.msra.mxu0 %v17345_v54  ;;  %v17444_v54 = vld [vmem:[#allocation9 + $0xa0] ss:$16 sps:$4 sm:$0xff]  }
 0x221   :  { %2153 = vmatprep.subr.bf16.mxu0 %v17353_v57  ;;  %2256 = vmatpush1.bf16.msra.mxu1 %v17435_v21  ;;  %v17491_v57 = vld [vmem:[#allocation8 + $0x3ec] ss:$16 sps:$4 sm:$0xff]   ;;  %v17519_v21 = vld [vmem:[#allocation9 + $0x88] ss:$16 sps:$4 sm:$0xff]  }
 0x222   :  { %2257 = vmatprep.subr.bf16.mxu1 %v17443_v24  ;;  %v17488_v24 = vld [vmem:[#allocation9 + $0x184] ss:$16 sps:$4 sm:$0xff]  }
 0x224   :  { %2154 = vmatpush1.bf16.msra.mxu0 %v17351_v58  ;;  %v17450_v58 = vld [vmem:[#allocation9 + $0xc0] ss:$16 sps:$4 sm:$0xff]  }
 0x225   :  { %2155 = vmatprep.subr.bf16.mxu0 %v17359_v62  ;;  %2258 = vmatpush1.bf16.msra.mxu1 %v17441_v26  ;;  %v17497_v62 = vld [vmem:[#allocation9 + $0xc] ss:$16 sps:$4 sm:$0xff]   ;;  %v17525_v26 = vld [vmem:[#allocation9 + $0xa8] ss:$16 sps:$4 sm:$0xff]  }
 0x226   :  { %2259 = vmatprep.subr.bf16.mxu1 %v17449_v29  ;;  %v17494_v29 = vld [vmem:[#allocation9 + $0x1a4] ss:$16 sps:$4 sm:$0xff]  }
 0x228   :  { %2156 = vmatpush1.bf16.msra.mxu0 %v17357_v1  ;;  %v17456_v1 = vld [vmem:[#allocation9 + $0xe0] ss:$16 sps:$4 sm:$0xff]  }
 0x229   :  { %2157 = vmatprep.subr.bf16.mxu0 %v17365_v3  ;;  %2260 = vmatpush1.bf16.msra.mxu1 %v17447_v30  ;;  %v17464_v3 = vld [vmem:[#allocation9 + $0x104] ss:$16 sps:$4 sm:$0xff]   ;;  %v17492_v30 = vld [vmem:[#allocation9 + $0x1a0] ss:$16 sps:$4 sm:$0xff]  }
 0x22a   :  { %2261 = vmatprep.subr.bf16.mxu1 %v17455_v33  ;;  %v17537_v33 = vld [vmem:[#allocation9 + $0xe8] ss:$16 sps:$4 sm:$0xff]  }
 0x22c   :  { %2158 = vmatpush1.bf16.msra.mxu0 %v17363_v5  ;;  %v17462_v5 = vld [vmem:[#allocation9 + $0x100] ss:$16 sps:$4 sm:$0xff]  }
 0x22d   :  { %2159 = vmatprep.subr.bf16.mxu0 %v17371_v7  ;;  %2262 = vmatpush1.bf16.msra.mxu1 %v17453_v34  ;;  %v17470_v7 = vld [vmem:[#allocation9 + $0x124] ss:$16 sps:$4 sm:$0xff]   ;;  %v17498_v34 = vld [vmem:[#allocation9 + $0x1c0] ss:$16 sps:$4 sm:$0xff]  }
 0x22e   :  { %2263 = vmatprep.subr.bf16.mxu1 %v17461_v37  ;;  %v17543_v37 = vld [vmem:[#allocation9 + $0x108] ss:$16 sps:$4 sm:$0xff]  }
 0x230   :  { %2160 = vmatpush1.bf16.msra.mxu0 %v17369_v9  ;;  %v17468_v9 = vld [vmem:[#allocation9 + $0x120] ss:$16 sps:$4 sm:$0xff]  }
 0x231   :  { %2161 = vmatprep.subr.bf16.mxu0 %v17377_v12  ;;  %2264 = vmatpush1.bf16.msra.mxu1 %v17459_v38  ;;  %v17515_v12 = vld [vmem:[#allocation9 + $0x6c] ss:$16 sps:$4 sm:$0xff]   ;;  %v17504_v38 = vld [vmem:[#allocation9 + $0x1e0] ss:$16 sps:$4 sm:$0xff]  }
 0x232   :  { %2265 = vmatprep.subr.bf16.mxu1 %v17467_v40  ;;  %v17512_v40 = vld [vmem:[#allocation9 + $0x204] ss:$16 sps:$4 sm:$0xff]  }
 0x234   :  { %2162 = vmatpush1.bf16.msra.mxu0 %v17375_v18  ;;  %v17474_v18 = vld [vmem:[#allocation9 + $0x140] ss:$16 sps:$4 sm:$0xff]  }
 0x235   :  { %2163 = vmatprep.subr.bf16.mxu0 %v17383_v19  ;;  %2266 = vmatpush1.bf16.msra.mxu1 %v17465_v42  ;;  %v17521_v19 = vld [vmem:[#allocation9 + $0x8c] ss:$16 sps:$4 sm:$0xff]   ;;  %v17510_v42 = vld [vmem:[#allocation9 + $0x200] ss:$16 sps:$4 sm:$0xff]  }
 0x236   :  { %2267 = vmatprep.subr.bf16.mxu1 %v17473_v44  ;;  %v17518_v44 = vld [vmem:[#allocation9 + $0x224] ss:$16 sps:$4 sm:$0xff]  }
 0x238   :  { %2164 = vmatpush1.bf16.msra.mxu0 %v17381_v22  ;;  %v17480_v22 = vld [vmem:[#allocation9 + $0x160] ss:$16 sps:$4 sm:$0xff]  }
 0x239   :  { %2165 = vmatprep.subr.bf16.mxu0 %v17389_v23  ;;  %2268 = vmatpush1.bf16.msra.mxu1 %v17471_v48  ;;  %v17527_v23 = vld [vmem:[#allocation9 + $0xac] ss:$16 sps:$4 sm:$0xff]   ;;  %v17524_v48 = vld [vmem:[#allocation9 + $0x244] ss:$16 sps:$4 sm:$0xff]  }
 0x23a   :  { %2269 = vmatprep.subr.bf16.mxu1 %v17479_v49  ;;  %v17561_v49 = vld [vmem:[#allocation9 + $0x168] ss:$16 sps:$4 sm:$0xff]  }
 0x23c   :  { %2166 = vmatpush1.bf16.msra.mxu0 %v17387_v27  ;;  %v17486_v27 = vld [vmem:[#allocation9 + $0x180] ss:$16 sps:$4 sm:$0xff]  }
 0x23d   :  { %2167 = vmatprep.subr.bf16.mxu0 %v17395_v28  ;;  %2270 = vmatpush1.bf16.msra.mxu1 %v17477_v52  ;;  %v17533_v28 = vld [vmem:[#allocation9 + $0xcc] ss:$16 sps:$4 sm:$0xff]   ;;  %v17530_v52 = vld [vmem:[#allocation9 + $0x264] ss:$16 sps:$4 sm:$0xff]  }
 0x23e   :  { %2271 = vmatprep.subr.bf16.mxu1 %v17485_v53  ;;  %v422_v53 = vlaneseq }
 0x240   :  { %2168 = vmatpush1.bf16.msra.mxu0 %v17393_v31  ;;  %v17539_v31 = vld [vmem:[#allocation9 + $0xec] ss:$16 sps:$4 sm:$0xff]  }
 0x241   :  { %3086 = vmatprep.subr.bf16.mxu0 %v17416_v32  ;;  %2272 = vmatpush1.bf16.msra.mxu1 %v17483_v56  ;;  %v17500_v32 = vld [vmem:[#allocation9 + $0x1c4] ss:$16 sps:$4 sm:$0xff]   ;;  %v17575_v56 = vld [vmem:[#allocation9 + $0x1ac] ss:$16 sps:$4 sm:$0xff]  }
 0x242   :  { %2273 = vmatprep.subr.bf16.mxu1 %v17491_v57  ;;  %v17536_v57 = vld [vmem:[#allocation9 + $0x284] ss:$16 sps:$4 sm:$0xff]  }
 0x243   :  { %2170 = vmatmul.mubr.bf16.vlgmr.msra.gmra.mrb[8].mxu0 %v19540_v11 }
 0x244   :  { %2179 = vmatprep.mubr.bf16.mxu0 %v19542_v17  ;;  %3087 = vmatpush1.bf16.msra.mxu0 %v17414_v35  ;;  %v17545_v35 = vld [vmem:[#allocation9 + $0x10c] ss:$16 sps:$4 sm:$0xff]  }
 0x245   :  { %3088 = vmatprep.subr.bf16.mxu0 %v17422_v36  ;;  %2274 = vmatpush1.bf16.msra.mxu1 %v17489_v61  ;;  %v17506_v36 = vld [vmem:[#allocation9 + $0x1e4] ss:$16 sps:$4 sm:$0xff]   ;;  %v17534_v61 = vld [vmem:[#allocation9 + $0x280] ss:$16 sps:$4 sm:$0xff]  }
 0x246   :  { %3192 = vmatprep.subr.bf16.mxu1 %v17497_v62  ;;  %v17581_v62 = vld [vmem:[#allocation9 + $0x1cc] ss:$16 sps:$4 sm:$0xff]  }
 0x248   :  { %3089 = vmatpush1.bf16.msra.mxu0 %v17420_v39  ;;  %2276 = vmatmul.mubr.bf16.vlgmr.msra.gmra.mrb[8].mxu1 %v19540_v11  ;;  %v17551_v39 = vld [vmem:[#allocation9 + $0x12c] ss:$16 sps:$4 sm:$0xff]  }
 0x249   :  { %3090 = vmatprep.subr.bf16.mxu0 %v17428_v41  ;;  %3193 = vmatpush1.bf16.msra.mxu1 %v17495_v63  ;;  %v17549_v41 = vld [vmem:[#allocation9 + $0x128] ss:$16 sps:$4 sm:$0xff]   ;;  %v19576_v63 = vld [vmem:[#allocation11] sm:$0xf] }
 0x24a   :  { %2285 = vmatprep.mubr.bf16.mxu1 %v19542_v17  ;;  %3194 = vmatprep.subr.bf16.mxu1 %v17503_v2 }
 0x24b   :  { %2180 = vmatmul.mubr.bf16.gmra.mrb[12].mxu0 %v19546_v25 }
 0x24c   :  { %3091 = vmatpush1.bf16.msra.mxu0 %v17426_v43  ;;  %3118 = vmatprep.mubr.bf16.mxu0 %v19520_v15  ;;  %v17557_v43 = vld [vmem:[#allocation9 + $0x14c] ss:$16 sps:$4 sm:$0xff]  }
 0x24d   :  { %3092 = vmatprep.subr.bf16.mxu0 %v17434_v45  ;;  %3195 = vmatpush1.bf16.msra.mxu1 %v17501_v4  ;;  %v17555_v45 = vld [vmem:[#allocation9 + $0x148] ss:$16 sps:$4 sm:$0xff]  }
 0x24e   :  { %3196 = vmatprep.subr.bf16.mxu1 %v17509_v6  ;;  %v17579_v4 = vld [vmem:[#allocation9 + $0x1c8] ss:$16 sps:$4 sm:$0xff]   ;;  %v17587_v6 = vld [vmem:[#allocation9 + $0x1ec] ss:$16 sps:$4 sm:$0xff]  }
 0x250   :  { %3093 = vmatpush1.bf16.msra.mxu0 %v17432_v46  ;;  %2286 = vmatmul.mubr.bf16.gmra.mrb[12].mxu1 %v19546_v25  ;;  %v17516_v46 = vld [vmem:[#allocation9 + $0x220] ss:$16 sps:$4 sm:$0xff]  }
 0x251   :  { %3094 = vmatprep.subr.bf16.mxu0 %v17440_v47  ;;  %3197 = vmatpush1.bf16.msra.mxu1 %v17507_v8  ;;  %v17563_v47 = vld [vmem:[#allocation9 + $0x16c] ss:$16 sps:$4 sm:$0xff]  }
 0x252   :  { %3224 = vmatprep.mubr.bf16.mxu1 %v19520_v15  ;;  %3198 = vmatprep.subr.bf16.mxu1 %v17515_v12  ;;  %v17531_v15 = vld [vmem:[#allocation9 + $0xc8] ss:$16 sps:$4 sm:$0xff]  }
 0x253   :  { %v17585_v12 = vld [vmem:[#allocation9 + $0x1e8] ss:$16 sps:$4 sm:$0xff]  }
 0x254   :  { %3095 = vmatpush1.bf16.msra.mxu0 %v17438_v50  ;;  %v17522_v50 = vld [vmem:[#allocation9 + $0x240] ss:$16 sps:$4 sm:$0xff]  }
 0x255   :  { %3096 = vmatprep.subr.bf16.mxu0 %v17446_v51  ;;  %3199 = vmatpush1.bf16.msra.mxu1 %v17513_v16  ;;  %v17569_v51 = vld [vmem:[#allocation9 + $0x18c] ss:$16 sps:$4 sm:$0xff]   ;;  %v17546_v16 = vld [vmem:[#allocation9 + $0x2c0] ss:$16 sps:$4 sm:$0xff]  }
 0x256   :  { %3200 = vmatprep.subr.bf16.mxu1 %v17521_v19 }
 0x258   :  { %3097 = vmatpush1.bf16.msra.mxu0 %v17444_v54  ;;  %v17567_v54 = vld [vmem:[#allocation9 + $0x188] ss:$16 sps:$4 sm:$0xff]  }
 0x259   :  { %3098 = vmatprep.subr.bf16.mxu0 %v17452_v55  ;;  %3201 = vmatpush1.bf16.msra.mxu1 %v17519_v21  ;;  %v17528_v55 = vld [vmem:[#allocation9 + $0x260] ss:$16 sps:$4 sm:$0xff]  }
 0x25a   :  { %3202 = vmatprep.subr.bf16.mxu1 %v17527_v23 }
 0x25c   :  { %3099 = vmatpush1.bf16.msra.mxu0 %v17450_v58  ;;  %v19573_v58 = vshrl.u32 %v422_v53, 7  ;;  %v17609_v53 = vld [vmem:[#allocation9 + $0x288] ss:$16 sps:$4 sm:$0xff]  }
 0x25d   :  { %3100 = vmatprep.subr.bf16.mxu0 %v17458_v60  ;;  %3203 = vmatpush1.bf16.msra.mxu1 %v17525_v26  ;;  %v17573_v60 = vld [vmem:[#allocation9 + $0x1a8] ss:$16 sps:$4 sm:$0xff]  }
 0x25e   :  { %3204 = vmatprep.subr.bf16.mxu1 %v17533_v28  ;;  %v19579_v2 = vsub.s32 1, %v19573_v58 }
 0x260   :  { %3101 = vmatpush1.bf16.msra.mxu0 %v17456_v1  ;;  %v17542_v1 = vld [vmem:[#allocation9 + $0x2a4] ss:$16 sps:$4 sm:$0xff]   ;;  %v429_v8 = vrot.slane %v19576_v63, %v19579_v2 }
 0x261   :  { %3102 = vmatprep.subr.bf16.mxu0 %v17464_v3  ;;  %3205 = vmatpush1.bf16.msra.mxu1 %v17531_v15  ;;  %v19582_v3 = vsub.s32 0, %v19573_v58  ;;  %v17599_v15 = vld [vmem:[#allocation9 + $0x22c] ss:$16 sps:$4 sm:$0xff]  }
 0x262   :  { %3206 = vmatprep.subr.bf16.mxu1 %v17539_v31  ;;  %v17560_v31 = vld [vmem:[#allocation9 + $0x304] ss:$16 sps:$4 sm:$0xff]  }
 0x264   :  { %3103 = vmatpush1.bf16.msra.mxu0 %v17462_v5  ;;  %v17540_v5 = vld [vmem:[#allocation9 + $0x2a0] ss:$16 sps:$4 sm:$0xff]  }
 0x265   :  { %3104 = vmatprep.subr.bf16.mxu0 %v17470_v7  ;;  %3207 = vmatpush1.bf16.msra.mxu1 %v17537_v33  ;;  %v17548_v7 = vld [vmem:[#allocation9 + $0x2c4] ss:$16 sps:$4 sm:$0xff]   ;;  %v17597_v33 = vld [vmem:[#allocation9 + $0x228] ss:$16 sps:$4 sm:$0xff]  }
 0x266   :  { %3208 = vmatprep.subr.bf16.mxu1 %v17545_v35  ;;  %v17558_v35 = vld [vmem:[#allocation9 + $0x300] ss:$16 sps:$4 sm:$0xff]  }
 0x268   :  { %3105 = vmatpush1.bf16.msra.mxu0 %v17468_v9  ;;  %v425_v9 = vrot.slane %v19576_v63, %v19582_v3 }
 0x269   :  { %3106 = vmatprep.subr.bf16.mxu0 %v17476_v13  ;;  %3209 = vmatpush1.bf16.msra.mxu1 %v17543_v37 }
 0x26a   :  { %3210 = vmatprep.subr.bf16.mxu1 %v17551_v39 }
 0x26c   :  { %3107 = vmatpush1.bf16.msra.mxu0 %v17474_v18  ;;  %v17593_v18 = vld [vmem:[#allocation9 + $0x20c] ss:$16 sps:$4 sm:$0xff]  }
 0x26d   :  { %3108 = vmatprep.subr.bf16.mxu0 %v17482_v20  ;;  %3211 = vmatpush1.bf16.msra.mxu1 %v17549_v41  ;;  %v17554_v20 = vld [vmem:[#allocation9 + $0x2e4] ss:$16 sps:$4 sm:$0xff]  }
 0x26e   :  { %3212 = vmatprep.subr.bf16.mxu1 %v17557_v43 }
 0x270   :  { %3109 = vmatpush1.bf16.msra.mxu0 %v17480_v22 }
 0x271   :  { %3110 = vmatprep.subr.bf16.mxu0 %v17488_v24  ;;  %3213 = vmatpush1.bf16.msra.mxu1 %v17555_v45 }
 0x272   :  { %3214 = vmatprep.subr.bf16.mxu1 %v17563_v47  ;;  %v17608_v47 = vld [vmem:[#allocation9 + $0x26c] ss:$16 sps:$4 sm:$0xff]  }
 0x274   :  { %3111 = vmatpush1.bf16.msra.mxu0 %v17486_v27  ;;  %v17591_v27 = vld [vmem:[#allocation9 + $0x208] ss:$16 sps:$4 sm:$0xff]  }
 0x275   :  { %3112 = vmatprep.subr.bf16.mxu0 %v17494_v29  ;;  %3215 = vmatpush1.bf16.msra.mxu1 %v17561_v49  ;;  %v17552_v29 = vld [vmem:[#allocation9 + $0x2e0] ss:$16 sps:$4 sm:$0xff]  }
 0x276   :  { %3216 = vmatprep.subr.bf16.mxu1 %v17569_v51  ;;  %v17611_v51 = vld [vmem:[#allocation9 + $0x28c] ss:$16 sps:$4 sm:$0xff]  }
 0x278   :  { %3113 = vmatpush1.bf16.msra.mxu0 %v17492_v30 }
 0x279   :  { %3114 = vmatprep.subr.bf16.mxu0 %v17500_v32  ;;  %3217 = vmatpush1.bf16.msra.mxu1 %v17567_v54  ;;  %v17576_v54 = vld [vmem:[#allocation9 + $0x360] ss:$16 sps:$4 sm:$0xff]  }
 0x27a   :  { %3218 = vmatprep.subr.bf16.mxu1 %v17575_v56  ;;  %v17614_v56 = vld [vmem:[#allocation9 + $0x2ac] ss:$16 sps:$4 sm:$0xff]  }
 0x27c   :  { %3115 = vmatpush1.bf16.msra.mxu0 %v17498_v34 }
 0x27d   :  { %3116 = vmatprep.subr.bf16.mxu0 %v17506_v36  ;;  %3219 = vmatpush1.bf16.msra.mxu1 %v17573_v60  ;;  %v17605_v36 = vld [vmem:[#allocation9 + $0x24c] ss:$16 sps:$4 sm:$0xff]   ;;  %v19604_v60 = vsub.s32 3, %v19573_v58 }
 0x27e   :  { %3220 = vmatprep.subr.bf16.mxu1 %v17581_v62  ;;  %v17617_v62 = vld [vmem:[#allocation9 + $0x2cc] ss:$16 sps:$4 sm:$0xff]  }
 0x280   :  { %3117 = vmatpush1.bf16.msra.mxu0 %v17504_v38  ;;  %v17566_v38 = vld [vmem:[#allocation9 + $0x324] ss:$16 sps:$4 sm:$0xff]  }
 0x281   :  { %3139 = vmatprep.subr.bf16.mxu0 %v17512_v40  ;;  %3221 = vmatpush1.bf16.msra.mxu1 %v17579_v4  ;;  %v437_v4 = vrot.slane %v19576_v63, %v19604_v60 }
 0x282   :  { %3222 = vmatprep.subr.bf16.mxu1 %v17587_v6  ;;  %v17615_v6 = vld [vmem:[#allocation9 + $0x2c8] ss:$16 sps:$4 sm:$0xff]  }
 0x283   :  { %3119 = vmatmul.mubr.bf16.vlgmr.msra.gmra.mrb[16].mxu0 %v19524_v59 }
 0x284   :  { %3140 = vmatpush1.bf16.msra.mxu0 %v17510_v42  ;;  %3128 = vmatprep.mubr.bf16.mxu0 %v19526_v0 }
 0x285   :  { %3141 = vmatprep.subr.bf16.mxu0 %v17518_v44  ;;  %3223 = vmatpush1.bf16.msra.mxu1 %v17585_v12  ;;  %v17603_v44 = vld [vmem:[#allocation9 + $0x248] ss:$16 sps:$4 sm:$0xff]   ;;  %v17620_v12 = vld [vmem:[#allocation9 + $0x2ec] ss:$16 sps:$4 sm:$0xff]  }
 0x286   :  { %3245 = vmatprep.subr.bf16.mxu1 %v17593_v18 }
 0x288   :  { %3142 = vmatpush1.bf16.msra.mxu0 %v17516_v46  ;;  %3225 = vmatmul.mubr.bf16.vlgmr.msra.gmra.mrb[16].mxu1 %v19524_v59  ;;  %v17564_v46 = vld [vmem:[#allocation9 + $0x320] ss:$16 sps:$4 sm:$0xff]   ;;  %v17572_v59 = vld [vmem:[#allocation9 + $0x344] ss:$16 sps:$4 sm:$0xff]  }
 0x289   :  { %3143 = vmatprep.subr.bf16.mxu0 %v17524_v48  ;;  %3246 = vmatpush1.bf16.msra.mxu1 %v17591_v27 }
 0x28a   :  { %3234 = vmatprep.mubr.bf16.mxu1 %v19526_v0  ;;  %3247 = vmatprep.subr.bf16.mxu1 %v17599_v15  ;;  %v17606_v0 = vld [vmem:[#allocation9 + $0x268] ss:$16 sps:$4 sm:$0xff]   ;;  %v17600_v15 = vld [vmem:[#allocation9 + $0x3e0] ss:$16 sps:$4 sm:$0xff]  }
 0x28b   :  { %3129 = vmatmul.mubr.bf16.gmra.mrb[20].mxu0 %v19530_v10 }
 0x28c   :  { %3144 = vmatpush1.bf16.msra.mxu0 %v17522_v50  ;;  %3171 = vmatprep.mubr.bf16.mxu0 %v19532_v14  ;;  %v17570_v50 = vld [vmem:[#allocation9 + $0x340] ss:$16 sps:$4 sm:$0xff]  }
 0x28d   :  { %3145 = vmatprep.subr.bf16.mxu0 %v17530_v52  ;;  %3248 = vmatpush1.bf16.msra.mxu1 %v17597_v33  ;;  %v17578_v52 = vld [vmem:[#allocation9 + $0x364] ss:$16 sps:$4 sm:$0xff]  }
 0x28e   :  { %3249 = vmatprep.subr.bf16.mxu1 %v17605_v36 }
 0x290   :  { %3146 = vmatpush1.bf16.msra.mxu0 %v17528_v55  ;;  %3235 = vmatmul.mubr.bf16.gmra.mrb[20].mxu1 %v19530_v10  ;;  %v19601_v55 = vsub.s32 2, %v19573_v58  ;;  %v17612_v10 = vld [vmem:[#allocation9 + $0x2a8] ss:$16 sps:$4 sm:$0xff]  }
 0x291   :  { %3147 = vmatprep.subr.bf16.mxu0 %v17536_v57  ;;  %3250 = vmatpush1.bf16.msra.mxu1 %v17603_v44  ;;  %v17584_v57 = vld [vmem:[#allocation9 + $0x384] ss:$16 sps:$4 sm:$0xff]   ;;  %v17627_v44 = vld [vmem:[#allocation9 + $0x348] ss:$16 sps:$4 sm:$0xff]  }
 0x292   :  { %3277 = vmatprep.mubr.bf16.mxu1 %v19532_v14  ;;  %3251 = vmatprep.subr.bf16.mxu1 %v17608_v47  ;;  %v433_v14 = vrot.slane %v19576_v63, %v19601_v55  ;;  %v17618_v63 = vld [vmem:[#allocation9 + $0x2e8] ss:$16 sps:$4 sm:$0xff]  }
 0x293   :  { %v17630_v47 = vld [vmem:[#allocation9 + $0x368] ss:$16 sps:$4 sm:$0xff]  }
 0x294   :  { %3148 = vmatpush1.bf16.msra.mxu0 %v17534_v61  ;;  %v17582_v61 = vld [vmem:[#allocation9 + $0x380] ss:$16 sps:$4 sm:$0xff]  }
 0x295   :  { %3149 = vmatprep.subr.bf16.mxu0 %v17542_v1  ;;  %3252 = vmatpush1.bf16.msra.mxu1 %v17606_v0  ;;  %v17590_v1 = vld [vmem:[#allocation9 + $0x3a4] ss:$16 sps:$4 sm:$0xff]   ;;  %v17633_v0 = vld [vmem:[#allocation9 + $0x388] ss:$16 sps:$4 sm:$0xff]  }
 0x296   :  { %v1169_v13 = vpop.f32.mrb[0].mxu0  ;;  %3253 = vmatprep.subr.bf16.mxu1 %v17611_v51  ;;  %v17636_v51 = vld [vmem:[#allocation9 + $0x3a8] ss:$16 sps:$4 sm:$0xff]  }
 0x297   :  { %v1171_v19 = vpop.f32.mrb[1].mxu0  ;;  %v16659_v23 = vadd.f32 %v1169_v13, %v425_v9  ;;  %v17596_v13 = vld [vmem:[#allocation9 + $0x3c4] ss:$16 sps:$4 sm:$0xff]  }
 0x298   :  { %v16660_v21 = vadd.f32 %v1171_v19, %v429_v8  ;;  %v1173_v22 = vpop.f32.mrb[2].mxu0  ;;  %3150 = vmatpush1.bf16.msra.mxu0 %v17540_v5 }
 0x299   :  { %v16661_v24 = vadd.f32 %v1173_v22, %v425_v9  ;;  %v1175_v26 = vpop.f32.mrb[3].mxu0  ;;  %3151 = vmatprep.subr.bf16.mxu0 %v17548_v7  ;;  %3254 = vmatpush1.bf16.msra.mxu1 %v17609_v53  ;;  %v17588_v7 = vld [vmem:[#allocation9 + $0x3a0] ss:$16 sps:$4 sm:$0xff]   ;;  %v17639_v53 = vld [vmem:[#allocation9 + $0x3c8] ss:$16 sps:$4 sm:$0xff]  }
 0x29a   :  { %v16662_v28 = vadd.f32 %v1175_v26, %v429_v8  ;;  %3255 = vmatprep.subr.bf16.mxu1 %v17614_v56  ;;  %v17594_v22 = vld [vmem:[#allocation9 + $0x3c0] ss:$16 sps:$4 sm:$0xff]   ;;  %v17602_v26 = vld [vmem:[#allocation9 + $0x3e4] ss:$16 sps:$4 sm:$0xff]   ;;  %v17642_v56 = vld [vmem:[#allocation9 + $0x3e8] ss:$16 sps:$4 sm:$0xff]  }
 0x29b   :  { %v19588_v30 = vpack.c.bf16 %v16661_v24, %v16659_v23  ;;  %v1275_v5 = vpop.f32.mrb[0].mxu1  ;;  %v17623_v24 = vld [vmem:[#allocation9 + $0x30c] ss:$16 sps:$4 sm:$0xff]  }
 0x29c   :  { %v19590_v32 = vpack.c.bf16 %v16662_v28, %v16660_v21  ;;  %3152 = vmatpush1.bf16.msra.mxu0 %v17546_v16  ;;  %v17621_v28 = vld [vmem:[#allocation9 + $0x308] ss:$16 sps:$4 sm:$0xff]  }
 0x29d   :  { %3153 = vmatprep.subr.bf16.mxu0 %v17554_v20  ;;  %3256 = vmatpush1.bf16.msra.mxu1 %v17612_v10 }
 0x29e   :  { %v1179_v34 = vpop.f32.mrb[4].mxu0  ;;  %3257 = vmatprep.subr.bf16.mxu1 %v17617_v62 }
 0x29f   :  { %v1181_v37 = vpop.f32.mrb[5].mxu0  ;;  %v16663_v41 = vadd.f32 %v1179_v34, %v425_v9 }
 0x2a0   :  { %v16664_v39 = vadd.f32 %v1181_v37, %v429_v8  ;;  %v1183_v40 = vpop.f32.mrb[6].mxu0  ;;  %3154 = vmatpush1.bf16.msra.mxu0 %v17552_v29 }
 0x2a1   :  { %v16665_v42 = vadd.f32 %v1183_v40, %v425_v9  ;;  %v1185_v43 = vpop.f32.mrb[7].mxu0  ;;  %3155 = vmatprep.subr.bf16.mxu0 %v17560_v31  ;;  %v1277_v9 = vpop.f32.mrb[1].mxu1  ;;  %3258 = vmatpush1.bf16.msra.mxu1 %v17615_v6  ;;  %v17626_v31 = vld [vmem:[#allocation9 + $0x32c] ss:$16 sps:$4 sm:$0xff]  }
 0x2a2   :  { %v16666_v45 = vadd.f32 %v1185_v43, %v429_v8  ;;  %v16667_v8 = vadd.f32 %v1275_v5, %v433_v14  ;;  %v16668_v16 = vadd.f32 %v1277_v9, %v437_v4  ;;  %v1279_v18 = vpop.f32.mrb[2].mxu1  ;;  %3259 = vmatprep.subr.bf16.mxu1 %v17620_v12 }
 0x2a3   :  { %v19594_v48 = vpack.c.bf16 %v16665_v42, %v16663_v41  ;;  %v16669_v19 = vadd.f32 %v1279_v18, %v433_v14  ;;  %v1281_v20 = vpop.f32.mrb[3].mxu1  ;;  %v17629_v42 = vld [vmem:[#allocation9 + $0x34c] ss:$16 sps:$4 sm:$0xff]  }
 0x2a4   :  { %v19596_v49 = vpack.c.bf16 %v16666_v45, %v16664_v39  ;;  %3156 = vmatpush1.bf16.msra.mxu0 %v17558_v35  ;;  %v16670_v21 = vadd.f32 %v1281_v20, %v437_v4  ;;  %v1285_v29 = vpop.f32.mrb[4].mxu1  ;;  %v17624_v39 = vld [vmem:[#allocation9 + $0x328] ss:$16 sps:$4 sm:$0xff]   ;;  %v19204_v45 = vmov 0.0  }
 0x2a5   :  { %3157 = vmatprep.subr.bf16.mxu0 %v17566_v38  ;;  %v19610_v23 = vpack.c.bf16 %v16669_v19, %v16667_v8  ;;  %v16671_v33 = vadd.f32 %v1285_v29, %v433_v14  ;;  %v1287_v34 = vpop.f32.mrb[5].mxu1  ;;  %3260 = vmatpush1.bf16.msra.mxu1 %v17618_v63 }
 0x2a6   :  { %v19612_v27 = vpack.c.bf16 %v16670_v21, %v16668_v16  ;;  %v16672_v35 = vadd.f32 %v1287_v34, %v437_v4  ;;  %v1289_v36 = vpop.f32.mrb[6].mxu1  ;;  %3261 = vmatprep.subr.bf16.mxu1 %v17623_v24 }
 0x2a7   :  { %v16673_v37 = vadd.f32 %v1289_v36, %v433_v14  ;;  %v1291_v38 = vpop.f32.mrb[7].mxu1 }
 0x2a8   :  { %3158 = vmatpush1.bf16.msra.mxu0 %v17564_v46  ;;  %v16674_v40 = vadd.f32 %v1291_v38, %v437_v4  ;;  %v17632_v46 = vld [vmem:[#allocation9 + $0x36c] ss:$16 sps:$4 sm:$0xff]  }
 0x2a9   :  { %3159 = vmatprep.subr.bf16.mxu0 %v17572_v59  ;;  %v19614_v41 = vpack.c.bf16 %v16673_v37, %v16671_v33  ;;  %3262 = vmatpush1.bf16.msra.mxu1 %v17621_v28  ;;  %v17635_v59 = vld [vmem:[#allocation9 + $0x38c] ss:$16 sps:$4 sm:$0xff]  }
 0x2aa   :  { %v19616_v43 = vpack.c.bf16 %v16674_v40, %v16672_v35  ;;  %3263 = vmatprep.subr.bf16.mxu1 %v17626_v31 }
 0x2ac   :  { %3160 = vmatpush1.bf16.msra.mxu0 %v17570_v50  ;;  %v17638_v50 = vld [vmem:[#allocation9 + $0x3ac] ss:$16 sps:$4 sm:$0xff]  }
 0x2ad   :  { %3161 = vmatprep.subr.bf16.mxu0 %v17578_v52  ;;  %3264 = vmatpush1.bf16.msra.mxu1 %v17624_v39  ;;  %v17641_v52 = vld [vmem:[#allocation9 + $0x3cc] ss:$16 sps:$4 sm:$0xff]  }
 0x2ae   :  { %3265 = vmatprep.subr.bf16.mxu1 %v17629_v42 }
 0x2b0   :  { %3162 = vmatpush1.bf16.msra.mxu0 %v17576_v54  ;;  %v17644_v54 = vld [vmem:[#allocation9 + $0x3ec] ss:$16 sps:$4 sm:$0xff]  }
 0x2b1   :  { %3163 = vmatprep.subr.bf16.mxu0 %v17584_v57  ;;  %3266 = vmatpush1.bf16.msra.mxu1 %v17627_v44  ;;  %v1422_v57 = vld [vmem:[#allocation12] sm:$0xf] }
 0x2b2   :  { %3267 = vmatprep.subr.bf16.mxu1 %v17632_v46  ;;  %v1427_v10 = vrot.slane %v1422_v57, %v19582_v3  ;;  %v1431_v14 = vrot.slane %v1422_v57, %v19579_v2  ;;  %v1439_v28 = vrot.slane %v1422_v57, %v19604_v60 }
 0x2b4   :  { %3164 = vmatpush1.bf16.msra.mxu0 %v17582_v61 }
 0x2b5   :  { %3165 = vmatprep.subr.bf16.mxu0 %v17590_v1  ;;  %3268 = vmatpush1.bf16.msra.mxu1 %v17630_v47 }
 0x2b6   :  { %3269 = vmatprep.subr.bf16.mxu1 %v17635_v59 }
 0x2b8   :  { %3166 = vmatpush1.bf16.msra.mxu0 %v17588_v7 }
 0x2b9   :  { %3167 = vmatprep.subr.bf16.mxu0 %v17596_v13  ;;  %3270 = vmatpush1.bf16.msra.mxu1 %v17633_v0 }
 0x2ba   :  { %3271 = vmatprep.subr.bf16.mxu1 %v17638_v50 }
 0x2bc   :  { %3168 = vmatpush1.bf16.msra.mxu0 %v17594_v22 }
 0x2bd   :  { %3169 = vmatprep.subr.bf16.mxu0 %v17602_v26  ;;  %3272 = vmatpush1.bf16.msra.mxu1 %v17636_v51  ;;  %v1435_v26 = vrot.slane %v1422_v57, %v19601_v55 }
 0x2be   :  { %3273 = vmatprep.subr.bf16.mxu1 %v17641_v52 }
 0x2c0   :  { %3170 = vmatpush1.bf16.msra.mxu0 %v17600_v15 }
 0x2c1   :  { %16467 = vmatprep.subr.bf16.mxu0 %v19204_v45  ;;  %3274 = vmatpush1.bf16.msra.mxu1 %v17639_v53  ;;  %v2424_v53 = vld [vmem:[#allocation14] sm:$0xf] }
 0x2c2   :  { %3275 = vmatprep.subr.bf16.mxu1 %v17644_v54  ;;  %v2429_v54 = vrot.slane %v2424_v53, %v19582_v3 }
 0x2c3   :  { %3172 = vmatmul.mubr.bf16.vlgmr.msra.gmra.mrb[16].mxu0 %v19540_v11 }
 0x2c4   :  { %3181 = vmatprep.mubr.bf16.mxu0 %v19542_v17 }
 0x2c5   :  { %3276 = vmatpush1.bf16.msra.mxu1 %v17642_v56  ;;  %v2433_v56 = vrot.slane %v2424_v53, %v19579_v2 }
 0x2c6   :  { %16473 = vmatprep.subr.bf16.mxu1 %v19204_v45 }
 0x2c8   :  { %3278 = vmatmul.mubr.bf16.vlgmr.msra.gmra.mrb[16].mxu1 %v19540_v11 }
 0x2c9   :  { %3287 = vmatprep.mubr.bf16.mxu1 %v19542_v17 }
 0x2cb   :  { %3182 = vmatmul.mubr.bf16.gmra.mrb[20].mxu0 %v19546_v25 }
 0x2cc   :  { %16469 = vmatprep.mubr.msk.bf16.mxu0 %vm19205_vm0, %v19204_v45 }
 0x2d0   :  { %3288 = vmatmul.mubr.bf16.gmra.mrb[20].mxu1 %v19546_v25 }
 0x2d1   :  { %16475 = vmatprep.mubr.msk.bf16.mxu1 %vm19205_vm0, %v19204_v45 }
 0x316   :  { %v2171_v61 = vpop.f32.mrb[8].mxu0 }
 0x317   :  { %v2173_v62 = vpop.f32.mrb[9].mxu0  ;;  %v16675_v4 = vadd.f32 %v2171_v61, %v1427_v10 }
 0x318   :  { %v2175_v1 = vpop.f32.mrb[10].mxu0  ;;  %v16676_v7 = vadd.f32 %v2173_v62, %v1431_v14 }
 0x319   :  { %v16677_v5 = vadd.f32 %v2175_v1, %v1427_v10  ;;  %v2177_v6 = vpop.f32.mrb[11].mxu0 }
 0x31a   :  { %v16678_v11 = vadd.f32 %v2177_v6, %v1431_v14 }
 0x31b   :  { %v19632_v17 = vpack.c.bf16 %v16677_v5, %v16675_v4  ;;  %v2277_v29 = vpop.f32.mrb[8].mxu1 }
 0x31c   :  { %v19634_v25 = vpack.c.bf16 %v16678_v11, %v16676_v7  ;;  %v16683_v15 = vadd.f32 %v2277_v29, %v1435_v26  ;;  %v2279_v31 = vpop.f32.mrb[9].mxu1 }
 0x31d   :  { %v3327_v8 = vsel %vm3322_vm1, %v19632_v17, 0  ;;  %v16684_v33 = vadd.f32 %v2279_v31, %v1439_v28  ;;  %v2281_v34 = vpop.f32.mrb[10].mxu1 }
 0x31e   :  { %v2181_v9 = vpop.f32.mrb[12].mxu0  ;;  %16468 = vmatpush3.bf16.xpose.msra.mxu0 %v3327_v8  ;;  %v16685_v35 = vadd.f32 %v2281_v34, %v1435_v26  ;;  %v2283_v36 = vpop.f32.mrb[11].mxu1 }
 0x31f   :  { %v2183_v12 = vpop.f32.mrb[13].mxu0  ;;  %16479 = vmatprep.subr.bf16.mxu0 %v19204_v45  ;;  %v16679_v16 = vadd.f32 %v2181_v9, %v1427_v10  ;;  %v16686_v37 = vadd.f32 %v2283_v36, %v1439_v28 }
 0x320   :  { %v2185_v13 = vpop.f32.mrb[14].mxu0  ;;  %v16680_v20 = vadd.f32 %v2183_v12, %v1431_v14  ;;  %v19656_v38 = vpack.c.bf16 %v16685_v35, %v16683_v15 }
 0x321   :  { %v16681_v18 = vadd.f32 %v2185_v13, %v1427_v10  ;;  %v2187_v19 = vpop.f32.mrb[15].mxu0  ;;  %v19658_v39 = vpack.c.bf16 %v16686_v37, %v16684_v33 }
 0x322   :  { %v16682_v21 = vadd.f32 %v2187_v19, %v1431_v14 }
 0x323   :  { %v19639_v63 = vpack.c.bf16 %v16681_v18, %v16679_v16  ;;  %v2287_v40 = vpop.f32.mrb[12].mxu1 }
 0x324   :  { %v19641_v22 = vpack.c.bf16 %v16682_v21, %v16680_v20  ;;  %v16687_v42 = vadd.f32 %v2287_v40, %v1435_v26  ;;  %v2289_v44 = vpop.f32.mrb[13].mxu1 }
 0x325   :  { %16470 = vmatmul.mubr.msk.bf16.vlgmr.msra.gmra.mrb[24].mxu0 %vm3322_vm1, %v19588_v30  ;;  %v3374_v24 = vsel %vm3322_vm1, %v19639_v63, 0  ;;  %v16688_v46 = vadd.f32 %v2289_v44, %v1439_v28  ;;  %v2291_v47 = vpop.f32.mrb[14].mxu1 }
 0x326   :  { %16474 = vmatpush3.bf16.xpose.msra.mxu1 %v3374_v24  ;;  %16481 = vmatprep.mubr.msk.bf16.mxu0 %vm19205_vm0, %v19204_v45  ;;  %v16689_v59 = vadd.f32 %v2291_v47, %v1435_v26  ;;  %v2293_v0 = vpop.f32.mrb[15].mxu1  ;;  %v2437_v24 = vrot.slane %v2424_v53, %v19601_v55  ;;  %v2441_v26 = vrot.slane %v2424_v53, %v19604_v60 }
 0x327   :  { %16485 = vmatprep.subr.bf16.mxu1 %v19204_v45  ;;  %v16690_v50 = vadd.f32 %v2293_v0, %v1439_v28 }
 0x328   :  { %v19660_v51 = vpack.c.bf16 %v16689_v59, %v16687_v42 }
 0x329   :  { %v19662_v52 = vpack.c.bf16 %v16690_v50, %v16688_v46 }
 0x32d   :  { %16476 = vmatmul.mubr.msk.bf16.vlgmr.msra.gmra.mrb[24].mxu1 %vm3322_vm1, %v19594_v48 }
 0x32e   :  { %16487 = vmatprep.mubr.msk.bf16.mxu1 %vm19205_vm0, %v19204_v45 }
 0x396   :  { %v3173_v57 = vpop.f32.mrb[16].mxu0 }
 0x397   :  { %v16691_v10 = vadd.f32 %v3173_v57, %v2429_v54  ;;  %v3175_v61 = vpop.f32.mrb[17].mxu0 }
 0x398   :  { %v16692_v14 = vadd.f32 %v3175_v61, %v2433_v56  ;;  %v3177_v62 = vpop.f32.mrb[18].mxu0 }
 0x399   :  { %v16693_v1 = vadd.f32 %v3177_v62, %v2429_v54  ;;  %v3179_v4 = vpop.f32.mrb[19].mxu0 }
 0x39a   :  { %v16694_v5 = vadd.f32 %v3179_v4, %v2433_v56 }
 0x39b   :  { %v19666_v6 = vpack.c.bf16 %v16693_v1, %v16691_v10  ;;  %v3279_v28 = vpop.f32.mrb[16].mxu1 }
 0x39c   :  { %v19668_v7 = vpack.c.bf16 %v16694_v5, %v16692_v14  ;;  %v16699_v29 = vadd.f32 %v3279_v28, %v2437_v24  ;;  %v3281_v15 = vpop.f32.mrb[17].mxu1 }
 0x39d   :  { %16480 = vmatpush3.bf16.msra.mxu0 %v19666_v6  ;;  %v16700_v31 = vadd.f32 %v3281_v15, %v2441_v26  ;;  %v3283_v33 = vpop.f32.mrb[18].mxu1 }
 0x39e   :  { %v3183_v11 = vpop.f32.mrb[20].mxu0  ;;  %16491 = vmatprep.subr.bf16.mxu0 %v19204_v45  ;;  %v16701_v34 = vadd.f32 %v3283_v33, %v2437_v24  ;;  %v3285_v35 = vpop.f32.mrb[19].mxu1 }
 0x39f   :  { %v16695_v8 = vadd.f32 %v3183_v11, %v2429_v54  ;;  %v3185_v9 = vpop.f32.mrb[21].mxu0  ;;  %v16702_v36 = vadd.f32 %v3285_v35, %v2441_v26 }
 0x3a0   :  { %v16696_v12 = vadd.f32 %v3185_v9, %v2433_v56  ;;  %v3187_v13 = vpop.f32.mrb[22].mxu0  ;;  %v19680_v37 = vpack.c.bf16 %v16701_v34, %v16699_v29 }
 0x3a1   :  { %v16697_v16 = vadd.f32 %v3187_v13, %v2429_v54  ;;  %v3189_v18 = vpop.f32.mrb[23].mxu0  ;;  %v19682_v40 = vpack.c.bf16 %v16702_v36, %v16700_v31 }
 0x3a2   :  { %v16698_v19 = vadd.f32 %v3189_v18, %v2433_v56 }
 0x3a3   :  { %v19672_v20 = vpack.c.bf16 %v16697_v16, %v16695_v8  ;;  %v3289_v42 = vpop.f32.mrb[20].mxu1 }
 0x3a4   :  { %v19674_v21 = vpack.c.bf16 %v16698_v19, %v16696_v12  ;;  %v16703_v44 = vadd.f32 %v3289_v42, %v2437_v24  ;;  %v3291_v46 = vpop.f32.mrb[21].mxu1 }
 0x3a5   :  { %16486 = vmatpush3.bf16.msra.mxu1 %v19672_v20  ;;  %v16704_v47 = vadd.f32 %v3291_v46, %v2441_v26  ;;  %v3293_v59 = vpop.f32.mrb[22].mxu1 }
 0x3a6   :  { %16497 = vmatprep.subr.bf16.mxu1 %v19204_v45  ;;  %v16705_v0 = vadd.f32 %v3293_v59, %v2437_v24  ;;  %v3295_v50 = vpop.f32.mrb[23].mxu1 }
 0x3a7   :  { %v16706_v53 = vadd.f32 %v3295_v50, %v2441_v26 }
 0x3a8   :  { %v19684_v54 = vpack.c.bf16 %v16705_v0, %v16703_v44 }
 0x3a9   :  { %v19686_v56 = vpack.c.bf16 %v16706_v53, %v16704_v47 }
 0x3f8   :  { %v3363_v57 = vpop.f32.mrb[24].mxu0 }
 0x3f9   :  { %v16471_v10 = vpop.f32.mrb[25].mxu0  ;;  %v3418_v61 = vsel %vm3417_vm2, %v3363_v57, -inf }
 0x3fa   :  { %3419 = vmax.xlane.f32.xlu0 %v3418_v61  ;;  %v3366_v14 = vpop.f32.mrb[26].mxu0 }
 0x3fb   :  { %v16472_v62 = vpop.f32.mrb[27].mxu0  ;;  %v3421_v1 = vsel %vm3417_vm2, %v3366_v14, -inf }
 0x3fe   :  { %3422 = vmax.xlane.f32.xlu0 %v3421_v1 }
 0x400   :  { %v3410_v4 = vpop.f32.mrb[24].mxu1 }
 0x401   :  { %v16477_v5 = vpop.f32.mrb[25].mxu1  ;;  %v3424_v11 = vsel %vm3417_vm2, %v3410_v4, -inf }
 0x402   :  { %3425 = vmax.xlane.f32.xlu1 %v3424_v11  ;;  %v3413_v8 = vpop.f32.mrb[26].mxu1 }
 0x403   :  { %v16478_v9 = vpop.f32.mrb[27].mxu1  ;;  %v3427_v12 = vsel %vm3417_vm2, %v3413_v8, -inf }
 0x406   :  { %3428 = vmax.xlane.f32.xlu1 %v3427_v12 }
 0x487   :  { %v3420_v13 = vpop.xlane.xlu0 %3419 }
 0x488   :  { %v3430_v16 = vsub.f32 %v3363_v57, %v3420_v13 }
 0x48a   :  { %v3434_v18 = vmul.f32 1.442695, %v3430_v16 }
 0x48b   :  { %v3423_v19 = vpop.xlane.xlu0 %3422 }
 0x48c   :  { %18605 = vpow2.f32 %v3434_v18  ;;  %v3431_v24 = vsub.f32 %v3366_v14, %v3423_v19 }
 0x48e   :  { %v3436_v26 = vmul.f32 1.442695, %v3431_v24 }
 0x48f   :  { %v3426_v33 = vpop.xlane.xlu1 %3425 }
 0x490   :  { %18607 = vpow2.f32 %v3436_v26  ;;  %v3432_v36 = vsub.f32 %v3410_v4, %v3426_v33 }
 0x492   :  { %v3438_v44 = vmul.f32 1.442695, %v3432_v36 }
 0x493   :  { %v3429_v34 = vpop.xlane.xlu1 %3428 }
 0x494   :  { %v3433_v35 = vsub.f32 %v3413_v8, %v3429_v34 }
 0x496   :  { %v18606_v28 = vpop.eup %18605  ;;  %v3440_v42 = vmul.f32 1.442695, %v3433_v35 }
 0x497   :  { %v3442_v29 = vsel %vm3417_vm2, %v18606_v28, 0.0 }
 0x498   :  { %3443 = vadd.xlane.f32.xlu0 %v3442_v29  ;;  %18609 = vpow2.f32 %v3440_v42 }
 0x499   :  { %18611 = vpow2.f32 %v3438_v44 }
 0x49a   :  { %v18608_v15 = vpop.eup %18607 }
 0x49b   :  { %v3445_v31 = vsel %vm3417_vm2, %v18608_v15, 0.0 }
 0x49c   :  { %3446 = vadd.xlane.f32.xlu1 %v3445_v31 }
 0x4a2   :  { %v18610_v46 = vpop.eup %18609 }
 0x4a3   :  { %v3451_v47 = vsel %vm3417_vm2, %v18610_v46, 0.0  ;;  %v18612_v59 = vpop.eup %18611 }
 0x4a4   :  { %v3448_v0 = vsel %vm3417_vm2, %v18612_v59, 0.0 }
 0x4ad   :  { %3557 = vrot.lane.b32.xlu1 %v19588_v30, %s19190_s28 }
 0x4ae   :  { %3560 = vrot.lane.b32.xlu0 %v19632_v17, %s19190_s28 }
 0x4cd   :  { %3452 = vadd.xlane.f32.xlu0 %v3451_v47 }
 0x4d1   :  { %3449 = vadd.xlane.f32.xlu1 %v3448_v0 }
 0x4e2   :  { %3610 = vrot.lane.b32.xlu1 %v19594_v48, %s19190_s28 }
 0x4e3   :  { %3613 = vrot.lane.b32.xlu0 %v19639_v63, %s19190_s28 }
 0x525   :  { %v3444_v30 = vpop.xlane.xlu0 %3443 }
 0x526   :  { %18613 = vrcp.f32 %v3444_v30 }
 0x529   :  { %v3447_v17 = vpop.xlane.xlu1 %3446  ;;  %v3561_v61 = vpop.permute.xlu0 %3560 }
 0x52a   :  { %18615 = vrcp.f32 %v3447_v17  ;;  %v3566_v62 = vsel %vm3322_vm1, %v3561_v61, 0 }
 0x52d   :  { %v3558_v48 = vpop.permute.xlu1 %3557 }
 0x530   :  { %v18614_v50 = vpop.eup %18613 }
 0x531   :  { %v3458_v57 = vmul.f32 %v18614_v50, %v18606_v28 }
 0x534   :  { %v18616_v53 = vpop.eup %18615 }
 0x535   :  { %v3459_v10 = vmul.f32 %v18616_v53, %v18608_v15 }
 0x537   :  { %v3462_v14 = vpack.c.bf16 %v3459_v10, %v3458_v57 }
 0x539   :  { %16482 = vmatmul.mubr.msk.bf16.vlgmr.msra.gmra.mrb[28].mxu0 %vm3417_vm2, %v3462_v14 }
 0x53a   :  { %16492 = vmatpush3.bf16.xpose.msra.mxu0 %v3566_v62  ;;  %16493 = vmatprep.mubr.msk.bf16.mxu0 %vm19205_vm0, %v19204_v45 }
 0x53b   :  { %16503 = vmatprep.subr.bf16.mxu0 %v19204_v45 }
 0x541   :  { %16494 = vmatmul.mubr.msk.bf16.vlgmr.msra.gmra.mrb[32].mxu0 %vm3322_vm1, %v3558_v48 }
 0x542   :  { %16505 = vmatprep.mubr.msk.bf16.mxu0 %vm19205_vm0, %v19204_v45 }
 0x55a   :  { %v3453_v63 = vpop.xlane.xlu0 %3452 }
 0x55b   :  { %18617 = vrcp.f32 %v3453_v63 }
 0x55e   :  { %v3450_v1 = vpop.xlane.xlu1 %3449  ;;  %v3614_v9 = vpop.permute.xlu0 %3613 }
 0x55f   :  { %18619 = vrcp.f32 %v3450_v1  ;;  %v3619_v13 = vsel %vm3322_vm1, %v3614_v9, 0 }
 0x562   :  { %v3611_v16 = vpop.permute.xlu1 %3610 }
 0x565   :  { %v18618_v4 = vpop.eup %18617 }
 0x566   :  { %v3461_v11 = vmul.f32 %v18618_v4, %v18610_v46 }
 0x569   :  { %v18620_v5 = vpop.eup %18619 }
 0x56a   :  { %v3460_v8 = vmul.f32 %v18620_v5, %v18612_v59 }
 0x56c   :  { %v3463_v12 = vpack.c.bf16 %v3461_v11, %v3460_v8 }
 0x56e   :  { %16488 = vmatmul.mubr.msk.bf16.vlgmr.msra.gmra.mrb[28].mxu1 %vm3417_vm2, %v3463_v12 }
 0x56f   :  { %16498 = vmatpush3.bf16.xpose.msra.mxu1 %v3619_v13  ;;  %16499 = vmatprep.mubr.msk.bf16.mxu1 %vm19205_vm0, %v19204_v45 }
 0x570   :  { %16509 = vmatprep.subr.bf16.mxu1 %v19204_v45 }
 0x576   :  { %16500 = vmatmul.mubr.msk.bf16.vlgmr.msra.gmra.mrb[32].mxu1 %vm3322_vm1, %v3611_v16 }
 0x577   :  { %16511 = vmatprep.mubr.msk.bf16.mxu1 %vm19205_vm0, %v19204_v45 }
 0x60c   :  { %v3501_v18 = vpop.f32.mrb[28].mxu0 }
 0x60d   :  { %3552 = vst.msk [vmem:[#allocation2] sm:$0xff] %vm3322_vm1, %v3501_v18  ;;  %v16483_v19 = vpop.f32.mrb[29].mxu0 }
 0x60e   :  { %v3504_v24 = vpop.f32.mrb[30].mxu0 }
 0x60f   :  { %3553 = vst.msk [vmem:[#allocation2 + $0x20] sm:$0xff] %vm3322_vm1, %v3504_v24  ;;  %v16484_v26 = vpop.f32.mrb[31].mxu0 }
 0x614   :  { %v3602_v28 = vpop.f32.mrb[32].mxu0 }
 0x615   :  { %v16495_v29 = vpop.f32.mrb[33].mxu0  ;;  %v3662_v15 = vsel %vm3417_vm2, %v3602_v28, -inf }
 0x616   :  { %3663 = vmax.xlane.f32.xlu1 %v3662_v15  ;;  %v3605_v31 = vpop.f32.mrb[34].mxu0 }
 0x617   :  { %v16496_v33 = vpop.f32.mrb[35].mxu0  ;;  %v3665_v34 = vsel %vm3417_vm2, %v3605_v31, -inf }
 0x618   :  { %3666 = vmax.xlane.f32.xlu0 %v3665_v34  ;;  %v3829_v34 = vsel %vm3322_vm1, %v19634_v25, 0 }
 0x641   :  { %v3545_v35 = vpop.f32.mrb[28].mxu1 }
 0x642   :  { %3554 = vst.msk [vmem:[#allocation2 + $0x40] sm:$0xff] %vm3322_vm1, %v3545_v35  ;;  %v16489_v36 = vpop.f32.mrb[29].mxu1 }
 0x643   :  { %v3548_v42 = vpop.f32.mrb[30].mxu1 }
 0x644   :  { %3555 = vst.msk [vmem:[#allocation2 + $0x60] sm:$0xff] %vm3322_vm1, %v3548_v42  ;;  %v16490_v44 = vpop.f32.mrb[31].mxu1 }
 0x649   :  { %v3655_v46 = vpop.f32.mrb[32].mxu1 }
 0x64a   :  { %v16501_v47 = vpop.f32.mrb[33].mxu1  ;;  %v3668_v59 = vsel %vm3417_vm2, %v3655_v46, -inf }
 0x64b   :  { %v3658_v0 = vpop.f32.mrb[34].mxu1  ;;  %3669 = vmax.xlane.f32.xlu0 %v3668_v59 }
 0x64c   :  { %v16502_v30 = vpop.f32.mrb[35].mxu1  ;;  %v3671_v17 = vsel %vm3417_vm2, %v3658_v0, -inf }
 0x64d   :  { %3672 = vmax.xlane.f32.xlu1 %v3671_v17 }
 0x6a3   :  { %v3664_v50 = vpop.xlane.xlu1 %3663 }
 0x6a4   :  { %v3674_v53 = vsub.f32 %v3602_v28, %v3664_v50 }
 0x6a5   :  { %v3667_v57 = vpop.xlane.xlu0 %3666 }
 0x6a6   :  { %v3678_v10 = vmul.f32 1.442695, %v3674_v53  ;;  %v3675_v61 = vsub.f32 %v3605_v31, %v3667_v57 }
 0x6a8   :  { %18621 = vpow2.f32 %v3678_v10  ;;  %v3680_v14 = vmul.f32 1.442695, %v3675_v61 }
 0x6aa   :  { %18623 = vpow2.f32 %v3680_v14 }
 0x6b2   :  { %v18622_v62 = vpop.eup %18621 }
 0x6b3   :  { %v3686_v48 = vsel %vm3417_vm2, %v18622_v62, 0.0 }
 0x6b4   :  { %v18624_v63 = vpop.eup %18623  ;;  %3687 = vadd.xlane.f32.xlu0 %v3686_v48 }
 0x6b5   :  { %v3689_v1 = vsel %vm3417_vm2, %v18624_v63, 0.0 }
 0x6b6   :  { %3690 = vadd.xlane.f32.xlu1 %v3689_v1 }
 0x6ca   :  { %3709 = vrot.lane.b32.xlu0 %v19666_v6, %s19190_s28 }
 0x6d8   :  { %v3670_v4 = vpop.xlane.xlu0 %3669 }
 0x6d9   :  { %v3676_v5 = vsub.f32 %v3655_v46, %v3670_v4 }
 0x6da   :  { %v3673_v11 = vpop.xlane.xlu1 %3672 }
 0x6db   :  { %v3682_v8 = vmul.f32 1.442695, %v3676_v5  ;;  %v3677_v9 = vsub.f32 %v3658_v0, %v3673_v11  ;;  %v3876_v0 = vsel %vm3322_vm1, %v19641_v22, 0 }
 0x6dd   :  { %18625 = vpow2.f32 %v3682_v8  ;;  %v3684_v12 = vmul.f32 1.442695, %v3677_v9 }
 0x6df   :  { %18627 = vpow2.f32 %v3684_v12 }
 0x6e7   :  { %v18626_v13 = vpop.eup %18625 }
 0x6e8   :  { %v3692_v16 = vsel %vm3417_vm2, %v18626_v13, 0.0 }
 0x6e9   :  { %v18628_v18 = vpop.eup %18627  ;;  %3693 = vadd.xlane.f32.xlu1 %v3692_v16 }
 0x6ea   :  { %v3695_v19 = vsel %vm3417_vm2, %v18628_v18, 0.0 }
 0x6ed   :  { %3696 = vadd.xlane.f32.xlu1 %v3695_v19 }
 0x6fe   :  { %3757 = vrot.lane.b32.xlu1 %v19672_v20, %s19190_s28 }
 0x741   :  { %v3688_v6 = vpop.xlane.xlu0 %3687 }
 0x742   :  { %18629 = vrcp.f32 %v3688_v6 }
 0x743   :  { %v3691_v24 = vpop.xlane.xlu1 %3690 }
 0x744   :  { %18631 = vrcp.f32 %v3691_v24 }
 0x745   :  { %v3710_v26 = vpop.permute.xlu0 %3709 }
 0x746   :  { %16504 = vmatpush3.bf16.msra.mxu0 %v3710_v26 }
 0x747   :  { %16515 = vmatprep.subr.bf16.mxu0 %v19204_v45 }
 0x74c   :  { %v18630_v28 = vpop.eup %18629 }
 0x74d   :  { %v3702_v15 = vmul.f32 %v18630_v28, %v18622_v62 }
 0x74e   :  { %v18632_v29 = vpop.eup %18631 }
 0x74f   :  { %v3703_v31 = vmul.f32 %v18632_v29, %v18624_v63 }
 0x751   :  { %v3706_v33 = vpack.c.bf16 %v3703_v31, %v3702_v15 }
 0x753   :  { %16506 = vmatmul.mubr.msk.bf16.vlgmr.msra.gmra.mrb[36].mxu0 %vm3417_vm2, %v3706_v33 }
 0x754   :  { %16516 = vmatpush3.bf16.xpose.msra.mxu0 %v3829_v34  ;;  %16517 = vmatprep.mubr.msk.bf16.mxu0 %vm19205_vm0, %v19204_v45 }
 0x755   :  { %16527 = vmatprep.subr.bf16.mxu0 %v19204_v45 }
 0x75b   :  { %16518 = vmatmul.mubr.msk.bf16.vlgmr.msra.gmra.mrb[40].mxu0 %vm3322_vm1, %v19590_v32 }
 0x75c   :  { %16528 = vmatpush3.bf16.msra.mxu0 %v19668_v7  ;;  %16529 = vmatprep.mubr.msk.bf16.mxu0 %vm19205_vm0, %v19204_v45 }
 0x75d   :  { %16539 = vmatprep.subr.bf16.mxu0 %v19204_v45 }
 0x776   :  { %v3694_v20 = vpop.xlane.xlu1 %3693 }
 0x777   :  { %18633 = vrcp.f32 %v3694_v20 }
 0x77a   :  { %v3697_v35 = vpop.xlane.xlu1 %3696 }
 0x77b   :  { %18635 = vrcp.f32 %v3697_v35 }
 0x77e   :  { %v3758_v36 = vpop.permute.xlu1 %3757 }
 0x77f   :  { %16510 = vmatpush3.bf16.msra.mxu1 %v3758_v36 }
 0x780   :  { %16521 = vmatprep.subr.bf16.mxu1 %v19204_v45 }
 0x781   :  { %v18634_v42 = vpop.eup %18633 }
 0x782   :  { %v3704_v46 = vmul.f32 %v18634_v42, %v18626_v13 }
 0x785   :  { %v18636_v44 = vpop.eup %18635 }
 0x786   :  { %v3705_v47 = vmul.f32 %v18636_v44, %v18628_v18 }
 0x788   :  { %v3707_v59 = vpack.c.bf16 %v3705_v47, %v3704_v46 }
 0x78a   :  { %16512 = vmatmul.mubr.msk.bf16.vlgmr.msra.gmra.mrb[36].mxu1 %vm3417_vm2, %v3707_v59 }
 0x78b   :  { %16522 = vmatpush3.bf16.xpose.msra.mxu1 %v3876_v0  ;;  %16523 = vmatprep.mubr.msk.bf16.mxu1 %vm19205_vm0, %v19204_v45 }
 0x78c   :  { %16533 = vmatprep.subr.bf16.mxu1 %v19204_v45 }
 0x792   :  { %16524 = vmatmul.mubr.msk.bf16.vlgmr.msra.gmra.mrb[40].mxu1 %vm3322_vm1, %v19596_v49 }
 0x793   :  { %16534 = vmatpush3.bf16.msra.mxu1 %v19674_v21  ;;  %16535 = vmatprep.mubr.msk.bf16.mxu1 %vm19205_vm0, %v19204_v45 }
 0x794   :  { %16545 = vmatprep.subr.bf16.mxu1 %v19204_v45 }
 0x826   :  { %v19762_v30 = vpop.f32.mrb[36].mxu0 }
 0x827   :  { %v16507_v17 = vpop.f32.mrb[37].mxu0 }
 0x828   :  { %v19764_v50 = vpop.f32.mrb[38].mxu0 }
 0x829   :  { %v16508_v53 = vpop.f32.mrb[39].mxu0 }
 0x82e   :  { %v3865_v57 = vpop.f32.mrb[40].mxu0 }
 0x82f   :  { %v16519_v10 = vpop.f32.mrb[41].mxu0  ;;  %v3919_v61 = vsel %vm3417_vm2, %v3865_v57, -inf }
 0x830   :  { %3920 = vmax.xlane.f32.xlu0 %v3919_v61  ;;  %v3868_v14 = vpop.f32.mrb[42].mxu0 }
 0x831   :  { %v16520_v62 = vpop.f32.mrb[43].mxu0  ;;  %v3922_v48 = vsel %vm3417_vm2, %v3868_v14, -inf }
 0x832   :  { %3923 = vmax.xlane.f32.xlu1 %v3922_v48 }
 0x85d   :  { %v19768_v63 = vpop.f32.mrb[36].mxu1 }
 0x85e   :  { %v16513_v1 = vpop.f32.mrb[37].mxu1 }
 0x85f   :  { %v19770_v4 = vpop.f32.mrb[38].mxu1 }
 0x860   :  { %v16514_v5 = vpop.f32.mrb[39].mxu1 }
 0x865   :  { %v3912_v11 = vpop.f32.mrb[40].mxu1 }
 0x866   :  { %v16525_v8 = vpop.f32.mrb[41].mxu1  ;;  %v3925_v9 = vsel %vm3417_vm2, %v3912_v11, -inf }
 0x867   :  { %v3915_v12 = vpop.f32.mrb[42].mxu1  ;;  %3926 = vmax.xlane.f32.xlu0 %v3925_v9 }
 0x868   :  { %v16526_v13 = vpop.f32.mrb[43].mxu1  ;;  %v3928_v16 = vsel %vm3417_vm2, %v3915_v12, -inf }
 0x86b   :  { %3929 = vmax.xlane.f32.xlu0 %v3928_v16 }
 0x8bd   :  { %v3921_v18 = vpop.xlane.xlu0 %3920 }
 0x8be   :  { %v3931_v19 = vsub.f32 %v3865_v57, %v3921_v18 }
 0x8bf   :  { %v3924_v6 = vpop.xlane.xlu1 %3923 }
 0x8c0   :  { %v3935_v24 = vmul.f32 1.442695, %v3931_v19  ;;  %v3932_v26 = vsub.f32 %v3868_v14, %v3924_v6 }
 0x8c2   :  { %18637 = vpow2.f32 %v3935_v24  ;;  %v3937_v28 = vmul.f32 1.442695, %v3932_v26 }
 0x8c4   :  { %18639 = vpow2.f32 %v3937_v28 }
 0x8cc   :  { %v18638_v29 = vpop.eup %18637 }
 0x8cd   :  { %v3943_v15 = vsel %vm3417_vm2, %v18638_v29, 0.0 }
 0x8ce   :  { %v18640_v31 = vpop.eup %18639  ;;  %3944 = vadd.xlane.f32.xlu0 %v3943_v15 }
 0x8cf   :  { %v3946_v33 = vsel %vm3417_vm2, %v18640_v31, 0.0 }
 0x8d0   :  { %3947 = vadd.xlane.f32.xlu1 %v3946_v33 }
 0x8e1   :  { %4058 = vrot.lane.b32.xlu1 %v19590_v32, %s19190_s28 }
 0x8e4   :  { %4061 = vrot.lane.b32.xlu0 %v19634_v25, %s19190_s28 }
 0x8f4   :  { %v3927_v34 = vpop.xlane.xlu0 %3926 }
 0x8f5   :  { %v3933_v20 = vsub.f32 %v3912_v11, %v3927_v34 }
 0x8f7   :  { %v3939_v35 = vmul.f32 1.442695, %v3933_v20 }
 0x8f8   :  { %v3930_v36 = vpop.xlane.xlu0 %3929 }
 0x8f9   :  { %18641 = vpow2.f32 %v3939_v35  ;;  %v3934_v42 = vsub.f32 %v3915_v12, %v3930_v36 }
 0x8fb   :  { %v3941_v44 = vmul.f32 1.442695, %v3934_v42 }
 0x8fd   :  { %18643 = vpow2.f32 %v3941_v44 }
 0x903   :  { %v18642_v46 = vpop.eup %18641 }
 0x904   :  { %v3949_v47 = vsel %vm3417_vm2, %v18642_v46, 0.0 }
 0x905   :  { %3950 = vadd.xlane.f32.xlu1 %v3949_v47 }
 0x907   :  { %v18644_v59 = vpop.eup %18643 }
 0x908   :  { %v3952_v0 = vsel %vm3417_vm2, %v18644_v59, 0.0 }
 0x909   :  { %3953 = vadd.xlane.f32.xlu0 %v3952_v0 }
 0x916   :  { %4111 = vrot.lane.b32.xlu1 %v19596_v49, %s19190_s28 }
 0x91f   :  { %4114 = vrot.lane.b32.xlu0 %v19641_v22, %s19190_s28 }
 0x95b   :  { %v3945_v32 = vpop.xlane.xlu0 %3944 }
 0x95c   :  { %18645 = vrcp.f32 %v3945_v32 }
 0x95d   :  { %v3948_v25 = vpop.xlane.xlu1 %3947 }
 0x95e   :  { %18647 = vrcp.f32 %v3948_v25 }
 0x95f   :  { %v4062_v61 = vpop.permute.xlu0 %4061 }
 0x960   :  { %v4067_v62 = vsel %vm3322_vm1, %v4062_v61, 0 }
 0x961   :  { %v4059_v49 = vpop.permute.xlu1 %4058 }
 0x966   :  { %v18646_v17 = vpop.eup %18645 }
 0x967   :  { %v3959_v57 = vmul.f32 %v18646_v17, %v18638_v29 }
 0x968   :  { %v18648_v53 = vpop.eup %18647 }
 0x969   :  { %v3960_v10 = vmul.f32 %v18648_v53, %v18640_v31 }
 0x96b   :  { %v3963_v14 = vpack.c.bf16 %v3960_v10, %v3959_v57 }
 0x96d   :  { %16530 = vmatmul.mubr.msk.bf16.vlgmr.msra.gmra.mrb[44].mxu0 %vm3417_vm2, %v3963_v14 }
 0x96e   :  { %16540 = vmatpush3.bf16.xpose.msra.mxu0 %v4067_v62  ;;  %16541 = vmatprep.mubr.msk.bf16.mxu0 %vm19205_vm0, %v19204_v45 }
 0x96f   :  { %16551 = vmatprep.subr.bf16.mxu0 %v19204_v45 }
 0x975   :  { %16542 = vmatmul.mubr.msk.bf16.vlgmr.msra.gmra.mrb[48].mxu0 %vm3322_vm1, %v4059_v49 }
 0x976   :  { %16553 = vmatprep.mubr.msk.bf16.mxu0 %vm19205_vm0, %v19204_v45 }
 0x992   :  { %v3951_v22 = vpop.xlane.xlu1 %3950 }
 0x993   :  { %18649 = vrcp.f32 %v3951_v22 }
 0x996   :  { %v3954_v48 = vpop.xlane.xlu0 %3953  ;;  %v4112_v16 = vpop.permute.xlu1 %4111 }
 0x997   :  { %18651 = vrcp.f32 %v3954_v48 }
 0x99a   :  { %v4115_v9 = vpop.permute.xlu0 %4114 }
 0x99b   :  { %v4120_v13 = vsel %vm3322_vm1, %v4115_v9, 0 }
 0x99d   :  { %v18650_v1 = vpop.eup %18649 }
 0x99e   :  { %v3961_v11 = vmul.f32 %v18650_v1, %v18642_v46 }
 0x9a1   :  { %v18652_v5 = vpop.eup %18651 }
 0x9a2   :  { %v3962_v8 = vmul.f32 %v18652_v5, %v18644_v59 }
 0x9a4   :  { %v3964_v12 = vpack.c.bf16 %v3962_v8, %v3961_v11 }
 0x9a6   :  { %16536 = vmatmul.mubr.msk.bf16.vlgmr.msra.gmra.mrb[44].mxu1 %vm3417_vm2, %v3964_v12 }
 0x9a7   :  { %16546 = vmatpush3.bf16.xpose.msra.mxu1 %v4120_v13  ;;  %16547 = vmatprep.mubr.msk.bf16.mxu1 %vm19205_vm0, %v19204_v45 }
 0x9a8   :  { %16557 = vmatprep.subr.bf16.mxu1 %v19204_v45 }
 0x9ae   :  { %16548 = vmatmul.mubr.msk.bf16.vlgmr.msra.gmra.mrb[48].mxu1 %vm3322_vm1, %v4112_v16 }
 0x9af   :  { %16559 = vmatprep.mubr.msk.bf16.mxu1 %vm19205_vm0, %v19204_v45 }
 0xa40   :  { %v4002_v18 = vpop.f32.mrb[44].mxu0 }
 0xa41   :  { %4053 = vst.msk [vmem:[#allocation2 + $0x8] sm:$0xff] %vm3322_vm1, %v4002_v18  ;;  %v16531_v19 = vpop.f32.mrb[45].mxu0 }
 0xa42   :  { %v4005_v6 = vpop.f32.mrb[46].mxu0 }
 0xa43   :  { %4054 = vst.msk [vmem:[#allocation2 + $0x28] sm:$0xff] %vm3322_vm1, %v4005_v6  ;;  %v16532_v24 = vpop.f32.mrb[47].mxu0 }
 0xa48   :  { %v4103_v26 = vpop.f32.mrb[48].mxu0 }
 0xa49   :  { %v16543_v28 = vpop.f32.mrb[49].mxu0  ;;  %v4163_v29 = vsel %vm3417_vm2, %v4103_v26, -inf }
 0xa4a   :  { %4164 = vmax.xlane.f32.xlu1 %v4163_v29  ;;  %v4106_v15 = vpop.f32.mrb[50].mxu0 }
 0xa4b   :  { %v16544_v31 = vpop.f32.mrb[51].mxu0  ;;  %v4166_v33 = vsel %vm3417_vm2, %v4106_v15, -inf }
 0xa4c   :  { %4167 = vmax.xlane.f32.xlu0 %v4166_v33 }
 0xa79   :  { %v4046_v34 = vpop.f32.mrb[44].mxu1 }
 0xa7a   :  { %4055 = vst.msk [vmem:[#allocation2 + $0x48] sm:$0xff] %vm3322_vm1, %v4046_v34  ;;  %v16537_v20 = vpop.f32.mrb[45].mxu1 }
 0xa7b   :  { %v4049_v35 = vpop.f32.mrb[46].mxu1 }
 0xa7c   :  { %4056 = vst.msk [vmem:[#allocation2 + $0x68] sm:$0xff] %vm3322_vm1, %v4049_v35  ;;  %v16538_v36 = vpop.f32.mrb[47].mxu1 }
 0xa81   :  { %v4156_v42 = vpop.f32.mrb[48].mxu1 }
 0xa82   :  { %v16549_v44 = vpop.f32.mrb[49].mxu1  ;;  %v4169_v46 = vsel %vm3417_vm2, %v4156_v42, -inf }
 0xa83   :  { %v4159_v47 = vpop.f32.mrb[50].mxu1  ;;  %4170 = vmax.xlane.f32.xlu0 %v4169_v46  ;;  %v4376_v44 = vsel %vm3322_vm1, %v19660_v51, 0 }
 0xa84   :  { %v16550_v59 = vpop.f32.mrb[51].mxu1  ;;  %v4172_v0 = vsel %vm3417_vm2, %v4159_v47, -inf }
 0xa85   :  { %4173 = vmax.xlane.f32.xlu1 %v4172_v0 }
 0xad7   :  { %v4165_v32 = vpop.xlane.xlu1 %4164 }
 0xad8   :  { %v4175_v25 = vsub.f32 %v4103_v26, %v4165_v32 }
 0xad9   :  { %v4168_v17 = vpop.xlane.xlu0 %4167 }
 0xada   :  { %v4179_v53 = vmul.f32 1.442695, %v4175_v25  ;;  %v4176_v57 = vsub.f32 %v4106_v15, %v4168_v17  ;;  %v4329_v15 = vsel %vm3322_vm1, %v19656_v38, 0 }
 0xadc   :  { %18653 = vpow2.f32 %v4179_v53  ;;  %v4181_v10 = vmul.f32 1.442695, %v4176_v57 }
 0xade   :  { %18655 = vpow2.f32 %v4181_v10 }
 0xae6   :  { %v18654_v61 = vpop.eup %18653 }
 0xae7   :  { %v4187_v14 = vsel %vm3417_vm2, %v18654_v61, 0.0 }
 0xae8   :  { %v18656_v62 = vpop.eup %18655  ;;  %4188 = vadd.xlane.f32.xlu0 %v4187_v14 }
 0xae9   :  { %v4190_v49 = vsel %vm3417_vm2, %v18656_v62, 0.0 }
 0xaea   :  { %4191 = vadd.xlane.f32.xlu1 %v4190_v49 }
 0xafe   :  { %4210 = vrot.lane.b32.xlu0 %v19668_v7, %s19190_s28 }
 0xb10   :  { %v4171_v22 = vpop.xlane.xlu0 %4170 }
 0xb11   :  { %v4177_v48 = vsub.f32 %v4156_v42, %v4171_v22 }
 0xb12   :  { %v4174_v1 = vpop.xlane.xlu1 %4173 }
 0xb13   :  { %v4183_v5 = vmul.f32 1.442695, %v4177_v48  ;;  %v4178_v11 = vsub.f32 %v4159_v47, %v4174_v1 }
 0xb15   :  { %18657 = vpow2.f32 %v4183_v5  ;;  %v4185_v8 = vmul.f32 1.442695, %v4178_v11 }
 0xb17   :  { %18659 = vpow2.f32 %v4185_v8 }
 0xb1f   :  { %v18658_v9 = vpop.eup %18657 }
 0xb20   :  { %v4193_v12 = vsel %vm3417_vm2, %v18658_v9, 0.0 }
 0xb21   :  { %v18660_v13 = vpop.eup %18659  ;;  %4194 = vadd.xlane.f32.xlu1 %v4193_v12 }
 0xb22   :  { %v4196_v16 = vsel %vm3417_vm2, %v18660_v13, 0.0 }
 0xb25   :  { %4197 = vadd.xlane.f32.xlu1 %v4196_v16 }
 0xb36   :  { %4258 = vrot.lane.b32.xlu1 %v19674_v21, %s19190_s28 }
 0xb75   :  { %v4189_v7 = vpop.xlane.xlu0 %4188 }
 0xb76   :  { %18661 = vrcp.f32 %v4189_v7 }
 0xb77   :  { %v4192_v18 = vpop.xlane.xlu1 %4191 }
 0xb78   :  { %18663 = vrcp.f32 %v4192_v18 }
 0xb79   :  { %v4211_v19 = vpop.permute.xlu0 %4210 }
 0xb7a   :  { %16552 = vmatpush3.bf16.msra.mxu0 %v4211_v19 }
 0xb7b   :  { %16563 = vmatprep.subr.bf16.mxu0 %v19204_v45 }
 0xb80   :  { %v18662_v6 = vpop.eup %18661 }
 0xb81   :  { %v4203_v26 = vmul.f32 %v18662_v6, %v18654_v61 }
 0xb82   :  { %v18664_v24 = vpop.eup %18663 }
 0xb83   :  { %v4204_v28 = vmul.f32 %v18664_v24, %v18656_v62 }
 0xb85   :  { %v4207_v29 = vpack.c.bf16 %v4204_v28, %v4203_v26 }
 0xb87   :  { %16554 = vmatmul.mubr.msk.bf16.vlgmr.msra.gmra.mrb[52].mxu0 %vm3417_vm2, %v4207_v29 }
 0xb88   :  { %16564 = vmatpush3.bf16.xpose.msra.mxu0 %v4329_v15  ;;  %16565 = vmatprep.mubr.msk.bf16.mxu0 %vm19205_vm0, %v19204_v45 }
 0xb89   :  { %16575 = vmatprep.subr.bf16.mxu0 %v19204_v45 }
 0xb8f   :  { %16566 = vmatmul.mubr.msk.bf16.vlgmr.msra.gmra.mrb[56].mxu0 %vm3322_vm1, %v19610_v23 }
 0xb90   :  { %16576 = vmatpush3.bf16.msra.mxu0 %v19680_v37  ;;  %16577 = vmatprep.mubr.msk.bf16.mxu0 %vm19205_vm0, %v19204_v45 }
 0xb91   :  { %16587 = vmatprep.subr.bf16.mxu0 %v19204_v45 }
 0xbae   :  { %v4195_v21 = vpop.xlane.xlu1 %4194 }
 0xbaf   :  { %18665 = vrcp.f32 %v4195_v21 }
 0xbb2   :  { %v4198_v31 = vpop.xlane.xlu1 %4197 }
 0xbb3   :  { %18667 = vrcp.f32 %v4198_v31 }
 0xbb6   :  { %v4259_v33 = vpop.permute.xlu1 %4258 }
 0xbb7   :  { %16558 = vmatpush3.bf16.msra.mxu1 %v4259_v33 }
 0xbb8   :  { %16569 = vmatprep.subr.bf16.mxu1 %v19204_v45 }
 0xbb9   :  { %v18666_v34 = vpop.eup %18665 }
 0xbba   :  { %v4205_v35 = vmul.f32 %v18666_v34, %v18658_v9 }
 0xbbd   :  { %v18668_v20 = vpop.eup %18667 }
 0xbbe   :  { %v4206_v36 = vmul.f32 %v18668_v20, %v18660_v13 }
 0xbc0   :  { %v4208_v42 = vpack.c.bf16 %v4206_v36, %v4205_v35 }
 0xbc2   :  { %16560 = vmatmul.mubr.msk.bf16.vlgmr.msra.gmra.mrb[52].mxu1 %vm3417_vm2, %v4208_v42 }
 0xbc3   :  { %16570 = vmatpush3.bf16.xpose.msra.mxu1 %v4376_v44  ;;  %16571 = vmatprep.mubr.msk.bf16.mxu1 %vm19205_vm0, %v19204_v45 }
 0xbc4   :  { %16581 = vmatprep.subr.bf16.mxu1 %v19204_v45 }
 0xbca   :  { %16572 = vmatmul.mubr.msk.bf16.vlgmr.msra.gmra.mrb[56].mxu1 %vm3322_vm1, %v19614_v41 }
 0xbcb   :  { %16582 = vmatpush3.bf16.msra.mxu1 %v19684_v54  ;;  %16583 = vmatprep.mubr.msk.bf16.mxu1 %vm19205_vm0, %v19204_v45 }
 0xbcc   :  { %16593 = vmatprep.subr.bf16.mxu1 %v19204_v45 }
 0xc5a   :  { %v19844_v46 = vpop.f32.mrb[52].mxu0 }
 0xc5b   :  { %v16555_v47 = vpop.f32.mrb[53].mxu0 }
 0xc5c   :  { %v19846_v59 = vpop.f32.mrb[54].mxu0 }
 0xc5d   :  { %v16556_v0 = vpop.f32.mrb[55].mxu0 }
 0xc62   :  { %v4365_v32 = vpop.f32.mrb[56].mxu0 }
 0xc63   :  { %v16567_v25 = vpop.f32.mrb[57].mxu0  ;;  %v4419_v17 = vsel %vm3417_vm2, %v4365_v32, -inf }
 0xc64   :  { %4420 = vmax.xlane.f32.xlu0 %v4419_v17  ;;  %v4368_v53 = vpop.f32.mrb[58].mxu0 }
 0xc65   :  { %v16568_v57 = vpop.f32.mrb[59].mxu0  ;;  %v4422_v10 = vsel %vm3417_vm2, %v4368_v53, -inf }
 0xc66   :  { %4423 = vmax.xlane.f32.xlu1 %v4422_v10 }
 0xc95   :  { %v19850_v61 = vpop.f32.mrb[52].mxu1 }
 0xc96   :  { %v16561_v14 = vpop.f32.mrb[53].mxu1 }
 0xc97   :  { %v19852_v62 = vpop.f32.mrb[54].mxu1 }
 0xc98   :  { %v16562_v49 = vpop.f32.mrb[55].mxu1 }
 0xc9d   :  { %v4412_v22 = vpop.f32.mrb[56].mxu1 }
 0xc9e   :  { %v16573_v48 = vpop.f32.mrb[57].mxu1  ;;  %v4425_v1 = vsel %vm3417_vm2, %v4412_v22, -inf }
 0xc9f   :  { %v4415_v5 = vpop.f32.mrb[58].mxu1  ;;  %4426 = vmax.xlane.f32.xlu0 %v4425_v1 }
 0xca0   :  { %v16574_v11 = vpop.f32.mrb[59].mxu1  ;;  %v4428_v8 = vsel %vm3417_vm2, %v4415_v5, -inf }
 0xca3   :  { %4429 = vmax.xlane.f32.xlu0 %v4428_v8 }
 0xcf1   :  { %v4421_v9 = vpop.xlane.xlu0 %4420 }
 0xcf2   :  { %v4431_v12 = vsub.f32 %v4365_v32, %v4421_v9 }
 0xcf3   :  { %v4424_v13 = vpop.xlane.xlu1 %4423 }
 0xcf4   :  { %v4435_v16 = vmul.f32 1.442695, %v4431_v12  ;;  %v4432_v7 = vsub.f32 %v4368_v53, %v4424_v13 }
 0xcf6   :  { %18669 = vpow2.f32 %v4435_v16  ;;  %v4437_v18 = vmul.f32 1.442695, %v4432_v7 }
 0xcf8   :  { %18671 = vpow2.f32 %v4437_v18 }
 0xd00   :  { %v18670_v19 = vpop.eup %18669 }
 0xd01   :  { %v4443_v6 = vsel %vm3417_vm2, %v18670_v19, 0.0 }
 0xd02   :  { %v18672_v24 = vpop.eup %18671  ;;  %4444 = vadd.xlane.f32.xlu0 %v4443_v6 }
 0xd03   :  { %v4446_v26 = vsel %vm3417_vm2, %v18672_v24, 0.0 }
 0xd04   :  { %4447 = vadd.xlane.f32.xlu1 %v4446_v26 }
 0xd15   :  { %4558 = vrot.lane.b32.xlu1 %v19610_v23, %s19190_s28 }
 0xd18   :  { %4561 = vrot.lane.b32.xlu0 %v19656_v38, %s19190_s28 }
 0xd2c   :  { %v4427_v28 = vpop.xlane.xlu0 %4426 }
 0xd2d   :  { %v4433_v29 = vsub.f32 %v4412_v22, %v4427_v28 }
 0xd2f   :  { %v4439_v15 = vmul.f32 1.442695, %v4433_v29 }
 0xd30   :  { %v4430_v21 = vpop.xlane.xlu0 %4429 }
 0xd31   :  { %18673 = vpow2.f32 %v4439_v15  ;;  %v4434_v31 = vsub.f32 %v4415_v5, %v4430_v21 }
 0xd33   :  { %v4441_v33 = vmul.f32 1.442695, %v4434_v31 }
 0xd35   :  { %18675 = vpow2.f32 %v4441_v33 }
 0xd3b   :  { %v18674_v34 = vpop.eup %18673 }
 0xd3c   :  { %v4449_v20 = vsel %vm3417_vm2, %v18674_v34, 0.0 }
 0xd3d   :  { %4450 = vadd.xlane.f32.xlu1 %v4449_v20 }
 0xd3f   :  { %v18676_v35 = vpop.eup %18675 }
 0xd40   :  { %v4452_v36 = vsel %vm3417_vm2, %v18676_v35, 0.0 }
 0xd41   :  { %4453 = vadd.xlane.f32.xlu0 %v4452_v36 }
 0xd4e   :  { %4611 = vrot.lane.b32.xlu1 %v19614_v41, %s19190_s28 }
 0xd57   :  { %4614 = vrot.lane.b32.xlu0 %v19660_v51, %s19190_s28 }
 0xd8f   :  { %v4445_v23 = vpop.xlane.xlu0 %4444 }
 0xd90   :  { %18677 = vrcp.f32 %v4445_v23 }
 0xd91   :  { %v4448_v38 = vpop.xlane.xlu1 %4447 }
 0xd92   :  { %18679 = vrcp.f32 %v4448_v38 }
 0xd93   :  { %v4562_v32 = vpop.permute.xlu0 %4561 }
 0xd94   :  { %v4567_v17 = vsel %vm3322_vm1, %v4562_v32, 0 }
 0xd95   :  { %v4559_v41 = vpop.permute.xlu1 %4558 }
 0xd9a   :  { %v18678_v42 = vpop.eup %18677 }
 0xd9b   :  { %v4459_v47 = vmul.f32 %v18678_v42, %v18670_v19 }
 0xd9c   :  { %v18680_v44 = vpop.eup %18679 }
 0xd9d   :  { %v4460_v0 = vmul.f32 %v18680_v44, %v18672_v24 }
 0xd9f   :  { %v4463_v25 = vpack.c.bf16 %v4460_v0, %v4459_v47 }
 0xda1   :  { %16578 = vmatmul.mubr.msk.bf16.vlgmr.msra.gmra.mrb[60].mxu0 %vm3417_vm2, %v4463_v25 }
 0xda2   :  { %16588 = vmatpush3.bf16.xpose.msra.mxu0 %v4567_v17  ;;  %16589 = vmatprep.mubr.msk.bf16.mxu0 %vm19205_vm0, %v19204_v45 }
 0xda3   :  { %16599 = vmatprep.subr.bf16.mxu0 %v19204_v45 }
 0xda9   :  { %16590 = vmatmul.mubr.msk.bf16.vlgmr.msra.gmra.mrb[64].mxu0 %vm3322_vm1, %v4559_v41 }
 0xdaa   :  { %16601 = vmatprep.mubr.msk.bf16.mxu0 %vm19205_vm0, %v19204_v45 }
 0xdca   :  { %v4451_v51 = vpop.xlane.xlu1 %4450 }
 0xdcb   :  { %18681 = vrcp.f32 %v4451_v51 }
 0xdce   :  { %v4454_v53 = vpop.xlane.xlu0 %4453  ;;  %v4612_v5 = vpop.permute.xlu1 %4611 }
 0xdcf   :  { %18683 = vrcp.f32 %v4454_v53 }
 0xdd2   :  { %v4615_v22 = vpop.permute.xlu0 %4614 }
 0xdd3   :  { %v4620_v1 = vsel %vm3322_vm1, %v4615_v22, 0 }
 0xdd5   :  { %v18682_v57 = vpop.eup %18681 }
 0xdd6   :  { %v4461_v14 = vmul.f32 %v18682_v57, %v18674_v34 }
 0xdd9   :  { %v18684_v10 = vpop.eup %18683 }
 0xdda   :  { %v4462_v49 = vmul.f32 %v18684_v10, %v18676_v35 }
 0xddc   :  { %v4464_v48 = vpack.c.bf16 %v4462_v49, %v4461_v14 }
 0xdde   :  { %16584 = vmatmul.mubr.msk.bf16.vlgmr.msra.gmra.mrb[60].mxu1 %vm3417_vm2, %v4464_v48 }
 0xddf   :  { %16594 = vmatpush3.bf16.xpose.msra.mxu1 %v4620_v1  ;;  %16595 = vmatprep.mubr.msk.bf16.mxu1 %vm19205_vm0, %v19204_v45 }
 0xde0   :  { %16605 = vmatprep.subr.bf16.mxu1 %v19204_v45 }
 0xde6   :  { %16596 = vmatmul.mubr.msk.bf16.vlgmr.msra.gmra.mrb[64].mxu1 %vm3322_vm1, %v4612_v5 }
 0xde7   :  { %16607 = vmatprep.mubr.msk.bf16.mxu1 %vm19205_vm0, %v19204_v45 }
 0xe74   :  { %v4502_v11 = vpop.f32.mrb[60].mxu0 }
 0xe75   :  { %4553 = vst.msk [vmem:[#allocation2 + $0x10] sm:$0xff] %vm3322_vm1, %v4502_v11  ;;  %v16579_v8 = vpop.f32.mrb[61].mxu0 }
 0xe76   :  { %v4505_v9 = vpop.f32.mrb[62].mxu0 }
 0xe77   :  { %4554 = vst.msk [vmem:[#allocation2 + $0x30] sm:$0xff] %vm3322_vm1, %v4505_v9  ;;  %v16580_v12 = vpop.f32.mrb[63].mxu0 }
 0xe7c   :  { %v4603_v13 = vpop.f32.mrb[64].mxu0 }
 0xe7d   :  { %v16591_v16 = vpop.f32.mrb[65].mxu0  ;;  %v4663_v7 = vsel %vm3417_vm2, %v4603_v13, -inf }
 0xe7e   :  { %4664 = vmax.xlane.f32.xlu1 %v4663_v7  ;;  %v4606_v18 = vpop.f32.mrb[66].mxu0  ;;  %v4829_v16 = vsel %vm3322_vm1, %v19658_v39, 0 }
 0xe7f   :  { %v16592_v19 = vpop.f32.mrb[67].mxu0  ;;  %v4666_v6 = vsel %vm3417_vm2, %v4606_v18, -inf }
 0xe80   :  { %4667 = vmax.xlane.f32.xlu0 %v4666_v6 }
 0xeb1   :  { %v4546_v24 = vpop.f32.mrb[60].mxu1 }
 0xeb2   :  { %4555 = vst.msk [vmem:[#allocation2 + $0x50] sm:$0xff] %vm3322_vm1, %v4546_v24  ;;  %v16585_v26 = vpop.f32.mrb[61].mxu1 }
 0xeb3   :  { %v4549_v28 = vpop.f32.mrb[62].mxu1 }
 0xeb4   :  { %4556 = vst.msk [vmem:[#allocation2 + $0x70] sm:$0xff] %vm3322_vm1, %v4549_v28  ;;  %v16586_v29 = vpop.f32.mrb[63].mxu1 }
 0xeb5   :  { %v4876_v29 = vsel %vm3322_vm1, %v19662_v52, 0 }
 0xeb9   :  { %v4656_v15 = vpop.f32.mrb[64].mxu1 }
 0xeba   :  { %v16597_v21 = vpop.f32.mrb[65].mxu1  ;;  %v4669_v31 = vsel %vm3417_vm2, %v4656_v15, -inf }
 0xebb   :  { %v4659_v33 = vpop.f32.mrb[66].mxu1  ;;  %4670 = vmax.xlane.f32.xlu0 %v4669_v31 }
 0xebc   :  { %v16598_v34 = vpop.f32.mrb[67].mxu1  ;;  %v4672_v20 = vsel %vm3417_vm2, %v4659_v33, -inf }
 0xebd   :  { %4673 = vmax.xlane.f32.xlu1 %v4672_v20 }
 0xf0b   :  { %v4665_v35 = vpop.xlane.xlu1 %4664 }
 0xf0c   :  { %v4675_v36 = vsub.f32 %v4603_v13, %v4665_v35 }
 0xf0d   :  { %v4668_v23 = vpop.xlane.xlu0 %4667 }
 0xf0e   :  { %v4679_v38 = vmul.f32 1.442695, %v4675_v36  ;;  %v4676_v42 = vsub.f32 %v4606_v18, %v4668_v23 }
 0xf10   :  { %18685 = vpow2.f32 %v4679_v38  ;;  %v4681_v44 = vmul.f32 1.442695, %v4676_v42 }
 0xf12   :  { %18687 = vpow2.f32 %v4681_v44 }
 0xf1a   :  { %v18686_v47 = vpop.eup %18685 }
 0xf1b   :  { %v4687_v0 = vsel %vm3417_vm2, %v18686_v47, 0.0 }
 0xf1c   :  { %v18688_v32 = vpop.eup %18687  ;;  %4688 = vadd.xlane.f32.xlu0 %v4687_v0 }
 0xf1d   :  { %v4690_v25 = vsel %vm3417_vm2, %v18688_v32, 0.0 }
 0xf1e   :  { %4691 = vadd.xlane.f32.xlu1 %v4690_v25 }
 0xf32   :  { %4710 = vrot.lane.b32.xlu0 %v19680_v37, %s19190_s28 }
 0xf48   :  { %v4671_v17 = vpop.xlane.xlu0 %4670 }
 0xf49   :  { %v4677_v41 = vsub.f32 %v4656_v15, %v4671_v17 }
 0xf4a   :  { %v4674_v51 = vpop.xlane.xlu1 %4673 }
 0xf4b   :  { %v4683_v53 = vmul.f32 1.442695, %v4677_v41  ;;  %v4678_v57 = vsub.f32 %v4659_v33, %v4674_v51 }
 0xf4d   :  { %18689 = vpow2.f32 %v4683_v53  ;;  %v4685_v10 = vmul.f32 1.442695, %v4678_v57 }
 0xf4f   :  { %18691 = vpow2.f32 %v4685_v10 }
 0xf57   :  { %v18690_v14 = vpop.eup %18689 }
 0xf58   :  { %v4693_v49 = vsel %vm3417_vm2, %v18690_v14, 0.0 }
 0xf59   :  { %v18692_v22 = vpop.eup %18691  ;;  %4694 = vadd.xlane.f32.xlu1 %v4693_v49 }
 0xf5a   :  { %v4696_v48 = vsel %vm3417_vm2, %v18692_v22, 0.0 }
 0xf5d   :  { %4697 = vadd.xlane.f32.xlu1 %v4696_v48 }
 0xf6e   :  { %4758 = vrot.lane.b32.xlu1 %v19684_v54, %s19190_s28 }
 0xfa9   :  { %v4689_v37 = vpop.xlane.xlu0 %4688 }
 0xfaa   :  { %18693 = vrcp.f32 %v4689_v37 }
 0xfab   :  { %v4692_v1 = vpop.xlane.xlu1 %4691 }
 0xfac   :  { %18695 = vrcp.f32 %v4692_v1 }
 0xfad   :  { %v4711_v5 = vpop.permute.xlu0 %4710 }
 0xfae   :  { %16600 = vmatpush3.bf16.msra.mxu0 %v4711_v5 }
 0xfaf   :  { %16611 = vmatprep.subr.bf16.mxu0 %v19204_v45 }
 0xfb4   :  { %v18694_v11 = vpop.eup %18693 }
 0xfb5   :  { %v4703_v9 = vmul.f32 %v18694_v11, %v18686_v47 }
 0xfb6   :  { %v18696_v8 = vpop.eup %18695 }
 0xfb7   :  { %v4704_v12 = vmul.f32 %v18696_v8, %v18688_v32 }
 0xfb9   :  { %v4707_v13 = vpack.c.bf16 %v4704_v12, %v4703_v9 }
 0xfbb   :  { %16602 = vmatmul.mubr.msk.bf16.vlgmr.msra.gmra.mrb[68].mxu0 %vm3417_vm2, %v4707_v13 }
 0xfbc   :  { %16612 = vmatpush3.bf16.xpose.msra.mxu0 %v4829_v16  ;;  %16613 = vmatprep.mubr.msk.bf16.mxu0 %vm19205_vm0, %v19204_v45 }
 0xfbd   :  { %16623 = vmatprep.subr.bf16.mxu0 %v19204_v45 }
 0xfc3   :  { %16614 = vmatmul.mubr.msk.bf16.vlgmr.msra.gmra.mrb[72].mxu0 %vm3322_vm1, %v19612_v27 }
 0xfc4   :  { %16624 = vmatpush3.bf16.msra.mxu0 %v19682_v40  ;;  %16625 = vmatprep.mubr.msk.bf16.mxu0 %vm19205_vm0, %v19204_v45 }
 0xfc5   :  { %16635 = vmatprep.subr.bf16.mxu0 %v19204_v45 }
 0xfe6   :  { %v4695_v54 = vpop.xlane.xlu1 %4694 }
 0xfe7   :  { %18697 = vrcp.f32 %v4695_v54 }
 0xfea   :  { %v4698_v7 = vpop.xlane.xlu1 %4697 }
 0xfeb   :  { %18699 = vrcp.f32 %v4698_v7 }
 0xfee   :  { %v4759_v18 = vpop.permute.xlu1 %4758 }
 0xfef   :  { %16606 = vmatpush3.bf16.msra.mxu1 %v4759_v18 }
 0xff0   :  { %16617 = vmatprep.subr.bf16.mxu1 %v19204_v45 }
 0xff1   :  { %v18698_v19 = vpop.eup %18697 }
 0xff2   :  { %v4705_v24 = vmul.f32 %v18698_v19, %v18690_v14 }
 0xff5   :  { %v18700_v6 = vpop.eup %18699 }
 0xff6   :  { %v4706_v26 = vmul.f32 %v18700_v6, %v18692_v22 }
 0xff8   :  { %v4708_v28 = vpack.c.bf16 %v4706_v26, %v4705_v24 }
 0xffa   :  { %16608 = vmatmul.mubr.msk.bf16.vlgmr.msra.gmra.mrb[68].mxu1 %vm3417_vm2, %v4708_v28 }
 0xffb   :  { %16618 = vmatpush3.bf16.xpose.msra.mxu1 %v4876_v29  ;;  %16619 = vmatprep.mubr.msk.bf16.mxu1 %vm19205_vm0, %v19204_v45 }
 0xffc   :  { %16629 = vmatprep.subr.bf16.mxu1 %v19204_v45 }
0x1002   :  { %16620 = vmatmul.mubr.msk.bf16.vlgmr.msra.gmra.mrb[72].mxu1 %vm3322_vm1, %v19616_v43 }
0x1003   :  { %16630 = vmatpush3.bf16.msra.mxu1 %v19686_v56  ;;  %16631 = vmatprep.mubr.msk.bf16.mxu1 %vm19205_vm0, %v19204_v45 }
0x1004   :  { %16641 = vmatprep.subr.bf16.mxu1 %v19204_v45 }
0x108e   :  { %v19926_v15 = vpop.f32.mrb[68].mxu0 }
0x108f   :  { %v16603_v21 = vpop.f32.mrb[69].mxu0 }
0x1090   :  { %v19928_v31 = vpop.f32.mrb[70].mxu0 }
0x1091   :  { %v16604_v33 = vpop.f32.mrb[71].mxu0 }
0x1096   :  { %v4865_v34 = vpop.f32.mrb[72].mxu0 }
0x1097   :  { %v16615_v20 = vpop.f32.mrb[73].mxu0  ;;  %v4919_v35 = vsel %vm3417_vm2, %v4865_v34, -inf }
0x1098   :  { %4920 = vmax.xlane.f32.xlu0 %v4919_v35  ;;  %v4868_v36 = vpop.f32.mrb[74].mxu0 }
0x1099   :  { %v16616_v23 = vpop.f32.mrb[75].mxu0  ;;  %v4922_v38 = vsel %vm3417_vm2, %v4868_v36, -inf }
0x109a   :  { %4923 = vmax.xlane.f32.xlu1 %v4922_v38 }
0x10cd   :  { %v19932_v42 = vpop.f32.mrb[68].mxu1 }
0x10ce   :  { %v16609_v44 = vpop.f32.mrb[69].mxu1 }
0x10cf   :  { %v19934_v47 = vpop.f32.mrb[70].mxu1 }
0x10d0   :  { %v16610_v0 = vpop.f32.mrb[71].mxu1 }
0x10d5   :  { %v4912_v32 = vpop.f32.mrb[72].mxu1 }
0x10d6   :  { %v16621_v25 = vpop.f32.mrb[73].mxu1  ;;  %v4925_v17 = vsel %vm3417_vm2, %v4912_v32, -inf }
0x10d7   :  { %v4915_v41 = vpop.f32.mrb[74].mxu1  ;;  %4926 = vmax.xlane.f32.xlu0 %v4925_v17 }
0x10d8   :  { %v16622_v51 = vpop.f32.mrb[75].mxu1  ;;  %v4928_v53 = vsel %vm3417_vm2, %v4915_v41, -inf }
0x10db   :  { %4929 = vmax.xlane.f32.xlu0 %v4928_v53 }
0x1125   :  { %v4921_v57 = vpop.xlane.xlu0 %4920 }
0x1126   :  { %v4931_v10 = vsub.f32 %v4865_v34, %v4921_v57 }
0x1127   :  { %v4924_v14 = vpop.xlane.xlu1 %4923 }
0x1128   :  { %v4935_v49 = vmul.f32 1.442695, %v4931_v10  ;;  %v4932_v22 = vsub.f32 %v4868_v36, %v4924_v14 }
0x112a   :  { %18701 = vpow2.f32 %v4935_v49  ;;  %v4937_v48 = vmul.f32 1.442695, %v4932_v22 }
0x112c   :  { %18703 = vpow2.f32 %v4937_v48 }
0x1134   :  { %v18702_v37 = vpop.eup %18701 }
0x1135   :  { %v4943_v1 = vsel %vm3417_vm2, %v18702_v37, 0.0 }
0x1136   :  { %v18704_v5 = vpop.eup %18703  ;;  %4944 = vadd.xlane.f32.xlu0 %v4943_v1 }
0x1137   :  { %v4946_v11 = vsel %vm3417_vm2, %v18704_v5, 0.0 }
0x1138   :  { %4947 = vadd.xlane.f32.xlu1 %v4946_v11 }
0x1149   :  { %5058 = vrot.lane.b32.xlu1 %v19612_v27, %s19190_s28 }
0x114c   :  { %5061 = vrot.lane.b32.xlu0 %v19658_v39, %s19190_s28 }
0x1164   :  { %v4927_v8 = vpop.xlane.xlu0 %4926 }
0x1165   :  { %v4933_v9 = vsub.f32 %v4912_v32, %v4927_v8 }
0x1167   :  { %v4939_v12 = vmul.f32 1.442695, %v4933_v9 }
0x1168   :  { %v4930_v13 = vpop.xlane.xlu0 %4929 }
0x1169   :  { %18705 = vpow2.f32 %v4939_v12  ;;  %v4934_v16 = vsub.f32 %v4915_v41, %v4930_v13 }
0x116b   :  { %v4941_v54 = vmul.f32 1.442695, %v4934_v16 }
0x116d   :  { %18707 = vpow2.f32 %v4941_v54 }
0x1173   :  { %v18706_v7 = vpop.eup %18705 }
0x1174   :  { %v4949_v18 = vsel %vm3417_vm2, %v18706_v7, 0.0 }
0x1175   :  { %4950 = vadd.xlane.f32.xlu1 %v4949_v18 }
0x1177   :  { %v18708_v19 = vpop.eup %18707 }
0x1178   :  { %v4952_v6 = vsel %vm3417_vm2, %v18708_v19, 0.0 }
0x1179   :  { %4953 = vadd.xlane.f32.xlu0 %v4952_v6 }
0x1186   :  { %5111 = vrot.lane.b32.xlu1 %v19616_v43, %s19190_s28 }
0x118f   :  { %5114 = vrot.lane.b32.xlu0 %v19662_v52, %s19190_s28 }
0x11c3   :  { %v4945_v27 = vpop.xlane.xlu0 %4944 }
0x11c4   :  { %18709 = vrcp.f32 %v4945_v27 }
0x11c5   :  { %v4948_v39 = vpop.xlane.xlu1 %4947 }
0x11c6   :  { %18711 = vrcp.f32 %v4948_v39 }
0x11c7   :  { %v5062_v21 = vpop.permute.xlu0 %5061 }
0x11c8   :  { %v5067_v34 = vsel %vm3322_vm1, %v5062_v21, 0 }
0x11c9   :  { %v5059_v43 = vpop.permute.xlu1 %5058 }
0x11ce   :  { %v18710_v24 = vpop.eup %18709 }
0x11cf   :  { %v4959_v28 = vmul.f32 %v18710_v24, %v18702_v37 }
0x11d0   :  { %v18712_v26 = vpop.eup %18711 }
0x11d1   :  { %v4960_v29 = vmul.f32 %v18712_v26, %v18704_v5 }
0x11d3   :  { %v4963_v33 = vpack.c.bf16 %v4960_v29, %v4959_v28 }
0x11d5   :  { %16626 = vmatmul.mubr.msk.bf16.vlgmr.msra.gmra.mrb[76].mxu0 %vm3417_vm2, %v4963_v33 }
0x11d6   :  { %16636 = vmatpush3.bf16.xpose.msra.mxu0 %v5067_v34  ;;  %16637 = vmatprep.mubr.msk.bf16.mxu0 %vm19205_vm0, %v19204_v45 }
0x11d7   :  { %16647 = vmatprep.subr.bf16.mxu0 %v19204_v45 }
0x11dd   :  { %16638 = vmatmul.mubr.msk.bf16.vlgmr.msra.gmra.mrb[80].mxu0 %vm3322_vm1, %v5059_v43 }
0x11de   :  { %16649 = vmatprep.mubr.msk.bf16.mxu0 %vm19205_vm0, %v19204_v45 }
0x1202   :  { %v4951_v52 = vpop.xlane.xlu1 %4950 }
0x1203   :  { %18713 = vrcp.f32 %v4951_v52 }
0x1206   :  { %v4954_v20 = vpop.xlane.xlu0 %4953  ;;  %v5112_v25 = vpop.permute.xlu1 %5111 }
0x1207   :  { %18715 = vrcp.f32 %v4954_v20 }
0x120a   :  { %v5115_v44 = vpop.permute.xlu0 %5114 }
0x120b   :  { %v5120_v32 = vsel %vm3322_vm1, %v5115_v44, 0 }
0x120d   :  { %v18714_v35 = vpop.eup %18713 }
0x120e   :  { %v4961_v23 = vmul.f32 %v18714_v35, %v18706_v7  ;;  %v17647_v35 = vld [vmem:[#allocation15 + $0x4] ss:$16 sps:$4 sm:$0xff]  }
0x1211   :  { %v18716_v36 = vpop.eup %18715 }
0x1212   :  { %v4962_v38 = vmul.f32 %v18716_v36, %v18708_v19 }
0x1214   :  { %v4964_v0 = vpack.c.bf16 %v4962_v38, %v4961_v23 }
0x1216   :  { %16632 = vmatmul.mubr.msk.bf16.vlgmr.msra.gmra.mrb[76].mxu1 %vm3417_vm2, %v4964_v0 }
0x1217   :  { %16642 = vmatpush3.bf16.xpose.msra.mxu1 %v5120_v32  ;;  %16643 = vmatprep.mubr.msk.bf16.mxu1 %vm19205_vm0, %v19204_v45  ;;  %v17650_v32 = vld [vmem:[#allocation15 + $0x24] ss:$16 sps:$4 sm:$0xff]  }
0x1218   :  { %16653 = vmatprep.subr.bf16.mxu1 %v19204_v45 }
0x121e   :  { %16644 = vmatmul.mubr.msk.bf16.vlgmr.msra.gmra.mrb[80].mxu1 %vm3322_vm1, %v5112_v25  ;;  %v17648_v25 = vld [vmem:[#allocation15 + $0x20] ss:$16 sps:$4 sm:$0xff]  }
0x121f   :  { %16655 = vmatprep.mubr.msk.bf16.mxu1 %vm19205_vm0, %v19204_v45 }
0x12a8   :  { %v5002_v17 = vpop.f32.mrb[76].mxu0 }
0x12a9   :  { %5053 = vst.msk [vmem:[#allocation2 + $0x18] sm:$0xff] %vm3322_vm1, %v5002_v17  ;;  %v16627_v41 = vpop.f32.mrb[77].mxu0 }
0x12aa   :  { %v5005_v51 = vpop.f32.mrb[78].mxu0  ;;  %v17653_v41 = vld [vmem:[#allocation15 + $0x44] ss:$16 sps:$4 sm:$0xff]  }
0x12ab   :  { %5054 = vst.msk [vmem:[#allocation2 + $0x38] sm:$0xff] %vm3322_vm1, %v5005_v51  ;;  %v16628_v53 = vpop.f32.mrb[79].mxu0  ;;  %v17651_v51 = vld [vmem:[#allocation15 + $0x40] ss:$16 sps:$4 sm:$0xff]  }
0x12ac   :  { %v17656_v53 = vld [vmem:[#allocation15 + $0x64] ss:$16 sps:$4 sm:$0xff]  }
0x12b0   :  { %v5103_v57 = vpop.f32.mrb[80].mxu0 }
0x12b1   :  { %v16639_v10 = vpop.f32.mrb[81].mxu0  ;;  %v5163_v14 = vsel %vm3417_vm2, %v5103_v57, -inf }
0x12b2   :  { %5164 = vmax.xlane.f32.xlu1 %v5163_v14  ;;  %v5106_v49 = vpop.f32.mrb[82].mxu0  ;;  %v17659_v10 = vld [vmem:[#allocation15 + $0x84] ss:$16 sps:$4 sm:$0xff]   ;;  %v17657_v14 = vld [vmem:[#allocation15 + $0x80] ss:$16 sps:$4 sm:$0xff]  }
0x12b3   :  { %v16640_v22 = vpop.f32.mrb[83].mxu0  ;;  %v5166_v48 = vsel %vm3417_vm2, %v5106_v49, -inf }
0x12b4   :  { %5167 = vmax.xlane.f32.xlu0 %v5166_v48  ;;  %v17660_v22 = vld [vmem:[#allocation15 + $0xa0] ss:$16 sps:$4 sm:$0xff]   ;;  %v17665_v48 = vld [vmem:[#allocation15 + $0xc4] ss:$16 sps:$4 sm:$0xff]  }
0x12e9   :  { %v5046_v37 = vpop.f32.mrb[76].mxu1 }
0x12ea   :  { %5055 = vst.msk [vmem:[#allocation2 + $0x58] sm:$0xff] %vm3322_vm1, %v5046_v37  ;;  %v16633_v45 = vpop.f32.mrb[77].mxu1  ;;  %v17663_v37 = vld [vmem:[#allocation15 + $0xc0] ss:$16 sps:$4 sm:$0xff]  }
0x12eb   :  { %v5049_v1 = vpop.f32.mrb[78].mxu1  ;;  %v17668_v45 = vld [vmem:[#allocation15 + $0xe4] ss:$16 sps:$4 sm:$0xff]  }
0x12ec   :  { %5056 = vst.msk [vmem:[#allocation2 + $0x78] sm:$0xff] %vm3322_vm1, %v5049_v1  ;;  %v16634_v5 = vpop.f32.mrb[79].mxu1  ;;  %v17666_v1 = vld [vmem:[#allocation15 + $0xe0] ss:$16 sps:$4 sm:$0xff]  }
0x12ed   :  { %v17671_v5 = vld [vmem:[#allocation15 + $0x104] ss:$16 sps:$4 sm:$0xff]  }
0x12f1   :  { %v5156_v11 = vpop.f32.mrb[80].mxu1 }
0x12f2   :  { %v16645_v8 = vpop.f32.mrb[81].mxu1  ;;  %v5169_v9 = vsel %vm3417_vm2, %v5156_v11, -inf }
0x12f3   :  { %v5159_v12 = vpop.f32.mrb[82].mxu1  ;;  %5170 = vmax.xlane.f32.xlu0 %v5169_v9  ;;  %v17674_v8 = vld [vmem:[#allocation15 + $0x124] ss:$16 sps:$4 sm:$0xff]   ;;  %v17672_v9 = vld [vmem:[#allocation15 + $0x120] ss:$16 sps:$4 sm:$0xff]  }
0x12f4   :  { %v16646_v13 = vpop.f32.mrb[83].mxu1  ;;  %v5172_v16 = vsel %vm3417_vm2, %v5159_v12, -inf }
0x12f5   :  { %5173 = vmax.xlane.f32.xlu1 %v5172_v16  ;;  %v17675_v13 = vld [vmem:[#allocation15 + $0x140] ss:$16 sps:$4 sm:$0xff]   ;;  %v17680_v16 = vld [vmem:[#allocation15 + $0x164] ss:$16 sps:$4 sm:$0xff]  }
0x133f   :  { %v5165_v54 = vpop.xlane.xlu1 %5164 }
0x1340   :  { %v5175_v7 = vsub.f32 %v5103_v57, %v5165_v54  ;;  %v17654_v57 = vld [vmem:[#allocation15 + $0x60] ss:$16 sps:$4 sm:$0xff]  }
0x1341   :  { %v5168_v18 = vpop.xlane.xlu0 %5167  ;;  %v17678_v54 = vld [vmem:[#allocation15 + $0x160] ss:$16 sps:$4 sm:$0xff]  }
0x1342   :  { %v5179_v19 = vmul.f32 1.442695, %v5175_v7  ;;  %v5176_v6 = vsub.f32 %v5106_v49, %v5168_v18  ;;  %v17662_v49 = vld [vmem:[#allocation15 + $0xa4] ss:$16 sps:$4 sm:$0xff]   ;;  %v17681_v18 = vld [vmem:[#allocation15 + $0x180] ss:$16 sps:$4 sm:$0xff]  }
0x1343   :  { %v17683_v7 = vld [vmem:[#allocation15 + $0x184] ss:$16 sps:$4 sm:$0xff]  }
0x1344   :  { %18717 = vpow2.f32 %v5179_v19  ;;  %v5181_v27 = vmul.f32 1.442695, %v5176_v6  ;;  %v17686_v19 = vld [vmem:[#allocation15 + $0x1a4] ss:$16 sps:$4 sm:$0xff]  }
0x1346   :  { %18719 = vpow2.f32 %v5181_v27  ;;  %v17684_v27 = vld [vmem:[#allocation15 + $0x1a0] ss:$16 sps:$4 sm:$0xff]  }
0x134e   :  { %v18718_v39 = vpop.eup %18717 }
0x134f   :  { %v5187_v24 = vsel %vm3417_vm2, %v18718_v39, 0.0 }
0x1350   :  { %v18720_v26 = vpop.eup %18719  ;;  %5188 = vadd.xlane.f32.xlu0 %v5187_v24 }
0x1351   :  { %v5190_v28 = vsel %vm3417_vm2, %v18720_v26, 0.0 }
0x1352   :  { %5191 = vadd.xlane.f32.xlu1 %v5190_v28  ;;  %v17692_v28 = vld [vmem:[#allocation15 + $0xc] ss:$16 sps:$4 sm:$0xff]  }
0x1366   :  { %5210 = vrot.lane.b32.xlu0 %v19682_v40, %s19190_s28 }
0x136a   :  { %4309 = vrot.lane.b32.xlu0 %v19844_v46, %s19190_s28 }
0x136e   :  { %3808 = vrot.lane.b32.xlu0 %v19762_v30, %s19190_s28 }
0x1372   :  { %4313 = vrot.lane.b32.xlu0 %v19850_v61, %s19190_s28 }
0x1376   :  { %3812 = vrot.lane.b32.xlu0 %v19768_v63, %s19190_s28 }
0x1380   :  { %v5171_v29 = vpop.xlane.xlu0 %5170 }
0x1381   :  { %v5177_v21 = vsub.f32 %v5156_v11, %v5171_v29  ;;  %v17669_v11 = vld [vmem:[#allocation15 + $0x100] ss:$16 sps:$4 sm:$0xff]   ;;  %v17695_v29 = vld [vmem:[#allocation15 + $0x1e4] ss:$16 sps:$4 sm:$0xff]  }
0x1382   :  { %v5174_v33 = vpop.xlane.xlu1 %5173 }
0x1383   :  { %v5183_v34 = vmul.f32 1.442695, %v5177_v21  ;;  %v5178_v43 = vsub.f32 %v5159_v12, %v5174_v33  ;;  %v17677_v12 = vld [vmem:[#allocation15 + $0x144] ss:$16 sps:$4 sm:$0xff]   ;;  %v17693_v33 = vld [vmem:[#allocation15 + $0x1e0] ss:$16 sps:$4 sm:$0xff]  }
0x1385   :  { %18721 = vpow2.f32 %v5183_v34  ;;  %v5185_v52 = vmul.f32 1.442695, %v5178_v43 }
0x1387   :  { %18723 = vpow2.f32 %v5185_v52 }
0x138f   :  { %v19986_v40 = vpop.eup %18721 }
0x1390   :  { %v5193_v46 = vsel %vm3417_vm2, %v19986_v40, 0.0 }
0x1391   :  { %v19990_v30 = vpop.eup %18723  ;;  %5194 = vadd.xlane.f32.xlu1 %v5193_v46 }
0x1392   :  { %v5196_v61 = vsel %vm3417_vm2, %v19990_v30, 0.0 }
0x1395   :  { %5197 = vadd.xlane.f32.xlu1 %v5196_v61 }
0x13a6   :  { %5258 = vrot.lane.b32.xlu1 %v19686_v56, %s19190_s28 }
0x13aa   :  { %4311 = vrot.lane.b32.xlu1 %v19846_v59, %s19190_s28 }
0x13ae   :  { %3810 = vrot.lane.b32.xlu1 %v19764_v50, %s19190_s28 }
0x13b2   :  { %4315 = vrot.lane.b32.xlu1 %v19852_v62, %s19190_s28 }
0x13b6   :  { %3814 = vrot.lane.b32.xlu1 %v19770_v4, %s19190_s28  ;;  %v17645_v4 = vld [vmem:[#allocation15] ss:$16 sps:$4 sm:$0xff]  }
0x13dd   :  { %v5189_v63 = vpop.xlane.xlu0 %5188 }
0x13de   :  { %18725 = vrcp.f32 %v5189_v63 }
0x13df   :  { %v5192_v20 = vpop.xlane.xlu1 %5191 }
0x13e0   :  { %18727 = vrcp.f32 %v5192_v20  ;;  %v17690_v20 = vld [vmem:[#allocation15 + $0x8] ss:$16 sps:$4 sm:$0xff]  }
0x13e1   :  { %v5211_v36 = vpop.permute.xlu0 %5210 }
0x13e2   :  { %16648 = vmatpush3.bf16.msra.mxu0 %v5211_v36  ;;  %v17698_v36 = vld [vmem:[#allocation15 + $0x2c] ss:$16 sps:$4 sm:$0xff]  }
0x13e3   :  { %6139 = vmatprep.subr.bf16.mxu0 %v17647_v35 }
0x13e5   :  { %v4310_v56 = vpop.permute.xlu0 %4309 }
0x13e6   :  { %4321 = vst.msk [vmem:[#allocation2 + $0x8] sm:$0xff] %vm3820_vm3, %v4310_v56 }
0x13e8   :  { %v18726_v59 = vpop.eup %18725 }
0x13e9   :  { %v3809_v50 = vpop.permute.xlu0 %3808  ;;  %v5203_v62 = vmul.f32 %v18726_v59, %v18718_v39  ;;  %v17689_v39 = vld [vmem:[#allocation15 + $0x1c4] ss:$16 sps:$4 sm:$0xff]  }
0x13ea   :  { %v18728_v23 = vpop.eup %18727  ;;  %3821 = vst.msk [vmem:[#allocation2] sm:$0xff] %vm3820_vm3, %v3809_v50 }
0x13eb   :  { %v5204_v38 = vmul.f32 %v18728_v23, %v18720_v26  ;;  %v17687_v26 = vld [vmem:[#allocation15 + $0x1c0] ss:$16 sps:$4 sm:$0xff]  }
0x13ed   :  { %v4314_v44 = vpop.permute.xlu0 %4313  ;;  %v5207_v0 = vpack.c.bf16 %v5204_v38, %v5203_v62  ;;  %v5326_v59 = vld [vmem:[#allocation2 + $0x8] sm:$0xff]  ;;  %v17696_v62 = vld [vmem:[#allocation15 + $0x28] ss:$16 sps:$4 sm:$0xff]  }
0x13ee   :  { %4323 = vst.msk [vmem:[#allocation2 + $0x48] sm:$0xff] %vm3820_vm3, %v4314_v44 }
0x13ef   :  { %16650 = vmatmul.mubr.msk.bf16.vlgmr.msra.gmra.mrb[84].mxu0 %vm3417_vm2, %v5207_v0  ;;  %v17699_v0 = vld [vmem:[#allocation15 + $0x48] ss:$16 sps:$4 sm:$0xff]  }
0x13f0   :  { %6140 = vmatpush1.bf16.msra.mxu0 %v17645_v4 }
0x13f1   :  { %v3813_v17 = vpop.permute.xlu0 %3812  ;;  %6141 = vmatprep.subr.bf16.mxu0 %v17650_v32  ;;  %v5325_v38 = vld [vmem:[#allocation2] sm:$0xff]  ;;  %v17704_v32 = vld [vmem:[#allocation15 + $0x6c] ss:$16 sps:$4 sm:$0xff]  }
0x13f2   :  { %3823 = vst.msk [vmem:[#allocation2 + $0x40] sm:$0xff] %vm3820_vm3, %v3813_v17 }
0x13f4   :  { %6142 = vmatpush1.bf16.msra.mxu0 %v17648_v25 }
0x13f5   :  { %6143 = vmatprep.subr.bf16.mxu0 %v17653_v41  ;;  %v5334_v25 = vld [vmem:[#allocation2 + $0x48] sm:$0xff] }
0x13f8   :  { %6144 = vmatpush1.bf16.msra.mxu0 %v17651_v51  ;;  %v17702_v51 = vld [vmem:[#allocation15 + $0x68] ss:$16 sps:$4 sm:$0xff]  }
0x13f9   :  { %6145 = vmatprep.subr.bf16.mxu0 %v17656_v53  ;;  %v17707_v53 = vld [vmem:[#allocation15 + $0x8c] ss:$16 sps:$4 sm:$0xff]  }
0x13fc   :  { %6146 = vmatpush1.bf16.msra.mxu0 %v17654_v57  ;;  %v5333_v57 = vld [vmem:[#allocation2 + $0x40] sm:$0xff] }
0x13fd   :  { %6147 = vmatprep.subr.bf16.mxu0 %v17659_v10 }
0x1400   :  { %6148 = vmatpush1.bf16.msra.mxu0 %v17657_v14 }
0x1401   :  { %6149 = vmatprep.subr.bf16.mxu0 %v17662_v49  ;;  %v17705_v49 = vld [vmem:[#allocation15 + $0x88] ss:$16 sps:$4 sm:$0xff]  }
0x1404   :  { %6150 = vmatpush1.bf16.msra.mxu0 %v17660_v22  ;;  %v17710_v22 = vld [vmem:[#allocation15 + $0xac] ss:$16 sps:$4 sm:$0xff]  }
0x1405   :  { %6151 = vmatprep.subr.bf16.mxu0 %v17665_v48  ;;  %v17708_v48 = vld [vmem:[#allocation15 + $0xa8] ss:$16 sps:$4 sm:$0xff]  }
0x1408   :  { %6152 = vmatpush1.bf16.msra.mxu0 %v17663_v37  ;;  %v17713_v37 = vld [vmem:[#allocation15 + $0xcc] ss:$16 sps:$4 sm:$0xff]  }
0x1409   :  { %6153 = vmatprep.subr.bf16.mxu0 %v17668_v45  ;;  %v17711_v45 = vld [vmem:[#allocation15 + $0xc8] ss:$16 sps:$4 sm:$0xff]  }
0x140c   :  { %6154 = vmatpush1.bf16.msra.mxu0 %v17666_v1  ;;  %v17716_v1 = vld [vmem:[#allocation15 + $0xec] ss:$16 sps:$4 sm:$0xff]  }
0x140d   :  { %6155 = vmatprep.subr.bf16.mxu0 %v17671_v5  ;;  %v17714_v5 = vld [vmem:[#allocation15 + $0xe8] ss:$16 sps:$4 sm:$0xff]  }
0x1410   :  { %6156 = vmatpush1.bf16.msra.mxu0 %v17669_v11  ;;  %v17719_v11 = vld [vmem:[#allocation15 + $0x10c] ss:$16 sps:$4 sm:$0xff]  }
0x1411   :  { %6157 = vmatprep.subr.bf16.mxu0 %v17674_v8  ;;  %v17717_v8 = vld [vmem:[#allocation15 + $0x108] ss:$16 sps:$4 sm:$0xff]  }
0x1414   :  { %6158 = vmatpush1.bf16.msra.mxu0 %v17672_v9  ;;  %v17722_v9 = vld [vmem:[#allocation15 + $0x12c] ss:$16 sps:$4 sm:$0xff]  }
0x1415   :  { %6159 = vmatprep.subr.bf16.mxu0 %v17677_v12  ;;  %v17720_v12 = vld [vmem:[#allocation15 + $0x128] ss:$16 sps:$4 sm:$0xff]  }
0x1418   :  { %6160 = vmatpush1.bf16.msra.mxu0 %v17675_v13  ;;  %v17725_v13 = vld [vmem:[#allocation15 + $0x14c] ss:$16 sps:$4 sm:$0xff]  }
0x1419   :  { %6161 = vmatprep.subr.bf16.mxu0 %v17680_v16  ;;  %v17723_v16 = vld [vmem:[#allocation15 + $0x148] ss:$16 sps:$4 sm:$0xff]  }
0x141c   :  { %6162 = vmatpush1.bf16.msra.mxu0 %v17678_v54  ;;  %v17728_v54 = vld [vmem:[#allocation15 + $0x16c] ss:$16 sps:$4 sm:$0xff]  }
0x141d   :  { %6163 = vmatprep.subr.bf16.mxu0 %v17683_v7  ;;  %v17726_v7 = vld [vmem:[#allocation15 + $0x168] ss:$16 sps:$4 sm:$0xff]  }
0x141e   :  { %v5195_v6 = vpop.xlane.xlu1 %5194 }
0x141f   :  { %18729 = vrcp.f32 %v5195_v6  ;;  %v17734_v6 = vld [vmem:[#allocation15 + $0x1ac] ss:$16 sps:$4 sm:$0xff]  }
0x1420   :  { %6164 = vmatpush1.bf16.msra.mxu0 %v17681_v18  ;;  %v17731_v18 = vld [vmem:[#allocation15 + $0x18c] ss:$16 sps:$4 sm:$0xff]  }
0x1421   :  { %6165 = vmatprep.subr.bf16.mxu0 %v17686_v19  ;;  %v17729_v19 = vld [vmem:[#allocation15 + $0x188] ss:$16 sps:$4 sm:$0xff]  }
0x1422   :  { %v5198_v24 = vpop.xlane.xlu1 %5197 }
0x1423   :  { %18731 = vrcp.f32 %v5198_v24  ;;  %v17735_v24 = vld [vmem:[#allocation15 + $0x1c8] ss:$16 sps:$4 sm:$0xff]  }
0x1424   :  { %6166 = vmatpush1.bf16.msra.mxu0 %v17684_v27  ;;  %v17732_v27 = vld [vmem:[#allocation15 + $0x1a8] ss:$16 sps:$4 sm:$0xff]  }
0x1425   :  { %6167 = vmatprep.subr.bf16.mxu0 %v17689_v39  ;;  %v17737_v39 = vld [vmem:[#allocation15 + $0x1cc] ss:$16 sps:$4 sm:$0xff]  }
0x1426   :  { %v5259_v21 = vpop.permute.xlu1 %5258 }
0x1427   :  { %16654 = vmatpush3.bf16.msra.mxu1 %v5259_v21  ;;  %v17746_v21 = vld [vmem:[#allocation15 + $0x20c] ss:$16 sps:$4 sm:$0xff]  }
0x1428   :  { %6245 = vmatprep.subr.bf16.mxu1 %v17692_v28  ;;  %6168 = vmatpush1.bf16.msra.mxu0 %v17687_v26  ;;  %v17740_v26 = vld [vmem:[#allocation15 + $0x1ec] ss:$16 sps:$4 sm:$0xff]   ;;  %v17738_v28 = vld [vmem:[#allocation15 + $0x1e8] ss:$16 sps:$4 sm:$0xff]  }
0x1429   :  { %6169 = vmatprep.subr.bf16.mxu0 %v17695_v29  ;;  %v18730_v43 = vpop.eup %18729  ;;  %v17743_v29 = vld [vmem:[#allocation15 + $0x204] ss:$16 sps:$4 sm:$0xff]  }
0x142a   :  { %v4312_v34 = vpop.permute.xlu1 %4311  ;;  %v5205_v46 = vmul.f32 %v18730_v43, %v19986_v40  ;;  %v17701_v40 = vld [vmem:[#allocation15 + $0x4c] ss:$16 sps:$4 sm:$0xff]   ;;  %v17747_v43 = vld [vmem:[#allocation15 + $0x220] ss:$16 sps:$4 sm:$0xff]  }
0x142b   :  { %4322 = vst.msk [vmem:[#allocation2 + $0x28] sm:$0xff] %vm3820_vm3, %v4312_v34  ;;  %v17744_v34 = vld [vmem:[#allocation15 + $0x208] ss:$16 sps:$4 sm:$0xff]  }
0x142c   :  { %6170 = vmatpush1.bf16.msra.mxu0 %v17693_v33  ;;  %v17741_v33 = vld [vmem:[#allocation15 + $0x200] ss:$16 sps:$4 sm:$0xff]  }
0x142d   :  { %v18732_v52 = vpop.eup %18731  ;;  %6192 = vmatprep.subr.bf16.mxu0 %v17743_v29  ;;  %v17822_v29 = vld [vmem:[#allocation15 + $0x3a8] ss:$16 sps:$4 sm:$0xff]  }
0x142e   :  { %v5206_v61 = vmul.f32 %v18732_v52, %v19990_v30  ;;  %v3811_v63 = vpop.permute.xlu1 %3810  ;;  %v17749_v52 = vld [vmem:[#allocation15 + $0x224] ss:$16 sps:$4 sm:$0xff]  }
0x142f   :  { %3822 = vst.msk [vmem:[#allocation2 + $0x20] sm:$0xff] %vm3820_vm3, %v3811_v63  ;;  %v17753_v63 = vld [vmem:[#allocation15 + $0x240] ss:$16 sps:$4 sm:$0xff]  }
0x1430   :  { %v5208_v35 = vpack.c.bf16 %v5206_v61, %v5205_v46  ;;  %v17750_v46 = vld [vmem:[#allocation15 + $0x228] ss:$16 sps:$4 sm:$0xff]   ;;  %v17752_v61 = vld [vmem:[#allocation15 + $0x22c] ss:$16 sps:$4 sm:$0xff]  }
0x1432   :  { %16656 = vmatmul.mubr.msk.bf16.vlgmr.msra.gmra.mrb[84].mxu1 %vm3417_vm2, %v5208_v35  ;;  %v4316_v56 = vpop.permute.xlu1 %4315  ;;  %v5330_v50 = vld [vmem:[#allocation2 + $0x28] sm:$0xff]  ;;  %v17756_v35 = vld [vmem:[#allocation15 + $0x248] ss:$16 sps:$4 sm:$0xff]  }
0x1433   :  { %6246 = vmatpush1.bf16.msra.mxu1 %v17690_v20  ;;  %4324 = vst.msk [vmem:[#allocation2 + $0x68] sm:$0xff] %vm3820_vm3, %v4316_v56  ;;  %v5342_v23 = vpack.c.bf16 %v5330_v50, %v5326_v59  ;;  %v17755_v20 = vld [vmem:[#allocation15 + $0x244] ss:$16 sps:$4 sm:$0xff]   ;;  %v17764_v59 = vld [vmem:[#allocation15 + $0x26c] ss:$16 sps:$4 sm:$0xff]  }
0x1434   :  { %6247 = vmatprep.subr.bf16.mxu1 %v17698_v36  ;;  %v17758_v36 = vld [vmem:[#allocation15 + $0x24c] ss:$16 sps:$4 sm:$0xff]   ;;  %v17761_v56 = vld [vmem:[#allocation15 + $0x264] ss:$16 sps:$4 sm:$0xff]   ;;  %v17759_v50 = vld [vmem:[#allocation15 + $0x260] ss:$16 sps:$4 sm:$0xff]  }
0x1435   :  { %6171 = vmatprep.mubr.bf16.mxu0 %v5342_v23  ;;  %6277 = vmatprep.mubr.bf16.mxu1 %v5342_v23  ;;  %v17762_v23 = vld [vmem:[#allocation15 + $0x268] ss:$16 sps:$4 sm:$0xff]  }
0x1436   :  { %v3815_v30 = vpop.permute.xlu1 %3814  ;;  %v5329_v4 = vld [vmem:[#allocation2 + $0x20] sm:$0xff] }
0x1437   :  { %6248 = vmatpush1.bf16.msra.mxu1 %v17696_v62  ;;  %3824 = vst.msk [vmem:[#allocation2 + $0x60] sm:$0xff] %vm3820_vm3, %v3815_v30  ;;  %v20016_v44 = vpack.c.bf16 %v5329_v4, %v5325_v38  ;;  %v17767_v62 = vld [vmem:[#allocation15 + $0x284] ss:$16 sps:$4 sm:$0xff]   ;;  %v17765_v30 = vld [vmem:[#allocation15 + $0x280] ss:$16 sps:$4 sm:$0xff]  }
0x1438   :  { %6249 = vmatprep.subr.bf16.mxu1 %v17701_v40  ;;  %v17770_v40 = vld [vmem:[#allocation15 + $0x28c] ss:$16 sps:$4 sm:$0xff]   ;;  %v17768_v38 = vld [vmem:[#allocation15 + $0x288] ss:$16 sps:$4 sm:$0xff]   ;;  %v17773_v4 = vld [vmem:[#allocation15 + $0x2a4] ss:$16 sps:$4 sm:$0xff]  }
0x1439   :  { %6172 = vmatmul.mubr.bf16.vlgmr.msra.gmra.mrb[88].mxu0 %v20016_v44 }
0x143a   :  { %v5338_v17 = vld [vmem:[#allocation2 + $0x68] sm:$0xff]  ;;  %6193 = vmatpush1.bf16.msra.mxu0 %v17741_v33  ;;  %v17827_v33 = vld [vmem:[#allocation15 + $0x3c4] ss:$16 sps:$4 sm:$0xff]  }
0x143b   :  { %6250 = vmatpush1.bf16.msra.mxu1 %v17699_v0  ;;  %v5346_v41 = vpack.c.bf16 %v5338_v17, %v5334_v25  ;;  %6194 = vmatprep.subr.bf16.mxu0 %v17749_v52  ;;  %v17771_v0 = vld [vmem:[#allocation15 + $0x2a0] ss:$16 sps:$4 sm:$0xff]   ;;  %v17779_v25 = vld [vmem:[#allocation15 + $0x2c4] ss:$16 sps:$4 sm:$0xff]   ;;  %v17782_v17 = vld [vmem:[#allocation15 + $0x2cc] ss:$16 sps:$4 sm:$0xff]  }
0x143c   :  { %6251 = vmatprep.subr.bf16.mxu1 %v17704_v32  ;;  %v17774_v32 = vld [vmem:[#allocation15 + $0x2a8] ss:$16 sps:$4 sm:$0xff]   ;;  %v17833_v52 = vld [vmem:[#allocation15 + $0x3e4] ss:$16 sps:$4 sm:$0xff]  }
0x143d   :  { %6181 = vmatprep.mubr.bf16.mxu0 %v5346_v41 }
0x143e   :  { %v5337_v10 = vld [vmem:[#allocation2 + $0x60] sm:$0xff]  ;;  %6195 = vmatpush1.bf16.msra.mxu0 %v17747_v43  ;;  %v17830_v43 = vld [vmem:[#allocation15 + $0x3cc] ss:$16 sps:$4 sm:$0xff]  }
0x143f   :  { %6252 = vmatpush1.bf16.msra.mxu1 %v17702_v51  ;;  %v5345_v14 = vpack.c.bf16 %v5337_v10, %v5333_v57  ;;  %6196 = vmatprep.subr.bf16.mxu0 %v17755_v20  ;;  %v17780_v51 = vld [vmem:[#allocation15 + $0x2c8] ss:$16 sps:$4 sm:$0xff]   ;;  %v17788_v57 = vld [vmem:[#allocation15 + $0x2ec] ss:$16 sps:$4 sm:$0xff]   ;;  %v17783_v10 = vld [vmem:[#allocation15 + $0x2e0] ss:$16 sps:$4 sm:$0xff]  }
0x1440   :  { %6253 = vmatprep.subr.bf16.mxu1 %v17707_v53  ;;  %v17785_v53 = vld [vmem:[#allocation15 + $0x2e4] ss:$16 sps:$4 sm:$0xff]   ;;  %v17834_v20 = vld [vmem:[#allocation15 + $0x3e8] ss:$16 sps:$4 sm:$0xff]  }
0x1441   :  { %6182 = vmatmul.mubr.bf16.gmra.mrb[92].mxu0 %v5345_v14 }
0x1442   :  { %6197 = vmatpush1.bf16.msra.mxu0 %v17753_v63 }
0x1443   :  { %6254 = vmatpush1.bf16.msra.mxu1 %v17705_v49  ;;  %6198 = vmatprep.subr.bf16.mxu0 %v17761_v56  ;;  %v17791_v49 = vld [vmem:[#allocation15 + $0x304] ss:$16 sps:$4 sm:$0xff]  }
0x1444   :  { %6255 = vmatprep.subr.bf16.mxu1 %v17710_v22  ;;  %v17794_v22 = vld [vmem:[#allocation15 + $0x30c] ss:$16 sps:$4 sm:$0xff]  }
0x1446   :  { %6199 = vmatpush1.bf16.msra.mxu0 %v17759_v50 }
0x1447   :  { %6256 = vmatpush1.bf16.msra.mxu1 %v17708_v48  ;;  %6200 = vmatprep.subr.bf16.mxu0 %v17767_v62  ;;  %v17789_v48 = vld [vmem:[#allocation15 + $0x300] ss:$16 sps:$4 sm:$0xff]  }
0x1448   :  { %6257 = vmatprep.subr.bf16.mxu1 %v17713_v37  ;;  %v17792_v37 = vld [vmem:[#allocation15 + $0x308] ss:$16 sps:$4 sm:$0xff]  }
0x144a   :  { %6201 = vmatpush1.bf16.msra.mxu0 %v17765_v30 }
0x144b   :  { %6258 = vmatpush1.bf16.msra.mxu1 %v17711_v45  ;;  %6202 = vmatprep.subr.bf16.mxu0 %v17773_v4  ;;  %v17797_v45 = vld [vmem:[#allocation15 + $0x324] ss:$16 sps:$4 sm:$0xff]  }
0x144c   :  { %6259 = vmatprep.subr.bf16.mxu1 %v17716_v1  ;;  %v17800_v1 = vld [vmem:[#allocation15 + $0x32c] ss:$16 sps:$4 sm:$0xff]  }
0x144e   :  { %6203 = vmatpush1.bf16.msra.mxu0 %v17771_v0 }
0x144f   :  { %6260 = vmatpush1.bf16.msra.mxu1 %v17714_v5  ;;  %6204 = vmatprep.subr.bf16.mxu0 %v17779_v25  ;;  %v17795_v5 = vld [vmem:[#allocation15 + $0x320] ss:$16 sps:$4 sm:$0xff]  }
0x1450   :  { %6261 = vmatprep.subr.bf16.mxu1 %v17719_v11  ;;  %v17798_v11 = vld [vmem:[#allocation15 + $0x328] ss:$16 sps:$4 sm:$0xff]  }
0x1453   :  { %6262 = vmatpush1.bf16.msra.mxu1 %v17717_v8  ;;  %v17803_v8 = vld [vmem:[#allocation15 + $0x344] ss:$16 sps:$4 sm:$0xff]  }
0x1454   :  { %6263 = vmatprep.subr.bf16.mxu1 %v17722_v9  ;;  %v17806_v9 = vld [vmem:[#allocation15 + $0x34c] ss:$16 sps:$4 sm:$0xff]  }
0x1457   :  { %6264 = vmatpush1.bf16.msra.mxu1 %v17720_v12  ;;  %v17801_v12 = vld [vmem:[#allocation15 + $0x340] ss:$16 sps:$4 sm:$0xff]  }
0x1458   :  { %6265 = vmatprep.subr.bf16.mxu1 %v17725_v13  ;;  %v17804_v13 = vld [vmem:[#allocation15 + $0x348] ss:$16 sps:$4 sm:$0xff]  }
0x145b   :  { %6266 = vmatpush1.bf16.msra.mxu1 %v17723_v16  ;;  %v17809_v16 = vld [vmem:[#allocation15 + $0x364] ss:$16 sps:$4 sm:$0xff]  }
0x145c   :  { %6267 = vmatprep.subr.bf16.mxu1 %v17728_v54  ;;  %v17812_v54 = vld [vmem:[#allocation15 + $0x36c] ss:$16 sps:$4 sm:$0xff]  }
0x145f   :  { %6268 = vmatpush1.bf16.msra.mxu1 %v17726_v7  ;;  %v17807_v7 = vld [vmem:[#allocation15 + $0x360] ss:$16 sps:$4 sm:$0xff]  }
0x1460   :  { %6269 = vmatprep.subr.bf16.mxu1 %v17731_v18  ;;  %v17810_v18 = vld [vmem:[#allocation15 + $0x368] ss:$16 sps:$4 sm:$0xff]  }
0x1463   :  { %6270 = vmatpush1.bf16.msra.mxu1 %v17729_v19  ;;  %v17815_v19 = vld [vmem:[#allocation15 + $0x384] ss:$16 sps:$4 sm:$0xff]  }
0x1464   :  { %6271 = vmatprep.subr.bf16.mxu1 %v17734_v6  ;;  %v17818_v6 = vld [vmem:[#allocation15 + $0x38c] ss:$16 sps:$4 sm:$0xff]  }
0x1467   :  { %6272 = vmatpush1.bf16.msra.mxu1 %v17732_v27  ;;  %v17813_v27 = vld [vmem:[#allocation15 + $0x380] ss:$16 sps:$4 sm:$0xff]  }
0x1468   :  { %6273 = vmatprep.subr.bf16.mxu1 %v17737_v39  ;;  %v17816_v39 = vld [vmem:[#allocation15 + $0x388] ss:$16 sps:$4 sm:$0xff]  }
0x146b   :  { %6274 = vmatpush1.bf16.msra.mxu1 %v17735_v24  ;;  %v17821_v24 = vld [vmem:[#allocation15 + $0x3a4] ss:$16 sps:$4 sm:$0xff]  }
0x146c   :  { %6275 = vmatprep.subr.bf16.mxu1 %v17740_v26  ;;  %v17824_v26 = vld [vmem:[#allocation15 + $0x3ac] ss:$16 sps:$4 sm:$0xff]  }
0x146f   :  { %6276 = vmatpush1.bf16.msra.mxu1 %v17738_v28  ;;  %v17819_v28 = vld [vmem:[#allocation15 + $0x3a0] ss:$16 sps:$4 sm:$0xff]  }
0x1470   :  { %6298 = vmatprep.subr.bf16.mxu1 %v17746_v21  ;;  %v17825_v21 = vld [vmem:[#allocation15 + $0x3c0] ss:$16 sps:$4 sm:$0xff]  }
0x1472   :  { %6278 = vmatmul.mubr.bf16.vlgmr.msra.gmra.mrb[88].mxu1 %v20016_v44  ;;  %v17776_v44 = vld [vmem:[#allocation15 + $0x2ac] ss:$16 sps:$4 sm:$0xff]  }
0x1473   :  { %6287 = vmatprep.mubr.bf16.mxu1 %v5346_v41  ;;  %6299 = vmatpush1.bf16.msra.mxu1 %v17744_v34  ;;  %v17777_v41 = vld [vmem:[#allocation15 + $0x2c0] ss:$16 sps:$4 sm:$0xff]   ;;  %v17828_v34 = vld [vmem:[#allocation15 + $0x3c8] ss:$16 sps:$4 sm:$0xff]  }
0x1474   :  { %6300 = vmatprep.subr.bf16.mxu1 %v17752_v61  ;;  %6205 = vmatpush1.bf16.msra.mxu0 %v17777_v41  ;;  %v17836_v61 = vld [vmem:[#allocation15 + $0x3ec] ss:$16 sps:$4 sm:$0xff]  }
0x1475   :  { %6206 = vmatprep.subr.bf16.mxu0 %v17785_v53 }
0x1477   :  { %6301 = vmatpush1.bf16.msra.mxu1 %v17750_v46  ;;  %v17831_v46 = vld [vmem:[#allocation15 + $0x3e0] ss:$16 sps:$4 sm:$0xff]  }
0x1478   :  { %6302 = vmatprep.subr.bf16.mxu1 %v17758_v36  ;;  %6207 = vmatpush1.bf16.msra.mxu0 %v17783_v10 }
0x1479   :  { %6208 = vmatprep.subr.bf16.mxu0 %v17791_v49 }
0x147a   :  { %6288 = vmatmul.mubr.bf16.gmra.mrb[92].mxu1 %v5345_v14  ;;  %v17786_v14 = vld [vmem:[#allocation15 + $0x2e8] ss:$16 sps:$4 sm:$0xff]  }
0x147b   :  { %6303 = vmatpush1.bf16.msra.mxu1 %v17756_v35 }
0x147c   :  { %6304 = vmatprep.subr.bf16.mxu1 %v17764_v59  ;;  %6209 = vmatpush1.bf16.msra.mxu0 %v17789_v48 }
0x147d   :  { %6210 = vmatprep.subr.bf16.mxu0 %v17797_v45 }
0x147f   :  { %6305 = vmatpush1.bf16.msra.mxu1 %v17762_v23 }
0x1480   :  { %6306 = vmatprep.subr.bf16.mxu1 %v17770_v40  ;;  %6211 = vmatpush1.bf16.msra.mxu0 %v17795_v5 }
0x1481   :  { %6212 = vmatprep.subr.bf16.mxu0 %v17803_v8 }
0x1483   :  { %6307 = vmatpush1.bf16.msra.mxu1 %v17768_v38 }
0x1484   :  { %6308 = vmatprep.subr.bf16.mxu1 %v17776_v44  ;;  %6213 = vmatpush1.bf16.msra.mxu0 %v17801_v12 }
0x1485   :  { %6214 = vmatprep.subr.bf16.mxu0 %v17809_v16 }
0x1487   :  { %6309 = vmatpush1.bf16.msra.mxu1 %v17774_v32 }
0x1488   :  { %6310 = vmatprep.subr.bf16.mxu1 %v17782_v17  ;;  %6215 = vmatpush1.bf16.msra.mxu0 %v17807_v7 }
0x1489   :  { %6216 = vmatprep.subr.bf16.mxu0 %v17815_v19 }
0x148b   :  { %6311 = vmatpush1.bf16.msra.mxu1 %v17780_v51 }
0x148c   :  { %6312 = vmatprep.subr.bf16.mxu1 %v17788_v57  ;;  %6217 = vmatpush1.bf16.msra.mxu0 %v17813_v27 }
0x148d   :  { %6218 = vmatprep.subr.bf16.mxu0 %v17821_v24  ;;  %v18750_v24 = vld [vmem:[#allocation3 + $0x8] sm:$0xff] }
0x148f   :  { %6313 = vmatpush1.bf16.msra.mxu1 %v17786_v14 }
0x1490   :  { %6314 = vmatprep.subr.bf16.mxu1 %v17794_v22  ;;  %6219 = vmatpush1.bf16.msra.mxu0 %v17819_v28  ;;  %v5477_v22 = vld [vmem:[#allocation17] sm:$0xf] }
0x1491   :  { %6220 = vmatprep.subr.bf16.mxu0 %v17827_v33  ;;  %v5482_v48 = vrot.slane %v5477_v22, %v19582_v3  ;;  %v5486_v45 = vrot.slane %v5477_v22, %v19579_v2  ;;  %v18751_v33 = vld [vmem:[#allocation3 + $0x20] sm:$0xff] }
0x1493   :  { %6315 = vmatpush1.bf16.msra.mxu1 %v17792_v37  ;;  %v5490_v37 = vrot.slane %v5477_v22, %v19601_v55 }
0x1494   :  { %6316 = vmatprep.subr.bf16.mxu1 %v17800_v1  ;;  %6221 = vmatpush1.bf16.msra.mxu0 %v17825_v21 }
0x1495   :  { %6222 = vmatprep.subr.bf16.mxu0 %v17833_v52 }
0x1497   :  { %6317 = vmatpush1.bf16.msra.mxu1 %v17798_v11  ;;  %v20044_v11 = vrot.slane %v5477_v22, %v19604_v60 }
0x1498   :  { %6318 = vmatprep.subr.bf16.mxu1 %v17806_v9  ;;  %6223 = vmatpush1.bf16.msra.mxu0 %v17831_v46 }
0x149b   :  { %6319 = vmatpush1.bf16.msra.mxu1 %v17804_v13 }
0x149c   :  { %6320 = vmatprep.subr.bf16.mxu1 %v17812_v54 }
0x149f   :  { %6321 = vmatpush1.bf16.msra.mxu1 %v17810_v18  ;;  %v18749_v18 = vld [vmem:[#allocation3] sm:$0xff] }
0x14a0   :  { %6322 = vmatprep.subr.bf16.mxu1 %v17818_v6 }
0x14a3   :  { %6323 = vmatpush1.bf16.msra.mxu1 %v17816_v39 }
0x14a4   :  { %6324 = vmatprep.subr.bf16.mxu1 %v17824_v26 }
0x14a7   :  { %6325 = vmatpush1.bf16.msra.mxu1 %v17822_v29 }
0x14a8   :  { %6326 = vmatprep.subr.bf16.mxu1 %v17830_v43  ;;  %v18752_v43 = vld [vmem:[#allocation3 + $0x10] sm:$0xff] }
0x14ab   :  { %6327 = vmatpush1.bf16.msra.mxu1 %v17828_v34 }
0x14ac   :  { %6328 = vmatprep.subr.bf16.mxu1 %v17836_v61  ;;  %v18753_v61 = vld [vmem:[#allocation3 + $0x28] sm:$0xff] }
0x14af   :  { %6329 = vmatpush1.bf16.msra.mxu1 %v17834_v20 }
0x14c2   :  { %v5250_v63 = vpop.f32.mrb[84].mxu0 }
0x14c3   :  { %5309 = vrot.lane.b32.xlu0 %v5250_v63, %s19190_s28  ;;  %v16651_v35 = vpop.f32.mrb[85].mxu0 }
0x14c4   :  { %v5253_v36 = vpop.f32.mrb[86].mxu0  ;;  %v18754_v35 = vld [vmem:[#allocation3 + $0x18] sm:$0xff] }
0x14c5   :  { %5311 = vrot.lane.b32.xlu1 %v5253_v36, %s19190_s28  ;;  %v16652_v56 = vpop.f32.mrb[87].mxu0 }
0x14c6   :  { %v18755_v56 = vld [vmem:[#allocation3 + $0x30] sm:$0xff] }
0x14c7   :  { %4809 = vrot.lane.b32.xlu0 %v19926_v15, %s19190_s28 }
0x14c9   :  { %4811 = vrot.lane.b32.xlu1 %v19928_v31, %s19190_s28 }
0x1505   :  { %v5298_v59 = vpop.f32.mrb[84].mxu1 }
0x1506   :  { %v16657_v50 = vpop.f32.mrb[85].mxu1  ;;  %5313 = vrot.lane.b32.xlu0 %v5298_v59, %s19190_s28 }
0x1507   :  { %v5301_v23 = vpop.f32.mrb[86].mxu1 }
0x1508   :  { %v16658_v62 = vpop.f32.mrb[87].mxu1  ;;  %5315 = vrot.lane.b32.xlu1 %v5301_v23, %s19190_s28 }
0x1509   :  { %v18756_v62 = vld [vmem:[#allocation3 + $0x38] sm:$0xff] }
0x150a   :  { %4813 = vrot.lane.b32.xlu0 %v19932_v42, %s19190_s28 }
0x150c   :  { %4815 = vrot.lane.b32.xlu1 %v19934_v47, %s19190_s28  ;;  %s19206_s28 = smov [#allocation30]  }
0x150d   :  { %s14815_s13 = sshll.u32 %s19206_s28, 4  ;;  %s14816_s13 = int_to_ptr.vmem [resolvable:$true] %s14815_s13 }
0x150e   :  { %s19139_s10 = scalar_lea.vmem %s14816_s13, 2048  ;;  %p19144_p11 = scmp.lt.s32.totalorder %s14816_s13, %s14816_s13 }
0x150f   :  { %p19140_p10 = scmp.ne.s32.totalorder %s14816_s13, %s19139_s10  ;;  %p19145_p12 = scmp.lt.s32.totalorder %s19139_s10, %s19139_s10 }
0x1511   :  { %p19146_p13 = por %p19145_p12, %p19144_p11 }
0x1513   :  { %p19147_p0 = pnand %p19146_p13, %p19140_p10 }
0x1535   :  { %v5310_v40 = vpop.permute.xlu0 %5309 }
0x1536   :  { %5321 = vst.msk [vmem:[#allocation2 + $0x18] sm:$0xff] %vm3820_vm3, %v5310_v40 }
0x1537   :  { %v5312_v15 = vpop.permute.xlu1 %5311 }
0x1538   :  { %5322 = vst.msk [vmem:[#allocation2 + $0x38] sm:$0xff] %vm3820_vm3, %v5312_v15 }
0x1539   :  { %v4810_v31 = vpop.permute.xlu0 %4809 }
0x153a   :  { %4821 = vst.msk [vmem:[#allocation2 + $0x10] sm:$0xff] %vm3820_vm3, %v4810_v31 }
0x153b   :  { %v4812_v30 = vpop.permute.xlu1 %4811 }
0x153c   :  { %4822 = vst.msk [vmem:[#allocation2 + $0x30] sm:$0xff] %vm3820_vm3, %v4812_v30 }
0x153d   :  { %v5328_v38 = vld [vmem:[#allocation2 + $0x18] sm:$0xff] }
0x153f   :  { %v5332_v4 = vld [vmem:[#allocation2 + $0x38] sm:$0xff] }
0x1540   :  { %v5344_v44 = vpack.c.bf16 %v5332_v4, %v5328_v38 }
0x1541   :  { %v5327_v42 = vld [vmem:[#allocation2 + $0x10] sm:$0xff] }
0x1542   :  { %6224 = vmatprep.mubr.bf16.mxu0 %v5344_v44  ;;  %6330 = vmatprep.mubr.bf16.mxu1 %v5344_v44 }
0x1543   :  { %v5331_v0 = vld [vmem:[#allocation2 + $0x30] sm:$0xff] }
0x1544   :  { %v5343_v47 = vpack.c.bf16 %v5331_v0, %v5327_v42 }
0x1546   :  { %6225 = vmatmul.mubr.bf16.vlgmr.msra.gmra.mrb[88].mxu0 %v5343_v47  ;;  %6331 = vmatmul.mubr.bf16.vlgmr.msra.gmra.mrb[88].mxu1 %v5343_v47 }
0x1578   :  { %v5314_v32 = vpop.permute.xlu0 %5313 }
0x1579   :  { %5323 = vst.msk [vmem:[#allocation2 + $0x58] sm:$0xff] %vm3820_vm3, %v5314_v32 }
0x157a   :  { %v5316_v25 = vpop.permute.xlu1 %5315 }
0x157b   :  { %5324 = vst.msk [vmem:[#allocation2 + $0x78] sm:$0xff] %vm3820_vm3, %v5316_v25 }
0x157c   :  { %v4814_v17 = vpop.permute.xlu0 %4813 }
0x157d   :  { %4823 = vst.msk [vmem:[#allocation2 + $0x50] sm:$0xff] %vm3820_vm3, %v4814_v17 }
0x157e   :  { %v4816_v41 = vpop.permute.xlu1 %4815 }
0x157f   :  { %4824 = vst.msk [vmem:[#allocation2 + $0x70] sm:$0xff] %vm3820_vm3, %v4816_v41  ;;  %v18757_v41 = vld [vmem:[#allocation3 + $0x40] sm:$0xff] }
0x1580   :  { %v5336_v51 = vld [vmem:[#allocation2 + $0x58] sm:$0xff] }
0x1582   :  { %v5340_v53 = vld [vmem:[#allocation2 + $0x78] sm:$0xff] }
0x1583   :  { %v5348_v57 = vpack.c.bf16 %v5340_v53, %v5336_v51 }
0x1584   :  { %v5335_v10 = vld [vmem:[#allocation2 + $0x50] sm:$0xff] }
0x1585   :  { %6234 = vmatprep.mubr.bf16.mxu0 %v5348_v57  ;;  %6340 = vmatprep.mubr.bf16.mxu1 %v5348_v57 }
0x1586   :  { %v5339_v14 = vld [vmem:[#allocation2 + $0x70] sm:$0xff] }
0x1587   :  { %v5347_v49 = vpack.c.bf16 %v5339_v14, %v5335_v10 }
0x1589   :  { %6235 = vmatmul.mubr.bf16.gmra.mrb[92].mxu0 %v5347_v49  ;;  %6341 = vmatmul.mubr.bf16.gmra.mrb[92].mxu1 %v5347_v49  ;;  %v18758_v49 = vld [vmem:[#allocation3 + $0x48] sm:$0xff] }
0x1619   :  { %v6226_v1 = vpop.f32.mrb[88].mxu0  ;;  %v6332_v5 = vpop.f32.mrb[88].mxu1 }
0x161a   :  { %v16707_v8 = vadd.f32 %v6226_v1, %v5482_v48  ;;  %v6228_v9 = vpop.f32.mrb[89].mxu0  ;;  %v6334_v12 = vpop.f32.mrb[89].mxu1  ;;  %v16715_v13 = vadd.f32 %v6332_v5, %v5490_v37 }
0x161b   :  { %v16708_v16 = vadd.f32 %v6228_v9, %v5486_v45  ;;  %v6230_v54 = vpop.f32.mrb[90].mxu0  ;;  %v6336_v7 = vpop.f32.mrb[90].mxu1  ;;  %v16716_v28 = vadd.f32 %v6334_v12, %v20044_v11  ;;  %v18760_v12 = vld [vmem:[#allocation3 + $0x50] sm:$0xff] }
0x161c   :  { %v20046_v19 = vadd.f32 %v18749_v18, %v16707_v8  ;;  %v16709_v6 = vadd.f32 %v6230_v54, %v5482_v48  ;;  %v6232_v27 = vpop.f32.mrb[91].mxu0  ;;  %v6338_v39 = vpop.f32.mrb[91].mxu1  ;;  %v16717_v29 = vadd.f32 %v6336_v7, %v5490_v37  ;;  %v20053_v52 = vadd.f32 %v18752_v43, %v16715_v13  ;;  %v18759_v8 = vld [vmem:[#allocation3 + $0x60] sm:$0xff]  ;;  %v18761_v54 = vld [vmem:[#allocation3 + $0x68] sm:$0xff]  ;;  %v6556_v43 = vld [vmem:[#allocation21] sm:$0xff] }
0x161d   :  { %v20048_v26 = vadd.f32 %v18750_v24, %v16708_v16  ;;  %v16710_v21 = vadd.f32 %v6232_v27, %v5486_v45  ;;  %v16718_v20 = vadd.f32 %v6338_v39, %v20044_v11  ;;  %v20060_v36 = vadd.f32 %v18754_v35, %v16716_v28 }
0x161e   :  { %v20051_v34 = vadd.f32 %v18751_v33, %v16709_v6  ;;  %v20062_v59 = vadd.f32 %v18755_v56, %v16717_v29  ;;  %v18763_v6 = vld [vmem:[#allocation3 + $0x70] sm:$0xff]  ;;  %v18764_v29 = vld [vmem:[#allocation3 + $0x78] sm:$0xff]  ;;  %v6565_v56 = vld [vmem:[#allocation21 + $0x48] sm:$0xff] }
0x161f   :  { %v6369_v46 = vadd.f32 %v20048_v26, %v20046_v19  ;;  %v20057_v63 = vadd.f32 %v18753_v61, %v16710_v21  ;;  %v20067_v40 = vadd.f32 %v18756_v62, %v16718_v20  ;;  %v6557_v61 = vld [vmem:[#allocation21 + $0x8] sm:$0xff] }
0x1620   :  { %v15382_v62 = vcombine.high %v6557_v61, %v6565_v56 }
0x1621   :  { %v6374_v50 = vadd.f32 %v20057_v63, %v20051_v34  ;;  %v6370_v23 = vadd.f32 %v6369_v46, %v20053_v52  ;;  %v6564_v46 = vld [vmem:[#allocation21 + $0x40] sm:$0xff] }
0x1622   :  { %v15379_v20 = vcombine.low %v6556_v43, %v6564_v46  ;;  %v15380_v35 = vcombine.high %v6556_v43, %v6564_v46  ;;  %9818 = vmatprep.subr.bf16.mxu1 %v15382_v62 }
0x1623   :  { %v6371_v15 = vadd.f32 %v6370_v23, %v20060_v36  ;;  %v6375_v31 = vadd.f32 %v6374_v50, %v20062_v59  ;;  %v6580_v50 = vld [vmem:[#allocation21 + $0xc0] sm:$0xff]  ;;  %v15381_v23 = vcombine.low %v6557_v61, %v6565_v56  ;;  %v6653_v56 = vld [vmem:[#allocation21 + $0x308] sm:$0xff] }
0x1624   :  { %9712 = vmatprep.subr.bf16.mxu0 %v15380_v35  ;;  %v6660_v35 = vld [vmem:[#allocation21 + $0x340] sm:$0xff] }
0x1625   :  { %6372 = vadd.xlane.f32.xlu0 %v6371_v15  ;;  %v6376_v30 = vadd.f32 %v6375_v31, %v20067_v40  ;;  %v6573_v31 = vld [vmem:[#allocation21 + $0x88] sm:$0xff]  ;;  %9713 = vmatpush1.bf16.msra.mxu0 %v15379_v20  ;;  %v6652_v20 = vld [vmem:[#allocation21 + $0x300] sm:$0xff] }
0x1626   :  { %9819 = vmatpush1.bf16.msra.mxu1 %v15381_v23  ;;  %v15476_v62 = vcombine.high %v6652_v20, %v6660_v35 }
0x1627   :  { %6377 = vadd.xlane.f32.xlu1 %v6376_v30  ;;  %v6581_v30 = vld [vmem:[#allocation21 + $0xc8] sm:$0xff] }
0x165c   :  { %v6236_v38 = vpop.f32.mrb[92].mxu0  ;;  %v6342_v4 = vpop.f32.mrb[92].mxu1 }
0x165d   :  { %v16711_v44 = vadd.f32 %v6236_v38, %v5482_v48  ;;  %v6238_v42 = vpop.f32.mrb[93].mxu0  ;;  %v6344_v0 = vpop.f32.mrb[93].mxu1  ;;  %v16719_v47 = vadd.f32 %v6342_v4, %v5490_v37  ;;  %v6588_v38 = vld [vmem:[#allocation21 + $0x100] sm:$0xff]  ;;  %v15398_v4 = vcombine.high %v6573_v31, %v6581_v30 }
0x165e   :  { %v16712_v32 = vadd.f32 %v6238_v42, %v5486_v45  ;;  %v6240_v25 = vpop.f32.mrb[94].mxu0  ;;  %v6346_v17 = vpop.f32.mrb[94].mxu1  ;;  %v16720_v53 = vadd.f32 %v6344_v0, %v20044_v11  ;;  %v6589_v42 = vld [vmem:[#allocation21 + $0x108] sm:$0xff] }
0x165f   :  { %v20072_v51 = vadd.f32 %v18757_v41, %v16711_v44  ;;  %v16713_v57 = vadd.f32 %v6240_v25, %v5482_v48  ;;  %v6242_v10 = vpop.f32.mrb[95].mxu0  ;;  %v6348_v14 = vpop.f32.mrb[95].mxu1  ;;  %v16721_v1 = vadd.f32 %v6346_v17, %v5490_v37  ;;  %v20079_v13 = vadd.f32 %v18760_v12, %v16719_v47  ;;  %v18762_v48 = vld [vmem:[#allocation3 + $0x58] sm:$0xff]  ;;  %v6597_v0 = vld [vmem:[#allocation21 + $0x148] sm:$0xff]  ;;  %9820 = vmatprep.subr.bf16.mxu1 %v15398_v4 }
0x1660   :  { %v20075_v22 = vadd.f32 %v18758_v49, %v16712_v32  ;;  %v16714_v5 = vadd.f32 %v6242_v10, %v5486_v45  ;;  %v20085_v18 = vadd.f32 %v18762_v48, %v16720_v53  ;;  %v16722_v45 = vadd.f32 %v6348_v14, %v20044_v11  ;;  %v6572_v11 = vld [vmem:[#allocation21 + $0x80] sm:$0xff]  ;;  %v6613_v10 = vld [vmem:[#allocation21 + $0x1c8] sm:$0xff] }
0x1661   :  { %v20077_v9 = vadd.f32 %v18759_v8, %v16713_v57  ;;  %v20087_v27 = vadd.f32 %v18763_v6, %v16721_v1  ;;  %v15396_v15 = vcombine.high %v6572_v11, %v6580_v50  ;;  %v6596_v44 = vld [vmem:[#allocation21 + $0x140] sm:$0xff]  ;;  %v15395_v47 = vcombine.low %v6572_v11, %v6580_v50  ;;  %v6605_v57 = vld [vmem:[#allocation21 + $0x188] sm:$0xff] }
0x1662   :  { %v6379_v16 = vadd.f32 %v20075_v22, %v20072_v51  ;;  %v20083_v7 = vadd.f32 %v18761_v54, %v16714_v5  ;;  %v20095_v21 = vadd.f32 %v18764_v29, %v16722_v45  ;;  %v15397_v32 = vcombine.low %v6573_v31, %v6581_v30  ;;  %v6604_v41 = vld [vmem:[#allocation21 + $0x180] sm:$0xff]  ;;  %v6629_v54 = vld [vmem:[#allocation21 + $0x248] sm:$0xff] }
0x1663   :  { %9714 = vmatprep.subr.bf16.mxu0 %v15396_v15  ;;  %v15412_v25 = vcombine.high %v6588_v38, %v6596_v44  ;;  %v15414_v17 = vcombine.high %v6589_v42, %v6597_v0  ;;  %v6612_v53 = vld [vmem:[#allocation21 + $0x1c0] sm:$0xff]  ;;  %v15411_v14 = vcombine.low %v6588_v38, %v6596_v44  ;;  %v15413_v49 = vcombine.low %v6589_v42, %v6597_v0  ;;  %v6645_v29 = vld [vmem:[#allocation21 + $0x2c8] sm:$0xff] }
0x1664   :  { %v6384_v37 = vadd.f32 %v20083_v7, %v20077_v9  ;;  %v6380_v39 = vadd.f32 %v6379_v16, %v20079_v13  ;;  %9715 = vmatpush1.bf16.msra.mxu0 %v15395_v47  ;;  %9821 = vmatpush1.bf16.msra.mxu1 %v15397_v32  ;;  %v15428_v1 = vcombine.high %v6604_v41, %v6612_v53  ;;  %v6620_v8 = vld [vmem:[#allocation21 + $0x200] sm:$0xff]  ;;  %v6621_v16 = vld [vmem:[#allocation21 + $0x208] sm:$0xff] }
0x1665   :  { %9716 = vmatprep.subr.bf16.mxu0 %v15412_v25  ;;  %9822 = vmatprep.subr.bf16.mxu1 %v15414_v17  ;;  %v15430_v5 = vcombine.high %v6605_v57, %v6613_v10  ;;  %v6628_v12 = vld [vmem:[#allocation21 + $0x240] sm:$0xff]  ;;  %v15427_v48 = vcombine.low %v6604_v41, %v6612_v53  ;;  %v15429_v6 = vcombine.low %v6605_v57, %v6613_v10  ;;  %v6661_v11 = vld [vmem:[#allocation21 + $0x348] sm:$0xff] }
0x1666   :  { %v6381_v24 = vadd.f32 %v6380_v39, %v20085_v18  ;;  %v6385_v28 = vadd.f32 %v6384_v37, %v20087_v27  ;;  %v15444_v37 = vcombine.high %v6620_v8, %v6628_v12  ;;  %v15446_v45 = vcombine.high %v6621_v16, %v6629_v54  ;;  %v6636_v39 = vld [vmem:[#allocation21 + $0x280] sm:$0xff]  ;;  %v6669_v38 = vld [vmem:[#allocation21 + $0x388] sm:$0xff] }
0x1667   :  { %v15445_v43 = vcombine.low %v6621_v16, %v6629_v54  ;;  %v15478_v15 = vcombine.high %v6653_v56, %v6661_v11  ;;  %v6668_v31 = vld [vmem:[#allocation21 + $0x380] sm:$0xff]  ;;  %v6677_v4 = vld [vmem:[#allocation21 + $0x3c8] sm:$0xff]  ;;  %v15475_v44 = vcombine.low %v6652_v20, %v6660_v35  ;;  %v15477_v42 = vcombine.low %v6653_v56, %v6661_v11 }
0x1668   :  { %6382 = vadd.xlane.f32.xlu0 %v6381_v24  ;;  %v6386_v33 = vadd.f32 %v6385_v28, %v20095_v21  ;;  %9717 = vmatpush1.bf16.msra.mxu0 %v15411_v14  ;;  %v6644_v24 = vld [vmem:[#allocation21 + $0x2c0] sm:$0xff]  ;;  %v6637_v28 = vld [vmem:[#allocation21 + $0x288] sm:$0xff]  ;;  %v15494_v47 = vcombine.high %v6669_v38, %v6677_v4  ;;  %v15493_v57 = vcombine.low %v6669_v38, %v6677_v4 }
0x1669   :  { %9823 = vmatpush1.bf16.msra.mxu1 %v15413_v49  ;;  %9718 = vmatprep.subr.bf16.mxu0 %v15428_v1  ;;  %v15460_v46 = vcombine.high %v6636_v39, %v6644_v24  ;;  %v15462_v61 = vcombine.high %v6637_v28, %v6645_v29  ;;  %v15459_v50 = vcombine.low %v6636_v39, %v6644_v24  ;;  %v6676_v30 = vld [vmem:[#allocation21 + $0x3c0] sm:$0xff]  ;;  %v6685_v17 = vld [vmem:[#allocation21 + $0x408] sm:$0xff] }
0x166a   :  { %9824 = vmatprep.subr.bf16.mxu1 %v15430_v5  ;;  %v15461_v23 = vcombine.low %v6637_v28, %v6645_v29  ;;  %v15492_v0 = vcombine.high %v6668_v31, %v6676_v30  ;;  %v6684_v32 = vld [vmem:[#allocation21 + $0x400] sm:$0xff]  ;;  %v6693_v41 = vld [vmem:[#allocation21 + $0x448] sm:$0xff]  ;;  %v15491_v53 = vcombine.low %v6668_v31, %v6676_v30 }
0x166b   :  { %v6692_v25 = vld [vmem:[#allocation21 + $0x440] sm:$0xff]  ;;  %v15510_v14 = vcombine.high %v6685_v17, %v6693_v41  ;;  %v6701_v5 = vld [vmem:[#allocation21 + $0x488] sm:$0xff]  ;;  %v15509_v16 = vcombine.low %v6685_v17, %v6693_v41 }
0x166c   :  { %6387 = vadd.xlane.f32.xlu0 %v6386_v33  ;;  %9719 = vmatpush1.bf16.msra.mxu0 %v15427_v48  ;;  %v15443_v33 = vcombine.low %v6620_v8, %v6628_v12  ;;  %v15508_v10 = vcombine.high %v6684_v32, %v6692_v25  ;;  %v6700_v49 = vld [vmem:[#allocation21 + $0x480] sm:$0xff]  ;;  %v6709_v8 = vld [vmem:[#allocation21 + $0x4c8] sm:$0xff]  ;;  %v15507_v12 = vcombine.low %v6684_v32, %v6692_v25 }
0x166d   :  { %9825 = vmatpush1.bf16.msra.mxu1 %v15429_v6  ;;  %9720 = vmatprep.subr.bf16.mxu0 %v15444_v37  ;;  %v6708_v1 = vld [vmem:[#allocation21 + $0x4c0] sm:$0xff]  ;;  %v15526_v48 = vcombine.high %v6701_v5, %v6709_v8  ;;  %v15525_v37 = vcombine.low %v6701_v5, %v6709_v8  ;;  %v6717_v4 = vld [vmem:[#allocation21 + $0x508] sm:$0xff] }
0x166e   :  { %9826 = vmatprep.subr.bf16.mxu1 %v15446_v45  ;;  %v15524_v54 = vcombine.high %v6700_v49, %v6708_v1  ;;  %v15523_v6 = vcombine.low %v6700_v49, %v6708_v1  ;;  %v6716_v30 = vld [vmem:[#allocation21 + $0x500] sm:$0xff]  ;;  %v6733_v41 = vld [vmem:[#allocation21 + $0x588] sm:$0xff] }
0x166f   :  { %v6724_v38 = vld [vmem:[#allocation21 + $0x540] sm:$0xff]  ;;  %v6749_v8 = vld [vmem:[#allocation21 + $0x608] sm:$0xff] }
0x1670   :  { %9721 = vmatpush1.bf16.msra.mxu0 %v15443_v33  ;;  %v6732_v25 = vld [vmem:[#allocation21 + $0x580] sm:$0xff] }
0x1671   :  { %9827 = vmatpush1.bf16.msra.mxu1 %v15445_v43  ;;  %9722 = vmatprep.subr.bf16.mxu0 %v15460_v46  ;;  %v6740_v17 = vld [vmem:[#allocation21 + $0x5c0] sm:$0xff] }
0x1672   :  { %9828 = vmatprep.subr.bf16.mxu1 %v15462_v61  ;;  %v6748_v1 = vld [vmem:[#allocation21 + $0x600] sm:$0xff] }
0x1673   :  { %v6756_v5 = vld [vmem:[#allocation21 + $0x640] sm:$0xff] }
0x1674   :  { %9723 = vmatpush1.bf16.msra.mxu0 %v15459_v50 }
0x1675   :  { %9829 = vmatpush1.bf16.msra.mxu1 %v15461_v23  ;;  %9724 = vmatprep.subr.bf16.mxu0 %v15476_v62 }
0x1676   :  { %9830 = vmatprep.subr.bf16.mxu1 %v15478_v15 }
0x1678   :  { %9725 = vmatpush1.bf16.msra.mxu0 %v15475_v44  ;;  %v15540_v44 = vcombine.high %v6716_v30, %v6724_v38 }
0x1679   :  { %9831 = vmatpush1.bf16.msra.mxu1 %v15477_v42  ;;  %9726 = vmatprep.subr.bf16.mxu0 %v15492_v0  ;;  %v6725_v42 = vld [vmem:[#allocation21 + $0x548] sm:$0xff]  ;;  %v15539_v0 = vcombine.low %v6716_v30, %v6724_v38 }
0x167a   :  { %9832 = vmatprep.subr.bf16.mxu1 %v15494_v47  ;;  %v15541_v47 = vcombine.low %v6717_v4, %v6725_v42  ;;  %v15542_v32 = vcombine.high %v6717_v4, %v6725_v42 }
0x167c   :  { %9727 = vmatpush1.bf16.msra.mxu0 %v15491_v53  ;;  %v15556_v53 = vcombine.high %v6732_v25, %v6740_v17 }
0x167d   :  { %9833 = vmatpush1.bf16.msra.mxu1 %v15493_v57  ;;  %9728 = vmatprep.subr.bf16.mxu0 %v15508_v10  ;;  %v6741_v57 = vld [vmem:[#allocation21 + $0x5c8] sm:$0xff]  ;;  %v15555_v10 = vcombine.low %v6732_v25, %v6740_v17 }
0x167e   :  { %9834 = vmatprep.subr.bf16.mxu1 %v15510_v14  ;;  %v15557_v14 = vcombine.low %v6733_v41, %v6741_v57  ;;  %v15558_v49 = vcombine.high %v6733_v41, %v6741_v57  ;;  %v20148_v41 = vld [vmem:[#allocation21 + $0x848] sm:$0xff] }
0x1680   :  { %9729 = vmatpush1.bf16.msra.mxu0 %v15507_v12  ;;  %v15572_v12 = vcombine.high %v6748_v1, %v6756_v5 }
0x1681   :  { %9835 = vmatpush1.bf16.msra.mxu1 %v15509_v16  ;;  %9730 = vmatprep.subr.bf16.mxu0 %v15524_v54  ;;  %v6757_v16 = vld [vmem:[#allocation21 + $0x648] sm:$0xff]  ;;  %v6764_v54 = vld [vmem:[#allocation21 + $0x680] sm:$0xff] }
0x1682   :  { %9836 = vmatprep.subr.bf16.mxu1 %v15526_v48  ;;  %v6772_v48 = vld [vmem:[#allocation21 + $0x6c0] sm:$0xff] }
0x1684   :  { %9731 = vmatpush1.bf16.msra.mxu0 %v15523_v6  ;;  %v15571_v6 = vcombine.low %v6748_v1, %v6756_v5 }
0x1685   :  { %9837 = vmatpush1.bf16.msra.mxu1 %v15525_v37  ;;  %9732 = vmatprep.subr.bf16.mxu0 %v15540_v44  ;;  %v15574_v37 = vcombine.high %v6749_v8, %v6757_v16 }
0x1686   :  { %9838 = vmatprep.subr.bf16.mxu1 %v15542_v32  ;;  %v20142_v32 = vld [vmem:[#allocation21 + $0x808] sm:$0xff] }
0x1687   :  { %v15638_v57 = vcombine.high %v20142_v32, %v20148_v41 }
0x1688   :  { %9733 = vmatpush1.bf16.msra.mxu0 %v15539_v0  ;;  %v20138_v0 = vld [vmem:[#allocation21 + $0x800] sm:$0xff] }
0x1689   :  { %9839 = vmatpush1.bf16.msra.mxu1 %v15541_v47  ;;  %9734 = vmatprep.subr.bf16.mxu0 %v15556_v53  ;;  %v20140_v47 = vld [vmem:[#allocation21 + $0x840] sm:$0xff]  ;;  %v15637_v53 = vcombine.low %v20142_v32, %v20148_v41  ;;  %v6877_v41 = vld [vmem:[#allocation21 + $0xa08] sm:$0xff] }
0x168a   :  { %9840 = vmatprep.subr.bf16.mxu1 %v15558_v49  ;;  %v15635_v25 = vcombine.low %v20138_v0, %v20140_v47  ;;  %v15636_v17 = vcombine.high %v20138_v0, %v20140_v47  ;;  %v6876_v32 = vld [vmem:[#allocation21 + $0xa00] sm:$0xff] }
0x168c   :  { %9735 = vmatpush1.bf16.msra.mxu0 %v15555_v10 }
0x168d   :  { %9841 = vmatpush1.bf16.msra.mxu1 %v15557_v14  ;;  %9736 = vmatprep.subr.bf16.mxu0 %v15572_v12 }
0x168e   :  { %9842 = vmatprep.subr.bf16.mxu1 %v15574_v37 }
0x1690   :  { %9737 = vmatpush1.bf16.msra.mxu0 %v15571_v6 }
0x16b2   :  { %v6373_v45 = vpop.xlane.xlu0 %6372 }
0x16b3   :  { %v6390_v39 = vmul.f32 0.001953125, %v6373_v45  ;;  %v6765_v45 = vld [vmem:[#allocation21 + $0x688] sm:$0xff] }
0x16b4   :  { %v6378_v24 = vpop.xlane.xlu1 %6377 }
0x16b5   :  { %v20099_v28 = vsub.f32 %v20046_v19, %v6390_v39  ;;  %v20102_v29 = vsub.f32 %v20048_v26, %v6390_v39  ;;  %v6391_v33 = vmul.f32 0.001953125, %v6378_v24  ;;  %v20105_v43 = vsub.f32 %v20053_v52, %v6390_v39 }
0x16b6   :  { %v20119_v35 = vsub.f32 %v20060_v36, %v6390_v39  ;;  %v6773_v39 = vld [vmem:[#allocation21 + $0x6c8] sm:$0xff]  ;;  %v15573_v24 = vcombine.low %v6749_v8, %v6757_v16 }
0x16b7   :  { %v20108_v46 = vsub.f32 %v20051_v34, %v6391_v33  ;;  %v20111_v61 = vsub.f32 %v20057_v63, %v6391_v33  ;;  %v20114_v20 = vsub.f32 %v20062_v59, %v6391_v33  ;;  %v6410_v19 = vmul.f32 %v20099_v28, %v20099_v28 }
0x16b8   :  { %v6411_v26 = vmul.f32 %v20102_v29, %v20102_v29  ;;  %v20124_v52 = vsub.f32 %v20067_v40, %v6391_v33  ;;  %v6412_v59 = vmul.f32 %v20105_v43, %v20105_v43  ;;  %v6413_v50 = vmul.f32 %v20119_v35, %v20119_v35  ;;  %9843 = vmatpush1.bf16.msra.mxu1 %v15573_v24 }
0x16b9   :  { %v6414_v34 = vmul.f32 %v20108_v46, %v20108_v46  ;;  %v6415_v63 = vmul.f32 %v20111_v61, %v20111_v61  ;;  %v6416_v36 = vmul.f32 %v20114_v20, %v20114_v20  ;;  %v15588_v33 = vcombine.high %v6764_v54, %v6772_v48 }
0x16ba   :  { %v6426_v56 = vadd.f32 %v6411_v26, %v6410_v19  ;;  %v6417_v40 = vmul.f32 %v20124_v52, %v20124_v52  ;;  %v15590_v19 = vcombine.high %v6765_v45, %v6773_v39  ;;  %v6780_v26 = vld [vmem:[#allocation21 + $0x700] sm:$0xff] }
0x16bb   :  { %v6431_v11 = vadd.f32 %v6415_v63, %v6414_v34  ;;  %v6788_v34 = vld [vmem:[#allocation21 + $0x740] sm:$0xff]  ;;  %v6781_v63 = vld [vmem:[#allocation21 + $0x708] sm:$0xff]  ;;  %9738 = vmatprep.subr.bf16.mxu0 %v15588_v33 }
0x16bc   :  { %v6427_v23 = vadd.f32 %v6426_v56, %v6412_v59  ;;  %v6789_v59 = vld [vmem:[#allocation21 + $0x748] sm:$0xff]  ;;  %v15587_v56 = vcombine.low %v6764_v54, %v6772_v48  ;;  %9844 = vmatprep.subr.bf16.mxu1 %v15590_v19 }
0x16bd   :  { %v6432_v62 = vadd.f32 %v6431_v11, %v6416_v36  ;;  %v15589_v36 = vcombine.low %v6765_v45, %v6773_v39  ;;  %v15604_v11 = vcombine.high %v6780_v26, %v6788_v34  ;;  %v15605_v30 = vcombine.low %v6781_v63, %v6789_v59 }
0x16be   :  { %v6428_v15 = vadd.f32 %v6427_v23, %v6413_v50  ;;  %v15606_v50 = vcombine.high %v6781_v63, %v6789_v59  ;;  %v6796_v23 = vld [vmem:[#allocation21 + $0x780] sm:$0xff]  ;;  %9739 = vmatpush1.bf16.msra.mxu0 %v15587_v56 }
0x16bf   :  { %v6433_v31 = vadd.f32 %v6432_v62, %v6417_v40  ;;  %v6804_v40 = vld [vmem:[#allocation21 + $0x7c0] sm:$0xff]  ;;  %v6797_v62 = vld [vmem:[#allocation21 + $0x788] sm:$0xff]  ;;  %9845 = vmatpush1.bf16.msra.mxu1 %v15589_v36  ;;  %9740 = vmatprep.subr.bf16.mxu0 %v15604_v11 }
0x16c0   :  { %6429 = vadd.xlane.f32.xlu0 %v6428_v15  ;;  %v6805_v15 = vld [vmem:[#allocation21 + $0x7c8] sm:$0xff]  ;;  %v15620_v38 = vcombine.high %v6796_v23, %v6804_v40  ;;  %9846 = vmatprep.subr.bf16.mxu1 %v15606_v50  ;;  %v15619_v44 = vcombine.low %v6796_v23, %v6804_v40  ;;  %v6367_v50 = vld [vmem:[#allocation18] sm:$0xf]  ;;  %v6368_v23 = vld [vmem:[#allocation20] sm:$0xf] }
0x16c1   :  { %6434 = vadd.xlane.f32.xlu1 %v6433_v31  ;;  %v15603_v31 = vcombine.low %v6780_v26, %v6788_v34  ;;  %v15622_v4 = vcombine.high %v6797_v62, %v6805_v15  ;;  %v15621_v42 = vcombine.low %v6797_v62, %v6805_v15  ;;  %v20195_v40 = vrot.slane %v6367_v50, %v19579_v2 }
0x16c2   :  { %v20198_v62 = vrot.slane %v6367_v50, %v19582_v3  ;;  %v20201_v15 = vrot.slane %v6367_v50, %v19604_v60 }
0x16c3   :  { %9741 = vmatpush1.bf16.msra.mxu0 %v15603_v31  ;;  %9847 = vmatpush1.bf16.msra.mxu1 %v15605_v30  ;;  %v20204_v31 = vrot.slane %v6367_v50, %v19601_v55  ;;  %v6852_v50 = vld [vmem:[#allocation21 + $0x940] sm:$0xff] }
0x16c4   :  { %9742 = vmatprep.subr.bf16.mxu0 %v15620_v38  ;;  %9848 = vmatprep.subr.bf16.mxu1 %v15622_v4  ;;  %v20207_v38 = vrot.slane %v6368_v23, %v19579_v2  ;;  %v20210_v4 = vrot.slane %v6368_v23, %v19582_v3 }
0x16c7   :  { %9743 = vmatpush1.bf16.msra.mxu0 %v15619_v44  ;;  %9849 = vmatpush1.bf16.msra.mxu1 %v15621_v42  ;;  %v20213_v44 = vrot.slane %v6368_v23, %v19604_v60  ;;  %v20216_v42 = vrot.slane %v6368_v23, %v19601_v55  ;;  %v6845_v23 = vld [vmem:[#allocation21 + $0x908] sm:$0xff] }
0x16c8   :  { %9765 = vmatprep.subr.bf16.mxu0 %v15636_v17  ;;  %9871 = vmatprep.subr.bf16.mxu1 %v15638_v57 }
0x16f5   :  { %v6383_v10 = vpop.xlane.xlu0 %6382 }
0x16f6   :  { %v6392_v14 = vmul.f32 0.001953125, %v6383_v10 }
0x16f8   :  { %v20155_v49 = vsub.f32 %v20072_v51, %v6392_v14  ;;  %v20158_v1 = vsub.f32 %v20075_v22, %v6392_v14  ;;  %v20161_v5 = vsub.f32 %v20079_v13, %v6392_v14  ;;  %v20164_v12 = vsub.f32 %v20085_v18, %v6392_v14 }
0x16f9   :  { %v6388_v8 = vpop.xlane.xlu0 %6387 }
0x16fa   :  { %v6393_v16 = vmul.f32 0.001953125, %v6388_v8  ;;  %v6418_v54 = vmul.f32 %v20155_v49, %v20155_v49  ;;  %v6419_v48 = vmul.f32 %v20158_v1, %v20158_v1  ;;  %v6420_v51 = vmul.f32 %v20161_v5, %v20161_v5 }
0x16fb   :  { %v6421_v37 = vmul.f32 %v20164_v12, %v20164_v12 }
0x16fc   :  { %v20173_v22 = vsub.f32 %v20077_v9, %v6393_v16  ;;  %v20176_v13 = vsub.f32 %v20083_v7, %v6393_v16  ;;  %v20179_v6 = vsub.f32 %v20087_v27, %v6393_v16  ;;  %v6436_v18 = vadd.f32 %v6419_v48, %v6418_v54 }
0x16fd   :  { %v20184_v39 = vsub.f32 %v20095_v21, %v6393_v16 }
0x16fe   :  { %v6437_v45 = vadd.f32 %v6436_v18, %v6420_v51  ;;  %v6422_v24 = vmul.f32 %v20173_v22, %v20173_v22  ;;  %v6423_v9 = vmul.f32 %v20176_v13, %v20176_v13  ;;  %v6424_v7 = vmul.f32 %v20179_v6, %v20179_v6 }
0x16ff   :  { %v6425_v19 = vmul.f32 %v20184_v39, %v20184_v39 }
0x1700   :  { %v6438_v33 = vadd.f32 %v6437_v45, %v6421_v37  ;;  %v6441_v27 = vadd.f32 %v6423_v9, %v6422_v24  ;;  %v6828_v45 = vld [vmem:[#allocation21 + $0x880] sm:$0xff] }
0x1702   :  { %6439 = vadd.xlane.f32.xlu0 %v6438_v33  ;;  %v6442_v26 = vadd.f32 %v6441_v27, %v6424_v7  ;;  %v6836_v27 = vld [vmem:[#allocation21 + $0x8c0] sm:$0xff] }
0x1704   :  { %v6443_v34 = vadd.f32 %v6442_v26, %v6425_v19  ;;  %v6829_v19 = vld [vmem:[#allocation21 + $0x888] sm:$0xff] }
0x1705   :  { %v6837_v26 = vld [vmem:[#allocation21 + $0x8c8] sm:$0xff] }
0x1706   :  { %6444 = vadd.xlane.f32.xlu1 %v6443_v34 }
0x174d   :  { %v6430_v21 = vpop.xlane.xlu0 %6429 }
0x174e   :  { %v6446_v63 = vmul.f32 0.001953125, %v6430_v21  ;;  %v6435_v59 = vpop.xlane.xlu1 %6434 }
0x174f   :  { %v6447_v56 = vmul.f32 0.001953125, %v6435_v59 }
0x1750   :  { %v6450_v36 = vadd.f32 1e-05, %v6446_v63 }
0x1751   :  { %v6451_v11 = vadd.f32 1e-05, %v6447_v56  ;;  %v15652_v56 = vcombine.high %v6828_v45, %v6836_v27 }
0x1752   :  { %18733 = vrsqrt.f32 %v6450_v36  ;;  %v15654_v36 = vcombine.high %v6829_v19, %v6837_v26 }
0x1753   :  { %18735 = vrsqrt.f32 %v6451_v11  ;;  %v6844_v11 = vld [vmem:[#allocation21 + $0x900] sm:$0xff] }
0x175c   :  { %v18734_v30 = vpop.eup %18733 }
0x175d   :  { %v18736_v17 = vpop.eup %18735  ;;  %v6459_v57 = vmul.f32 %v18734_v30, %v20102_v29  ;;  %v6458_v10 = vmul.f32 %v18734_v30, %v20099_v28  ;;  %v6461_v14 = vmul.f32 %v18734_v30, %v20119_v35  ;;  %v6460_v8 = vmul.f32 %v18734_v30, %v20105_v43  ;;  %v6853_v30 = vld [vmem:[#allocation21 + $0x948] sm:$0xff] }
0x175e   :  { %v6463_v16 = vmul.f32 %v18736_v17, %v20111_v61  ;;  %v6462_v54 = vmul.f32 %v18736_v17, %v20108_v46  ;;  %v6465_v48 = vmul.f32 %v18736_v17, %v20124_v52  ;;  %v6464_v51 = vmul.f32 %v18736_v17, %v20114_v20 }
0x175f   :  { %v6496_v18 = vmul.f32 %v20195_v40, %v6459_v57  ;;  %v6495_v37 = vmul.f32 %v20198_v62, %v6458_v10  ;;  %v6498_v29 = vmul.f32 %v20201_v15, %v6461_v14  ;;  %v6497_v28 = vmul.f32 %v20204_v31, %v6460_v8  ;;  %v6860_v8 = vld [vmem:[#allocation21 + $0x980] sm:$0xff] }
0x1760   :  { %v6500_v35 = vmul.f32 %v20195_v40, %v6463_v16  ;;  %v6499_v43 = vmul.f32 %v20198_v62, %v6462_v54  ;;  %v6502_v61 = vmul.f32 %v20201_v15, %v6465_v48  ;;  %v6501_v46 = vmul.f32 %v20204_v31, %v6464_v51  ;;  %v6868_v16 = vld [vmem:[#allocation21 + $0x9c0] sm:$0xff]  ;;  %v6861_v54 = vld [vmem:[#allocation21 + $0x988] sm:$0xff] }
0x1761   :  { %v20235_v52 = vadd.f32 %v20207_v38, %v6496_v18  ;;  %v20238_v20 = vadd.f32 %v20210_v4, %v6495_v37  ;;  %v20241_v24 = vadd.f32 %v20213_v44, %v6498_v29  ;;  %v20244_v9 = vadd.f32 %v20216_v42, %v6497_v28  ;;  %v6869_v48 = vld [vmem:[#allocation21 + $0x9c8] sm:$0xff] }
0x1762   :  { %v20247_v33 = vadd.f32 %v20207_v38, %v6500_v35  ;;  %v20250_v7 = vadd.f32 %v20210_v4, %v6499_v43  ;;  %v20253_v34 = vadd.f32 %v20213_v44, %v6502_v61  ;;  %v20256_v21 = vadd.f32 %v20216_v42, %v6501_v46  ;;  %v6892_v43 = vld [vmem:[#allocation21 + $0xa80] sm:$0xff]  ;;  %v6893_v46 = vld [vmem:[#allocation21 + $0xa88] sm:$0xff] }
0x1763   :  { %v15651_v17 = vcombine.low %v6828_v45, %v6836_v27  ;;  %v15653_v57 = vcombine.low %v6829_v19, %v6837_v26  ;;  %v15668_v10 = vcombine.high %v6844_v11, %v6852_v50  ;;  %v15670_v14 = vcombine.high %v6845_v23, %v6853_v30  ;;  %v6900_v61 = vld [vmem:[#allocation21 + $0xac0] sm:$0xff]  ;;  %v6901_v45 = vld [vmem:[#allocation21 + $0xac8] sm:$0xff] }
0x1764   :  { %v20260_v63 = vpack.c.bf16 %v20247_v33, %v20235_v52  ;;  %v20264_v59 = vpack.c.bf16 %v20250_v7, %v20238_v20  ;;  %v15667_v51 = vcombine.low %v6844_v11, %v6852_v50  ;;  %v15669_v18 = vcombine.low %v6845_v23, %v6853_v30  ;;  %v6916_v11 = vld [vmem:[#allocation21 + $0xb40] sm:$0xff]  ;;  %v6909_v50 = vld [vmem:[#allocation21 + $0xb08] sm:$0xff] }
0x1765   :  { %v15684_v0 = vcombine.high %v6860_v8, %v6868_v16  ;;  %v15686_v47 = vcombine.high %v6861_v54, %v6869_v48  ;;  %v15683_v37 = vcombine.low %v6860_v8, %v6868_v16  ;;  %v15685_v29 = vcombine.low %v6861_v54, %v6869_v48  ;;  %v6917_v23 = vld [vmem:[#allocation21 + $0xb48] sm:$0xff]  ;;  %v6932_v8 = vld [vmem:[#allocation21 + $0xbc0] sm:$0xff] }
0x1766   :  { %9744 = vmatprep.mubr.bf16.mxu0 %v20260_v63  ;;  %9850 = vmatprep.mubr.bf16.mxu1 %v20260_v63  ;;  %v15716_v26 = vcombine.high %v6892_v43, %v6900_v61  ;;  %v15715_v30 = vcombine.low %v6892_v43, %v6900_v61  ;;  %v6925_v16 = vld [vmem:[#allocation21 + $0xb88] sm:$0xff]  ;;  %v6964_v43 = vld [vmem:[#allocation21 + $0xcc0] sm:$0xff] }
0x1767   :  { %9745 = vmatmul.mubr.bf16.vlgmr.msra.gmra.mrb[96].mxu0 %v20264_v59  ;;  %9851 = vmatmul.mubr.bf16.vlgmr.msra.gmra.mrb[96].mxu1 %v20264_v59  ;;  %v6933_v54 = vld [vmem:[#allocation21 + $0xbc8] sm:$0xff] }
0x1768   :  { %9766 = vmatpush1.bf16.msra.mxu0 %v15635_v25  ;;  %9872 = vmatpush1.bf16.msra.mxu1 %v15637_v53  ;;  %v6884_v25 = vld [vmem:[#allocation21 + $0xa40] sm:$0xff]  ;;  %v6885_v53 = vld [vmem:[#allocation21 + $0xa48] sm:$0xff] }
0x1769   :  { %9767 = vmatprep.subr.bf16.mxu0 %v15652_v56  ;;  %9873 = vmatprep.subr.bf16.mxu1 %v15654_v36  ;;  %v15700_v28 = vcombine.high %v6876_v32, %v6884_v25  ;;  %v15702_v35 = vcombine.high %v6877_v41, %v6885_v53  ;;  %v15699_v27 = vcombine.low %v6876_v32, %v6884_v25  ;;  %v6908_v36 = vld [vmem:[#allocation21 + $0xb00] sm:$0xff]  ;;  %v6941_v25 = vld [vmem:[#allocation21 + $0xc08] sm:$0xff] }
0x176a   :  { %v15701_v19 = vcombine.low %v6877_v41, %v6885_v53  ;;  %v15718_v56 = vcombine.high %v6893_v46, %v6901_v45  ;;  %v15731_v48 = vcombine.low %v6908_v36, %v6916_v11  ;;  %v6948_v32 = vld [vmem:[#allocation21 + $0xc40] sm:$0xff]  ;;  %v6949_v41 = vld [vmem:[#allocation21 + $0xc48] sm:$0xff] }
0x176b   :  { %v6957_v61 = vld [vmem:[#allocation21 + $0xc88] sm:$0xff] }
0x176c   :  { %9768 = vmatpush1.bf16.msra.mxu0 %v15651_v17  ;;  %9874 = vmatpush1.bf16.msra.mxu1 %v15653_v57  ;;  %v15717_v17 = vcombine.low %v6893_v46, %v6901_v45  ;;  %v15732_v57 = vcombine.high %v6908_v36, %v6916_v11  ;;  %v6965_v46 = vld [vmem:[#allocation21 + $0xcc8] sm:$0xff]  ;;  %v6980_v36 = vld [vmem:[#allocation21 + $0xd40] sm:$0xff] }
0x176d   :  { %9769 = vmatprep.subr.bf16.mxu0 %v15668_v10  ;;  %9875 = vmatprep.subr.bf16.mxu1 %v15670_v14  ;;  %v15734_v10 = vcombine.high %v6909_v50, %v6917_v23  ;;  %v6924_v14 = vld [vmem:[#allocation21 + $0xb80] sm:$0xff]  ;;  %v6973_v11 = vld [vmem:[#allocation21 + $0xd08] sm:$0xff] }
0x176e   :  { %v15747_v53 = vcombine.low %v6924_v14, %v6932_v8 }
0x1770   :  { %9770 = vmatpush1.bf16.msra.mxu0 %v15667_v51  ;;  %9876 = vmatpush1.bf16.msra.mxu1 %v15669_v18  ;;  %v15733_v51 = vcombine.low %v6909_v50, %v6917_v23  ;;  %v15748_v18 = vcombine.high %v6924_v14, %v6932_v8  ;;  %v6981_v50 = vld [vmem:[#allocation21 + $0xd48] sm:$0xff]  ;;  %v6996_v14 = vld [vmem:[#allocation21 + $0xdc0] sm:$0xff] }
0x1771   :  { %9771 = vmatprep.subr.bf16.mxu0 %v15684_v0  ;;  %9877 = vmatprep.subr.bf16.mxu1 %v15686_v47  ;;  %v15750_v0 = vcombine.high %v6925_v16, %v6933_v54  ;;  %v6940_v47 = vld [vmem:[#allocation21 + $0xc00] sm:$0xff]  ;;  %v6989_v8 = vld [vmem:[#allocation21 + $0xd88] sm:$0xff] }
0x1772   :  { %v15763_v45 = vcombine.low %v6940_v47, %v6948_v32 }
0x1774   :  { %9772 = vmatpush1.bf16.msra.mxu0 %v15683_v37  ;;  %9878 = vmatpush1.bf16.msra.mxu1 %v15685_v29  ;;  %v15749_v37 = vcombine.low %v6925_v16, %v6933_v54  ;;  %v15764_v29 = vcombine.high %v6940_v47, %v6948_v32  ;;  %v6997_v16 = vld [vmem:[#allocation21 + $0xdc8] sm:$0xff]  ;;  %v7012_v47 = vld [vmem:[#allocation21 + $0xe40] sm:$0xff] }
0x1775   :  { %9773 = vmatprep.subr.bf16.mxu0 %v15700_v28  ;;  %9879 = vmatprep.subr.bf16.mxu1 %v15702_v35  ;;  %v15766_v28 = vcombine.high %v6941_v25, %v6949_v41  ;;  %v6956_v35 = vld [vmem:[#allocation21 + $0xc80] sm:$0xff]  ;;  %v7005_v32 = vld [vmem:[#allocation21 + $0xe08] sm:$0xff] }
0x1776   :  { %v15779_v23 = vcombine.low %v6956_v35, %v6964_v43 }
0x1778   :  { %9774 = vmatpush1.bf16.msra.mxu0 %v15699_v27  ;;  %9880 = vmatpush1.bf16.msra.mxu1 %v15701_v19  ;;  %v15765_v27 = vcombine.low %v6941_v25, %v6949_v41  ;;  %v15780_v19 = vcombine.high %v6956_v35, %v6964_v43  ;;  %v7013_v25 = vld [vmem:[#allocation21 + $0xe48] sm:$0xff]  ;;  %v7020_v43 = vld [vmem:[#allocation21 + $0xe80] sm:$0xff] }
0x1779   :  { %9775 = vmatprep.subr.bf16.mxu0 %v15716_v26  ;;  %9881 = vmatprep.subr.bf16.mxu1 %v15718_v56  ;;  %v15782_v26 = vcombine.high %v6957_v61, %v6965_v46  ;;  %v6972_v56 = vld [vmem:[#allocation21 + $0xd00] sm:$0xff]  ;;  %v15830_v35 = vcombine.high %v7005_v32, %v7013_v25 }
0x177a   :  { %v15795_v54 = vcombine.low %v6972_v56, %v6980_v36 }
0x177c   :  { %9776 = vmatpush1.bf16.msra.mxu0 %v15715_v30  ;;  %9882 = vmatpush1.bf16.msra.mxu1 %v15717_v17  ;;  %v15781_v30 = vcombine.low %v6957_v61, %v6965_v46  ;;  %v15796_v17 = vcombine.high %v6972_v56, %v6980_v36  ;;  %v7028_v46 = vld [vmem:[#allocation21 + $0xec0] sm:$0xff]  ;;  %v15829_v36 = vcombine.low %v7005_v32, %v7013_v25 }
0x177d   :  { %9777 = vmatprep.subr.bf16.mxu0 %v15732_v57  ;;  %9883 = vmatprep.subr.bf16.mxu1 %v15734_v10  ;;  %v15798_v57 = vcombine.high %v6973_v11, %v6981_v50  ;;  %v6988_v10 = vld [vmem:[#allocation21 + $0xd80] sm:$0xff] }
0x1780   :  { %9778 = vmatpush1.bf16.msra.mxu0 %v15731_v48  ;;  %9884 = vmatpush1.bf16.msra.mxu1 %v15733_v51  ;;  %v15797_v48 = vcombine.low %v6973_v11, %v6981_v50  ;;  %v15812_v51 = vcombine.high %v6988_v10, %v6996_v14  ;;  %v15844_v11 = vcombine.high %v7020_v43, %v7028_v46 }
0x1781   :  { %9779 = vmatprep.subr.bf16.mxu0 %v15748_v18  ;;  %9885 = vmatprep.subr.bf16.mxu1 %v15750_v0  ;;  %v15814_v18 = vcombine.high %v6989_v8, %v6997_v16  ;;  %v7004_v0 = vld [vmem:[#allocation21 + $0xe00] sm:$0xff] }
0x1782   :  { %v15827_v56 = vcombine.low %v7004_v0, %v7012_v47 }
0x1784   :  { %9780 = vmatpush1.bf16.msra.mxu0 %v15747_v53  ;;  %9886 = vmatpush1.bf16.msra.mxu1 %v15749_v37  ;;  %v15811_v37 = vcombine.low %v6988_v10, %v6996_v14  ;;  %v7045_v10 = vld [vmem:[#allocation21 + $0xf48] sm:$0xff]  ;;  %v15843_v14 = vcombine.low %v7020_v43, %v7028_v46 }
0x1785   :  { %9781 = vmatprep.subr.bf16.mxu0 %v15764_v29  ;;  %9887 = vmatprep.subr.bf16.mxu1 %v15766_v28  ;;  %v15813_v29 = vcombine.low %v6989_v8, %v6997_v16  ;;  %v15828_v28 = vcombine.high %v7004_v0, %v7012_v47  ;;  %v7061_v0 = vld [vmem:[#allocation21 + $0xfc8] sm:$0xff] }
0x1788   :  { %9782 = vmatpush1.bf16.msra.mxu0 %v15763_v45  ;;  %9888 = vmatpush1.bf16.msra.mxu1 %v15765_v27  ;;  %v7021_v45 = vld [vmem:[#allocation21 + $0xe88] sm:$0xff] }
0x1789   :  { %9783 = vmatprep.subr.bf16.mxu0 %v15780_v19  ;;  %9889 = vmatprep.subr.bf16.mxu1 %v15782_v26  ;;  %v7029_v27 = vld [vmem:[#allocation21 + $0xec8] sm:$0xff] }
0x178a   :  { %v15846_v50 = vcombine.high %v7021_v45, %v7029_v27  ;;  %v15845_v8 = vcombine.low %v7021_v45, %v7029_v27 }
0x178c   :  { %9784 = vmatpush1.bf16.msra.mxu0 %v15779_v23  ;;  %9890 = vmatpush1.bf16.msra.mxu1 %v15781_v30  ;;  %v7036_v23 = vld [vmem:[#allocation21 + $0xf00] sm:$0xff] }
0x178d   :  { %9785 = vmatprep.subr.bf16.mxu0 %v15796_v17  ;;  %9891 = vmatprep.subr.bf16.mxu1 %v15798_v57  ;;  %v7044_v17 = vld [vmem:[#allocation21 + $0xf40] sm:$0xff]  ;;  %v7037_v57 = vld [vmem:[#allocation21 + $0xf08] sm:$0xff] }
0x178e   :  { %v15860_v16 = vcombine.high %v7036_v23, %v7044_v17  ;;  %v15859_v47 = vcombine.low %v7036_v23, %v7044_v17  ;;  %v15861_v32 = vcombine.low %v7037_v57, %v7045_v10 }
0x178f   :  { %v6440_v41 = vpop.xlane.xlu0 %6439 }
0x1790   :  { %v6448_v53 = vmul.f32 0.001953125, %v6440_v41  ;;  %9786 = vmatpush1.bf16.msra.mxu0 %v15795_v54  ;;  %9892 = vmatpush1.bf16.msra.mxu1 %v15797_v48  ;;  %v15862_v54 = vcombine.high %v7037_v57, %v7045_v10  ;;  %v7052_v48 = vld [vmem:[#allocation21 + $0xf80] sm:$0xff] }
0x1791   :  { %9787 = vmatprep.subr.bf16.mxu0 %v15812_v51  ;;  %9893 = vmatprep.subr.bf16.mxu1 %v15814_v18  ;;  %v7060_v51 = vld [vmem:[#allocation21 + $0xfc0] sm:$0xff]  ;;  %v7053_v18 = vld [vmem:[#allocation21 + $0xf88] sm:$0xff] }
0x1792   :  { %v6452_v61 = vadd.f32 1e-05, %v6448_v53  ;;  %v15876_v25 = vcombine.high %v7052_v48, %v7060_v51  ;;  %v15878_v41 = vcombine.high %v7053_v18, %v7061_v0  ;;  %v20276_v53 = vld [vmem:[#allocation21 + $0x10] sm:$0xff]  ;;  %v15875_v27 = vcombine.low %v7052_v48, %v7060_v51 }
0x1793   :  { %v6445_v19 = vpop.xlane.xlu1 %6444 }
0x1794   :  { %18737 = vrsqrt.f32 %v6452_v61  ;;  %v6449_v26 = vmul.f32 0.001953125, %v6445_v19  ;;  %9788 = vmatpush1.bf16.msra.mxu0 %v15811_v37  ;;  %9894 = vmatpush1.bf16.msra.mxu1 %v15813_v29  ;;  %v20278_v29 = vld [vmem:[#allocation21 + $0x50] sm:$0xff]  ;;  %v15877_v19 = vcombine.low %v7053_v18, %v7061_v0  ;;  %v20352_v18 = vpack.c.bf16 %v20256_v21, %v20244_v9 }
0x1795   :  { %9789 = vmatprep.subr.bf16.mxu0 %v15828_v28  ;;  %9895 = vmatprep.subr.bf16.mxu1 %v15830_v35  ;;  %v20280_v28 = vld [vmem:[#allocation21 + $0x18] sm:$0xff]  ;;  %v15383_v48 = vcombine.low %v20276_v53, %v20278_v29  ;;  %v6590_v0 = vld [vmem:[#allocation21 + $0x110] sm:$0xff] }
0x1796   :  { %v6453_v30 = vadd.f32 1e-05, %v6449_v26  ;;  %v20282_v35 = vld [vmem:[#allocation21 + $0x58] sm:$0xff]  ;;  %v15384_v26 = vcombine.high %v20276_v53, %v20278_v29 }
0x1797   :  { %v15385_v51 = vcombine.low %v20280_v28, %v20282_v35 }
0x1798   :  { %18739 = vrsqrt.f32 %v6453_v30  ;;  %9790 = vmatpush1.bf16.msra.mxu0 %v15827_v56  ;;  %9896 = vmatpush1.bf16.msra.mxu1 %v15829_v36  ;;  %v15386_v56 = vcombine.high %v20280_v28, %v20282_v35 }
0x1799   :  { %9791 = vmatprep.subr.bf16.mxu0 %v15844_v11  ;;  %9897 = vmatprep.subr.bf16.mxu1 %v15846_v50 }
0x179c   :  { %9792 = vmatpush1.bf16.msra.mxu0 %v15843_v14  ;;  %9898 = vmatpush1.bf16.msra.mxu1 %v15845_v8 }
0x179d   :  { %9793 = vmatprep.subr.bf16.mxu0 %v15860_v16  ;;  %9899 = vmatprep.subr.bf16.mxu1 %v15862_v54  ;;  %v6583_v54 = vld [vmem:[#allocation21 + $0xd8] sm:$0xff] }
0x179e   :  { %v18738_v37 = vpop.eup %18737 }
0x179f   :  { %v6467_v43 = vmul.f32 %v18738_v37, %v20158_v1  ;;  %v6466_v61 = vmul.f32 %v18738_v37, %v20155_v49  ;;  %v6469_v46 = vmul.f32 %v18738_v37, %v20164_v12  ;;  %v6468_v45 = vmul.f32 %v18738_v37, %v20161_v5  ;;  %v6599_v37 = vld [vmem:[#allocation21 + $0x158] sm:$0xff] }
0x17a0   :  { %9794 = vmatpush1.bf16.msra.mxu0 %v15859_v47  ;;  %9900 = vmatpush1.bf16.msra.mxu1 %v15861_v32 }
0x17a1   :  { %9795 = vmatprep.subr.bf16.mxu0 %v15876_v25  ;;  %9901 = vmatprep.subr.bf16.mxu1 %v15878_v41  ;;  %v6506_v1 = vmul.f32 %v20201_v15, %v6469_v46  ;;  %v6505_v49 = vmul.f32 %v20204_v31, %v6468_v45  ;;  %v6504_v5 = vmul.f32 %v20195_v40, %v6467_v43  ;;  %v6598_v25 = vld [vmem:[#allocation21 + $0x150] sm:$0xff]  ;;  %v6591_v41 = vld [vmem:[#allocation21 + $0x118] sm:$0xff] }
0x17a2   :  { %v18740_v36 = vpop.eup %18739  ;;  %v6503_v50 = vmul.f32 %v20198_v62, %v6466_v61  ;;  %v15416_v35 = vcombine.high %v6590_v0, %v6598_v25  ;;  %v15418_v43 = vcombine.high %v6591_v41, %v6599_v37  ;;  %v6606_v61 = vld [vmem:[#allocation21 + $0x190] sm:$0xff]  ;;  %v6607_v45 = vld [vmem:[#allocation21 + $0x198] sm:$0xff] }
0x17a3   :  { %v6471_v12 = vmul.f32 %v18740_v36, %v20176_v13  ;;  %v6470_v11 = vmul.f32 %v18740_v36, %v20173_v22  ;;  %v6473_v23 = vmul.f32 %v18740_v36, %v20184_v39  ;;  %v20300_v30 = vadd.f32 %v20213_v44, %v6506_v1  ;;  %v6614_v46 = vld [vmem:[#allocation21 + $0x1d0] sm:$0xff] }
0x17a4   :  { %9796 = vmatpush1.bf16.msra.mxu0 %v15875_v27  ;;  %9902 = vmatpush1.bf16.msra.mxu1 %v15877_v19  ;;  %v6472_v17 = vmul.f32 %v18740_v36, %v20179_v6  ;;  %v20306_v13 = vadd.f32 %v20216_v42, %v6505_v49  ;;  %v20311_v39 = vadd.f32 %v20207_v38, %v6504_v5  ;;  %v6615_v27 = vld [vmem:[#allocation21 + $0x1d8] sm:$0xff]  ;;  %v6622_v1 = vld [vmem:[#allocation21 + $0x210] sm:$0xff] }
0x17a5   :  { %20870 = vst [vmem:[#allocation41_spill] sm:$0xff] %v20300_v30  ;;  %v6508_v57 = vmul.f32 %v20195_v40, %v6471_v12  ;;  %v6507_v10 = vmul.f32 %v20198_v62, %v6470_v11  ;;  %9924 = vmatprep.subr.bf16.mxu0 %v15384_v26  ;;  %10030 = vmatprep.subr.bf16.mxu1 %v15386_v56  ;;  %v6630_v12 = vld [vmem:[#allocation21 + $0x250] sm:$0xff]  ;;  %v6623_v5 = vld [vmem:[#allocation21 + $0x218] sm:$0xff] }
0x17a6   :  { %20871 = vst [vmem:[#allocation42_spill] sm:$0xff] %v20306_v13  ;;  %v6510_v22 = vmul.f32 %v20201_v15, %v6473_v23  ;;  %v6509_v14 = vmul.f32 %v20204_v31, %v6472_v17  ;;  %v20317_v6 = vadd.f32 %v20210_v4, %v6503_v50  ;;  %v15415_v19 = vcombine.low %v6590_v0, %v6598_v25  ;;  %v6631_v11 = vld [vmem:[#allocation21 + $0x258] sm:$0xff]  ;;  %v6662_v0 = vld [vmem:[#allocation21 + $0x350] sm:$0xff] }
0x17a7   :  { %v20314_v8 = vadd.f32 %v20207_v38, %v6508_v57  ;;  %v20320_v40 = vadd.f32 %v20210_v4, %v6507_v10  ;;  %v20340_v38 = vpack.c.bf16 %v20253_v34, %v20241_v24  ;;  %v6574_v4 = vld [vmem:[#allocation21 + $0x90] sm:$0xff]  ;;  %v15417_v26 = vcombine.low %v6591_v41, %v6599_v37 }
0x17a8   :  { %v20323_v62 = vadd.f32 %v20213_v44, %v6510_v22  ;;  %v20326_v16 = vadd.f32 %v20216_v42, %v6509_v14  ;;  %v6582_v44 = vld [vmem:[#allocation21 + $0xd0] sm:$0xff]  ;;  %v6575_v42 = vld [vmem:[#allocation21 + $0x98] sm:$0xff]  ;;  %v15432_v36 = vcombine.high %v6606_v61, %v6614_v46  ;;  %v15434_v49 = vcombine.high %v6607_v45, %v6615_v27 }
0x17a9   :  { %20872 = vst [vmem:[#allocation43_spill] sm:$0xff] %v20314_v8  ;;  %20873 = vst [vmem:[#allocation44_spill] sm:$0xff] %v20320_v40  ;;  %v20330_v15 = vpack.c.bf16 %v20314_v8, %v20311_v39  ;;  %v20334_v31 = vpack.c.bf16 %v20320_v40, %v20317_v6  ;;  %v15400_v47 = vcombine.high %v6574_v4, %v6582_v44  ;;  %v6638_v10 = vld [vmem:[#allocation21 + $0x290] sm:$0xff]  ;;  %v6639_v14 = vld [vmem:[#allocation21 + $0x298] sm:$0xff] }
0x17aa   :  { %20874 = vst [vmem:[#allocation45_spill] sm:$0xff] %v20323_v62  ;;  %20875 = vst [vmem:[#allocation46_spill] sm:$0xff] %v20326_v16  ;;  %v15402_v32 = vcombine.high %v6575_v42, %v6583_v54  ;;  %v20358_v53 = vpack.c.bf16 %v20323_v62, %v20300_v30  ;;  %v15399_v29 = vcombine.low %v6574_v4, %v6582_v44  ;;  %v6646_v22 = vld [vmem:[#allocation21 + $0x2d0] sm:$0xff]  ;;  %v6647_v4 = vld [vmem:[#allocation21 + $0x2d8] sm:$0xff] }
0x17ab   :  { %9754 = vmatprep.mubr.bf16.mxu0 %v20330_v15  ;;  %9860 = vmatprep.mubr.bf16.mxu1 %v20330_v15  ;;  %v15401_v28 = vcombine.low %v6575_v42, %v6583_v54  ;;  %v20364_v56 = vpack.c.bf16 %v20326_v16, %v20306_v13  ;;  %v15431_v50 = vcombine.low %v6606_v61, %v6614_v46  ;;  %v6679_v61 = vld [vmem:[#allocation21 + $0x3d8] sm:$0xff]  ;;  %v6945_v16 = vld [vmem:[#allocation21 + $0xc28] sm:$0xff] }
0x17ac   :  { %9755 = vmatmul.mubr.bf16.gmra.mrb[100].mxu0 %v20334_v31  ;;  %9861 = vmatmul.mubr.bf16.gmra.mrb[100].mxu1 %v20334_v31  ;;  %v15433_v23 = vcombine.low %v6607_v45, %v6615_v27  ;;  %v15448_v17 = vcombine.high %v6622_v1, %v6630_v12  ;;  %v15450_v57 = vcombine.high %v6623_v5, %v6631_v11  ;;  %v6953_v30 = vld [vmem:[#allocation21 + $0xc68] sm:$0xff] }
0x17ad   :  { %9797 = vmatprep.mubr.bf16.mxu0 %v20340_v38  ;;  %9903 = vmatprep.mubr.bf16.mxu1 %v20340_v38  ;;  %v15447_v44 = vcombine.low %v6622_v1, %v6630_v12  ;;  %v15449_v42 = vcombine.low %v6623_v5, %v6631_v11  ;;  %v15464_v54 = vcombine.high %v6638_v10, %v6646_v22  ;;  %v6694_v1 = vld [vmem:[#allocation21 + $0x450] sm:$0xff] }
0x17ae   :  { %v15463_v25 = vcombine.low %v6638_v10, %v6646_v22  ;;  %v15465_v41 = vcombine.low %v6639_v14, %v6647_v4  ;;  %v6711_v10 = vld [vmem:[#allocation21 + $0x4d8] sm:$0xff] }
0x17b4   :  { %9798 = vmatmul.mubr.bf16.vlgmr.msra.gmra.mrb[96].mxu0 %v20352_v18  ;;  %9904 = vmatmul.mubr.bf16.vlgmr.msra.gmra.mrb[96].mxu1 %v20352_v18 }
0x17b5   :  { %9925 = vmatpush1.bf16.msra.mxu0 %v15383_v48  ;;  %10031 = vmatpush1.bf16.msra.mxu1 %v15385_v51  ;;  %v15466_v48 = vcombine.high %v6639_v14, %v6647_v4  ;;  %v6654_v51 = vld [vmem:[#allocation21 + $0x310] sm:$0xff] }
0x17b6   :  { %9807 = vmatprep.mubr.bf16.mxu0 %v20358_v53  ;;  %9913 = vmatprep.mubr.bf16.mxu1 %v20358_v53  ;;  %v15480_v37 = vcombine.high %v6654_v51, %v6662_v0  ;;  %v15479_v46 = vcombine.low %v6654_v51, %v6662_v0  ;;  %v6727_v51 = vld [vmem:[#allocation21 + $0x558] sm:$0xff] }
0x17b7   :  { %9926 = vmatprep.subr.bf16.mxu0 %v15400_v47  ;;  %10032 = vmatprep.subr.bf16.mxu1 %v15402_v32  ;;  %v6655_v47 = vld [vmem:[#allocation21 + $0x318] sm:$0xff] }
0x17b8   :  { %v6663_v32 = vld [vmem:[#allocation21 + $0x358] sm:$0xff] }
0x17b9   :  { %9927 = vmatpush1.bf16.msra.mxu0 %v15399_v29  ;;  %10033 = vmatpush1.bf16.msra.mxu1 %v15401_v28  ;;  %v15482_v29 = vcombine.high %v6655_v47, %v6663_v32  ;;  %v6670_v28 = vld [vmem:[#allocation21 + $0x390] sm:$0xff]  ;;  %v15481_v45 = vcombine.low %v6655_v47, %v6663_v32 }
0x17ba   :  { %9928 = vmatprep.subr.bf16.mxu0 %v15416_v35  ;;  %10034 = vmatprep.subr.bf16.mxu1 %v15418_v43  ;;  %v6678_v35 = vld [vmem:[#allocation21 + $0x3d0] sm:$0xff]  ;;  %v6671_v43 = vld [vmem:[#allocation21 + $0x398] sm:$0xff] }
0x17bb   :  { %v15496_v27 = vcombine.high %v6670_v28, %v6678_v35  ;;  %v15495_v12 = vcombine.low %v6670_v28, %v6678_v35  ;;  %v15497_v5 = vcombine.low %v6671_v43, %v6679_v61  ;;  %v6743_v28 = vld [vmem:[#allocation21 + $0x5d8] sm:$0xff] }
0x17bc   :  { %9808 = vmatmul.mubr.bf16.gmra.mrb[100].mxu0 %v20364_v56  ;;  %9914 = vmatmul.mubr.bf16.gmra.mrb[100].mxu1 %v20364_v56 }
0x17bd   :  { %9929 = vmatpush1.bf16.msra.mxu0 %v15415_v19  ;;  %10035 = vmatpush1.bf16.msra.mxu1 %v15417_v26  ;;  %v15498_v19 = vcombine.high %v6671_v43, %v6679_v61  ;;  %v6686_v26 = vld [vmem:[#allocation21 + $0x410] sm:$0xff] }
0x17be   :  { %9956 = vmatprep.mubr.bf16.mxu0 %v20260_v63  ;;  %10062 = vmatprep.mubr.bf16.mxu1 %v20260_v63  ;;  %v15512_v11 = vcombine.high %v6686_v26, %v6694_v1  ;;  %v15511_v22 = vcombine.low %v6686_v26, %v6694_v1  ;;  %v6759_v26 = vld [vmem:[#allocation21 + $0x658] sm:$0xff] }
0x17bf   :  { %9930 = vmatprep.subr.bf16.mxu0 %v15432_v36  ;;  %10036 = vmatprep.subr.bf16.mxu1 %v15434_v49  ;;  %v6687_v36 = vld [vmem:[#allocation21 + $0x418] sm:$0xff] }
0x17c0   :  { %v6695_v49 = vld [vmem:[#allocation21 + $0x458] sm:$0xff] }
0x17c1   :  { %9931 = vmatpush1.bf16.msra.mxu0 %v15431_v50  ;;  %10037 = vmatpush1.bf16.msra.mxu1 %v15433_v23  ;;  %v15514_v50 = vcombine.high %v6687_v36, %v6695_v49  ;;  %v6702_v23 = vld [vmem:[#allocation21 + $0x490] sm:$0xff]  ;;  %v15513_v14 = vcombine.low %v6687_v36, %v6695_v49 }
0x17c2   :  { %9932 = vmatprep.subr.bf16.mxu0 %v15448_v17  ;;  %10038 = vmatprep.subr.bf16.mxu1 %v15450_v57  ;;  %v6710_v17 = vld [vmem:[#allocation21 + $0x4d0] sm:$0xff]  ;;  %v6703_v57 = vld [vmem:[#allocation21 + $0x498] sm:$0xff] }
0x17c3   :  { %v15528_v4 = vcombine.high %v6702_v23, %v6710_v17  ;;  %v15527_v0 = vcombine.low %v6702_v23, %v6710_v17  ;;  %v15529_v47 = vcombine.low %v6703_v57, %v6711_v10  ;;  %v6775_v23 = vld [vmem:[#allocation21 + $0x6d8] sm:$0xff] }
0x17c5   :  { %9933 = vmatpush1.bf16.msra.mxu0 %v15447_v44  ;;  %10039 = vmatpush1.bf16.msra.mxu1 %v15449_v42  ;;  %v15530_v44 = vcombine.high %v6703_v57, %v6711_v10  ;;  %v6718_v42 = vld [vmem:[#allocation21 + $0x510] sm:$0xff] }
0x17c6   :  { %9934 = vmatprep.subr.bf16.mxu0 %v15464_v54  ;;  %10040 = vmatprep.subr.bf16.mxu1 %v15466_v48  ;;  %v6726_v54 = vld [vmem:[#allocation21 + $0x550] sm:$0xff]  ;;  %v6719_v48 = vld [vmem:[#allocation21 + $0x518] sm:$0xff] }
0x17c7   :  { %v15544_v32 = vcombine.high %v6718_v42, %v6726_v54  ;;  %v15543_v35 = vcombine.low %v6718_v42, %v6726_v54  ;;  %v15545_v43 = vcombine.low %v6719_v48, %v6727_v51  ;;  %v6791_v42 = vld [vmem:[#allocation21 + $0x758] sm:$0xff] }
0x17c9   :  { %9935 = vmatpush1.bf16.msra.mxu0 %v15463_v25  ;;  %10041 = vmatpush1.bf16.msra.mxu1 %v15465_v41  ;;  %v15546_v25 = vcombine.high %v6719_v48, %v6727_v51  ;;  %v6734_v41 = vld [vmem:[#allocation21 + $0x590] sm:$0xff] }
0x17ca   :  { %9936 = vmatprep.subr.bf16.mxu0 %v15480_v37  ;;  %10042 = vmatprep.subr.bf16.mxu1 %v15482_v29  ;;  %v6742_v37 = vld [vmem:[#allocation21 + $0x5d0] sm:$0xff]  ;;  %v6735_v29 = vld [vmem:[#allocation21 + $0x598] sm:$0xff] }
0x17cb   :  { %v15560_v61 = vcombine.high %v6734_v41, %v6742_v37  ;;  %v15559_v1 = vcombine.low %v6734_v41, %v6742_v37  ;;  %v15561_v36 = vcombine.low %v6735_v29, %v6743_v28  ;;  %v6807_v41 = vld [vmem:[#allocation21 + $0x7d8] sm:$0xff] }
0x17cd   :  { %9937 = vmatpush1.bf16.msra.mxu0 %v15479_v46  ;;  %10043 = vmatpush1.bf16.msra.mxu1 %v15481_v45  ;;  %v15562_v46 = vcombine.high %v6735_v29, %v6743_v28  ;;  %v6750_v45 = vld [vmem:[#allocation21 + $0x610] sm:$0xff] }
0x17ce   :  { %9938 = vmatprep.subr.bf16.mxu0 %v15496_v27  ;;  %10044 = vmatprep.subr.bf16.mxu1 %v15498_v19  ;;  %v6758_v27 = vld [vmem:[#allocation21 + $0x650] sm:$0xff]  ;;  %v6751_v19 = vld [vmem:[#allocation21 + $0x618] sm:$0xff] }
0x17cf   :  { %v15576_v49 = vcombine.high %v6750_v45, %v6758_v27  ;;  %v15575_v17 = vcombine.low %v6750_v45, %v6758_v27  ;;  %v15577_v57 = vcombine.low %v6751_v19, %v6759_v26  ;;  %v6823_v45 = vld [vmem:[#allocation21 + $0x858] sm:$0xff] }
0x17d1   :  { %9939 = vmatpush1.bf16.msra.mxu0 %v15495_v12  ;;  %10045 = vmatpush1.bf16.msra.mxu1 %v15497_v5  ;;  %v15578_v12 = vcombine.high %v6751_v19, %v6759_v26  ;;  %v6766_v5 = vld [vmem:[#allocation21 + $0x690] sm:$0xff] }
0x17d2   :  { %9940 = vmatprep.subr.bf16.mxu0 %v15512_v11  ;;  %10046 = vmatprep.subr.bf16.mxu1 %v15514_v50  ;;  %v6774_v11 = vld [vmem:[#allocation21 + $0x6d0] sm:$0xff]  ;;  %v6767_v50 = vld [vmem:[#allocation21 + $0x698] sm:$0xff] }
0x17d3   :  { %v15592_v10 = vcombine.high %v6766_v5, %v6774_v11  ;;  %v15591_v54 = vcombine.low %v6766_v5, %v6774_v11  ;;  %v15593_v48 = vcombine.low %v6767_v50, %v6775_v23  ;;  %v6839_v5 = vld [vmem:[#allocation21 + $0x8d8] sm:$0xff] }
0x17d5   :  { %9941 = vmatpush1.bf16.msra.mxu0 %v15511_v22  ;;  %10047 = vmatpush1.bf16.msra.mxu1 %v15513_v14  ;;  %v15594_v22 = vcombine.high %v6767_v50, %v6775_v23  ;;  %v6782_v14 = vld [vmem:[#allocation21 + $0x710] sm:$0xff] }
0x17d6   :  { %9942 = vmatprep.subr.bf16.mxu0 %v15528_v4  ;;  %10048 = vmatprep.subr.bf16.mxu1 %v15530_v44  ;;  %v6790_v4 = vld [vmem:[#allocation21 + $0x750] sm:$0xff]  ;;  %v6783_v44 = vld [vmem:[#allocation21 + $0x718] sm:$0xff] }
0x17d7   :  { %v15608_v51 = vcombine.high %v6782_v14, %v6790_v4  ;;  %v15607_v37 = vcombine.low %v6782_v14, %v6790_v4  ;;  %v15609_v29 = vcombine.low %v6783_v44, %v6791_v42  ;;  %v6855_v14 = vld [vmem:[#allocation21 + $0x958] sm:$0xff] }
0x17d9   :  { %9943 = vmatpush1.bf16.msra.mxu0 %v15527_v0  ;;  %10049 = vmatpush1.bf16.msra.mxu1 %v15529_v47  ;;  %v15610_v0 = vcombine.high %v6783_v44, %v6791_v42  ;;  %v6798_v47 = vld [vmem:[#allocation21 + $0x790] sm:$0xff] }
0x17da   :  { %9944 = vmatprep.subr.bf16.mxu0 %v15544_v32  ;;  %10050 = vmatprep.subr.bf16.mxu1 %v15546_v25  ;;  %v6806_v32 = vld [vmem:[#allocation21 + $0x7d0] sm:$0xff]  ;;  %v6799_v25 = vld [vmem:[#allocation21 + $0x798] sm:$0xff] }
0x17db   :  { %v15624_v28 = vcombine.high %v6798_v47, %v6806_v32  ;;  %v15623_v27 = vcombine.low %v6798_v47, %v6806_v32  ;;  %v15625_v19 = vcombine.low %v6799_v25, %v6807_v41  ;;  %v6871_v47 = vld [vmem:[#allocation21 + $0x9d8] sm:$0xff] }
0x17dd   :  { %9945 = vmatpush1.bf16.msra.mxu0 %v15543_v35  ;;  %10051 = vmatpush1.bf16.msra.mxu1 %v15545_v43  ;;  %v15626_v35 = vcombine.high %v6799_v25, %v6807_v41  ;;  %v6814_v43 = vld [vmem:[#allocation21 + $0x810] sm:$0xff] }
0x17de   :  { %9946 = vmatprep.subr.bf16.mxu0 %v15560_v61  ;;  %10052 = vmatprep.subr.bf16.mxu1 %v15562_v46  ;;  %v6822_v61 = vld [vmem:[#allocation21 + $0x850] sm:$0xff]  ;;  %v6815_v46 = vld [vmem:[#allocation21 + $0x818] sm:$0xff] }
0x17df   :  { %v15640_v26 = vcombine.high %v6814_v43, %v6822_v61  ;;  %v15639_v11 = vcombine.low %v6814_v43, %v6822_v61  ;;  %v15641_v50 = vcombine.low %v6815_v46, %v6823_v45  ;;  %v6887_v43 = vld [vmem:[#allocation21 + $0xa58] sm:$0xff] }
0x17e1   :  { %9947 = vmatpush1.bf16.msra.mxu0 %v15559_v1  ;;  %10053 = vmatpush1.bf16.msra.mxu1 %v15561_v36  ;;  %v15642_v1 = vcombine.high %v6815_v46, %v6823_v45  ;;  %v6830_v36 = vld [vmem:[#allocation21 + $0x890] sm:$0xff] }
0x17e2   :  { %9948 = vmatprep.subr.bf16.mxu0 %v15576_v49  ;;  %10054 = vmatprep.subr.bf16.mxu1 %v15578_v12  ;;  %v6838_v49 = vld [vmem:[#allocation21 + $0x8d0] sm:$0xff]  ;;  %v6831_v12 = vld [vmem:[#allocation21 + $0x898] sm:$0xff] }
0x17e3   :  { %v15656_v23 = vcombine.high %v6830_v36, %v6838_v49  ;;  %v15655_v4 = vcombine.low %v6830_v36, %v6838_v49  ;;  %v15657_v44 = vcombine.low %v6831_v12, %v6839_v5  ;;  %v6903_v36 = vld [vmem:[#allocation21 + $0xad8] sm:$0xff] }
0x17e5   :  { %9949 = vmatpush1.bf16.msra.mxu0 %v15575_v17  ;;  %10055 = vmatpush1.bf16.msra.mxu1 %v15577_v57  ;;  %v15658_v17 = vcombine.high %v6831_v12, %v6839_v5  ;;  %v6846_v57 = vld [vmem:[#allocation21 + $0x910] sm:$0xff] }
0x17e6   :  { %9950 = vmatprep.subr.bf16.mxu0 %v15592_v10  ;;  %10056 = vmatprep.subr.bf16.mxu1 %v15594_v22  ;;  %v6854_v10 = vld [vmem:[#allocation21 + $0x950] sm:$0xff]  ;;  %v6847_v22 = vld [vmem:[#allocation21 + $0x918] sm:$0xff] }
0x17e7   :  { %v15672_v42 = vcombine.high %v6846_v57, %v6854_v10  ;;  %v15671_v32 = vcombine.low %v6846_v57, %v6854_v10  ;;  %v15673_v25 = vcombine.low %v6847_v22, %v6855_v14  ;;  %v6919_v57 = vld [vmem:[#allocation21 + $0xb58] sm:$0xff] }
0x17e9   :  { %9951 = vmatpush1.bf16.msra.mxu0 %v15591_v54  ;;  %10057 = vmatpush1.bf16.msra.mxu1 %v15593_v48  ;;  %v15674_v54 = vcombine.high %v6847_v22, %v6855_v14  ;;  %v6862_v48 = vld [vmem:[#allocation21 + $0x990] sm:$0xff] }
0x17ea   :  { %9952 = vmatprep.subr.bf16.mxu0 %v15608_v51  ;;  %10058 = vmatprep.subr.bf16.mxu1 %v15610_v0  ;;  %v6870_v51 = vld [vmem:[#allocation21 + $0x9d0] sm:$0xff]  ;;  %v6863_v0 = vld [vmem:[#allocation21 + $0x998] sm:$0xff] }
0x17eb   :  { %v15688_v41 = vcombine.high %v6862_v48, %v6870_v51  ;;  %v15687_v61 = vcombine.low %v6862_v48, %v6870_v51  ;;  %v15689_v46 = vcombine.low %v6863_v0, %v6871_v47  ;;  %v6935_v48 = vld [vmem:[#allocation21 + $0xbd8] sm:$0xff] }
0x17ed   :  { %9953 = vmatpush1.bf16.msra.mxu0 %v15607_v37  ;;  %10059 = vmatpush1.bf16.msra.mxu1 %v15609_v29  ;;  %v15690_v37 = vcombine.high %v6863_v0, %v6871_v47  ;;  %v6878_v29 = vld [vmem:[#allocation21 + $0xa10] sm:$0xff] }
0x17ee   :  { %9954 = vmatprep.subr.bf16.mxu0 %v15624_v28  ;;  %10060 = vmatprep.subr.bf16.mxu1 %v15626_v35  ;;  %v6886_v28 = vld [vmem:[#allocation21 + $0xa50] sm:$0xff]  ;;  %v6879_v35 = vld [vmem:[#allocation21 + $0xa18] sm:$0xff] }
0x17ef   :  { %v15704_v45 = vcombine.high %v6878_v29, %v6886_v28  ;;  %v15703_v49 = vcombine.low %v6878_v29, %v6886_v28  ;;  %v15705_v12 = vcombine.low %v6879_v35, %v6887_v43  ;;  %v6951_v29 = vld [vmem:[#allocation21 + $0xc58] sm:$0xff] }
0x17f1   :  { %9955 = vmatpush1.bf16.msra.mxu0 %v15623_v27  ;;  %10061 = vmatpush1.bf16.msra.mxu1 %v15625_v19  ;;  %v15706_v27 = vcombine.high %v6879_v35, %v6887_v43  ;;  %v6894_v19 = vld [vmem:[#allocation21 + $0xa90] sm:$0xff] }
0x17f2   :  { %9977 = vmatprep.subr.bf16.mxu0 %v15640_v26  ;;  %10083 = vmatprep.subr.bf16.mxu1 %v15642_v1  ;;  %v6902_v26 = vld [vmem:[#allocation21 + $0xad0] sm:$0xff]  ;;  %v6895_v1 = vld [vmem:[#allocation21 + $0xa98] sm:$0xff] }
0x17f3   :  { %v15720_v5 = vcombine.high %v6894_v19, %v6902_v26  ;;  %v15719_v10 = vcombine.low %v6894_v19, %v6902_v26  ;;  %v15721_v22 = vcombine.low %v6895_v1, %v6903_v36  ;;  %v6967_v19 = vld [vmem:[#allocation21 + $0xcd8] sm:$0xff] }
0x17f4   :  { %9957 = vmatmul.mubr.bf16.vlgmr.msra.gmra.mrb[104].mxu0 %v20264_v59  ;;  %10063 = vmatmul.mubr.bf16.vlgmr.msra.gmra.mrb[104].mxu1 %v20264_v59 }
0x17f5   :  { %9966 = vmatprep.mubr.bf16.mxu0 %v20330_v15  ;;  %9978 = vmatpush1.bf16.msra.mxu0 %v15639_v11  ;;  %v15722_v11 = vcombine.high %v6895_v1, %v6903_v36 }
0x17f6   :  { %10072 = vmatprep.mubr.bf16.mxu1 %v20330_v15  ;;  %10084 = vmatpush1.bf16.msra.mxu1 %v15641_v50  ;;  %v6910_v50 = vld [vmem:[#allocation21 + $0xb10] sm:$0xff] }
0x17f7   :  { %9979 = vmatprep.subr.bf16.mxu0 %v15656_v23  ;;  %10085 = vmatprep.subr.bf16.mxu1 %v15658_v17  ;;  %v6918_v23 = vld [vmem:[#allocation21 + $0xb50] sm:$0xff]  ;;  %v6911_v17 = vld [vmem:[#allocation21 + $0xb18] sm:$0xff] }
0x17f8   :  { %v15736_v14 = vcombine.high %v6910_v50, %v6918_v23  ;;  %v15735_v51 = vcombine.low %v6910_v50, %v6918_v23  ;;  %v15737_v0 = vcombine.low %v6911_v17, %v6919_v57  ;;  %v6983_v50 = vld [vmem:[#allocation21 + $0xd58] sm:$0xff] }
0x17f9   :  { %9980 = vmatpush1.bf16.msra.mxu0 %v15655_v4  ;;  %v15738_v4 = vcombine.high %v6911_v17, %v6919_v57 }
0x17fa   :  { %10086 = vmatpush1.bf16.msra.mxu1 %v15657_v44  ;;  %9981 = vmatprep.subr.bf16.mxu0 %v15672_v42  ;;  %v6926_v44 = vld [vmem:[#allocation21 + $0xb90] sm:$0xff] }
0x17fb   :  { %10087 = vmatprep.subr.bf16.mxu1 %v15674_v54  ;;  %v6934_v42 = vld [vmem:[#allocation21 + $0xbd0] sm:$0xff]  ;;  %v6927_v54 = vld [vmem:[#allocation21 + $0xb98] sm:$0xff] }
0x17fc   :  { %9967 = vmatmul.mubr.bf16.gmra.mrb[108].mxu0 %v20334_v31  ;;  %10073 = vmatmul.mubr.bf16.gmra.mrb[108].mxu1 %v20334_v31  ;;  %v15752_v47 = vcombine.high %v6926_v44, %v6934_v42  ;;  %v15751_v28 = vcombine.low %v6926_v44, %v6934_v42  ;;  %v15753_v35 = vcombine.low %v6927_v54, %v6935_v48  ;;  %v6999_v44 = vld [vmem:[#allocation21 + $0xdd8] sm:$0xff] }
0x17fd   :  { %9982 = vmatpush1.bf16.msra.mxu0 %v15671_v32  ;;  %10009 = vmatprep.mubr.bf16.mxu0 %v20340_v38  ;;  %v15754_v32 = vcombine.high %v6927_v54, %v6935_v48 }
0x17fe   :  { %10088 = vmatpush1.bf16.msra.mxu1 %v15673_v25  ;;  %10115 = vmatprep.mubr.bf16.mxu1 %v20340_v38  ;;  %v6942_v25 = vld [vmem:[#allocation21 + $0xc10] sm:$0xff] }
0x17ff   :  { %9983 = vmatprep.subr.bf16.mxu0 %v15688_v41  ;;  %10089 = vmatprep.subr.bf16.mxu1 %v15690_v37  ;;  %v6950_v41 = vld [vmem:[#allocation21 + $0xc50] sm:$0xff]  ;;  %v6943_v37 = vld [vmem:[#allocation21 + $0xc18] sm:$0xff] }
0x1800   :  { %v15768_v43 = vcombine.high %v6942_v25, %v6950_v41  ;;  %v15767_v26 = vcombine.low %v6942_v25, %v6950_v41  ;;  %v15769_v1 = vcombine.low %v6943_v37, %v6951_v29  ;;  %v7015_v25 = vld [vmem:[#allocation21 + $0xe58] sm:$0xff] }
0x1801   :  { %9984 = vmatpush1.bf16.msra.mxu0 %v15687_v61  ;;  %v15770_v61 = vcombine.high %v6943_v37, %v6951_v29 }
0x1802   :  { %10090 = vmatpush1.bf16.msra.mxu1 %v15689_v46  ;;  %9985 = vmatprep.subr.bf16.mxu0 %v15704_v45  ;;  %v6958_v46 = vld [vmem:[#allocation21 + $0xc90] sm:$0xff] }
0x1803   :  { %10091 = vmatprep.subr.bf16.mxu1 %v15706_v27  ;;  %v6966_v45 = vld [vmem:[#allocation21 + $0xcd0] sm:$0xff]  ;;  %v6959_v27 = vld [vmem:[#allocation21 + $0xc98] sm:$0xff] }
0x1804   :  { %v15784_v36 = vcombine.high %v6958_v46, %v6966_v45  ;;  %v15783_v23 = vcombine.low %v6958_v46, %v6966_v45  ;;  %v15785_v17 = vcombine.low %v6959_v27, %v6967_v19  ;;  %v7031_v46 = vld [vmem:[#allocation21 + $0xed8] sm:$0xff] }
0x1805   :  { %9986 = vmatpush1.bf16.msra.mxu0 %v15703_v49  ;;  %v15786_v49 = vcombine.high %v6959_v27, %v6967_v19 }
0x1806   :  { %10092 = vmatpush1.bf16.msra.mxu1 %v15705_v12  ;;  %9987 = vmatprep.subr.bf16.mxu0 %v15720_v5  ;;  %v6974_v12 = vld [vmem:[#allocation21 + $0xd10] sm:$0xff] }
0x1807   :  { %10093 = vmatprep.subr.bf16.mxu1 %v15722_v11  ;;  %v6982_v5 = vld [vmem:[#allocation21 + $0xd50] sm:$0xff]  ;;  %v6975_v11 = vld [vmem:[#allocation21 + $0xd18] sm:$0xff] }
0x1808   :  { %v15800_v57 = vcombine.high %v6974_v12, %v6982_v5  ;;  %v15799_v42 = vcombine.low %v6974_v12, %v6982_v5  ;;  %v15801_v54 = vcombine.low %v6975_v11, %v6983_v50  ;;  %v7047_v12 = vld [vmem:[#allocation21 + $0xf58] sm:$0xff] }
0x1809   :  { %9988 = vmatpush1.bf16.msra.mxu0 %v15719_v10  ;;  %v15802_v10 = vcombine.high %v6975_v11, %v6983_v50 }
0x180a   :  { %10094 = vmatpush1.bf16.msra.mxu1 %v15721_v22  ;;  %9989 = vmatprep.subr.bf16.mxu0 %v15736_v14  ;;  %v6990_v22 = vld [vmem:[#allocation21 + $0xd90] sm:$0xff] }
0x180b   :  { %10095 = vmatprep.subr.bf16.mxu1 %v15738_v4  ;;  %v6998_v14 = vld [vmem:[#allocation21 + $0xdd0] sm:$0xff]  ;;  %v6991_v4 = vld [vmem:[#allocation21 + $0xd98] sm:$0xff] }
0x180c   :  { %v15816_v48 = vcombine.high %v6990_v22, %v6998_v14  ;;  %v15815_v41 = vcombine.low %v6990_v22, %v6998_v14  ;;  %v15817_v37 = vcombine.low %v6991_v4, %v6999_v44  ;;  %v7063_v22 = vld [vmem:[#allocation21 + $0xfd8] sm:$0xff] }
0x180d   :  { %9990 = vmatpush1.bf16.msra.mxu0 %v15735_v51  ;;  %v15818_v51 = vcombine.high %v6991_v4, %v6999_v44 }
0x180e   :  { %10096 = vmatpush1.bf16.msra.mxu1 %v15737_v0  ;;  %9991 = vmatprep.subr.bf16.mxu0 %v15752_v47  ;;  %v7006_v0 = vld [vmem:[#allocation21 + $0xe10] sm:$0xff] }
0x180f   :  { %10097 = vmatprep.subr.bf16.mxu1 %v15754_v32  ;;  %v7014_v47 = vld [vmem:[#allocation21 + $0xe50] sm:$0xff]  ;;  %v7007_v32 = vld [vmem:[#allocation21 + $0xe18] sm:$0xff] }
0x1810   :  { %v15832_v29 = vcombine.high %v7006_v0, %v7014_v47  ;;  %v15831_v45 = vcombine.low %v7006_v0, %v7014_v47  ;;  %v15833_v27 = vcombine.low %v7007_v32, %v7015_v25  ;;  %v6569_v0 = vld [vmem:[#allocation21 + $0x68] sm:$0xff] }
0x1811   :  { %9992 = vmatpush1.bf16.msra.mxu0 %v15751_v28  ;;  %v15834_v28 = vcombine.high %v7007_v32, %v7015_v25 }
0x1812   :  { %10098 = vmatpush1.bf16.msra.mxu1 %v15753_v35  ;;  %9993 = vmatprep.subr.bf16.mxu0 %v15768_v43  ;;  %v7022_v35 = vld [vmem:[#allocation21 + $0xe90] sm:$0xff] }
0x1813   :  { %10099 = vmatprep.subr.bf16.mxu1 %v15770_v61  ;;  %v7030_v43 = vld [vmem:[#allocation21 + $0xed0] sm:$0xff]  ;;  %v7023_v61 = vld [vmem:[#allocation21 + $0xe98] sm:$0xff] }
0x1814   :  { %v15848_v19 = vcombine.high %v7022_v35, %v7030_v43  ;;  %v15847_v5 = vcombine.low %v7022_v35, %v7030_v43  ;;  %v15849_v11 = vcombine.low %v7023_v61, %v7031_v46  ;;  %v6585_v35 = vld [vmem:[#allocation21 + $0xe8] sm:$0xff] }
0x1815   :  { %9994 = vmatpush1.bf16.msra.mxu0 %v15767_v26  ;;  %v15850_v26 = vcombine.high %v7023_v61, %v7031_v46 }
0x1816   :  { %10100 = vmatpush1.bf16.msra.mxu1 %v15769_v1  ;;  %9995 = vmatprep.subr.bf16.mxu0 %v15784_v36  ;;  %v7038_v1 = vld [vmem:[#allocation21 + $0xf10] sm:$0xff] }
0x1817   :  { %10101 = vmatprep.subr.bf16.mxu1 %v15786_v49  ;;  %v7046_v36 = vld [vmem:[#allocation21 + $0xf50] sm:$0xff]  ;;  %v7039_v49 = vld [vmem:[#allocation21 + $0xf18] sm:$0xff] }
0x1818   :  { %v15864_v50 = vcombine.high %v7038_v1, %v7046_v36  ;;  %v15863_v14 = vcombine.low %v7038_v1, %v7046_v36  ;;  %v15865_v4 = vcombine.low %v7039_v49, %v7047_v12  ;;  %v6601_v1 = vld [vmem:[#allocation21 + $0x168] sm:$0xff] }
0x1819   :  { %9996 = vmatpush1.bf16.msra.mxu0 %v15783_v23  ;;  %v15866_v23 = vcombine.high %v7039_v49, %v7047_v12 }
0x181a   :  { %10102 = vmatpush1.bf16.msra.mxu1 %v15785_v17  ;;  %9997 = vmatprep.subr.bf16.mxu0 %v15800_v57  ;;  %v7054_v17 = vld [vmem:[#allocation21 + $0xf90] sm:$0xff] }
0x181b   :  { %10103 = vmatprep.subr.bf16.mxu1 %v15802_v10  ;;  %v7062_v57 = vld [vmem:[#allocation21 + $0xfd0] sm:$0xff]  ;;  %v7055_v10 = vld [vmem:[#allocation21 + $0xf98] sm:$0xff] }
0x181c   :  { %v15880_v44 = vcombine.high %v7054_v17, %v7062_v57  ;;  %v15879_v47 = vcombine.low %v7054_v17, %v7062_v57  ;;  %v15881_v32 = vcombine.low %v7055_v10, %v7063_v22  ;;  %v6617_v17 = vld [vmem:[#allocation21 + $0x1e8] sm:$0xff] }
0x181d   :  { %9998 = vmatpush1.bf16.msra.mxu0 %v15799_v42  ;;  %v15882_v42 = vcombine.high %v7055_v10, %v7063_v22 }
0x181e   :  { %10104 = vmatpush1.bf16.msra.mxu1 %v15801_v54  ;;  %9999 = vmatprep.subr.bf16.mxu0 %v15816_v48  ;;  %v6560_v54 = vld [vmem:[#allocation21 + $0x20] sm:$0xff] }
0x181f   :  { %10105 = vmatprep.subr.bf16.mxu1 %v15818_v51  ;;  %v6568_v48 = vld [vmem:[#allocation21 + $0x60] sm:$0xff]  ;;  %v6561_v51 = vld [vmem:[#allocation21 + $0x28] sm:$0xff] }
0x1820   :  { %v15388_v25 = vcombine.high %v6560_v54, %v6568_v48  ;;  %v15387_v43 = vcombine.low %v6560_v54, %v6568_v48  ;;  %v15389_v61 = vcombine.low %v6561_v51, %v6569_v0  ;;  %v6633_v54 = vld [vmem:[#allocation21 + $0x268] sm:$0xff] }
0x1821   :  { %10000 = vmatpush1.bf16.msra.mxu0 %v15815_v41  ;;  %v15390_v41 = vcombine.high %v6561_v51, %v6569_v0 }
0x1822   :  { %10106 = vmatpush1.bf16.msra.mxu1 %v15817_v37  ;;  %10001 = vmatprep.subr.bf16.mxu0 %v15832_v29  ;;  %v6576_v37 = vld [vmem:[#allocation21 + $0xa0] sm:$0xff] }
0x1823   :  { %10107 = vmatprep.subr.bf16.mxu1 %v15834_v28  ;;  %v6584_v29 = vld [vmem:[#allocation21 + $0xe0] sm:$0xff]  ;;  %v6577_v28 = vld [vmem:[#allocation21 + $0xa8] sm:$0xff] }
0x1824   :  { %v15404_v46 = vcombine.high %v6576_v37, %v6584_v29  ;;  %v15403_v36 = vcombine.low %v6576_v37, %v6584_v29  ;;  %v15405_v49 = vcombine.low %v6577_v28, %v6585_v35  ;;  %v6649_v37 = vld [vmem:[#allocation21 + $0x2e8] sm:$0xff] }
0x1825   :  { %10002 = vmatpush1.bf16.msra.mxu0 %v15831_v45  ;;  %v15406_v45 = vcombine.high %v6577_v28, %v6585_v35 }
0x1826   :  { %10108 = vmatpush1.bf16.msra.mxu1 %v15833_v27  ;;  %10003 = vmatprep.subr.bf16.mxu0 %v15848_v19  ;;  %v6592_v27 = vld [vmem:[#allocation21 + $0x120] sm:$0xff] }
0x1827   :  { %10109 = vmatprep.subr.bf16.mxu1 %v15850_v26  ;;  %v6600_v19 = vld [vmem:[#allocation21 + $0x160] sm:$0xff]  ;;  %v6593_v26 = vld [vmem:[#allocation21 + $0x128] sm:$0xff] }
0x1828   :  { %v15420_v12 = vcombine.high %v6592_v27, %v6600_v19  ;;  %v15419_v57 = vcombine.low %v6592_v27, %v6600_v19  ;;  %v15421_v10 = vcombine.low %v6593_v26, %v6601_v1  ;;  %v6665_v27 = vld [vmem:[#allocation21 + $0x368] sm:$0xff] }
0x1829   :  { %10004 = vmatpush1.bf16.msra.mxu0 %v15847_v5  ;;  %v15422_v5 = vcombine.high %v6593_v26, %v6601_v1 }
0x182a   :  { %10110 = vmatpush1.bf16.msra.mxu1 %v15849_v11  ;;  %10005 = vmatprep.subr.bf16.mxu0 %v15864_v50  ;;  %v6608_v11 = vld [vmem:[#allocation21 + $0x1a0] sm:$0xff] }
0x182b   :  { %10111 = vmatprep.subr.bf16.mxu1 %v15866_v23  ;;  %v6616_v50 = vld [vmem:[#allocation21 + $0x1e0] sm:$0xff]  ;;  %v6609_v23 = vld [vmem:[#allocation21 + $0x1a8] sm:$0xff] }
0x182c   :  { %v15436_v22 = vcombine.high %v6608_v11, %v6616_v50  ;;  %v15435_v48 = vcombine.low %v6608_v11, %v6616_v50  ;;  %v15437_v51 = vcombine.low %v6609_v23, %v6617_v17  ;;  %v6681_v11 = vld [vmem:[#allocation21 + $0x3e8] sm:$0xff] }
0x182d   :  { %10006 = vmatpush1.bf16.msra.mxu0 %v15863_v14  ;;  %v15438_v14 = vcombine.high %v6609_v23, %v6617_v17 }
0x182e   :  { %10112 = vmatpush1.bf16.msra.mxu1 %v15865_v4  ;;  %10007 = vmatprep.subr.bf16.mxu0 %v15880_v44  ;;  %v6624_v4 = vld [vmem:[#allocation21 + $0x220] sm:$0xff] }
0x182f   :  { %10113 = vmatprep.subr.bf16.mxu1 %v15882_v42  ;;  %v6632_v44 = vld [vmem:[#allocation21 + $0x260] sm:$0xff]  ;;  %v6625_v42 = vld [vmem:[#allocation21 + $0x228] sm:$0xff] }
0x1830   :  { %v15452_v0 = vcombine.high %v6624_v4, %v6632_v44  ;;  %v15451_v29 = vcombine.low %v6624_v4, %v6632_v44  ;;  %v15453_v28 = vcombine.low %v6625_v42, %v6633_v54  ;;  %v6697_v4 = vld [vmem:[#allocation21 + $0x468] sm:$0xff] }
0x1831   :  { %10008 = vmatpush1.bf16.msra.mxu0 %v15879_v47  ;;  %v15454_v47 = vcombine.high %v6625_v42, %v6633_v54 }
0x1832   :  { %10114 = vmatpush1.bf16.msra.mxu1 %v15881_v32  ;;  %10136 = vmatprep.subr.bf16.mxu0 %v15388_v25  ;;  %v6640_v32 = vld [vmem:[#allocation21 + $0x2a0] sm:$0xff] }
0x1833   :  { %10242 = vmatprep.subr.bf16.mxu1 %v15390_v41  ;;  %v6648_v25 = vld [vmem:[#allocation21 + $0x2e0] sm:$0xff]  ;;  %v6641_v41 = vld [vmem:[#allocation21 + $0x2a8] sm:$0xff] }
0x1834   :  { %10010 = vmatmul.mubr.bf16.vlgmr.msra.gmra.mrb[104].mxu0 %v20352_v18  ;;  %v15468_v35 = vcombine.high %v6640_v32, %v6648_v25  ;;  %v15467_v19 = vcombine.low %v6640_v32, %v6648_v25  ;;  %v15469_v26 = vcombine.low %v6641_v41, %v6649_v37  ;;  %v6713_v32 = vld [vmem:[#allocation21 + $0x4e8] sm:$0xff] }
0x1835   :  { %10116 = vmatmul.mubr.bf16.vlgmr.msra.gmra.mrb[104].mxu1 %v20352_v18  ;;  %10019 = vmatprep.mubr.bf16.mxu0 %v20358_v53 }
0x1836   :  { %10125 = vmatprep.mubr.bf16.mxu1 %v20358_v53  ;;  %10137 = vmatpush1.bf16.msra.mxu0 %v15387_v43  ;;  %v15470_v43 = vcombine.high %v6641_v41, %v6649_v37 }
0x1837   :  { %10243 = vmatpush1.bf16.msra.mxu1 %v15389_v61  ;;  %10138 = vmatprep.subr.bf16.mxu0 %v15404_v46  ;;  %v6656_v61 = vld [vmem:[#allocation21 + $0x320] sm:$0xff] }
0x1838   :  { %10244 = vmatprep.subr.bf16.mxu1 %v15406_v45  ;;  %v6664_v46 = vld [vmem:[#allocation21 + $0x360] sm:$0xff]  ;;  %v6657_v45 = vld [vmem:[#allocation21 + $0x328] sm:$0xff] }
0x1839   :  { %v15484_v1 = vcombine.high %v6656_v61, %v6664_v46  ;;  %v15483_v50 = vcombine.low %v6656_v61, %v6664_v46  ;;  %v15485_v23 = vcombine.low %v6657_v45, %v6665_v27  ;;  %v6729_v61 = vld [vmem:[#allocation21 + $0x568] sm:$0xff] }
0x183a   :  { %10139 = vmatpush1.bf16.msra.mxu0 %v15403_v36  ;;  %v15486_v36 = vcombine.high %v6657_v45, %v6665_v27 }
0x183b   :  { %10245 = vmatpush1.bf16.msra.mxu1 %v15405_v49  ;;  %10140 = vmatprep.subr.bf16.mxu0 %v15420_v12  ;;  %v6672_v49 = vld [vmem:[#allocation21 + $0x3a0] sm:$0xff] }
0x183c   :  { %10020 = vmatmul.mubr.bf16.gmra.mrb[108].mxu0 %v20364_v56  ;;  %10246 = vmatprep.subr.bf16.mxu1 %v15422_v5  ;;  %v6680_v12 = vld [vmem:[#allocation21 + $0x3e0] sm:$0xff]  ;;  %v6673_v5 = vld [vmem:[#allocation21 + $0x3a8] sm:$0xff] }
0x183d   :  { %10126 = vmatmul.mubr.bf16.gmra.mrb[108].mxu1 %v20364_v56  ;;  %10168 = vmatprep.mubr.bf16.mxu0 %v20260_v63  ;;  %v15500_v17 = vcombine.high %v6672_v49, %v6680_v12  ;;  %v15499_v44 = vcombine.low %v6672_v49, %v6680_v12  ;;  %v15501_v42 = vcombine.low %v6673_v5, %v6681_v11  ;;  %v6745_v49 = vld [vmem:[#allocation21 + $0x5e8] sm:$0xff] }
0x183e   :  { %10141 = vmatpush1.bf16.msra.mxu0 %v15419_v57  ;;  %10274 = vmatprep.mubr.bf16.mxu1 %v20260_v63  ;;  %v15502_v57 = vcombine.high %v6673_v5, %v6681_v11 }
0x183f   :  { %10247 = vmatpush1.bf16.msra.mxu1 %v15421_v10  ;;  %10142 = vmatprep.subr.bf16.mxu0 %v15436_v22  ;;  %v6688_v10 = vld [vmem:[#allocation21 + $0x420] sm:$0xff] }
0x1840   :  { %10248 = vmatprep.subr.bf16.mxu1 %v15438_v14  ;;  %v6696_v22 = vld [vmem:[#allocation21 + $0x460] sm:$0xff]  ;;  %v6689_v14 = vld [vmem:[#allocation21 + $0x428] sm:$0xff] }
0x1841   :  { %v15516_v54 = vcombine.high %v6688_v10, %v6696_v22  ;;  %v15515_v25 = vcombine.low %v6688_v10, %v6696_v22  ;;  %v15517_v41 = vcombine.low %v6689_v14, %v6697_v4  ;;  %v6761_v10 = vld [vmem:[#allocation21 + $0x668] sm:$0xff] }
0x1842   :  { %10143 = vmatpush1.bf16.msra.mxu0 %v15435_v48  ;;  %v15518_v48 = vcombine.high %v6689_v14, %v6697_v4 }
0x1843   :  { %10249 = vmatpush1.bf16.msra.mxu1 %v15437_v51  ;;  %10144 = vmatprep.subr.bf16.mxu0 %v15452_v0  ;;  %v6704_v51 = vld [vmem:[#allocation21 + $0x4a0] sm:$0xff] }
0x1844   :  { %10250 = vmatprep.subr.bf16.mxu1 %v15454_v47  ;;  %v6712_v0 = vld [vmem:[#allocation21 + $0x4e0] sm:$0xff]  ;;  %v6705_v47 = vld [vmem:[#allocation21 + $0x4a8] sm:$0xff] }
0x1845   :  { %v15532_v37 = vcombine.high %v6704_v51, %v6712_v0  ;;  %v15531_v46 = vcombine.low %v6704_v51, %v6712_v0  ;;  %v15533_v45 = vcombine.low %v6705_v47, %v6713_v32  ;;  %v6777_v51 = vld [vmem:[#allocation21 + $0x6e8] sm:$0xff] }
0x1846   :  { %10145 = vmatpush1.bf16.msra.mxu0 %v15451_v29  ;;  %v15534_v29 = vcombine.high %v6705_v47, %v6713_v32 }
0x1847   :  { %10251 = vmatpush1.bf16.msra.mxu1 %v15453_v28  ;;  %10146 = vmatprep.subr.bf16.mxu0 %v15468_v35  ;;  %v6720_v28 = vld [vmem:[#allocation21 + $0x520] sm:$0xff] }
0x1848   :  { %10252 = vmatprep.subr.bf16.mxu1 %v15470_v43  ;;  %v6728_v35 = vld [vmem:[#allocation21 + $0x560] sm:$0xff]  ;;  %v6721_v43 = vld [vmem:[#allocation21 + $0x528] sm:$0xff] }
0x1849   :  { %v15548_v27 = vcombine.high %v6720_v28, %v6728_v35  ;;  %v15547_v12 = vcombine.low %v6720_v28, %v6728_v35  ;;  %v15549_v5 = vcombine.low %v6721_v43, %v6729_v61  ;;  %v6793_v28 = vld [vmem:[#allocation21 + $0x768] sm:$0xff] }
0x184a   :  { %10147 = vmatpush1.bf16.msra.mxu0 %v15467_v19  ;;  %v15550_v19 = vcombine.high %v6721_v43, %v6729_v61 }
0x184b   :  { %10253 = vmatpush1.bf16.msra.mxu1 %v15469_v26  ;;  %10148 = vmatprep.subr.bf16.mxu0 %v15484_v1  ;;  %v6736_v26 = vld [vmem:[#allocation21 + $0x5a0] sm:$0xff] }
0x184c   :  { %10254 = vmatprep.subr.bf16.mxu1 %v15486_v36  ;;  %v6744_v1 = vld [vmem:[#allocation21 + $0x5e0] sm:$0xff]  ;;  %v6737_v36 = vld [vmem:[#allocation21 + $0x5a8] sm:$0xff] }
0x184d   :  { %v15564_v11 = vcombine.high %v6736_v26, %v6744_v1  ;;  %v15563_v22 = vcombine.low %v6736_v26, %v6744_v1  ;;  %v15565_v14 = vcombine.low %v6737_v36, %v6745_v49  ;;  %v6809_v26 = vld [vmem:[#allocation21 + $0x7e8] sm:$0xff] }
0x184e   :  { %10149 = vmatpush1.bf16.msra.mxu0 %v15483_v50  ;;  %v15566_v50 = vcombine.high %v6737_v36, %v6745_v49 }
0x184f   :  { %10255 = vmatpush1.bf16.msra.mxu1 %v15485_v23  ;;  %10150 = vmatprep.subr.bf16.mxu0 %v15500_v17  ;;  %v6752_v23 = vld [vmem:[#allocation21 + $0x620] sm:$0xff] }
0x1850   :  { %10256 = vmatprep.subr.bf16.mxu1 %v15502_v57  ;;  %v6760_v17 = vld [vmem:[#allocation21 + $0x660] sm:$0xff]  ;;  %v6753_v57 = vld [vmem:[#allocation21 + $0x628] sm:$0xff] }
0x1851   :  { %v15580_v4 = vcombine.high %v6752_v23, %v6760_v17  ;;  %v15579_v0 = vcombine.low %v6752_v23, %v6760_v17  ;;  %v15581_v47 = vcombine.low %v6753_v57, %v6761_v10  ;;  %v6825_v23 = vld [vmem:[#allocation21 + $0x868] sm:$0xff] }
0x1852   :  { %10151 = vmatpush1.bf16.msra.mxu0 %v15499_v44  ;;  %v15582_v44 = vcombine.high %v6753_v57, %v6761_v10 }
0x1853   :  { %10257 = vmatpush1.bf16.msra.mxu1 %v15501_v42  ;;  %10152 = vmatprep.subr.bf16.mxu0 %v15516_v54  ;;  %v6768_v42 = vld [vmem:[#allocation21 + $0x6a0] sm:$0xff] }
0x1854   :  { %10258 = vmatprep.subr.bf16.mxu1 %v15518_v48  ;;  %v6776_v54 = vld [vmem:[#allocation21 + $0x6e0] sm:$0xff]  ;;  %v6769_v48 = vld [vmem:[#allocation21 + $0x6a8] sm:$0xff] }
0x1855   :  { %v15596_v32 = vcombine.high %v6768_v42, %v6776_v54  ;;  %v15595_v35 = vcombine.low %v6768_v42, %v6776_v54  ;;  %v15597_v43 = vcombine.low %v6769_v48, %v6777_v51  ;;  %v6841_v42 = vld [vmem:[#allocation21 + $0x8e8] sm:$0xff] }
0x1856   :  { %10153 = vmatpush1.bf16.msra.mxu0 %v15515_v25  ;;  %v15598_v25 = vcombine.high %v6769_v48, %v6777_v51 }
0x1857   :  { %10259 = vmatpush1.bf16.msra.mxu1 %v15517_v41  ;;  %10154 = vmatprep.subr.bf16.mxu0 %v15532_v37  ;;  %v6784_v41 = vld [vmem:[#allocation21 + $0x720] sm:$0xff] }
0x1858   :  { %10260 = vmatprep.subr.bf16.mxu1 %v15534_v29  ;;  %v6792_v37 = vld [vmem:[#allocation21 + $0x760] sm:$0xff]  ;;  %v6785_v29 = vld [vmem:[#allocation21 + $0x728] sm:$0xff] }
0x1859   :  { %v15612_v61 = vcombine.high %v6784_v41, %v6792_v37  ;;  %v15611_v1 = vcombine.low %v6784_v41, %v6792_v37  ;;  %v15613_v36 = vcombine.low %v6785_v29, %v6793_v28  ;;  %v6857_v41 = vld [vmem:[#allocation21 + $0x968] sm:$0xff] }
0x185a   :  { %10155 = vmatpush1.bf16.msra.mxu0 %v15531_v46  ;;  %v15614_v46 = vcombine.high %v6785_v29, %v6793_v28 }
0x185b   :  { %10261 = vmatpush1.bf16.msra.mxu1 %v15533_v45  ;;  %10156 = vmatprep.subr.bf16.mxu0 %v15548_v27  ;;  %v6800_v45 = vld [vmem:[#allocation21 + $0x7a0] sm:$0xff] }
0x185c   :  { %10262 = vmatprep.subr.bf16.mxu1 %v15550_v19  ;;  %v6808_v27 = vld [vmem:[#allocation21 + $0x7e0] sm:$0xff]  ;;  %v6801_v19 = vld [vmem:[#allocation21 + $0x7a8] sm:$0xff] }
0x185d   :  { %v15628_v49 = vcombine.high %v6800_v45, %v6808_v27  ;;  %v15627_v17 = vcombine.low %v6800_v45, %v6808_v27  ;;  %v15629_v57 = vcombine.low %v6801_v19, %v6809_v26  ;;  %v6873_v45 = vld [vmem:[#allocation21 + $0x9e8] sm:$0xff] }
0x185e   :  { %10157 = vmatpush1.bf16.msra.mxu0 %v15547_v12  ;;  %v15630_v12 = vcombine.high %v6801_v19, %v6809_v26 }
0x185f   :  { %10263 = vmatpush1.bf16.msra.mxu1 %v15549_v5  ;;  %10158 = vmatprep.subr.bf16.mxu0 %v15564_v11  ;;  %v6816_v5 = vld [vmem:[#allocation21 + $0x820] sm:$0xff] }
0x1860   :  { %10264 = vmatprep.subr.bf16.mxu1 %v15566_v50  ;;  %v6824_v11 = vld [vmem:[#allocation21 + $0x860] sm:$0xff]  ;;  %v6817_v50 = vld [vmem:[#allocation21 + $0x828] sm:$0xff] }
0x1861   :  { %v15644_v10 = vcombine.high %v6816_v5, %v6824_v11  ;;  %v15643_v54 = vcombine.low %v6816_v5, %v6824_v11  ;;  %v15645_v48 = vcombine.low %v6817_v50, %v6825_v23  ;;  %v6889_v5 = vld [vmem:[#allocation21 + $0xa68] sm:$0xff] }
0x1862   :  { %10159 = vmatpush1.bf16.msra.mxu0 %v15563_v22  ;;  %v15646_v22 = vcombine.high %v6817_v50, %v6825_v23 }
0x1863   :  { %10265 = vmatpush1.bf16.msra.mxu1 %v15565_v14  ;;  %10160 = vmatprep.subr.bf16.mxu0 %v15580_v4  ;;  %v6832_v14 = vld [vmem:[#allocation21 + $0x8a0] sm:$0xff] }
0x1864   :  { %10266 = vmatprep.subr.bf16.mxu1 %v15582_v44  ;;  %v6840_v4 = vld [vmem:[#allocation21 + $0x8e0] sm:$0xff]  ;;  %v6833_v44 = vld [vmem:[#allocation21 + $0x8a8] sm:$0xff] }
0x1865   :  { %v15660_v51 = vcombine.high %v6832_v14, %v6840_v4  ;;  %v15659_v37 = vcombine.low %v6832_v14, %v6840_v4  ;;  %v15661_v29 = vcombine.low %v6833_v44, %v6841_v42  ;;  %v6897_v14 = vld [vmem:[#allocation21 + $0xaa8] sm:$0xff] }
0x1866   :  { %10161 = vmatpush1.bf16.msra.mxu0 %v15579_v0  ;;  %v15662_v0 = vcombine.high %v6833_v44, %v6841_v42  ;;  %v6905_v4 = vld [vmem:[#allocation21 + $0xae8] sm:$0xff] }
0x1867   :  { %10267 = vmatpush1.bf16.msra.mxu1 %v15581_v47  ;;  %10162 = vmatprep.subr.bf16.mxu0 %v15596_v32  ;;  %v6848_v47 = vld [vmem:[#allocation21 + $0x920] sm:$0xff] }
0x1868   :  { %10268 = vmatprep.subr.bf16.mxu1 %v15598_v25  ;;  %v6856_v32 = vld [vmem:[#allocation21 + $0x960] sm:$0xff]  ;;  %v6849_v25 = vld [vmem:[#allocation21 + $0x928] sm:$0xff] }
0x1869   :  { %v15676_v28 = vcombine.high %v6848_v47, %v6856_v32  ;;  %v15675_v27 = vcombine.low %v6848_v47, %v6856_v32  ;;  %v15677_v19 = vcombine.low %v6849_v25, %v6857_v41 }
0x186a   :  { %10163 = vmatpush1.bf16.msra.mxu0 %v15595_v35  ;;  %v15678_v35 = vcombine.high %v6849_v25, %v6857_v41  ;;  %v6912_v25 = vld [vmem:[#allocation21 + $0xb20] sm:$0xff] }
0x186b   :  { %10269 = vmatpush1.bf16.msra.mxu1 %v15597_v43  ;;  %10164 = vmatprep.subr.bf16.mxu0 %v15612_v61  ;;  %v6864_v43 = vld [vmem:[#allocation21 + $0x9a0] sm:$0xff] }
0x186c   :  { %10270 = vmatprep.subr.bf16.mxu1 %v15614_v46  ;;  %v6872_v61 = vld [vmem:[#allocation21 + $0x9e0] sm:$0xff]  ;;  %v6865_v46 = vld [vmem:[#allocation21 + $0x9a8] sm:$0xff] }
0x186d   :  { %v15692_v26 = vcombine.high %v6864_v43, %v6872_v61  ;;  %v15691_v11 = vcombine.low %v6864_v43, %v6872_v61  ;;  %v15693_v50 = vcombine.low %v6865_v46, %v6873_v45  ;;  %v6920_v41 = vld [vmem:[#allocation21 + $0xb60] sm:$0xff]  ;;  %v15725_v61 = vcombine.low %v6897_v14, %v6905_v4 }
0x186e   :  { %10165 = vmatpush1.bf16.msra.mxu0 %v15611_v1  ;;  %v15694_v1 = vcombine.high %v6865_v46, %v6873_v45  ;;  %v20412_v46 = vld [vmem:[#allocation21 + $0xba0] sm:$0xff] }
0x186f   :  { %10271 = vmatpush1.bf16.msra.mxu1 %v15613_v36  ;;  %10166 = vmatprep.subr.bf16.mxu0 %v15628_v49  ;;  %v6880_v36 = vld [vmem:[#allocation21 + $0xa20] sm:$0xff] }
0x1870   :  { %10272 = vmatprep.subr.bf16.mxu1 %v15630_v12  ;;  %v6888_v49 = vld [vmem:[#allocation21 + $0xa60] sm:$0xff]  ;;  %v6881_v12 = vld [vmem:[#allocation21 + $0xa28] sm:$0xff] }
0x1871   :  { %v15708_v23 = vcombine.high %v6880_v36, %v6888_v49  ;;  %v15707_v44 = vcombine.low %v6880_v36, %v6888_v49  ;;  %v15709_v42 = vcombine.low %v6881_v12, %v6889_v5  ;;  %v20416_v36 = vld [vmem:[#allocation21 + $0xbe0] sm:$0xff]  ;;  %v20418_v49 = vld [vmem:[#allocation21 + $0xba8] sm:$0xff] }
0x1872   :  { %10167 = vmatpush1.bf16.msra.mxu0 %v15627_v17  ;;  %v15710_v17 = vcombine.high %v6881_v12, %v6889_v5  ;;  %v20420_v12 = vld [vmem:[#allocation21 + $0xbe8] sm:$0xff] }
0x1873   :  { %10273 = vmatpush1.bf16.msra.mxu1 %v15629_v57  ;;  %10189 = vmatprep.subr.bf16.mxu0 %v15644_v10  ;;  %v20394_v57 = vld [vmem:[#allocation23] sm:$0xff] }
0x1874   :  { %10295 = vmatprep.subr.bf16.mxu1 %v15646_v22  ;;  %v6896_v10 = vld [vmem:[#allocation21 + $0xaa0] sm:$0xff]  ;;  %v20406_v47 = vrot.slane %v20394_v57, %v19579_v2  ;;  %v20410_v32 = vrot.slane %v20394_v57, %v19604_v60 }
0x1875   :  { %10169 = vmatmul.mubr.bf16.vlgmr.msra.gmra.mrb[112].mxu0 %v20264_v59  ;;  %v6904_v22 = vld [vmem:[#allocation21 + $0xae0] sm:$0xff] }
0x1876   :  { %10275 = vmatmul.mubr.bf16.vlgmr.msra.gmra.mrb[112].mxu1 %v20264_v59  ;;  %10178 = vmatprep.mubr.bf16.mxu0 %v20330_v15  ;;  %v15723_v43 = vcombine.low %v6896_v10, %v6904_v22 }
0x1877   :  { %10190 = vmatpush1.bf16.msra.mxu0 %v15643_v54  ;;  %10284 = vmatprep.mubr.bf16.mxu1 %v20330_v15  ;;  %v20398_v54 = vrot.slane %v20394_v57, %v19582_v3 }
0x1878   :  { %10296 = vmatpush1.bf16.msra.mxu1 %v15645_v48  ;;  %10191 = vmatprep.subr.bf16.mxu0 %v15660_v51  ;;  %v20402_v48 = vrot.slane %v20394_v57, %v19601_v55  ;;  %v15724_v51 = vcombine.high %v6896_v10, %v6904_v22 }
0x1879   :  { %10297 = vmatprep.subr.bf16.mxu1 %v15662_v0  ;;  %v15726_v0 = vcombine.high %v6897_v14, %v6905_v4 }
0x187b   :  { %10192 = vmatpush1.bf16.msra.mxu0 %v15659_v37  ;;  %v6913_v37 = vld [vmem:[#allocation21 + $0xb28] sm:$0xff] }
0x187c   :  { %10298 = vmatpush1.bf16.msra.mxu1 %v15661_v29  ;;  %10193 = vmatprep.subr.bf16.mxu0 %v15676_v28  ;;  %v6921_v29 = vld [vmem:[#allocation21 + $0xb68] sm:$0xff] }
0x187d   :  { %10179 = vmatmul.mubr.bf16.gmra.mrb[116].mxu0 %v20334_v31  ;;  %10299 = vmatprep.subr.bf16.mxu1 %v15678_v35 }
0x187e   :  { %10285 = vmatmul.mubr.bf16.gmra.mrb[116].mxu1 %v20334_v31  ;;  %10221 = vmatprep.mubr.bf16.mxu0 %v20340_v38 }
0x187f   :  { %10194 = vmatpush1.bf16.msra.mxu0 %v15675_v27  ;;  %10327 = vmatprep.mubr.bf16.mxu1 %v20340_v38 }
0x1880   :  { %10300 = vmatpush1.bf16.msra.mxu1 %v15677_v19  ;;  %10195 = vmatprep.subr.bf16.mxu0 %v15692_v26 }
0x1881   :  { %10301 = vmatprep.subr.bf16.mxu1 %v15694_v1  ;;  %v15740_v1 = vcombine.high %v6912_v25, %v6920_v41 }
0x1883   :  { %10196 = vmatpush1.bf16.msra.mxu0 %v15691_v11 }
0x1884   :  { %10302 = vmatpush1.bf16.msra.mxu1 %v15693_v50  ;;  %10197 = vmatprep.subr.bf16.mxu0 %v15708_v23 }
0x1885   :  { %10303 = vmatprep.subr.bf16.mxu1 %v15710_v17  ;;  %v15742_v17 = vcombine.high %v6913_v37, %v6921_v29 }
0x1887   :  { %10198 = vmatpush1.bf16.msra.mxu0 %v15707_v44  ;;  %v9799_v28 = vpop.f32.mrb[96].mxu0  ;;  %v9905_v35 = vpop.f32.mrb[96].mxu1  ;;  %v15739_v44 = vcombine.low %v6912_v25, %v6920_v41 }
0x1888   :  { %10304 = vmatpush1.bf16.msra.mxu1 %v15709_v42  ;;  %v16723_v45 = vadd.f32 %v9799_v28, %v20398_v54  ;;  %v16731_v27 = vadd.f32 %v9905_v35, %v20402_v48  ;;  %10199 = vmatprep.subr.bf16.mxu0 %v15724_v51  ;;  %v9801_v19 = vpop.f32.mrb[97].mxu0  ;;  %v9907_v26 = vpop.f32.mrb[97].mxu1  ;;  %v15741_v42 = vcombine.low %v6913_v37, %v6921_v29  ;;  %v6944_v29 = vld [vmem:[#allocation21 + $0xc20] sm:$0xff] }
0x1889   :  { %10305 = vmatprep.subr.bf16.mxu1 %v15726_v0  ;;  %v16724_v5 = vadd.f32 %v9801_v19, %v20406_v47  ;;  %v16732_v11 = vadd.f32 %v9907_v26, %v20410_v32  ;;  %v9803_v50 = vpop.f32.mrb[98].mxu0  ;;  %v9909_v23 = vpop.f32.mrb[98].mxu1  ;;  %v15756_v28 = vcombine.high %v20412_v46, %v20416_v36  ;;  %v15758_v35 = vcombine.high %v20418_v49, %v20420_v12 }
0x188a   :  { %v16725_v10 = vadd.f32 %v9803_v50, %v20398_v54  ;;  %v16733_v22 = vadd.f32 %v9909_v23, %v20402_v48  ;;  %v9805_v14 = vpop.f32.mrb[99].mxu0  ;;  %v9911_v4 = vpop.f32.mrb[99].mxu1  ;;  %v10560_v19 = vmax.f32 %v16723_v45, 0.0  ;;  %v10562_v26 = vmax.f32 %v16731_v27, 0.0 }
0x188b   :  { %10200 = vmatpush1.bf16.msra.mxu0 %v15723_v43  ;;  %v16726_v51 = vadd.f32 %v9805_v14, %v20406_v47  ;;  %v16734_v0 = vadd.f32 %v9911_v4, %v20410_v32  ;;  %v10561_v62 = vmax.f32 %v16724_v5, 0.0  ;;  %v10563_v25 = vmax.f32 %v16732_v11, 0.0  ;;  %v6952_v43 = vld [vmem:[#allocation21 + $0xc60] sm:$0xff] }
0x188c   :  { %10306 = vmatpush1.bf16.msra.mxu1 %v15725_v61  ;;  %v10576_v50 = vmax.f32 %v16725_v10, 0.0  ;;  %v10578_v23 = vmax.f32 %v16733_v22, 0.0  ;;  %10201 = vmatprep.subr.bf16.mxu0 %v15740_v1  ;;  %v15755_v1 = vcombine.low %v20412_v46, %v20416_v36  ;;  %v15757_v5 = vcombine.low %v20418_v49, %v20420_v12  ;;  %v6960_v11 = vld [vmem:[#allocation21 + $0xca0] sm:$0xff] }
0x188d   :  { %v10577_v41 = vmax.f32 %v16726_v51, 0.0  ;;  %v10579_v37 = vmax.f32 %v16734_v0, 0.0  ;;  %10307 = vmatprep.subr.bf16.mxu1 %v15742_v17  ;;  %v15772_v51 = vcombine.high %v6944_v29, %v6952_v43  ;;  %v6968_v0 = vld [vmem:[#allocation21 + $0xce0] sm:$0xff]  ;;  %v15774_v12 = vcombine.high %v6945_v16, %v6953_v30 }
0x188e   :  { %v20432_v14 = vpack.c.bf16 %v10576_v50, %v10560_v19  ;;  %v20434_v4 = vpack.c.bf16 %v10578_v23, %v10562_v26  ;;  %v6969_v19 = vld [vmem:[#allocation21 + $0xce8] sm:$0xff] }
0x188f   :  { %v20436_v8 = vpack.c.bf16 %v10577_v41, %v10561_v62  ;;  %v20438_v45 = vpack.c.bf16 %v10579_v37, %v10563_v25  ;;  %10202 = vmatpush1.bf16.msra.mxu0 %v15739_v44  ;;  %v9809_v61 = vpop.f32.mrb[100].mxu0  ;;  %v9915_v27 = vpop.f32.mrb[100].mxu1  ;;  %v6961_v44 = vld [vmem:[#allocation21 + $0xca8] sm:$0xff]  ;;  %v15771_v25 = vcombine.low %v6944_v29, %v6952_v43  ;;  %v15773_v41 = vcombine.low %v6945_v16, %v6953_v30  ;;  %v6976_v29 = vld [vmem:[#allocation21 + $0xd20] sm:$0xff] }
0x1890   :  { %10308 = vmatpush1.bf16.msra.mxu1 %v15741_v42  ;;  %v16727_v17 = vadd.f32 %v9809_v61, %v20398_v54  ;;  %v16735_v10 = vadd.f32 %v9915_v27, %v20402_v48  ;;  %10203 = vmatprep.subr.bf16.mxu0 %v15756_v28  ;;  %v9811_v62 = vpop.f32.mrb[101].mxu0  ;;  %v9917_v22 = vpop.f32.mrb[101].mxu1  ;;  %v15788_v61 = vcombine.high %v6960_v11, %v6968_v0  ;;  %v6984_v30 = vld [vmem:[#allocation21 + $0xd60] sm:$0xff]  ;;  %v6985_v43 = vld [vmem:[#allocation21 + $0xd68] sm:$0xff] }
0x1891   :  { %10309 = vmatprep.subr.bf16.mxu1 %v15758_v35  ;;  %v16728_v26 = vadd.f32 %v9811_v62, %v20406_v47  ;;  %v16736_v46 = vadd.f32 %v9917_v22, %v20410_v32  ;;  %v9813_v36 = vpop.f32.mrb[102].mxu0  ;;  %v9919_v49 = vpop.f32.mrb[102].mxu1  ;;  %v15790_v27 = vcombine.high %v6961_v44, %v6969_v19 }
0x1892   :  { %v16729_v42 = vadd.f32 %v9813_v36, %v20398_v54  ;;  %v16737_v50 = vadd.f32 %v9919_v49, %v20402_v48  ;;  %v9815_v23 = vpop.f32.mrb[103].mxu0  ;;  %v9921_v28 = vpop.f32.mrb[103].mxu1  ;;  %v10592_v62 = vmax.f32 %v16727_v17, 0.0  ;;  %v10594_v22 = vmax.f32 %v16735_v10, 0.0 }
0x1893   :  { %10204 = vmatpush1.bf16.msra.mxu0 %v15755_v1  ;;  %v16730_v37 = vadd.f32 %v9815_v23, %v20406_v47  ;;  %v16738_v35 = vadd.f32 %v9921_v28, %v20410_v32  ;;  %v10593_v54 = vmax.f32 %v16728_v26, 0.0  ;;  %v10595_v36 = vmax.f32 %v16736_v46, 0.0  ;;  %v6977_v32 = vld [vmem:[#allocation21 + $0xd28] sm:$0xff]  ;;  %v6992_v46 = vld [vmem:[#allocation21 + $0xda0] sm:$0xff] }
0x1894   :  { %10310 = vmatpush1.bf16.msra.mxu1 %v15757_v5  ;;  %v10608_v13 = vmax.f32 %v16729_v42, 0.0  ;;  %v10610_v40 = vmax.f32 %v16737_v50, 0.0  ;;  %10205 = vmatprep.subr.bf16.mxu0 %v15772_v51  ;;  %v15787_v5 = vcombine.low %v6960_v11, %v6968_v0  ;;  %v15789_v10 = vcombine.low %v6961_v44, %v6969_v19  ;;  %v7001_v42 = vld [vmem:[#allocation21 + $0xde8] sm:$0xff]  ;;  %v7016_v11 = vld [vmem:[#allocation21 + $0xe60] sm:$0xff] }
0x1895   :  { %v10609_v48 = vmax.f32 %v16730_v37, 0.0  ;;  %v10611_v49 = vmax.f32 %v16738_v35, 0.0  ;;  %10311 = vmatprep.subr.bf16.mxu1 %v15774_v12  ;;  %v15804_v51 = vcombine.high %v6976_v29, %v6984_v30  ;;  %v15806_v26 = vcombine.high %v6977_v32, %v6985_v43  ;;  %v7000_v12 = vld [vmem:[#allocation21 + $0xde0] sm:$0xff]  ;;  %v7009_v0 = vld [vmem:[#allocation21 + $0xe28] sm:$0xff] }
0x1896   :  { %v20452_v16 = vpack.c.bf16 %v10608_v13, %v10592_v62  ;;  %v20454_v47 = vpack.c.bf16 %v10610_v40, %v10594_v22  ;;  %v6993_v13 = vld [vmem:[#allocation21 + $0xda8] sm:$0xff]  ;;  %v15803_v40 = vcombine.low %v6976_v29, %v6984_v30  ;;  %v15805_v50 = vcombine.low %v6977_v32, %v6985_v43  ;;  %v7040_v29 = vld [vmem:[#allocation21 + $0xf20] sm:$0xff] }
0x1897   :  { %v20456_v1 = vpack.c.bf16 %v10609_v48, %v10593_v54  ;;  %v20458_v17 = vpack.c.bf16 %v10611_v49, %v10595_v36  ;;  %10206 = vmatpush1.bf16.msra.mxu0 %v15771_v25  ;;  %v15820_v23 = vcombine.high %v6992_v46, %v7000_v12  ;;  %v15822_v28 = vcombine.high %v6993_v13, %v7001_v42  ;;  %v7008_v25 = vld [vmem:[#allocation21 + $0xe20] sm:$0xff]  ;;  %v7025_v62 = vld [vmem:[#allocation21 + $0xea8] sm:$0xff] }
0x1898   :  { %10312 = vmatpush1.bf16.msra.mxu1 %v15773_v41  ;;  %10207 = vmatprep.subr.bf16.mxu0 %v15788_v61  ;;  %v7017_v41 = vld [vmem:[#allocation21 + $0xe68] sm:$0xff]  ;;  %v15819_v44 = vcombine.low %v6992_v46, %v7000_v12  ;;  %v15821_v19 = vcombine.low %v6993_v13, %v7001_v42  ;;  %v15836_v37 = vcombine.high %v7008_v25, %v7016_v11  ;;  %v7024_v61 = vld [vmem:[#allocation21 + $0xea0] sm:$0xff] }
0x1899   :  { %10313 = vmatprep.subr.bf16.mxu1 %v15790_v27  ;;  %v15838_v35 = vcombine.high %v7009_v0, %v7017_v41  ;;  %v7032_v27 = vld [vmem:[#allocation21 + $0xee0] sm:$0xff]  ;;  %v7033_v22 = vld [vmem:[#allocation21 + $0xee8] sm:$0xff]  ;;  %v15835_v54 = vcombine.low %v7008_v25, %v7016_v11  ;;  %v15837_v36 = vcombine.low %v7009_v0, %v7017_v41  ;;  %v6562_v25 = vld [vmem:[#allocation21 + $0x30] sm:$0xff] }
0x189a   :  { %v15852_v48 = vcombine.high %v7024_v61, %v7032_v27  ;;  %v15854_v49 = vcombine.high %v7025_v62, %v7033_v22  ;;  %v7048_v30 = vld [vmem:[#allocation21 + $0xf60] sm:$0xff]  ;;  %v7041_v32 = vld [vmem:[#allocation21 + $0xf28] sm:$0xff]  ;;  %v6570_v11 = vld [vmem:[#allocation21 + $0x70] sm:$0xff] }
0x189b   :  { %10208 = vmatpush1.bf16.msra.mxu0 %v15787_v5  ;;  %v7049_v43 = vld [vmem:[#allocation21 + $0xf68] sm:$0xff]  ;;  %v15851_v5 = vcombine.low %v7024_v61, %v7032_v27  ;;  %v7056_v46 = vld [vmem:[#allocation21 + $0xfa0] sm:$0xff]  ;;  %v6563_v0 = vld [vmem:[#allocation21 + $0x38] sm:$0xff] }
0x189c   :  { %10314 = vmatpush1.bf16.msra.mxu1 %v15789_v10  ;;  %10209 = vmatprep.subr.bf16.mxu0 %v15804_v51  ;;  %v15853_v10 = vcombine.low %v7025_v62, %v7033_v22  ;;  %v15868_v51 = vcombine.high %v7040_v29, %v7048_v30  ;;  %v7064_v12 = vld [vmem:[#allocation21 + $0xfe0] sm:$0xff]  ;;  %v7057_v13 = vld [vmem:[#allocation21 + $0xfa8] sm:$0xff]  ;;  %v6571_v41 = vld [vmem:[#allocation21 + $0x78] sm:$0xff] }
0x189d   :  { %10315 = vmatprep.subr.bf16.mxu1 %v15806_v26  ;;  %v15870_v26 = vcombine.high %v7041_v32, %v7049_v43  ;;  %v7065_v42 = vld [vmem:[#allocation21 + $0xfe8] sm:$0xff]  ;;  %v6578_v61 = vld [vmem:[#allocation21 + $0xb0] sm:$0xff]  ;;  %v6579_v62 = vld [vmem:[#allocation21 + $0xb8] sm:$0xff] }
0x189e   :  { %v6586_v27 = vld [vmem:[#allocation21 + $0xf0] sm:$0xff]  ;;  %v6587_v22 = vld [vmem:[#allocation21 + $0xf8] sm:$0xff] }
0x189f   :  { %10210 = vmatpush1.bf16.msra.mxu0 %v15803_v40  ;;  %v15867_v40 = vcombine.low %v7040_v29, %v7048_v30  ;;  %v6594_v29 = vld [vmem:[#allocation21 + $0x130] sm:$0xff] }
0x18a0   :  { %10316 = vmatpush1.bf16.msra.mxu1 %v15805_v50  ;;  %10211 = vmatprep.subr.bf16.mxu0 %v15820_v23  ;;  %v15869_v50 = vcombine.low %v7041_v32, %v7049_v43  ;;  %v15884_v23 = vcombine.high %v7056_v46, %v7064_v12  ;;  %v6602_v30 = vld [vmem:[#allocation21 + $0x170] sm:$0xff]  ;;  %v6595_v32 = vld [vmem:[#allocation21 + $0x138] sm:$0xff] }
0x18a1   :  { %10317 = vmatprep.subr.bf16.mxu1 %v15822_v28  ;;  %v15886_v28 = vcombine.high %v7057_v13, %v7065_v42  ;;  %v6603_v43 = vld [vmem:[#allocation21 + $0x178] sm:$0xff] }
0x18a3   :  { %10212 = vmatpush1.bf16.msra.mxu0 %v15819_v44  ;;  %v15883_v44 = vcombine.low %v7056_v46, %v7064_v12  ;;  %v6610_v46 = vld [vmem:[#allocation21 + $0x1b0] sm:$0xff] }
0x18a4   :  { %10318 = vmatpush1.bf16.msra.mxu1 %v15821_v19  ;;  %10213 = vmatprep.subr.bf16.mxu0 %v15836_v37  ;;  %v15885_v19 = vcombine.low %v7057_v13, %v7065_v42  ;;  %v15392_v37 = vcombine.high %v6562_v25, %v6570_v11  ;;  %v6618_v12 = vld [vmem:[#allocation21 + $0x1f0] sm:$0xff]  ;;  %v6611_v13 = vld [vmem:[#allocation21 + $0x1b8] sm:$0xff] }
0x18a5   :  { %10319 = vmatprep.subr.bf16.mxu1 %v15838_v35  ;;  %v15394_v35 = vcombine.high %v6563_v0, %v6571_v41  ;;  %v6619_v42 = vld [vmem:[#allocation21 + $0x1f8] sm:$0xff] }
0x18a7   :  { %10214 = vmatpush1.bf16.msra.mxu0 %v15835_v54  ;;  %v15391_v54 = vcombine.low %v6562_v25, %v6570_v11  ;;  %v6626_v25 = vld [vmem:[#allocation21 + $0x230] sm:$0xff] }
0x18a8   :  { %10320 = vmatpush1.bf16.msra.mxu1 %v15837_v36  ;;  %10215 = vmatprep.subr.bf16.mxu0 %v15852_v48  ;;  %v15393_v36 = vcombine.low %v6563_v0, %v6571_v41  ;;  %v15408_v48 = vcombine.high %v6578_v61, %v6586_v27  ;;  %v6634_v11 = vld [vmem:[#allocation21 + $0x270] sm:$0xff]  ;;  %v6627_v0 = vld [vmem:[#allocation21 + $0x238] sm:$0xff] }
0x18a9   :  { %10321 = vmatprep.subr.bf16.mxu1 %v15854_v49  ;;  %v15410_v49 = vcombine.high %v6579_v62, %v6587_v22  ;;  %v6635_v41 = vld [vmem:[#allocation21 + $0x278] sm:$0xff] }
0x18ab   :  { %10216 = vmatpush1.bf16.msra.mxu0 %v15851_v5  ;;  %v15407_v5 = vcombine.low %v6578_v61, %v6586_v27  ;;  %v6642_v61 = vld [vmem:[#allocation21 + $0x2b0] sm:$0xff] }
0x18ac   :  { %10322 = vmatpush1.bf16.msra.mxu1 %v15853_v10  ;;  %10217 = vmatprep.subr.bf16.mxu0 %v15868_v51  ;;  %v15409_v10 = vcombine.low %v6579_v62, %v6587_v22  ;;  %v15424_v51 = vcombine.high %v6594_v29, %v6602_v30  ;;  %v6650_v27 = vld [vmem:[#allocation21 + $0x2f0] sm:$0xff]  ;;  %v6643_v62 = vld [vmem:[#allocation21 + $0x2b8] sm:$0xff] }
0x18ad   :  { %10323 = vmatprep.subr.bf16.mxu1 %v15870_v26  ;;  %v15426_v26 = vcombine.high %v6595_v32, %v6603_v43  ;;  %v6651_v22 = vld [vmem:[#allocation21 + $0x2f8] sm:$0xff] }
0x18af   :  { %10218 = vmatpush1.bf16.msra.mxu0 %v15867_v40  ;;  %v15423_v40 = vcombine.low %v6594_v29, %v6602_v30  ;;  %v6666_v29 = vld [vmem:[#allocation21 + $0x370] sm:$0xff]  ;;  %v6659_v30 = vld [vmem:[#allocation21 + $0x338] sm:$0xff] }
0x18b0   :  { %10324 = vmatpush1.bf16.msra.mxu1 %v15869_v50  ;;  %10219 = vmatprep.subr.bf16.mxu0 %v15884_v23  ;;  %v15425_v50 = vcombine.low %v6595_v32, %v6603_v43  ;;  %v15440_v23 = vcombine.high %v6610_v46, %v6618_v12  ;;  %v6667_v32 = vld [vmem:[#allocation21 + $0x378] sm:$0xff]  ;;  %v15471_v43 = vcombine.low %v6642_v61, %v6650_v27 }
0x18b1   :  { %10325 = vmatprep.subr.bf16.mxu1 %v15886_v28  ;;  %v15442_v28 = vcombine.high %v6611_v13, %v6619_v42 }
0x18b3   :  { %10220 = vmatpush1.bf16.msra.mxu0 %v15883_v44  ;;  %v15439_v44 = vcombine.low %v6610_v46, %v6618_v12  ;;  %v6682_v46 = vld [vmem:[#allocation21 + $0x3f0] sm:$0xff]  ;;  %v6675_v12 = vld [vmem:[#allocation21 + $0x3b8] sm:$0xff] }
0x18b4   :  { %10326 = vmatpush1.bf16.msra.mxu1 %v15885_v19  ;;  %10348 = vmatprep.subr.bf16.mxu0 %v15392_v37  ;;  %v15441_v19 = vcombine.low %v6611_v13, %v6619_v42  ;;  %v15456_v37 = vcombine.high %v6626_v25, %v6634_v11  ;;  %v6683_v13 = vld [vmem:[#allocation21 + $0x3f8] sm:$0xff] }
0x18b5   :  { %10454 = vmatprep.subr.bf16.mxu1 %v15394_v35  ;;  %v15458_v35 = vcombine.high %v6627_v0, %v6635_v41 }
0x18b6   :  { %10222 = vmatmul.mubr.bf16.vlgmr.msra.gmra.mrb[112].mxu0 %v20352_v18 }
0x18b7   :  { %10328 = vmatmul.mubr.bf16.vlgmr.msra.gmra.mrb[112].mxu1 %v20352_v18  ;;  %10231 = vmatprep.mubr.bf16.mxu0 %v20358_v53 }
0x18b8   :  { %10337 = vmatprep.mubr.bf16.mxu1 %v20358_v53  ;;  %10349 = vmatpush1.bf16.msra.mxu0 %v15391_v54  ;;  %v15455_v54 = vcombine.low %v6626_v25, %v6634_v11  ;;  %v6698_v25 = vld [vmem:[#allocation21 + $0x470] sm:$0xff]  ;;  %v6691_v11 = vld [vmem:[#allocation21 + $0x438] sm:$0xff] }
0x18b9   :  { %10455 = vmatpush1.bf16.msra.mxu1 %v15393_v36  ;;  %10350 = vmatprep.subr.bf16.mxu0 %v15408_v48  ;;  %v15457_v36 = vcombine.low %v6627_v0, %v6635_v41  ;;  %v15472_v48 = vcombine.high %v6642_v61, %v6650_v27  ;;  %v6699_v0 = vld [vmem:[#allocation21 + $0x478] sm:$0xff]  ;;  %v6714_v61 = vld [vmem:[#allocation21 + $0x4f0] sm:$0xff] }
0x18ba   :  { %10456 = vmatprep.subr.bf16.mxu1 %v15410_v49  ;;  %v15474_v49 = vcombine.high %v6643_v62, %v6651_v22  ;;  %v6707_v27 = vld [vmem:[#allocation21 + $0x4b8] sm:$0xff] }
0x18bc   :  { %10351 = vmatpush1.bf16.msra.mxu0 %v15407_v5  ;;  %v15473_v5 = vcombine.low %v6643_v62, %v6651_v22  ;;  %v6715_v62 = vld [vmem:[#allocation21 + $0x4f8] sm:$0xff] }
0x18bd   :  { %10457 = vmatpush1.bf16.msra.mxu1 %v15409_v10  ;;  %10352 = vmatprep.subr.bf16.mxu0 %v15424_v51  ;;  %v15490_v51 = vcombine.high %v6659_v30, %v6667_v32 }
0x18be   :  { %10232 = vmatmul.mubr.bf16.gmra.mrb[116].mxu0 %v20364_v56  ;;  %10458 = vmatprep.subr.bf16.mxu1 %v15426_v26  ;;  %v6674_v26 = vld [vmem:[#allocation21 + $0x3b0] sm:$0xff] }
0x18bf   :  { %10338 = vmatmul.mubr.bf16.gmra.mrb[116].mxu1 %v20364_v56  ;;  %10380 = vmatprep.mubr.bf16.mxu0 %v20260_v63  ;;  %v15503_v41 = vcombine.low %v6674_v26, %v6682_v46 }
0x18c0   :  { %10353 = vmatpush1.bf16.msra.mxu0 %v15423_v40  ;;  %10486 = vmatprep.mubr.bf16.mxu1 %v20260_v63  ;;  %v6658_v63 = vld [vmem:[#allocation21 + $0x330] sm:$0xff]  ;;  %v15489_v40 = vcombine.low %v6659_v30, %v6667_v32  ;;  %v6731_v30 = vld [vmem:[#allocation21 + $0x578] sm:$0xff] }
0x18c1   :  { %10459 = vmatpush1.bf16.msra.mxu1 %v15425_v50  ;;  %10354 = vmatprep.subr.bf16.mxu0 %v15440_v23  ;;  %v15488_v10 = vcombine.high %v6658_v63, %v6666_v29  ;;  %v15487_v42 = vcombine.low %v6658_v63, %v6666_v29  ;;  %v15504_v50 = vcombine.high %v6674_v26, %v6682_v46  ;;  %v6730_v63 = vld [vmem:[#allocation21 + $0x570] sm:$0xff]  ;;  %v6723_v29 = vld [vmem:[#allocation21 + $0x538] sm:$0xff] }
0x18c2   :  { %10460 = vmatprep.subr.bf16.mxu1 %v15442_v28  ;;  %v15506_v23 = vcombine.high %v6675_v12, %v6683_v13  ;;  %v6690_v28 = vld [vmem:[#allocation21 + $0x430] sm:$0xff]  ;;  %v6739_v46 = vld [vmem:[#allocation21 + $0x5b8] sm:$0xff] }
0x18c3   :  { %v15519_v22 = vcombine.low %v6690_v28, %v6698_v25  ;;  %v6746_v26 = vld [vmem:[#allocation21 + $0x5f0] sm:$0xff] }
0x18c4   :  { %10355 = vmatpush1.bf16.msra.mxu0 %v15439_v44  ;;  %v15505_v44 = vcombine.low %v6675_v12, %v6683_v13  ;;  %v6747_v12 = vld [vmem:[#allocation21 + $0x5f8] sm:$0xff] }
0x18c5   :  { %10461 = vmatpush1.bf16.msra.mxu1 %v15441_v19  ;;  %10356 = vmatprep.subr.bf16.mxu0 %v15456_v37  ;;  %v15520_v19 = vcombine.high %v6690_v28, %v6698_v25  ;;  %v15522_v37 = vcombine.high %v6691_v11, %v6699_v0  ;;  %v6762_v28 = vld [vmem:[#allocation21 + $0x670] sm:$0xff]  ;;  %v6755_v25 = vld [vmem:[#allocation21 + $0x638] sm:$0xff] }
0x18c6   :  { %10462 = vmatprep.subr.bf16.mxu1 %v15458_v35  ;;  %v6706_v35 = vld [vmem:[#allocation21 + $0x4b0] sm:$0xff] }
0x18c7   :  { %v15535_v32 = vcombine.low %v6706_v35, %v6714_v61 }
0x18c8   :  { %10357 = vmatpush1.bf16.msra.mxu0 %v15455_v54  ;;  %v15521_v54 = vcombine.low %v6691_v11, %v6699_v0  ;;  %v6763_v11 = vld [vmem:[#allocation21 + $0x678] sm:$0xff] }
0x18c9   :  { %10463 = vmatpush1.bf16.msra.mxu1 %v15457_v36  ;;  %10358 = vmatprep.subr.bf16.mxu0 %v15472_v48  ;;  %v15536_v36 = vcombine.high %v6706_v35, %v6714_v61  ;;  %v15538_v48 = vcombine.high %v6707_v27, %v6715_v62  ;;  %v6778_v35 = vld [vmem:[#allocation21 + $0x6f0] sm:$0xff]  ;;  %v6771_v61 = vld [vmem:[#allocation21 + $0x6b8] sm:$0xff] }
0x18ca   :  { %10464 = vmatprep.subr.bf16.mxu1 %v15474_v49  ;;  %v6722_v49 = vld [vmem:[#allocation21 + $0x530] sm:$0xff] }
0x18cb   :  { %v15551_v13 = vcombine.low %v6722_v49, %v6730_v63 }
0x18cc   :  { %10359 = vmatpush1.bf16.msra.mxu0 %v15471_v43  ;;  %v15537_v43 = vcombine.low %v6707_v27, %v6715_v62  ;;  %v6779_v27 = vld [vmem:[#allocation21 + $0x6f8] sm:$0xff] }
0x18cd   :  { %10465 = vmatpush1.bf16.msra.mxu1 %v15473_v5  ;;  %10360 = vmatprep.subr.bf16.mxu0 %v15488_v10  ;;  %v15552_v5 = vcombine.high %v6722_v49, %v6730_v63  ;;  %v15554_v10 = vcombine.high %v6723_v29, %v6731_v30  ;;  %v6794_v49 = vld [vmem:[#allocation21 + $0x770] sm:$0xff]  ;;  %v6787_v63 = vld [vmem:[#allocation21 + $0x738] sm:$0xff] }
0x18ce   :  { %10466 = vmatprep.subr.bf16.mxu1 %v15490_v51  ;;  %v6738_v51 = vld [vmem:[#allocation21 + $0x5b0] sm:$0xff] }
0x18cf   :  { %v15567_v0 = vcombine.low %v6738_v51, %v6746_v26 }
0x18d0   :  { %10361 = vmatpush1.bf16.msra.mxu0 %v15487_v42  ;;  %v15553_v42 = vcombine.low %v6723_v29, %v6731_v30  ;;  %v6795_v29 = vld [vmem:[#allocation21 + $0x778] sm:$0xff] }
0x18d1   :  { %10467 = vmatpush1.bf16.msra.mxu1 %v15489_v40  ;;  %10362 = vmatprep.subr.bf16.mxu0 %v15504_v50  ;;  %v15568_v40 = vcombine.high %v6738_v51, %v6746_v26  ;;  %v15570_v50 = vcombine.high %v6739_v46, %v6747_v12  ;;  %v6810_v51 = vld [vmem:[#allocation21 + $0x7f0] sm:$0xff]  ;;  %v6803_v26 = vld [vmem:[#allocation21 + $0x7b8] sm:$0xff] }
0x18d2   :  { %10468 = vmatprep.subr.bf16.mxu1 %v15506_v23  ;;  %v6754_v23 = vld [vmem:[#allocation21 + $0x630] sm:$0xff] }
0x18d3   :  { %v15583_v62 = vcombine.low %v6754_v23, %v6762_v28 }
0x18d4   :  { %10363 = vmatpush1.bf16.msra.mxu0 %v15503_v41  ;;  %v15569_v41 = vcombine.low %v6739_v46, %v6747_v12  ;;  %v6811_v46 = vld [vmem:[#allocation21 + $0x7f8] sm:$0xff] }
0x18d5   :  { %10469 = vmatpush1.bf16.msra.mxu1 %v15505_v44  ;;  %10364 = vmatprep.subr.bf16.mxu0 %v15520_v19  ;;  %v15584_v44 = vcombine.high %v6754_v23, %v6762_v28  ;;  %v15586_v19 = vcombine.high %v6755_v25, %v6763_v11  ;;  %v6826_v23 = vld [vmem:[#allocation21 + $0x870] sm:$0xff]  ;;  %v6819_v28 = vld [vmem:[#allocation21 + $0x838] sm:$0xff] }
0x18d6   :  { %10470 = vmatprep.subr.bf16.mxu1 %v15522_v37  ;;  %v6770_v37 = vld [vmem:[#allocation21 + $0x6b0] sm:$0xff] }
0x18d7   :  { %v15599_v30 = vcombine.low %v6770_v37, %v6778_v35 }
0x18d8   :  { %10365 = vmatpush1.bf16.msra.mxu0 %v15519_v22  ;;  %v15585_v22 = vcombine.low %v6755_v25, %v6763_v11  ;;  %v6827_v25 = vld [vmem:[#allocation21 + $0x878] sm:$0xff] }
0x18d9   :  { %10471 = vmatpush1.bf16.msra.mxu1 %v15521_v54  ;;  %10366 = vmatprep.subr.bf16.mxu0 %v15536_v36  ;;  %v15600_v54 = vcombine.high %v6770_v37, %v6778_v35  ;;  %v15602_v36 = vcombine.high %v6771_v61, %v6779_v27  ;;  %v6842_v37 = vld [vmem:[#allocation21 + $0x8f0] sm:$0xff]  ;;  %v6835_v35 = vld [vmem:[#allocation21 + $0x8b8] sm:$0xff] }
0x18da   :  { %10472 = vmatprep.subr.bf16.mxu1 %v15538_v48  ;;  %v6786_v48 = vld [vmem:[#allocation21 + $0x730] sm:$0xff] }
0x18db   :  { %v15615_v12 = vcombine.low %v6786_v48, %v6794_v49 }
0x18dc   :  { %10367 = vmatpush1.bf16.msra.mxu0 %v15535_v32  ;;  %v15601_v32 = vcombine.low %v6771_v61, %v6779_v27  ;;  %v6843_v61 = vld [vmem:[#allocation21 + $0x8f8] sm:$0xff] }
0x18dd   :  { %10473 = vmatpush1.bf16.msra.mxu1 %v15537_v43  ;;  %10368 = vmatprep.subr.bf16.mxu0 %v15552_v5  ;;  %v15616_v43 = vcombine.high %v6786_v48, %v6794_v49  ;;  %v15618_v5 = vcombine.high %v6787_v63, %v6795_v29  ;;  %v6858_v48 = vld [vmem:[#allocation21 + $0x970] sm:$0xff]  ;;  %v6851_v49 = vld [vmem:[#allocation21 + $0x938] sm:$0xff] }
0x18de   :  { %10474 = vmatprep.subr.bf16.mxu1 %v15554_v10  ;;  %v6802_v10 = vld [vmem:[#allocation21 + $0x7b0] sm:$0xff] }
0x18df   :  { %v15631_v11 = vcombine.low %v6802_v10, %v6810_v51 }
0x18e0   :  { %10369 = vmatpush1.bf16.msra.mxu0 %v15551_v13  ;;  %v15617_v13 = vcombine.low %v6787_v63, %v6795_v29  ;;  %v6859_v63 = vld [vmem:[#allocation21 + $0x978] sm:$0xff] }
0x18e1   :  { %10475 = vmatpush1.bf16.msra.mxu1 %v15553_v42  ;;  %10370 = vmatprep.subr.bf16.mxu0 %v15568_v40  ;;  %v15632_v42 = vcombine.high %v6802_v10, %v6810_v51  ;;  %v15634_v40 = vcombine.high %v6803_v26, %v6811_v46  ;;  %v6874_v10 = vld [vmem:[#allocation21 + $0x9f0] sm:$0xff]  ;;  %v6867_v51 = vld [vmem:[#allocation21 + $0x9b8] sm:$0xff] }
0x18e2   :  { %10476 = vmatprep.subr.bf16.mxu1 %v15570_v50  ;;  %v6818_v50 = vld [vmem:[#allocation21 + $0x830] sm:$0xff] }
0x18e3   :  { %v15647_v27 = vcombine.low %v6818_v50, %v6826_v23 }
0x18e4   :  { %10371 = vmatpush1.bf16.msra.mxu0 %v15567_v0  ;;  %v15633_v0 = vcombine.low %v6803_v26, %v6811_v46  ;;  %v6875_v26 = vld [vmem:[#allocation21 + $0x9f8] sm:$0xff]  ;;  %v15681_v46 = vcombine.low %v6851_v49, %v6859_v63 }
0x18e5   :  { %10477 = vmatpush1.bf16.msra.mxu1 %v15569_v41  ;;  %10372 = vmatprep.subr.bf16.mxu0 %v15584_v44  ;;  %v15648_v41 = vcombine.high %v6818_v50, %v6826_v23  ;;  %v15650_v44 = vcombine.high %v6819_v28, %v6827_v25  ;;  %v6891_v50 = vld [vmem:[#allocation21 + $0xa78] sm:$0xff]  ;;  %v20862_v23 = vsub.s32 4, %v19573_v58 }
0x18e6   :  { %10478 = vmatprep.subr.bf16.mxu1 %v15586_v19  ;;  %v6834_v19 = vld [vmem:[#allocation21 + $0x8b0] sm:$0xff] }
0x18e7   :  { %v15663_v29 = vcombine.low %v6834_v19, %v6842_v37 }
0x18e8   :  { %10373 = vmatpush1.bf16.msra.mxu0 %v15583_v62  ;;  %v15649_v62 = vcombine.low %v6819_v28, %v6827_v25  ;;  %v20861_v25 = vsub.s32 6, %v19573_v58 }
0x18e9   :  { %10479 = vmatpush1.bf16.msra.mxu1 %v15585_v22  ;;  %10374 = vmatprep.subr.bf16.mxu0 %v15600_v54  ;;  %v15664_v22 = vcombine.high %v6834_v19, %v6842_v37  ;;  %v15666_v54 = vcombine.high %v6835_v35, %v6843_v61  ;;  %v6898_v19 = vld [vmem:[#allocation21 + $0xab0] sm:$0xff] }
0x18ea   :  { %10480 = vmatprep.subr.bf16.mxu1 %v15602_v36  ;;  %v6850_v36 = vld [vmem:[#allocation21 + $0x930] sm:$0xff] }
0x18eb   :  { %v6906_v37 = vld [vmem:[#allocation21 + $0xaf0] sm:$0xff] }
0x18ec   :  { %10375 = vmatpush1.bf16.msra.mxu0 %v15599_v30  ;;  %v15665_v30 = vcombine.low %v6835_v35, %v6843_v61  ;;  %v20483_v35 = vrot.slane %v20394_v57, %v20862_v23  ;;  %v6907_v61 = vld [vmem:[#allocation21 + $0xaf8] sm:$0xff] }
0x18ed   :  { %10481 = vmatpush1.bf16.msra.mxu1 %v15601_v32  ;;  %10376 = vmatprep.subr.bf16.mxu0 %v15616_v43  ;;  %v15680_v32 = vcombine.high %v6850_v36, %v6858_v48  ;;  %v15682_v43 = vcombine.high %v6851_v49, %v6859_v63 }
0x18ee   :  { %10482 = vmatprep.subr.bf16.mxu1 %v15618_v5  ;;  %v6866_v5 = vld [vmem:[#allocation21 + $0x9b0] sm:$0xff] }
0x18ef   :  { %v15695_v28 = vcombine.low %v6866_v5, %v6874_v10 }
0x18f0   :  { %10377 = vmatpush1.bf16.msra.mxu0 %v15615_v12  ;;  %v15696_v12 = vcombine.high %v6866_v5, %v6874_v10  ;;  %v6915_v10 = vld [vmem:[#allocation21 + $0xb38] sm:$0xff] }
0x18f1   :  { %10483 = vmatpush1.bf16.msra.mxu1 %v15617_v13  ;;  %10378 = vmatprep.subr.bf16.mxu0 %v15632_v42  ;;  %v6882_v13 = vld [vmem:[#allocation21 + $0xa30] sm:$0xff] }
0x18f2   :  { %10484 = vmatprep.subr.bf16.mxu1 %v15634_v40  ;;  %v6890_v42 = vld [vmem:[#allocation21 + $0xa70] sm:$0xff]  ;;  %v6883_v40 = vld [vmem:[#allocation21 + $0xa38] sm:$0xff] }
0x18f4   :  { %10379 = vmatpush1.bf16.msra.mxu0 %v15631_v11  ;;  %v20860_v11 = vsub.s32 5, %v19573_v58 }
0x18f5   :  { %10485 = vmatpush1.bf16.msra.mxu1 %v15633_v0  ;;  %10401 = vmatprep.subr.bf16.mxu0 %v15648_v41  ;;  %v15697_v0 = vcombine.low %v6867_v51, %v6875_v26  ;;  %v15712_v41 = vcombine.high %v6882_v13, %v6890_v42 }
0x18f6   :  { %10507 = vmatprep.subr.bf16.mxu1 %v15650_v44  ;;  %v15714_v44 = vcombine.high %v6883_v40, %v6891_v50 }
0x18f7   :  { %10381 = vmatmul.mubr.bf16.vlgmr.msra.gmra.mrb[120].mxu0 %v20264_v59 }
0x18f8   :  { %10487 = vmatmul.mubr.bf16.vlgmr.msra.gmra.mrb[120].mxu1 %v20264_v59  ;;  %10390 = vmatprep.mubr.bf16.mxu0 %v20330_v15  ;;  %v15679_v59 = vcombine.low %v6850_v36, %v6858_v48  ;;  %v15728_v48 = vcombine.high %v6898_v19, %v6906_v37 }
0x18f9   :  { %10402 = vmatpush1.bf16.msra.mxu0 %v15647_v27  ;;  %10496 = vmatprep.mubr.bf16.mxu1 %v20330_v15  ;;  %v15698_v15 = vcombine.high %v6867_v51, %v6875_v26  ;;  %v15711_v27 = vcombine.low %v6882_v13, %v6890_v42  ;;  %v6923_v51 = vld [vmem:[#allocation21 + $0xb78] sm:$0xff] }
0x18fa   :  { %10508 = vmatpush1.bf16.msra.mxu1 %v15649_v62  ;;  %10403 = vmatprep.subr.bf16.mxu0 %v15664_v22  ;;  %v20488_v62 = vrot.slane %v20394_v57, %v20861_v25  ;;  %v20493_v22 = vrot.slane %v20394_v57, %v20860_v11 }
0x18fb   :  { %10509 = vmatprep.subr.bf16.mxu1 %v15666_v54  ;;  %v15713_v54 = vcombine.low %v6883_v40, %v6891_v50 }
0x18fd   :  { %10404 = vmatpush1.bf16.msra.mxu0 %v15663_v29  ;;  %v6914_v29 = vld [vmem:[#allocation21 + $0xb30] sm:$0xff] }
0x18fe   :  { %10510 = vmatpush1.bf16.msra.mxu1 %v15665_v30  ;;  %10405 = vmatprep.subr.bf16.mxu0 %v15680_v32  ;;  %v6922_v30 = vld [vmem:[#allocation21 + $0xb70] sm:$0xff] }
0x18ff   :  { %10391 = vmatmul.mubr.bf16.gmra.mrb[124].mxu0 %v20334_v31  ;;  %10511 = vmatprep.subr.bf16.mxu1 %v15682_v43 }
0x1900   :  { %10497 = vmatmul.mubr.bf16.gmra.mrb[124].mxu1 %v20334_v31  ;;  %10433 = vmatprep.mubr.bf16.mxu0 %v20340_v38  ;;  %v20859_v31 = vsub.s32 7, %v19573_v58 }
0x1901   :  { %10406 = vmatpush1.bf16.msra.mxu0 %v15679_v59  ;;  %10539 = vmatprep.mubr.bf16.mxu1 %v20340_v38  ;;  %v6899_v38 = vld [vmem:[#allocation21 + $0xab8] sm:$0xff] }
0x1902   :  { %10512 = vmatpush1.bf16.msra.mxu1 %v15681_v46  ;;  %10407 = vmatprep.subr.bf16.mxu0 %v15696_v12  ;;  %v20498_v36 = vrot.slane %v20394_v57, %v20859_v31  ;;  %v15730_v63 = vcombine.high %v6899_v38, %v6907_v61  ;;  %v15727_v57 = vcombine.low %v6898_v19, %v6906_v37  ;;  %v20507_v19 = vld [vmem:[#allocation21 + $0xbb0] sm:$0xff] }
0x1903   :  { %10513 = vmatprep.subr.bf16.mxu1 %v15698_v15  ;;  %v15729_v12 = vcombine.low %v6899_v38, %v6907_v61  ;;  %v6938_v37 = vld [vmem:[#allocation21 + $0xbf0] sm:$0xff] }
0x1905   :  { %10408 = vmatpush1.bf16.msra.mxu0 %v15695_v28  ;;  %v15744_v28 = vcombine.high %v6914_v29, %v6922_v30 }
0x1906   :  { %10514 = vmatpush1.bf16.msra.mxu1 %v15697_v0  ;;  %10409 = vmatprep.subr.bf16.mxu0 %v15712_v41 }
0x1907   :  { %10515 = vmatprep.subr.bf16.mxu1 %v15714_v44  ;;  %v10011_v49 = vpop.f32.mrb[104].mxu0 }
0x1908   :  { %v16739_v32 = vadd.f32 %v10011_v49, %v20483_v35  ;;  %v10117_v43 = vpop.f32.mrb[104].mxu1  ;;  %v10013_v5 = vpop.f32.mrb[105].mxu0  ;;  %v15746_v49 = vcombine.high %v6915_v10, %v6923_v51 }
0x1909   :  { %10410 = vmatpush1.bf16.msra.mxu0 %v15711_v27  ;;  %v16747_v26 = vadd.f32 %v10117_v43, %v20488_v62  ;;  %v16740_v59 = vadd.f32 %v10013_v5, %v20493_v22  ;;  %v10119_v46 = vpop.f32.mrb[105].mxu1  ;;  %v10015_v15 = vpop.f32.mrb[106].mxu0  ;;  %v15743_v27 = vcombine.low %v6914_v29, %v6922_v30  ;;  %v6931_v43 = vld [vmem:[#allocation21 + $0xbb8] sm:$0xff]  ;;  %v15760_v30 = vcombine.high %v20507_v19, %v6938_v37 }
0x190a   :  { %10516 = vmatpush1.bf16.msra.mxu1 %v15713_v54  ;;  %v16748_v13 = vadd.f32 %v10119_v46, %v20498_v36  ;;  %10411 = vmatprep.subr.bf16.mxu0 %v15728_v48  ;;  %v16741_v42 = vadd.f32 %v10015_v15, %v20483_v35  ;;  %v10121_v40 = vpop.f32.mrb[106].mxu1  ;;  %v10017_v50 = vpop.f32.mrb[107].mxu0  ;;  %v10564_v38 = vmax.f32 %v16739_v32, 0.0  ;;  %v15745_v48 = vcombine.low %v6915_v10, %v6923_v51  ;;  %v6939_v5 = vld [vmem:[#allocation21 + $0xbf8] sm:$0xff] }
0x190b   :  { %10517 = vmatprep.subr.bf16.mxu1 %v15730_v63  ;;  %v16749_v0 = vadd.f32 %v10121_v40, %v20488_v62  ;;  %v16742_v41 = vadd.f32 %v10017_v50, %v20493_v22  ;;  %v10123_v44 = vpop.f32.mrb[107].mxu1  ;;  %v10566_v46 = vmax.f32 %v16747_v26, 0.0  ;;  %v10565_v15 = vmax.f32 %v16740_v59, 0.0  ;;  %v6946_v26 = vld [vmem:[#allocation21 + $0xc30] sm:$0xff] }
0x190c   :  { %v10580_v61 = vmax.f32 %v16741_v42, 0.0  ;;  %v16750_v54 = vadd.f32 %v10123_v44, %v20498_v36  ;;  %v10567_v31 = vmax.f32 %v16748_v13, 0.0  ;;  %v15762_v51 = vcombine.high %v6931_v43, %v6939_v5  ;;  %v6954_v59 = vld [vmem:[#allocation21 + $0xc70] sm:$0xff]  ;;  %v6955_v44 = vld [vmem:[#allocation21 + $0xc78] sm:$0xff] }
0x190d   :  { %v10582_v63 = vmax.f32 %v16749_v0, 0.0  ;;  %10412 = vmatpush1.bf16.msra.mxu0 %v15727_v57  ;;  %v10581_v40 = vmax.f32 %v16742_v41, 0.0 }
0x190e   :  { %v20510_v50 = vpack.c.bf16 %v10580_v61, %v10564_v38  ;;  %10518 = vmatpush1.bf16.msra.mxu1 %v15729_v12  ;;  %v10583_v29 = vmax.f32 %v16750_v54, 0.0  ;;  %10413 = vmatprep.subr.bf16.mxu0 %v15744_v28  ;;  %v6947_v12 = vld [vmem:[#allocation21 + $0xc38] sm:$0xff]  ;;  %v15761_v54 = vcombine.low %v6931_v43, %v6939_v5 }
0x190f   :  { %v20513_v32 = vpack.c.bf16 %v10582_v63, %v10566_v46  ;;  %v20515_v42 = vpack.c.bf16 %v10581_v40, %v10565_v15  ;;  %10519 = vmatprep.subr.bf16.mxu1 %v15746_v49  ;;  %v10021_v10 = vpop.f32.mrb[108].mxu0  ;;  %v15759_v49 = vcombine.low %v20507_v19, %v6938_v37  ;;  %v15778_v11 = vcombine.high %v6947_v12, %v6955_v44  ;;  %v6962_v19 = vld [vmem:[#allocation21 + $0xcb0] sm:$0xff] }
0x1910   :  { %v20517_v0 = vpack.c.bf16 %v10583_v29, %v10567_v31  ;;  %v16743_v57 = vadd.f32 %v10021_v10, %v20483_v35  ;;  %v10127_v13 = vpop.f32.mrb[108].mxu1  ;;  %v10023_v41 = vpop.f32.mrb[109].mxu0  ;;  %v15776_v29 = vcombine.high %v6946_v26, %v6954_v59  ;;  %v6970_v37 = vld [vmem:[#allocation21 + $0xcf0] sm:$0xff] }
0x1911   :  { %10414 = vmatpush1.bf16.msra.mxu0 %v15743_v27  ;;  %v16751_v28 = vadd.f32 %v10127_v13, %v20488_v62  ;;  %v16744_v38 = vadd.f32 %v10023_v41, %v20493_v22  ;;  %v10129_v61 = vpop.f32.mrb[109].mxu1  ;;  %v10025_v46 = vpop.f32.mrb[110].mxu0  ;;  %v15775_v41 = vcombine.low %v6946_v26, %v6954_v59  ;;  %v15792_v26 = vcombine.high %v6962_v19, %v6970_v37 }
0x1912   :  { %10520 = vmatpush1.bf16.msra.mxu1 %v15745_v48  ;;  %v16752_v31 = vadd.f32 %v10129_v61, %v20498_v36  ;;  %10415 = vmatprep.subr.bf16.mxu0 %v15760_v30  ;;  %v16745_v15 = vadd.f32 %v10025_v46, %v20483_v35  ;;  %v10131_v63 = vpop.f32.mrb[110].mxu1  ;;  %v10027_v40 = vpop.f32.mrb[111].mxu0  ;;  %v10596_v43 = vmax.f32 %v16743_v57, 0.0  ;;  %v15777_v30 = vcombine.low %v6947_v12, %v6955_v44  ;;  %v6963_v61 = vld [vmem:[#allocation21 + $0xcb8] sm:$0xff]  ;;  %v6978_v12 = vld [vmem:[#allocation21 + $0xd30] sm:$0xff] }
0x1913   :  { %10521 = vmatprep.subr.bf16.mxu1 %v15762_v51  ;;  %v16753_v27 = vadd.f32 %v10131_v63, %v20488_v62  ;;  %v16746_v10 = vadd.f32 %v10027_v40, %v20493_v22  ;;  %v10133_v13 = vpop.f32.mrb[111].mxu1  ;;  %v6971_v35 = vld [vmem:[#allocation21 + $0xcf8] sm:$0xff]  ;;  %v10598_v46 = vmax.f32 %v16751_v28, 0.0  ;;  %v10597_v25 = vmax.f32 %v16744_v38, 0.0  ;;  %v6986_v44 = vld [vmem:[#allocation21 + $0xd70] sm:$0xff] }
0x1914   :  { %v10612_v48 = vmax.f32 %v16745_v15, 0.0  ;;  %v16754_v5 = vadd.f32 %v10133_v13, %v20498_v36  ;;  %v10599_v62 = vmax.f32 %v16752_v31, 0.0  ;;  %v15794_v36 = vcombine.high %v6963_v61, %v6971_v35  ;;  %v6979_v38 = vld [vmem:[#allocation21 + $0xd38] sm:$0xff] }
0x1915   :  { %v10614_v23 = vmax.f32 %v16753_v27, 0.0  ;;  %10416 = vmatpush1.bf16.msra.mxu0 %v15759_v49  ;;  %v10613_v51 = vmax.f32 %v16746_v10, 0.0  ;;  %v6987_v49 = vld [vmem:[#allocation21 + $0xd78] sm:$0xff]  ;;  %v15791_v31 = vcombine.low %v6962_v19, %v6970_v37  ;;  %v15808_v15 = vcombine.high %v6978_v12, %v6986_v44  ;;  %v7018_v19 = vld [vmem:[#allocation21 + $0xe70] sm:$0xff] }
0x1916   :  { %v20528_v63 = vpack.c.bf16 %v10612_v48, %v10596_v43  ;;  %10522 = vmatpush1.bf16.msra.mxu1 %v15761_v54  ;;  %v10615_v22 = vmax.f32 %v16754_v5, 0.0  ;;  %10417 = vmatprep.subr.bf16.mxu0 %v15776_v29  ;;  %v15793_v54 = vcombine.low %v6963_v61, %v6971_v35  ;;  %v15810_v40 = vcombine.high %v6979_v38, %v6987_v49  ;;  %v7002_v29 = vld [vmem:[#allocation21 + $0xdf0] sm:$0xff]  ;;  %v7003_v27 = vld [vmem:[#allocation21 + $0xdf8] sm:$0xff] }
0x1917   :  { %v20530_v59 = vpack.c.bf16 %v10614_v23, %v10598_v46  ;;  %v20532_v57 = vpack.c.bf16 %v10613_v51, %v10597_v25  ;;  %10523 = vmatprep.subr.bf16.mxu1 %v15778_v11  ;;  %v6994_v23 = vld [vmem:[#allocation21 + $0xdb0] sm:$0xff]  ;;  %v6995_v25 = vld [vmem:[#allocation21 + $0xdb8] sm:$0xff]  ;;  %v15807_v11 = vcombine.low %v6978_v12, %v6986_v44  ;;  %v15809_v10 = vcombine.low %v6979_v38, %v6987_v49 }
0x1918   :  { %v20534_v28 = vpack.c.bf16 %v10615_v22, %v10599_v62  ;;  %v15824_v13 = vcombine.high %v6994_v23, %v7002_v29  ;;  %v15826_v43 = vcombine.high %v6995_v25, %v7003_v27  ;;  %v7011_v37 = vld [vmem:[#allocation21 + $0xe38] sm:$0xff]  ;;  %v15823_v5 = vcombine.low %v6994_v23, %v7002_v29  ;;  %v7026_v46 = vld [vmem:[#allocation21 + $0xeb0] sm:$0xff] }
0x1919   :  { %10418 = vmatpush1.bf16.msra.mxu0 %v15775_v41  ;;  %v7010_v41 = vld [vmem:[#allocation21 + $0xe30] sm:$0xff]  ;;  %v7019_v48 = vld [vmem:[#allocation21 + $0xe78] sm:$0xff] }
0x191a   :  { %10524 = vmatpush1.bf16.msra.mxu1 %v15777_v30  ;;  %10419 = vmatprep.subr.bf16.mxu0 %v15792_v26  ;;  %v15825_v30 = vcombine.low %v6995_v25, %v7003_v27  ;;  %v15840_v61 = vcombine.high %v7010_v41, %v7018_v19  ;;  %v15842_v35 = vcombine.high %v7011_v37, %v7019_v48  ;;  %v7034_v51 = vld [vmem:[#allocation21 + $0xef0] sm:$0xff]  ;;  %v7027_v62 = vld [vmem:[#allocation21 + $0xeb8] sm:$0xff] }
0x191b   :  { %10525 = vmatprep.subr.bf16.mxu1 %v15794_v36  ;;  %v7035_v22 = vld [vmem:[#allocation21 + $0xef8] sm:$0xff]  ;;  %v15839_v26 = vcombine.low %v7010_v41, %v7018_v19  ;;  %v15841_v36 = vcombine.low %v7011_v37, %v7019_v48  ;;  %v15856_v12 = vcombine.high %v7026_v46, %v7034_v51  ;;  %v7042_v38 = vld [vmem:[#allocation21 + $0xf30] sm:$0xff] }
0x191c   :  { %v15858_v44 = vcombine.high %v7027_v62, %v7035_v22  ;;  %v7050_v49 = vld [vmem:[#allocation21 + $0xf70] sm:$0xff] }
0x191d   :  { %10420 = vmatpush1.bf16.msra.mxu0 %v15791_v31  ;;  %v7043_v31 = vld [vmem:[#allocation21 + $0xf38] sm:$0xff]  ;;  %v15872_v23 = vcombine.high %v7042_v38, %v7050_v49  ;;  %v7058_v25 = vld [vmem:[#allocation21 + $0xfb0] sm:$0xff] }
0x191e   :  { %10526 = vmatpush1.bf16.msra.mxu1 %v15793_v54  ;;  %10421 = vmatprep.subr.bf16.mxu0 %v15808_v15  ;;  %v7051_v54 = vld [vmem:[#allocation21 + $0xf78] sm:$0xff]  ;;  %v15855_v15 = vcombine.low %v7026_v46, %v7034_v51  ;;  %v7066_v27 = vld [vmem:[#allocation21 + $0xff0] sm:$0xff] }
0x191f   :  { %10527 = vmatprep.subr.bf16.mxu1 %v15810_v40  ;;  %v15857_v40 = vcombine.low %v7027_v62, %v7035_v22  ;;  %v15874_v29 = vcombine.high %v7043_v31, %v7051_v54  ;;  %v15888_v41 = vcombine.high %v7058_v25, %v7066_v27  ;;  %v15887_v37 = vcombine.low %v7058_v25, %v7066_v27  ;;  %v17845_v46 = vld [vmem:[#allocation24 + $0x24] ss:$16 sps:$4 sm:$0xff]   ;;  %v17848_v51 = vld [vmem:[#allocation24 + $0x2c] ss:$16 sps:$4 sm:$0xff]   ;;  %v17843_v62 = vld [vmem:[#allocation24 + $0x20] ss:$16 sps:$4 sm:$0xff]  }
0x1920   :  { %v17846_v22 = vld [vmem:[#allocation24 + $0x28] ss:$16 sps:$4 sm:$0xff]   ;;  %v17875_v25 = vld [vmem:[#allocation24 + $0xc4] ss:$16 sps:$4 sm:$0xff]   ;;  %v17878_v27 = vld [vmem:[#allocation24 + $0xcc] ss:$16 sps:$4 sm:$0xff]  }
0x1921   :  { %10422 = vmatpush1.bf16.msra.mxu0 %v15807_v11  ;;  %v7059_v11 = vld [vmem:[#allocation21 + $0xfb8] sm:$0xff] }
0x1922   :  { %10528 = vmatpush1.bf16.msra.mxu1 %v15809_v10  ;;  %10423 = vmatprep.subr.bf16.mxu0 %v15824_v13  ;;  %v7067_v10 = vld [vmem:[#allocation21 + $0xff8] sm:$0xff]  ;;  %v15871_v13 = vcombine.low %v7042_v38, %v7050_v49  ;;  %v17857_v38 = vld [vmem:[#allocation24 + $0x64] ss:$16 sps:$4 sm:$0xff]  }
0x1923   :  { %10529 = vmatprep.subr.bf16.mxu1 %v15826_v43  ;;  %v15873_v43 = vcombine.low %v7043_v31, %v7051_v54  ;;  %v15890_v19 = vcombine.high %v7059_v11, %v7067_v10  ;;  %v15889_v48 = vcombine.low %v7059_v11, %v7067_v10  ;;  %v17858_v49 = vld [vmem:[#allocation24 + $0x68] ss:$16 sps:$4 sm:$0xff]   ;;  %v17863_v31 = vld [vmem:[#allocation24 + $0x84] ss:$16 sps:$4 sm:$0xff]   ;;  %v17866_v54 = vld [vmem:[#allocation24 + $0x8c] ss:$16 sps:$4 sm:$0xff]  }
0x1924   :  { %v17873_v11 = vld [vmem:[#allocation24 + $0xc0] ss:$16 sps:$4 sm:$0xff]   ;;  %v17876_v10 = vld [vmem:[#allocation24 + $0xc8] ss:$16 sps:$4 sm:$0xff]  }
0x1925   :  { %10424 = vmatpush1.bf16.msra.mxu0 %v15823_v5  ;;  %v17839_v5 = vld [vmem:[#allocation24 + $0x4] ss:$16 sps:$4 sm:$0xff]  }
0x1926   :  { %10530 = vmatpush1.bf16.msra.mxu1 %v15825_v30  ;;  %10425 = vmatprep.subr.bf16.mxu0 %v15840_v61  ;;  %v17842_v30 = vld [vmem:[#allocation24 + $0xc] ss:$16 sps:$4 sm:$0xff]   ;;  %v17837_v61 = vld [vmem:[#allocation24] ss:$16 sps:$4 sm:$0xff]  }
0x1927   :  { %10531 = vmatprep.subr.bf16.mxu1 %v15842_v35  ;;  %v17840_v35 = vld [vmem:[#allocation24 + $0x8] ss:$16 sps:$4 sm:$0xff]  }
0x1929   :  { %10426 = vmatpush1.bf16.msra.mxu0 %v15839_v26  ;;  %v17851_v26 = vld [vmem:[#allocation24 + $0x44] ss:$16 sps:$4 sm:$0xff]  }
0x192a   :  { %10532 = vmatpush1.bf16.msra.mxu1 %v15841_v36  ;;  %10427 = vmatprep.subr.bf16.mxu0 %v15856_v12  ;;  %v17854_v36 = vld [vmem:[#allocation24 + $0x4c] ss:$16 sps:$4 sm:$0xff]   ;;  %v17849_v12 = vld [vmem:[#allocation24 + $0x40] ss:$16 sps:$4 sm:$0xff]  }
0x192b   :  { %10533 = vmatprep.subr.bf16.mxu1 %v15858_v44  ;;  %v17852_v44 = vld [vmem:[#allocation24 + $0x48] ss:$16 sps:$4 sm:$0xff]  }
0x192d   :  { %10428 = vmatpush1.bf16.msra.mxu0 %v15855_v15  ;;  %v17861_v15 = vld [vmem:[#allocation24 + $0x80] ss:$16 sps:$4 sm:$0xff]  }
0x192e   :  { %10534 = vmatpush1.bf16.msra.mxu1 %v15857_v40  ;;  %10429 = vmatprep.subr.bf16.mxu0 %v15872_v23  ;;  %v17864_v40 = vld [vmem:[#allocation24 + $0x88] ss:$16 sps:$4 sm:$0xff]   ;;  %v17869_v23 = vld [vmem:[#allocation24 + $0xa4] ss:$16 sps:$4 sm:$0xff]  }
0x192f   :  { %10535 = vmatprep.subr.bf16.mxu1 %v15874_v29  ;;  %v17867_v29 = vld [vmem:[#allocation24 + $0xa0] ss:$16 sps:$4 sm:$0xff]  }
0x1931   :  { %10430 = vmatpush1.bf16.msra.mxu0 %v15871_v13  ;;  %v17881_v13 = vld [vmem:[#allocation24 + $0xe4] ss:$16 sps:$4 sm:$0xff]  }
0x1932   :  { %10536 = vmatpush1.bf16.msra.mxu1 %v15873_v43  ;;  %10431 = vmatprep.subr.bf16.mxu0 %v15888_v41  ;;  %v17884_v43 = vld [vmem:[#allocation24 + $0xec] ss:$16 sps:$4 sm:$0xff]   ;;  %v17879_v41 = vld [vmem:[#allocation24 + $0xe0] ss:$16 sps:$4 sm:$0xff]  }
0x1933   :  { %10537 = vmatprep.subr.bf16.mxu1 %v15890_v19  ;;  %v17882_v19 = vld [vmem:[#allocation24 + $0xe8] ss:$16 sps:$4 sm:$0xff]  }
0x1935   :  { %10432 = vmatpush1.bf16.msra.mxu0 %v15887_v37  ;;  %v17887_v37 = vld [vmem:[#allocation24 + $0x104] ss:$16 sps:$4 sm:$0xff]  }
0x1936   :  { %10538 = vmatpush1.bf16.msra.mxu1 %v15889_v48  ;;  %13750 = vmatprep.subr.bf16.mxu0 %v17839_v5  ;;  %v17890_v48 = vld [vmem:[#allocation24 + $0x10c] ss:$16 sps:$4 sm:$0xff]   ;;  %v17885_v5 = vld [vmem:[#allocation24 + $0x100] ss:$16 sps:$4 sm:$0xff]  }
0x1937   :  { %14174 = vmatprep.subr.bf16.mxu1 %v17842_v30  ;;  %v17888_v30 = vld [vmem:[#allocation24 + $0x108] ss:$16 sps:$4 sm:$0xff]  }
0x1938   :  { %10434 = vmatmul.mubr.bf16.vlgmr.msra.gmra.mrb[120].mxu0 %v20352_v18 }
0x1939   :  { %10540 = vmatmul.mubr.bf16.vlgmr.msra.gmra.mrb[120].mxu1 %v20352_v18  ;;  %10443 = vmatprep.mubr.bf16.mxu0 %v20358_v53  ;;  %v17860_v18 = vld [vmem:[#allocation24 + $0x6c] ss:$16 sps:$4 sm:$0xff]  }
0x193a   :  { %10549 = vmatprep.mubr.bf16.mxu1 %v20358_v53  ;;  %13751 = vmatpush1.bf16.msra.mxu0 %v17837_v61  ;;  %v17855_v53 = vld [vmem:[#allocation24 + $0x60] ss:$16 sps:$4 sm:$0xff]   ;;  %v17893_v61 = vld [vmem:[#allocation24 + $0x124] ss:$16 sps:$4 sm:$0xff]  }
0x193b   :  { %14175 = vmatpush1.bf16.msra.mxu1 %v17840_v35  ;;  %13752 = vmatprep.subr.bf16.mxu0 %v17845_v46  ;;  %v17896_v35 = vld [vmem:[#allocation24 + $0x12c] ss:$16 sps:$4 sm:$0xff]   ;;  %v17891_v46 = vld [vmem:[#allocation24 + $0x120] ss:$16 sps:$4 sm:$0xff]  }
0x193c   :  { %14176 = vmatprep.subr.bf16.mxu1 %v17848_v51  ;;  %v17894_v51 = vld [vmem:[#allocation24 + $0x128] ss:$16 sps:$4 sm:$0xff]  }
0x193e   :  { %13753 = vmatpush1.bf16.msra.mxu0 %v17843_v62  ;;  %v17899_v62 = vld [vmem:[#allocation24 + $0x144] ss:$16 sps:$4 sm:$0xff]  }
0x193f   :  { %14177 = vmatpush1.bf16.msra.mxu1 %v17846_v22  ;;  %13754 = vmatprep.subr.bf16.mxu0 %v17851_v26  ;;  %v17902_v22 = vld [vmem:[#allocation24 + $0x14c] ss:$16 sps:$4 sm:$0xff]   ;;  %v17897_v26 = vld [vmem:[#allocation24 + $0x140] ss:$16 sps:$4 sm:$0xff]  }
0x1940   :  { %10444 = vmatmul.mubr.bf16.gmra.mrb[124].mxu0 %v20364_v56  ;;  %14178 = vmatprep.subr.bf16.mxu1 %v17854_v36  ;;  %v17900_v36 = vld [vmem:[#allocation24 + $0x148] ss:$16 sps:$4 sm:$0xff]  }
0x1941   :  { %10550 = vmatmul.mubr.bf16.gmra.mrb[124].mxu1 %v20364_v56  ;;  %13782 = vmatprep.mubr.bf16.mxu0 %v20436_v8  ;;  %v17872_v56 = vld [vmem:[#allocation24 + $0xac] ss:$16 sps:$4 sm:$0xff]  }
0x1942   :  { %13755 = vmatpush1.bf16.msra.mxu0 %v17849_v12  ;;  %14206 = vmatprep.mubr.bf16.mxu1 %v20436_v8  ;;  %v17870_v8 = vld [vmem:[#allocation24 + $0xa8] ss:$16 sps:$4 sm:$0xff]   ;;  %v17905_v12 = vld [vmem:[#allocation24 + $0x164] ss:$16 sps:$4 sm:$0xff]  }
0x1943   :  { %14179 = vmatpush1.bf16.msra.mxu1 %v17852_v44  ;;  %13756 = vmatprep.subr.bf16.mxu0 %v17857_v38  ;;  %v17908_v44 = vld [vmem:[#allocation24 + $0x16c] ss:$16 sps:$4 sm:$0xff]   ;;  %v17903_v38 = vld [vmem:[#allocation24 + $0x160] ss:$16 sps:$4 sm:$0xff]  }
0x1944   :  { %14180 = vmatprep.subr.bf16.mxu1 %v17860_v18  ;;  %v17906_v18 = vld [vmem:[#allocation24 + $0x168] ss:$16 sps:$4 sm:$0xff]  }
0x1946   :  { %13757 = vmatpush1.bf16.msra.mxu0 %v17855_v53  ;;  %v17911_v53 = vld [vmem:[#allocation24 + $0x184] ss:$16 sps:$4 sm:$0xff]  }
0x1947   :  { %14181 = vmatpush1.bf16.msra.mxu1 %v17858_v49  ;;  %13758 = vmatprep.subr.bf16.mxu0 %v17863_v31  ;;  %v17914_v49 = vld [vmem:[#allocation24 + $0x18c] ss:$16 sps:$4 sm:$0xff]   ;;  %v17909_v31 = vld [vmem:[#allocation24 + $0x180] ss:$16 sps:$4 sm:$0xff]  }
0x1948   :  { %14182 = vmatprep.subr.bf16.mxu1 %v17866_v54  ;;  %v17912_v54 = vld [vmem:[#allocation24 + $0x188] ss:$16 sps:$4 sm:$0xff]  }
0x194a   :  { %13759 = vmatpush1.bf16.msra.mxu0 %v17861_v15  ;;  %v17917_v15 = vld [vmem:[#allocation24 + $0x1a4] ss:$16 sps:$4 sm:$0xff]  }
0x194b   :  { %14183 = vmatpush1.bf16.msra.mxu1 %v17864_v40  ;;  %13760 = vmatprep.subr.bf16.mxu0 %v17869_v23  ;;  %v17920_v40 = vld [vmem:[#allocation24 + $0x1ac] ss:$16 sps:$4 sm:$0xff]   ;;  %v17915_v23 = vld [vmem:[#allocation24 + $0x1a0] ss:$16 sps:$4 sm:$0xff]  }
0x194c   :  { %14184 = vmatprep.subr.bf16.mxu1 %v17872_v56  ;;  %v17918_v56 = vld [vmem:[#allocation24 + $0x1a8] ss:$16 sps:$4 sm:$0xff]  }
0x194e   :  { %13761 = vmatpush1.bf16.msra.mxu0 %v17867_v29  ;;  %v17923_v29 = vld [vmem:[#allocation24 + $0x1c4] ss:$16 sps:$4 sm:$0xff]  }
0x194f   :  { %14185 = vmatpush1.bf16.msra.mxu1 %v17870_v8  ;;  %13762 = vmatprep.subr.bf16.mxu0 %v17875_v25  ;;  %v17926_v8 = vld [vmem:[#allocation24 + $0x1cc] ss:$16 sps:$4 sm:$0xff]   ;;  %v17921_v25 = vld [vmem:[#allocation24 + $0x1c0] ss:$16 sps:$4 sm:$0xff]  }
0x1950   :  { %14186 = vmatprep.subr.bf16.mxu1 %v17878_v27  ;;  %v17924_v27 = vld [vmem:[#allocation24 + $0x1c8] ss:$16 sps:$4 sm:$0xff]  }
0x1952   :  { %13763 = vmatpush1.bf16.msra.mxu0 %v17873_v11  ;;  %v17929_v11 = vld [vmem:[#allocation24 + $0x1e4] ss:$16 sps:$4 sm:$0xff]  }
0x1953   :  { %14187 = vmatpush1.bf16.msra.mxu1 %v17876_v10  ;;  %13764 = vmatprep.subr.bf16.mxu0 %v17881_v13  ;;  %v17932_v10 = vld [vmem:[#allocation24 + $0x1ec] ss:$16 sps:$4 sm:$0xff]   ;;  %v17927_v13 = vld [vmem:[#allocation24 + $0x1e0] ss:$16 sps:$4 sm:$0xff]  }
0x1954   :  { %14188 = vmatprep.subr.bf16.mxu1 %v17884_v43  ;;  %v17930_v43 = vld [vmem:[#allocation24 + $0x1e8] ss:$16 sps:$4 sm:$0xff]  }
0x1956   :  { %13765 = vmatpush1.bf16.msra.mxu0 %v17879_v41  ;;  %v17935_v41 = vld [vmem:[#allocation24 + $0x204] ss:$16 sps:$4 sm:$0xff]  }
0x1957   :  { %14189 = vmatpush1.bf16.msra.mxu1 %v17882_v19  ;;  %13766 = vmatprep.subr.bf16.mxu0 %v17887_v37  ;;  %v17938_v19 = vld [vmem:[#allocation24 + $0x20c] ss:$16 sps:$4 sm:$0xff]   ;;  %v17933_v37 = vld [vmem:[#allocation24 + $0x200] ss:$16 sps:$4 sm:$0xff]  }
0x1958   :  { %14190 = vmatprep.subr.bf16.mxu1 %v17890_v48  ;;  %v17936_v48 = vld [vmem:[#allocation24 + $0x208] ss:$16 sps:$4 sm:$0xff]  }
0x195a   :  { %13767 = vmatpush1.bf16.msra.mxu0 %v17885_v5  ;;  %v17941_v5 = vld [vmem:[#allocation24 + $0x224] ss:$16 sps:$4 sm:$0xff]  }
0x195b   :  { %14191 = vmatpush1.bf16.msra.mxu1 %v17888_v30  ;;  %13768 = vmatprep.subr.bf16.mxu0 %v17893_v61  ;;  %v17944_v30 = vld [vmem:[#allocation24 + $0x22c] ss:$16 sps:$4 sm:$0xff]   ;;  %v17939_v61 = vld [vmem:[#allocation24 + $0x220] ss:$16 sps:$4 sm:$0xff]  }
0x195c   :  { %14192 = vmatprep.subr.bf16.mxu1 %v17896_v35  ;;  %v17942_v35 = vld [vmem:[#allocation24 + $0x228] ss:$16 sps:$4 sm:$0xff]  }
0x195e   :  { %13769 = vmatpush1.bf16.msra.mxu0 %v17891_v46  ;;  %v17947_v46 = vld [vmem:[#allocation24 + $0x244] ss:$16 sps:$4 sm:$0xff]  }
0x195f   :  { %14193 = vmatpush1.bf16.msra.mxu1 %v17894_v51  ;;  %13770 = vmatprep.subr.bf16.mxu0 %v17899_v62  ;;  %v17950_v51 = vld [vmem:[#allocation24 + $0x24c] ss:$16 sps:$4 sm:$0xff]   ;;  %v17945_v62 = vld [vmem:[#allocation24 + $0x240] ss:$16 sps:$4 sm:$0xff]  }
0x1960   :  { %14194 = vmatprep.subr.bf16.mxu1 %v17902_v22  ;;  %v17948_v22 = vld [vmem:[#allocation24 + $0x248] ss:$16 sps:$4 sm:$0xff]  }
0x1962   :  { %13771 = vmatpush1.bf16.msra.mxu0 %v17897_v26  ;;  %v17953_v26 = vld [vmem:[#allocation24 + $0x264] ss:$16 sps:$4 sm:$0xff]  }
0x1963   :  { %14195 = vmatpush1.bf16.msra.mxu1 %v17900_v36  ;;  %13772 = vmatprep.subr.bf16.mxu0 %v17905_v12  ;;  %v20552_v36 = vld [vmem:[#allocation23 + $0x8] sm:$0xff] }
0x1964   :  { %14196 = vmatprep.subr.bf16.mxu1 %v17908_v44  ;;  %v17954_v12 = vld [vmem:[#allocation24 + $0x268] ss:$16 sps:$4 sm:$0xff]   ;;  %v17959_v44 = vld [vmem:[#allocation24 + $0x284] ss:$16 sps:$4 sm:$0xff]  }
0x1966   :  { %13773 = vmatpush1.bf16.msra.mxu0 %v17903_v38  ;;  %v17962_v38 = vld [vmem:[#allocation24 + $0x28c] ss:$16 sps:$4 sm:$0xff]  }
0x1967   :  { %14197 = vmatpush1.bf16.msra.mxu1 %v17906_v18  ;;  %13774 = vmatprep.subr.bf16.mxu0 %v17911_v53  ;;  %v20556_v18 = vrot.slane %v20552_v36, %v19582_v3  ;;  %v20560_v53 = vrot.slane %v20552_v36, %v19601_v55 }
0x1968   :  { %14198 = vmatprep.subr.bf16.mxu1 %v17914_v49  ;;  %v17960_v49 = vld [vmem:[#allocation24 + $0x288] ss:$16 sps:$4 sm:$0xff]  }
0x196a   :  { %13775 = vmatpush1.bf16.msra.mxu0 %v17909_v31  ;;  %v20568_v31 = vrot.slane %v20552_v36, %v19604_v60 }
0x196b   :  { %14199 = vmatpush1.bf16.msra.mxu1 %v17912_v54  ;;  %13776 = vmatprep.subr.bf16.mxu0 %v17917_v15  ;;  %v17965_v54 = vld [vmem:[#allocation24 + $0x2a4] ss:$16 sps:$4 sm:$0xff]  }
0x196c   :  { %14200 = vmatprep.subr.bf16.mxu1 %v17920_v40  ;;  %v17968_v40 = vld [vmem:[#allocation24 + $0x2ac] ss:$16 sps:$4 sm:$0xff]  }
0x196e   :  { %13777 = vmatpush1.bf16.msra.mxu0 %v17915_v23 }
0x196f   :  { %14201 = vmatpush1.bf16.msra.mxu1 %v17918_v56  ;;  %13778 = vmatprep.subr.bf16.mxu0 %v17923_v29 }
0x1970   :  { %14202 = vmatprep.subr.bf16.mxu1 %v17926_v8 }
0x1972   :  { %13779 = vmatpush1.bf16.msra.mxu0 %v17921_v25 }
0x1973   :  { %14203 = vmatpush1.bf16.msra.mxu1 %v17924_v27  ;;  %13780 = vmatprep.subr.bf16.mxu0 %v17929_v11  ;;  %v17963_v11 = vld [vmem:[#allocation24 + $0x2a0] ss:$16 sps:$4 sm:$0xff]  }
0x1974   :  { %14204 = vmatprep.subr.bf16.mxu1 %v17932_v10 }
0x1976   :  { %13781 = vmatpush1.bf16.msra.mxu0 %v17927_v13 }
0x1977   :  { %14205 = vmatpush1.bf16.msra.mxu1 %v17930_v43  ;;  %13803 = vmatprep.subr.bf16.mxu0 %v17935_v41  ;;  %v17966_v43 = vld [vmem:[#allocation24 + $0x2a8] ss:$16 sps:$4 sm:$0xff]  }
0x1978   :  { %14227 = vmatprep.subr.bf16.mxu1 %v17938_v19 }
0x1979   :  { %13783 = vmatmul.mubr.bf16.vlgmr.msra.gmra.mrb[128].mxu0 %v20432_v14 }
0x197a   :  { %14207 = vmatmul.mubr.bf16.vlgmr.msra.gmra.mrb[128].mxu1 %v20432_v14  ;;  %13792 = vmatprep.mubr.bf16.mxu0 %v20456_v1  ;;  %v17956_v14 = vld [vmem:[#allocation24 + $0x26c] ss:$16 sps:$4 sm:$0xff]  }
0x197b   :  { %13804 = vmatpush1.bf16.msra.mxu0 %v17933_v37  ;;  %14216 = vmatprep.mubr.bf16.mxu1 %v20456_v1  ;;  %v17951_v1 = vld [vmem:[#allocation24 + $0x260] ss:$16 sps:$4 sm:$0xff]  }
0x197c   :  { %14228 = vmatpush1.bf16.msra.mxu1 %v17936_v48  ;;  %13805 = vmatprep.subr.bf16.mxu0 %v17941_v5  ;;  %v17971_v48 = vld [vmem:[#allocation24 + $0x2c4] ss:$16 sps:$4 sm:$0xff]  }
0x197d   :  { %14229 = vmatprep.subr.bf16.mxu1 %v17944_v30 }
0x197f   :  { %13806 = vmatpush1.bf16.msra.mxu0 %v17939_v61 }
0x1980   :  { %14230 = vmatpush1.bf16.msra.mxu1 %v17942_v35  ;;  %13807 = vmatprep.subr.bf16.mxu0 %v17947_v46  ;;  %v17974_v35 = vld [vmem:[#allocation24 + $0x2cc] ss:$16 sps:$4 sm:$0xff]  }
0x1981   :  { %13793 = vmatmul.mubr.bf16.gmra.mrb[132].mxu0 %v20452_v16  ;;  %14231 = vmatprep.subr.bf16.mxu1 %v17950_v51 }
0x1982   :  { %14217 = vmatmul.mubr.bf16.gmra.mrb[132].mxu1 %v20452_v16  ;;  %13835 = vmatprep.mubr.bf16.mxu0 %v20438_v45  ;;  %v17957_v16 = vld [vmem:[#allocation24 + $0x280] ss:$16 sps:$4 sm:$0xff]  }
0x1983   :  { %13808 = vmatpush1.bf16.msra.mxu0 %v17945_v62  ;;  %14259 = vmatprep.mubr.bf16.mxu1 %v20438_v45  ;;  %v20564_v45 = vrot.slane %v20552_v36, %v19579_v2 }
0x1984   :  { %14232 = vmatpush1.bf16.msra.mxu1 %v17948_v22  ;;  %13809 = vmatprep.subr.bf16.mxu0 %v17953_v26 }
0x1985   :  { %14233 = vmatprep.subr.bf16.mxu1 %v17956_v14 }
0x1987   :  { %13810 = vmatpush1.bf16.msra.mxu0 %v17951_v1 }
0x1988   :  { %14234 = vmatpush1.bf16.msra.mxu1 %v17954_v12  ;;  %13811 = vmatprep.subr.bf16.mxu0 %v17959_v44  ;;  %v17969_v12 = vld [vmem:[#allocation24 + $0x2c0] ss:$16 sps:$4 sm:$0xff]  }
0x1989   :  { %14235 = vmatprep.subr.bf16.mxu1 %v17962_v38  ;;  %v10223_v15 = vpop.f32.mrb[112].mxu0 }
0x198a   :  { %v16755_v23 = vadd.f32 %v10223_v15, %v20556_v18  ;;  %v10329_v56 = vpop.f32.mrb[112].mxu1  ;;  %v10225_v29 = vpop.f32.mrb[113].mxu0 }
0x198b   :  { %13812 = vmatpush1.bf16.msra.mxu0 %v17957_v16  ;;  %v16763_v8 = vadd.f32 %v10329_v56, %v20560_v53  ;;  %v16756_v25 = vadd.f32 %v10225_v29, %v20564_v45  ;;  %v10331_v27 = vpop.f32.mrb[113].mxu1  ;;  %v10227_v10 = vpop.f32.mrb[114].mxu0  ;;  %v17980_v56 = vld [vmem:[#allocation24 + $0x2ec] ss:$16 sps:$4 sm:$0xff]  }
0x198c   :  { %14236 = vmatpush1.bf16.msra.mxu1 %v17960_v49  ;;  %v16764_v13 = vadd.f32 %v10331_v27, %v20568_v31  ;;  %13813 = vmatprep.subr.bf16.mxu0 %v17965_v54  ;;  %v16757_v41 = vadd.f32 %v10227_v10, %v20556_v18  ;;  %v10333_v19 = vpop.f32.mrb[114].mxu1  ;;  %v10229_v37 = vpop.f32.mrb[115].mxu0  ;;  %v10568_v46 = vmax.f32 %v16755_v23, 0.0  ;;  %v17972_v49 = vld [vmem:[#allocation24 + $0x2c8] ss:$16 sps:$4 sm:$0xff]  }
0x198d   :  { %14237 = vmatprep.subr.bf16.mxu1 %v17968_v40  ;;  %v16765_v5 = vadd.f32 %v10333_v19, %v20560_v53  ;;  %v16758_v30 = vadd.f32 %v10229_v37, %v20564_v45  ;;  %v10335_v61 = vpop.f32.mrb[115].mxu1  ;;  %v10570_v22 = vmax.f32 %v16763_v8, 0.0  ;;  %v10569_v26 = vmax.f32 %v16756_v25, 0.0  ;;  %v17977_v54 = vld [vmem:[#allocation24 + $0x2e4] ss:$16 sps:$4 sm:$0xff]  }
0x198e   :  { %v10584_v51 = vmax.f32 %v16757_v41, 0.0  ;;  %v16766_v62 = vadd.f32 %v10335_v61, %v20568_v31  ;;  %v10571_v44 = vmax.f32 %v16764_v13, 0.0  ;;  %v17978_v37 = vld [vmem:[#allocation24 + $0x2e8] ss:$16 sps:$4 sm:$0xff]   ;;  %v17983_v61 = vld [vmem:[#allocation24 + $0x304] ss:$16 sps:$4 sm:$0xff]  }
0x198f   :  { %v10586_v14 = vmax.f32 %v16765_v5, 0.0  ;;  %13814 = vmatpush1.bf16.msra.mxu0 %v17963_v11  ;;  %v10585_v1 = vmax.f32 %v16758_v30, 0.0 }
0x1990   :  { %v20578_v38 = vpack.c.bf16 %v10584_v51, %v10568_v46  ;;  %14238 = vmatpush1.bf16.msra.mxu1 %v17966_v43  ;;  %v10587_v16 = vmax.f32 %v16766_v62, 0.0  ;;  %13815 = vmatprep.subr.bf16.mxu0 %v17971_v48  ;;  %v17975_v43 = vld [vmem:[#allocation24 + $0x2e0] ss:$16 sps:$4 sm:$0xff]   ;;  %v17986_v62 = vld [vmem:[#allocation24 + $0x30c] ss:$16 sps:$4 sm:$0xff]  }
0x1991   :  { %v20580_v15 = vpack.c.bf16 %v10586_v14, %v10570_v22  ;;  %v20582_v40 = vpack.c.bf16 %v10585_v1, %v10569_v26  ;;  %14239 = vmatprep.subr.bf16.mxu1 %v17974_v35  ;;  %v10233_v23 = vpop.f32.mrb[116].mxu0 }
0x1992   :  { %v20584_v29 = vpack.c.bf16 %v10587_v16, %v10571_v44  ;;  %v16759_v8 = vadd.f32 %v10233_v23, %v20556_v18  ;;  %v10339_v25 = vpop.f32.mrb[116].mxu1  ;;  %v10235_v27 = vpop.f32.mrb[117].mxu0 }
0x1993   :  { %13816 = vmatpush1.bf16.msra.mxu0 %v17969_v12  ;;  %v16767_v11 = vadd.f32 %v10339_v25, %v20560_v53  ;;  %v16760_v10 = vadd.f32 %v10235_v27, %v20564_v45  ;;  %v10341_v13 = vpop.f32.mrb[117].mxu1  ;;  %v10237_v41 = vpop.f32.mrb[118].mxu0  ;;  %v17987_v27 = vld [vmem:[#allocation24 + $0x320] ss:$16 sps:$4 sm:$0xff]  }
0x1994   :  { %14240 = vmatpush1.bf16.msra.mxu1 %v17972_v49  ;;  %v16768_v19 = vadd.f32 %v10341_v13, %v20568_v31  ;;  %13817 = vmatprep.subr.bf16.mxu0 %v17977_v54  ;;  %v16761_v48 = vadd.f32 %v10237_v41, %v20556_v18  ;;  %v10343_v5 = vpop.f32.mrb[118].mxu1  ;;  %v10239_v30 = vpop.f32.mrb[119].mxu0  ;;  %v10600_v22 = vmax.f32 %v16759_v8, 0.0  ;;  %v17981_v18 = vld [vmem:[#allocation24 + $0x300] ss:$16 sps:$4 sm:$0xff]  }
0x1995   :  { %14241 = vmatprep.subr.bf16.mxu1 %v17980_v56  ;;  %v16769_v35 = vadd.f32 %v10343_v5, %v20560_v53  ;;  %v16762_v46 = vadd.f32 %v10239_v30, %v20564_v45  ;;  %v10345_v51 = vpop.f32.mrb[119].mxu1  ;;  %v10602_v1 = vmax.f32 %v16767_v11, 0.0  ;;  %v10601_v12 = vmax.f32 %v16760_v10, 0.0  ;;  %v17984_v53 = vld [vmem:[#allocation24 + $0x308] ss:$16 sps:$4 sm:$0xff]  }
0x1996   :  { %v10616_v26 = vmax.f32 %v16761_v48, 0.0  ;;  %v16770_v14 = vadd.f32 %v10345_v51, %v20568_v31  ;;  %v10603_v49 = vmax.f32 %v16768_v19, 0.0  ;;  %v17989_v45 = vld [vmem:[#allocation24 + $0x324] ss:$16 sps:$4 sm:$0xff]   ;;  %v17992_v31 = vld [vmem:[#allocation24 + $0x32c] ss:$16 sps:$4 sm:$0xff]  }
0x1997   :  { %v10618_v44 = vmax.f32 %v16769_v35, 0.0  ;;  %13818 = vmatpush1.bf16.msra.mxu0 %v17975_v43  ;;  %v10617_v16 = vmax.f32 %v16762_v46, 0.0  ;;  %v17990_v11 = vld [vmem:[#allocation24 + $0x328] ss:$16 sps:$4 sm:$0xff]   ;;  %v17995_v10 = vld [vmem:[#allocation24 + $0x344] ss:$16 sps:$4 sm:$0xff]  }
0x1998   :  { %v20594_v54 = vpack.c.bf16 %v10616_v26, %v10600_v22  ;;  %14242 = vmatpush1.bf16.msra.mxu1 %v17978_v37  ;;  %v10619_v23 = vmax.f32 %v16770_v14, 0.0  ;;  %13819 = vmatprep.subr.bf16.mxu0 %v17983_v61  ;;  %v17998_v13 = vld [vmem:[#allocation24 + $0x34c] ss:$16 sps:$4 sm:$0xff]   ;;  %v17993_v43 = vld [vmem:[#allocation24 + $0x340] ss:$16 sps:$4 sm:$0xff]  }
0x1999   :  { %v20596_v56 = vpack.c.bf16 %v10618_v44, %v10602_v1  ;;  %v20598_v8 = vpack.c.bf16 %v10617_v16, %v10601_v12  ;;  %14243 = vmatprep.subr.bf16.mxu1 %v17986_v62  ;;  %v17996_v41 = vld [vmem:[#allocation24 + $0x348] ss:$16 sps:$4 sm:$0xff]   ;;  %v18001_v19 = vld [vmem:[#allocation24 + $0x364] ss:$16 sps:$4 sm:$0xff]   ;;  %v18004_v37 = vld [vmem:[#allocation24 + $0x36c] ss:$16 sps:$4 sm:$0xff]  }
0x199a   :  { %v20600_v25 = vpack.c.bf16 %v10619_v23, %v10603_v49  ;;  %v17999_v48 = vld [vmem:[#allocation24 + $0x360] ss:$16 sps:$4 sm:$0xff]   ;;  %v18002_v5 = vld [vmem:[#allocation24 + $0x368] ss:$16 sps:$4 sm:$0xff]   ;;  %v18007_v30 = vld [vmem:[#allocation24 + $0x384] ss:$16 sps:$4 sm:$0xff]  }
0x199b   :  { %13820 = vmatpush1.bf16.msra.mxu0 %v17981_v18  ;;  %v18010_v61 = vld [vmem:[#allocation24 + $0x38c] ss:$16 sps:$4 sm:$0xff]   ;;  %v18005_v35 = vld [vmem:[#allocation24 + $0x380] ss:$16 sps:$4 sm:$0xff]   ;;  %v18008_v46 = vld [vmem:[#allocation24 + $0x388] ss:$16 sps:$4 sm:$0xff]  }
0x199c   :  { %14244 = vmatpush1.bf16.msra.mxu1 %v17984_v53  ;;  %13821 = vmatprep.subr.bf16.mxu0 %v17989_v45  ;;  %v18013_v51 = vld [vmem:[#allocation24 + $0x3a4] ss:$16 sps:$4 sm:$0xff]   ;;  %v18016_v62 = vld [vmem:[#allocation24 + $0x3ac] ss:$16 sps:$4 sm:$0xff]   ;;  %v18011_v22 = vld [vmem:[#allocation24 + $0x3a0] ss:$16 sps:$4 sm:$0xff]  }
0x199d   :  { %14245 = vmatprep.subr.bf16.mxu1 %v17992_v31  ;;  %v18014_v26 = vld [vmem:[#allocation24 + $0x3a8] ss:$16 sps:$4 sm:$0xff]   ;;  %v18019_v14 = vld [vmem:[#allocation24 + $0x3c4] ss:$16 sps:$4 sm:$0xff]   ;;  %v18022_v1 = vld [vmem:[#allocation24 + $0x3cc] ss:$16 sps:$4 sm:$0xff]  }
0x199e   :  { %v18017_v12 = vld [vmem:[#allocation24 + $0x3c0] ss:$16 sps:$4 sm:$0xff]   ;;  %v18020_v44 = vld [vmem:[#allocation24 + $0x3c8] ss:$16 sps:$4 sm:$0xff]   ;;  %v18025_v16 = vld [vmem:[#allocation24 + $0x3e4] ss:$16 sps:$4 sm:$0xff]  }
0x199f   :  { %13822 = vmatpush1.bf16.msra.mxu0 %v17987_v27  ;;  %v18028_v18 = vld [vmem:[#allocation24 + $0x3ec] ss:$16 sps:$4 sm:$0xff]   ;;  %v18023_v49 = vld [vmem:[#allocation24 + $0x3e0] ss:$16 sps:$4 sm:$0xff]   ;;  %v18026_v23 = vld [vmem:[#allocation24 + $0x3e8] ss:$16 sps:$4 sm:$0xff]  }
0x19a0   :  { %14246 = vmatpush1.bf16.msra.mxu1 %v17990_v11  ;;  %13823 = vmatprep.subr.bf16.mxu0 %v17995_v10  ;;  %v18031_v53 = vld [vmem:[#allocation24 + $0x404] ss:$16 sps:$4 sm:$0xff]   ;;  %v18034_v45 = vld [vmem:[#allocation24 + $0x40c] ss:$16 sps:$4 sm:$0xff]   ;;  %v18029_v31 = vld [vmem:[#allocation24 + $0x400] ss:$16 sps:$4 sm:$0xff]  }
0x19a1   :  { %14247 = vmatprep.subr.bf16.mxu1 %v17998_v13  ;;  %v18032_v27 = vld [vmem:[#allocation24 + $0x408] ss:$16 sps:$4 sm:$0xff]   ;;  %v18037_v11 = vld [vmem:[#allocation24 + $0x424] ss:$16 sps:$4 sm:$0xff]   ;;  %v18040_v10 = vld [vmem:[#allocation24 + $0x42c] ss:$16 sps:$4 sm:$0xff]  }
0x19a2   :  { %v18035_v13 = vld [vmem:[#allocation24 + $0x420] ss:$16 sps:$4 sm:$0xff]  }
0x19a3   :  { %13824 = vmatpush1.bf16.msra.mxu0 %v17993_v43  ;;  %v18038_v43 = vld [vmem:[#allocation24 + $0x428] ss:$16 sps:$4 sm:$0xff]  }
0x19a4   :  { %14248 = vmatpush1.bf16.msra.mxu1 %v17996_v41  ;;  %13825 = vmatprep.subr.bf16.mxu0 %v18001_v19  ;;  %v18043_v41 = vld [vmem:[#allocation24 + $0x444] ss:$16 sps:$4 sm:$0xff]   ;;  %v18046_v19 = vld [vmem:[#allocation24 + $0x44c] ss:$16 sps:$4 sm:$0xff]  }
0x19a5   :  { %14249 = vmatprep.subr.bf16.mxu1 %v18004_v37  ;;  %v18041_v37 = vld [vmem:[#allocation24 + $0x440] ss:$16 sps:$4 sm:$0xff]  }
0x19a7   :  { %13826 = vmatpush1.bf16.msra.mxu0 %v17999_v48  ;;  %v18044_v48 = vld [vmem:[#allocation24 + $0x448] ss:$16 sps:$4 sm:$0xff]  }
0x19a8   :  { %14250 = vmatpush1.bf16.msra.mxu1 %v18002_v5  ;;  %13827 = vmatprep.subr.bf16.mxu0 %v18007_v30  ;;  %v18049_v5 = vld [vmem:[#allocation24 + $0x464] ss:$16 sps:$4 sm:$0xff]   ;;  %v18050_v30 = vld [vmem:[#allocation24 + $0x468] ss:$16 sps:$4 sm:$0xff]  }
0x19a9   :  { %14251 = vmatprep.subr.bf16.mxu1 %v18010_v61  ;;  %v18055_v61 = vld [vmem:[#allocation24 + $0x484] ss:$16 sps:$4 sm:$0xff]  }
0x19ab   :  { %13828 = vmatpush1.bf16.msra.mxu0 %v18005_v35  ;;  %v18058_v35 = vld [vmem:[#allocation24 + $0x48c] ss:$16 sps:$4 sm:$0xff]  }
0x19ac   :  { %14252 = vmatpush1.bf16.msra.mxu1 %v18008_v46  ;;  %13829 = vmatprep.subr.bf16.mxu0 %v18013_v51  ;;  %v18053_v46 = vld [vmem:[#allocation24 + $0x480] ss:$16 sps:$4 sm:$0xff]   ;;  %v18056_v51 = vld [vmem:[#allocation24 + $0x488] ss:$16 sps:$4 sm:$0xff]  }
0x19ad   :  { %14253 = vmatprep.subr.bf16.mxu1 %v18016_v62  ;;  %v18061_v62 = vld [vmem:[#allocation24 + $0x4a4] ss:$16 sps:$4 sm:$0xff]  }
0x19af   :  { %13830 = vmatpush1.bf16.msra.mxu0 %v18011_v22  ;;  %v18059_v22 = vld [vmem:[#allocation24 + $0x4a0] ss:$16 sps:$4 sm:$0xff]  }
0x19b0   :  { %14254 = vmatpush1.bf16.msra.mxu1 %v18014_v26  ;;  %13831 = vmatprep.subr.bf16.mxu0 %v18019_v14  ;;  %v18067_v26 = vld [vmem:[#allocation24 + $0x4c4] ss:$16 sps:$4 sm:$0xff]   ;;  %v18070_v14 = vld [vmem:[#allocation24 + $0x4cc] ss:$16 sps:$4 sm:$0xff]  }
0x19b1   :  { %14255 = vmatprep.subr.bf16.mxu1 %v18022_v1  ;;  %v18065_v1 = vld [vmem:[#allocation24 + $0x4c0] ss:$16 sps:$4 sm:$0xff]  }
0x19b3   :  { %13832 = vmatpush1.bf16.msra.mxu0 %v18017_v12  ;;  %v18068_v12 = vld [vmem:[#allocation24 + $0x4c8] ss:$16 sps:$4 sm:$0xff]  }
0x19b4   :  { %14256 = vmatpush1.bf16.msra.mxu1 %v18020_v44  ;;  %13833 = vmatprep.subr.bf16.mxu0 %v18025_v16  ;;  %v18073_v44 = vld [vmem:[#allocation24 + $0x4e4] ss:$16 sps:$4 sm:$0xff]   ;;  %v18076_v16 = vld [vmem:[#allocation24 + $0x4ec] ss:$16 sps:$4 sm:$0xff]  }
0x19b5   :  { %14257 = vmatprep.subr.bf16.mxu1 %v18028_v18  ;;  %v18071_v18 = vld [vmem:[#allocation24 + $0x4e0] ss:$16 sps:$4 sm:$0xff]  }
0x19b7   :  { %13834 = vmatpush1.bf16.msra.mxu0 %v18023_v49  ;;  %v18074_v49 = vld [vmem:[#allocation24 + $0x4e8] ss:$16 sps:$4 sm:$0xff]  }
0x19b8   :  { %14258 = vmatpush1.bf16.msra.mxu1 %v18026_v23  ;;  %13856 = vmatprep.subr.bf16.mxu0 %v18031_v53  ;;  %v18079_v23 = vld [vmem:[#allocation24 + $0x504] ss:$16 sps:$4 sm:$0xff]   ;;  %v18082_v53 = vld [vmem:[#allocation24 + $0x50c] ss:$16 sps:$4 sm:$0xff]  }
0x19b9   :  { %14280 = vmatprep.subr.bf16.mxu1 %v18034_v45  ;;  %v18077_v45 = vld [vmem:[#allocation24 + $0x500] ss:$16 sps:$4 sm:$0xff]  }
0x19ba   :  { %13836 = vmatmul.mubr.bf16.vlgmr.msra.gmra.mrb[128].mxu0 %v20434_v4 }
0x19bb   :  { %14260 = vmatmul.mubr.bf16.vlgmr.msra.gmra.mrb[128].mxu1 %v20434_v4  ;;  %13845 = vmatprep.mubr.bf16.mxu0 %v20458_v17  ;;  %v18052_v4 = vld [vmem:[#allocation24 + $0x46c] ss:$16 sps:$4 sm:$0xff]  }
0x19bc   :  { %13857 = vmatpush1.bf16.msra.mxu0 %v18029_v31  ;;  %14269 = vmatprep.mubr.bf16.mxu1 %v20458_v17  ;;  %v18047_v17 = vld [vmem:[#allocation24 + $0x460] ss:$16 sps:$4 sm:$0xff]   ;;  %v18080_v31 = vld [vmem:[#allocation24 + $0x508] ss:$16 sps:$4 sm:$0xff]  }
0x19bd   :  { %14281 = vmatpush1.bf16.msra.mxu1 %v18032_v27  ;;  %13858 = vmatprep.subr.bf16.mxu0 %v18037_v11  ;;  %v18085_v27 = vld [vmem:[#allocation24 + $0x524] ss:$16 sps:$4 sm:$0xff]   ;;  %v18088_v11 = vld [vmem:[#allocation24 + $0x52c] ss:$16 sps:$4 sm:$0xff]  }
0x19be   :  { %14282 = vmatprep.subr.bf16.mxu1 %v18040_v10  ;;  %v18083_v10 = vld [vmem:[#allocation24 + $0x520] ss:$16 sps:$4 sm:$0xff]  }
0x19c0   :  { %13859 = vmatpush1.bf16.msra.mxu0 %v18035_v13  ;;  %v18086_v13 = vld [vmem:[#allocation24 + $0x528] ss:$16 sps:$4 sm:$0xff]  }
0x19c1   :  { %14283 = vmatpush1.bf16.msra.mxu1 %v18038_v43  ;;  %13860 = vmatprep.subr.bf16.mxu0 %v18043_v41  ;;  %v18091_v43 = vld [vmem:[#allocation24 + $0x544] ss:$16 sps:$4 sm:$0xff]   ;;  %v18094_v41 = vld [vmem:[#allocation24 + $0x54c] ss:$16 sps:$4 sm:$0xff]  }
0x19c2   :  { %13846 = vmatmul.mubr.bf16.gmra.mrb[132].mxu0 %v20454_v47  ;;  %14284 = vmatprep.subr.bf16.mxu1 %v18046_v19  ;;  %v18089_v19 = vld [vmem:[#allocation24 + $0x540] ss:$16 sps:$4 sm:$0xff]  }
0x19c3   :  { %14270 = vmatmul.mubr.bf16.gmra.mrb[132].mxu1 %v20454_v47  ;;  %13888 = vmatprep.mubr.bf16.mxu0 %v20515_v42  ;;  %v18064_v47 = vld [vmem:[#allocation24 + $0x4ac] ss:$16 sps:$4 sm:$0xff]  }
0x19c4   :  { %13861 = vmatpush1.bf16.msra.mxu0 %v18041_v37  ;;  %14312 = vmatprep.mubr.bf16.mxu1 %v20515_v42  ;;  %v18062_v42 = vld [vmem:[#allocation24 + $0x4a8] ss:$16 sps:$4 sm:$0xff]  }
0x19c5   :  { %14285 = vmatpush1.bf16.msra.mxu1 %v18044_v48  ;;  %13862 = vmatprep.subr.bf16.mxu0 %v18049_v5  ;;  %v18092_v37 = vld [vmem:[#allocation24 + $0x548] ss:$16 sps:$4 sm:$0xff]   ;;  %v18097_v48 = vld [vmem:[#allocation24 + $0x564] ss:$16 sps:$4 sm:$0xff]   ;;  %v18100_v5 = vld [vmem:[#allocation24 + $0x56c] ss:$16 sps:$4 sm:$0xff]  }
0x19c6   :  { %14286 = vmatprep.subr.bf16.mxu1 %v18052_v4  ;;  %v18095_v4 = vld [vmem:[#allocation24 + $0x560] ss:$16 sps:$4 sm:$0xff]  }
0x19c8   :  { %13863 = vmatpush1.bf16.msra.mxu0 %v18047_v17  ;;  %v18098_v17 = vld [vmem:[#allocation24 + $0x568] ss:$16 sps:$4 sm:$0xff]  }
0x19c9   :  { %14287 = vmatpush1.bf16.msra.mxu1 %v18050_v30  ;;  %13864 = vmatprep.subr.bf16.mxu0 %v18055_v61  ;;  %v18103_v30 = vld [vmem:[#allocation24 + $0x584] ss:$16 sps:$4 sm:$0xff]   ;;  %v18106_v61 = vld [vmem:[#allocation24 + $0x58c] ss:$16 sps:$4 sm:$0xff]  }
0x19ca   :  { %14288 = vmatprep.subr.bf16.mxu1 %v18058_v35  ;;  %v18101_v35 = vld [vmem:[#allocation24 + $0x580] ss:$16 sps:$4 sm:$0xff]  }
0x19cc   :  { %13865 = vmatpush1.bf16.msra.mxu0 %v18053_v46  ;;  %v18104_v46 = vld [vmem:[#allocation24 + $0x588] ss:$16 sps:$4 sm:$0xff]  }
0x19cd   :  { %14289 = vmatpush1.bf16.msra.mxu1 %v18056_v51  ;;  %13866 = vmatprep.subr.bf16.mxu0 %v18061_v62  ;;  %v18109_v51 = vld [vmem:[#allocation24 + $0x5a4] ss:$16 sps:$4 sm:$0xff]   ;;  %v18112_v62 = vld [vmem:[#allocation24 + $0x5ac] ss:$16 sps:$4 sm:$0xff]  }
0x19ce   :  { %14290 = vmatprep.subr.bf16.mxu1 %v18064_v47  ;;  %v18107_v47 = vld [vmem:[#allocation24 + $0x5a0] ss:$16 sps:$4 sm:$0xff]  }
0x19d0   :  { %13867 = vmatpush1.bf16.msra.mxu0 %v18059_v22  ;;  %v18110_v22 = vld [vmem:[#allocation24 + $0x5a8] ss:$16 sps:$4 sm:$0xff]  }
0x19d1   :  { %14291 = vmatpush1.bf16.msra.mxu1 %v18062_v42  ;;  %13868 = vmatprep.subr.bf16.mxu0 %v18067_v26  ;;  %v18115_v42 = vld [vmem:[#allocation24 + $0x5c4] ss:$16 sps:$4 sm:$0xff]   ;;  %v18118_v26 = vld [vmem:[#allocation24 + $0x5cc] ss:$16 sps:$4 sm:$0xff]  }
0x19d2   :  { %14292 = vmatprep.subr.bf16.mxu1 %v18070_v14  ;;  %v18113_v14 = vld [vmem:[#allocation24 + $0x5c0] ss:$16 sps:$4 sm:$0xff]  }
0x19d4   :  { %13869 = vmatpush1.bf16.msra.mxu0 %v18065_v1  ;;  %v18116_v1 = vld [vmem:[#allocation24 + $0x5c8] ss:$16 sps:$4 sm:$0xff]  }
0x19d5   :  { %14293 = vmatpush1.bf16.msra.mxu1 %v18068_v12  ;;  %13870 = vmatprep.subr.bf16.mxu0 %v18073_v44  ;;  %v18121_v12 = vld [vmem:[#allocation24 + $0x5e4] ss:$16 sps:$4 sm:$0xff]   ;;  %v18124_v44 = vld [vmem:[#allocation24 + $0x5ec] ss:$16 sps:$4 sm:$0xff]  }
0x19d6   :  { %14294 = vmatprep.subr.bf16.mxu1 %v18076_v16  ;;  %v18119_v16 = vld [vmem:[#allocation24 + $0x5e0] ss:$16 sps:$4 sm:$0xff]  }
0x19d8   :  { %13871 = vmatpush1.bf16.msra.mxu0 %v18071_v18  ;;  %v18122_v18 = vld [vmem:[#allocation24 + $0x5e8] ss:$16 sps:$4 sm:$0xff]  }
0x19d9   :  { %14295 = vmatpush1.bf16.msra.mxu1 %v18074_v49  ;;  %13872 = vmatprep.subr.bf16.mxu0 %v18079_v23  ;;  %v18127_v49 = vld [vmem:[#allocation24 + $0x604] ss:$16 sps:$4 sm:$0xff]   ;;  %v18130_v23 = vld [vmem:[#allocation24 + $0x60c] ss:$16 sps:$4 sm:$0xff]  }
0x19da   :  { %14296 = vmatprep.subr.bf16.mxu1 %v18082_v53  ;;  %v18125_v53 = vld [vmem:[#allocation24 + $0x600] ss:$16 sps:$4 sm:$0xff]  }
0x19dc   :  { %13873 = vmatpush1.bf16.msra.mxu0 %v18077_v45  ;;  %v18128_v45 = vld [vmem:[#allocation24 + $0x608] ss:$16 sps:$4 sm:$0xff]  }
0x19dd   :  { %14297 = vmatpush1.bf16.msra.mxu1 %v18080_v31  ;;  %13874 = vmatprep.subr.bf16.mxu0 %v18085_v27  ;;  %v18133_v31 = vld [vmem:[#allocation24 + $0x624] ss:$16 sps:$4 sm:$0xff]   ;;  %v18136_v27 = vld [vmem:[#allocation24 + $0x62c] ss:$16 sps:$4 sm:$0xff]  }
0x19de   :  { %14298 = vmatprep.subr.bf16.mxu1 %v18088_v11  ;;  %v18131_v11 = vld [vmem:[#allocation24 + $0x620] ss:$16 sps:$4 sm:$0xff]  }
0x19e0   :  { %13875 = vmatpush1.bf16.msra.mxu0 %v18083_v10  ;;  %v18134_v10 = vld [vmem:[#allocation24 + $0x628] ss:$16 sps:$4 sm:$0xff]  }
0x19e1   :  { %14299 = vmatpush1.bf16.msra.mxu1 %v18086_v13  ;;  %13876 = vmatprep.subr.bf16.mxu0 %v18091_v43  ;;  %v18139_v13 = vld [vmem:[#allocation24 + $0x644] ss:$16 sps:$4 sm:$0xff]   ;;  %v18142_v43 = vld [vmem:[#allocation24 + $0x64c] ss:$16 sps:$4 sm:$0xff]  }
0x19e2   :  { %14300 = vmatprep.subr.bf16.mxu1 %v18094_v41  ;;  %v18137_v41 = vld [vmem:[#allocation24 + $0x640] ss:$16 sps:$4 sm:$0xff]  }
0x19e4   :  { %13877 = vmatpush1.bf16.msra.mxu0 %v18089_v19  ;;  %v18140_v19 = vld [vmem:[#allocation24 + $0x648] ss:$16 sps:$4 sm:$0xff]  }
0x19e5   :  { %14301 = vmatpush1.bf16.msra.mxu1 %v18092_v37  ;;  %13878 = vmatprep.subr.bf16.mxu0 %v18097_v48  ;;  %v18145_v37 = vld [vmem:[#allocation24 + $0x664] ss:$16 sps:$4 sm:$0xff]   ;;  %v18146_v48 = vld [vmem:[#allocation24 + $0x668] ss:$16 sps:$4 sm:$0xff]  }
0x19e6   :  { %14302 = vmatprep.subr.bf16.mxu1 %v18100_v5  ;;  %v18151_v5 = vld [vmem:[#allocation24 + $0x684] ss:$16 sps:$4 sm:$0xff]  }
0x19e8   :  { %13879 = vmatpush1.bf16.msra.mxu0 %v18095_v4  ;;  %v18154_v4 = vld [vmem:[#allocation24 + $0x68c] ss:$16 sps:$4 sm:$0xff]  }
0x19e9   :  { %14303 = vmatpush1.bf16.msra.mxu1 %v18098_v17  ;;  %13880 = vmatprep.subr.bf16.mxu0 %v18103_v30  ;;  %v20876_v17 = vsub.s32 4, %v19573_v58 }
0x19ea   :  { %14304 = vmatprep.subr.bf16.mxu1 %v18106_v61  ;;  %v18149_v61 = vld [vmem:[#allocation24 + $0x680] ss:$16 sps:$4 sm:$0xff]  }
0x19eb   :  { %v20621_v30 = vrot.slane %v20552_v36, %v20876_v17 }
0x19ec   :  { %13881 = vmatpush1.bf16.msra.mxu0 %v18101_v35 }
0x19ed   :  { %14305 = vmatpush1.bf16.msra.mxu1 %v18104_v46  ;;  %13882 = vmatprep.subr.bf16.mxu0 %v18109_v51  ;;  %v18152_v51 = vld [vmem:[#allocation24 + $0x688] ss:$16 sps:$4 sm:$0xff]  }
0x19ee   :  { %14306 = vmatprep.subr.bf16.mxu1 %v18112_v62  ;;  %v20879_v62 = vsub.s32 7, %v19573_v58 }
0x19f0   :  { %13883 = vmatpush1.bf16.msra.mxu0 %v18107_v47  ;;  %v20636_v47 = vrot.slane %v20552_v36, %v20879_v62 }
0x19f1   :  { %14307 = vmatpush1.bf16.msra.mxu1 %v18110_v22  ;;  %13884 = vmatprep.subr.bf16.mxu0 %v18115_v42  ;;  %v18157_v22 = vld [vmem:[#allocation24 + $0x6a4] ss:$16 sps:$4 sm:$0xff]  }
0x19f2   :  { %14308 = vmatprep.subr.bf16.mxu1 %v18118_v26  ;;  %v18160_v26 = vld [vmem:[#allocation24 + $0x6ac] ss:$16 sps:$4 sm:$0xff]  }
0x19f4   :  { %13885 = vmatpush1.bf16.msra.mxu0 %v18113_v14 }
0x19f5   :  { %14309 = vmatpush1.bf16.msra.mxu1 %v18116_v1  ;;  %13886 = vmatprep.subr.bf16.mxu0 %v18121_v12 }
0x19f6   :  { %14310 = vmatprep.subr.bf16.mxu1 %v18124_v44 }
0x19f8   :  { %13887 = vmatpush1.bf16.msra.mxu0 %v18119_v16 }
0x19f9   :  { %14311 = vmatpush1.bf16.msra.mxu1 %v18122_v18  ;;  %13909 = vmatprep.subr.bf16.mxu0 %v18127_v49  ;;  %v18155_v49 = vld [vmem:[#allocation24 + $0x6a0] ss:$16 sps:$4 sm:$0xff]  }
0x19fa   :  { %14333 = vmatprep.subr.bf16.mxu1 %v18130_v23 }
0x19fb   :  { %13889 = vmatmul.mubr.bf16.vlgmr.msra.gmra.mrb[128].mxu0 %v20510_v50 }
0x19fc   :  { %14313 = vmatmul.mubr.bf16.vlgmr.msra.gmra.mrb[128].mxu1 %v20510_v50  ;;  %13898 = vmatprep.mubr.bf16.mxu0 %v20532_v57  ;;  %v18148_v50 = vld [vmem:[#allocation24 + $0x66c] ss:$16 sps:$4 sm:$0xff]  }
0x19fd   :  { %13910 = vmatpush1.bf16.msra.mxu0 %v18125_v53  ;;  %14322 = vmatprep.mubr.bf16.mxu1 %v20532_v57  ;;  %v18143_v57 = vld [vmem:[#allocation24 + $0x660] ss:$16 sps:$4 sm:$0xff]  }
0x19fe   :  { %14334 = vmatpush1.bf16.msra.mxu1 %v18128_v45  ;;  %13911 = vmatprep.subr.bf16.mxu0 %v18133_v31 }
0x19ff   :  { %14335 = vmatprep.subr.bf16.mxu1 %v18136_v27  ;;  %v18163_v27 = vld [vmem:[#allocation24 + $0x6c4] ss:$16 sps:$4 sm:$0xff]  }
0x1a01   :  { %13912 = vmatpush1.bf16.msra.mxu0 %v18131_v11 }
0x1a02   :  { %14336 = vmatpush1.bf16.msra.mxu1 %v18134_v10  ;;  %13913 = vmatprep.subr.bf16.mxu0 %v18139_v13 }
0x1a03   :  { %13899 = vmatmul.mubr.bf16.gmra.mrb[132].mxu0 %v20528_v63  ;;  %14337 = vmatprep.subr.bf16.mxu1 %v18142_v43  ;;  %v18166_v43 = vld [vmem:[#allocation24 + $0x6cc] ss:$16 sps:$4 sm:$0xff]  }
0x1a04   :  { %14323 = vmatmul.mubr.bf16.gmra.mrb[132].mxu1 %v20528_v63  ;;  %13941 = vmatprep.mubr.bf16.mxu0 %v20517_v0  ;;  %v20877_v63 = vsub.s32 6, %v19573_v58 }
0x1a05   :  { %13914 = vmatpush1.bf16.msra.mxu0 %v18137_v41  ;;  %14365 = vmatprep.mubr.bf16.mxu1 %v20517_v0  ;;  %v20878_v0 = vsub.s32 5, %v19573_v58 }
0x1a06   :  { %14338 = vmatpush1.bf16.msra.mxu1 %v18140_v19  ;;  %13915 = vmatprep.subr.bf16.mxu0 %v18145_v37  ;;  %v20626_v35 = vrot.slane %v20552_v36, %v20877_v63 }
0x1a07   :  { %14339 = vmatprep.subr.bf16.mxu1 %v18148_v50  ;;  %v20631_v46 = vrot.slane %v20552_v36, %v20878_v0  ;;  %v18158_v36 = vld [vmem:[#allocation24 + $0x6a8] ss:$16 sps:$4 sm:$0xff]  }
0x1a08   :  { %v18164_v0 = vld [vmem:[#allocation24 + $0x6c8] ss:$16 sps:$4 sm:$0xff]  }
0x1a09   :  { %13916 = vmatpush1.bf16.msra.mxu0 %v18143_v57 }
0x1a0a   :  { %14340 = vmatpush1.bf16.msra.mxu1 %v18146_v48  ;;  %13917 = vmatprep.subr.bf16.mxu0 %v18151_v5 }
0x1a0b   :  { %14341 = vmatprep.subr.bf16.mxu1 %v18154_v4  ;;  %v10435_v42 = vpop.f32.mrb[120].mxu0  ;;  %v18161_v4 = vld [vmem:[#allocation24 + $0x6c0] ss:$16 sps:$4 sm:$0xff]  }
0x1a0c   :  { %v16771_v14 = vadd.f32 %v10435_v42, %v20621_v30  ;;  %v10541_v1 = vpop.f32.mrb[120].mxu1  ;;  %v10437_v12 = vpop.f32.mrb[121].mxu0 }
0x1a0d   :  { %13918 = vmatpush1.bf16.msra.mxu0 %v18149_v61  ;;  %v16779_v44 = vadd.f32 %v10541_v1, %v20626_v35  ;;  %v16772_v16 = vadd.f32 %v10437_v12, %v20631_v46  ;;  %v10543_v18 = vpop.f32.mrb[121].mxu1  ;;  %v10439_v23 = vpop.f32.mrb[122].mxu0 }
0x1a0e   :  { %14342 = vmatpush1.bf16.msra.mxu1 %v18152_v51  ;;  %v16780_v58 = vadd.f32 %v10543_v18, %v20636_v47  ;;  %13919 = vmatprep.subr.bf16.mxu0 %v18157_v22  ;;  %v16773_v53 = vadd.f32 %v10439_v23, %v20621_v30  ;;  %v10545_v45 = vpop.f32.mrb[122].mxu1  ;;  %v10441_v31 = vpop.f32.mrb[123].mxu0  ;;  %v10572_v41 = vmax.f32 %v16771_v14, 0.0  ;;  %v18169_v51 = vld [vmem:[#allocation24 + $0x6e4] ss:$16 sps:$4 sm:$0xff]  }
0x1a0f   :  { %14343 = vmatprep.subr.bf16.mxu1 %v18160_v26  ;;  %v16781_v11 = vadd.f32 %v10545_v45, %v20626_v35  ;;  %v16774_v10 = vadd.f32 %v10441_v31, %v20631_v46  ;;  %v10547_v13 = vpop.f32.mrb[123].mxu1  ;;  %v10574_v50 = vmax.f32 %v16779_v44, 0.0  ;;  %v10573_v57 = vmax.f32 %v16772_v16, 0.0  ;;  %v18172_v26 = vld [vmem:[#allocation24 + $0x6ec] ss:$16 sps:$4 sm:$0xff]  }
0x1a10   :  { %v10588_v19 = vmax.f32 %v16773_v53, 0.0  ;;  %v16782_v37 = vadd.f32 %v10547_v13, %v20636_v47  ;;  %v10575_v17 = vmax.f32 %v16780_v58, 0.0  ;;  %v18167_v23 = vld [vmem:[#allocation24 + $0x6e0] ss:$16 sps:$4 sm:$0xff]   ;;  %v18170_v53 = vld [vmem:[#allocation24 + $0x6e8] ss:$16 sps:$4 sm:$0xff]  }
0x1a11   :  { %v10590_v48 = vmax.f32 %v16781_v11, 0.0  ;;  %13920 = vmatpush1.bf16.msra.mxu0 %v18155_v49  ;;  %v10589_v5 = vmax.f32 %v16774_v10, 0.0  ;;  %v18175_v11 = vld [vmem:[#allocation24 + $0x704] ss:$16 sps:$4 sm:$0xff]  }
0x1a12   :  { %v20646_v61 = vpack.c.bf16 %v10588_v19, %v10572_v41  ;;  %14344 = vmatpush1.bf16.msra.mxu1 %v18158_v36  ;;  %v10591_v63 = vmax.f32 %v16782_v37, 0.0  ;;  %13921 = vmatprep.subr.bf16.mxu0 %v18163_v27  ;;  %v18178_v41 = vld [vmem:[#allocation24 + $0x70c] ss:$16 sps:$4 sm:$0xff]  }
0x1a13   :  { %v20648_v62 = vpack.c.bf16 %v10590_v48, %v10574_v50  ;;  %v20650_v22 = vpack.c.bf16 %v10589_v5, %v10573_v57  ;;  %14345 = vmatprep.subr.bf16.mxu1 %v18166_v43  ;;  %v10445_v42 = vpop.f32.mrb[124].mxu0 }
0x1a14   :  { %v20652_v14 = vpack.c.bf16 %v10591_v63, %v10575_v17  ;;  %v16775_v1 = vadd.f32 %v10445_v42, %v20621_v30  ;;  %v10551_v12 = vpop.f32.mrb[124].mxu1  ;;  %v10447_v44 = vpop.f32.mrb[125].mxu0 }
0x1a15   :  { %13922 = vmatpush1.bf16.msra.mxu0 %v18161_v4  ;;  %v16783_v16 = vadd.f32 %v10551_v12, %v20626_v35  ;;  %v16776_v18 = vadd.f32 %v10447_v44, %v20631_v46  ;;  %v10553_v49 = vpop.f32.mrb[125].mxu1  ;;  %v10449_v58 = vpop.f32.mrb[126].mxu0  ;;  %v18182_v12 = vld [vmem:[#allocation24 + $0x728] ss:$16 sps:$4 sm:$0xff]   ;;  %v18187_v44 = vld [vmem:[#allocation24 + $0x744] ss:$16 sps:$4 sm:$0xff]  }
0x1a16   :  { %14346 = vmatpush1.bf16.msra.mxu1 %v18164_v0  ;;  %v16784_v36 = vadd.f32 %v10553_v49, %v20636_v47  ;;  %13923 = vmatprep.subr.bf16.mxu0 %v18169_v51  ;;  %v16777_v45 = vadd.f32 %v10449_v58, %v20621_v30  ;;  %v10555_v31 = vpop.f32.mrb[126].mxu1  ;;  %v10451_v27 = vpop.f32.mrb[127].mxu0  ;;  %v10604_v19 = vmax.f32 %v16775_v1, 0.0  ;;  %v18173_v30 = vld [vmem:[#allocation24 + $0x700] ss:$16 sps:$4 sm:$0xff]  }
0x1a17   :  { %14347 = vmatprep.subr.bf16.mxu1 %v18172_v26  ;;  %v16785_v10 = vadd.f32 %v10555_v31, %v20626_v35  ;;  %v16778_v13 = vadd.f32 %v10451_v27, %v20631_v46  ;;  %v10557_v43 = vpop.f32.mrb[127].mxu1  ;;  %v10606_v57 = vmax.f32 %v16783_v16, 0.0  ;;  %v10605_v48 = vmax.f32 %v16776_v18, 0.0  ;;  %v18176_v35 = vld [vmem:[#allocation24 + $0x708] ss:$16 sps:$4 sm:$0xff]  }
0x1a18   :  { %v10620_v37 = vmax.f32 %v16777_v45, 0.0  ;;  %v16786_v50 = vadd.f32 %v10557_v43, %v20636_v47  ;;  %v10607_v17 = vmax.f32 %v16784_v36, 0.0  ;;  %v18181_v46 = vld [vmem:[#allocation24 + $0x724] ss:$16 sps:$4 sm:$0xff]   ;;  %v18184_v47 = vld [vmem:[#allocation24 + $0x72c] ss:$16 sps:$4 sm:$0xff]  }
0x1a19   :  { %v10622_v5 = vmax.f32 %v16785_v10, 0.0  ;;  %13924 = vmatpush1.bf16.msra.mxu0 %v18167_v23  ;;  %v10621_v4 = vmax.f32 %v16778_v13, 0.0  ;;  %v18179_v1 = vld [vmem:[#allocation24 + $0x720] ss:$16 sps:$4 sm:$0xff]   ;;  %v18190_v16 = vld [vmem:[#allocation24 + $0x74c] ss:$16 sps:$4 sm:$0xff]  }
0x1a1a   :  { %v20662_v63 = vpack.c.bf16 %v10620_v37, %v10604_v19  ;;  %14348 = vmatpush1.bf16.msra.mxu1 %v18170_v53  ;;  %v10623_v0 = vmax.f32 %v16786_v50, 0.0  ;;  %13925 = vmatprep.subr.bf16.mxu0 %v18175_v11  ;;  %v18185_v18 = vld [vmem:[#allocation24 + $0x740] ss:$16 sps:$4 sm:$0xff]   ;;  %v18188_v49 = vld [vmem:[#allocation24 + $0x748] ss:$16 sps:$4 sm:$0xff]  }
0x1a1b   :  { %v20664_v51 = vpack.c.bf16 %v10622_v5, %v10606_v57  ;;  %v20666_v42 = vpack.c.bf16 %v10621_v4, %v10605_v48  ;;  %14349 = vmatprep.subr.bf16.mxu1 %v18178_v41  ;;  %v18193_v23 = vld [vmem:[#allocation24 + $0x764] ss:$16 sps:$4 sm:$0xff]   ;;  %v18196_v58 = vld [vmem:[#allocation24 + $0x76c] ss:$16 sps:$4 sm:$0xff]   ;;  %v18191_v36 = vld [vmem:[#allocation24 + $0x760] ss:$16 sps:$4 sm:$0xff]  }
0x1a1c   :  { %v20668_v26 = vpack.c.bf16 %v10623_v0, %v10607_v17  ;;  %v18194_v53 = vld [vmem:[#allocation24 + $0x768] ss:$16 sps:$4 sm:$0xff]   ;;  %v18199_v45 = vld [vmem:[#allocation24 + $0x784] ss:$16 sps:$4 sm:$0xff]   ;;  %v18202_v31 = vld [vmem:[#allocation24 + $0x78c] ss:$16 sps:$4 sm:$0xff]  }
0x1a1d   :  { %13926 = vmatpush1.bf16.msra.mxu0 %v18173_v30  ;;  %v18197_v27 = vld [vmem:[#allocation24 + $0x780] ss:$16 sps:$4 sm:$0xff]   ;;  %v18200_v11 = vld [vmem:[#allocation24 + $0x788] ss:$16 sps:$4 sm:$0xff]   ;;  %v18205_v10 = vld [vmem:[#allocation24 + $0x7a4] ss:$16 sps:$4 sm:$0xff]  }
0x1a1e   :  { %14350 = vmatpush1.bf16.msra.mxu1 %v18176_v35  ;;  %13927 = vmatprep.subr.bf16.mxu0 %v18181_v46  ;;  %v18208_v13 = vld [vmem:[#allocation24 + $0x7ac] ss:$16 sps:$4 sm:$0xff]   ;;  %v18203_v43 = vld [vmem:[#allocation24 + $0x7a0] ss:$16 sps:$4 sm:$0xff]   ;;  %v18206_v41 = vld [vmem:[#allocation24 + $0x7a8] ss:$16 sps:$4 sm:$0xff]  }
0x1a1f   :  { %14351 = vmatprep.subr.bf16.mxu1 %v18184_v47  ;;  %v18211_v19 = vld [vmem:[#allocation24 + $0x7c4] ss:$16 sps:$4 sm:$0xff]   ;;  %v18214_v37 = vld [vmem:[#allocation24 + $0x7cc] ss:$16 sps:$4 sm:$0xff]   ;;  %v18209_v50 = vld [vmem:[#allocation24 + $0x7c0] ss:$16 sps:$4 sm:$0xff]  }
0x1a20   :  { %v18212_v57 = vld [vmem:[#allocation24 + $0x7c8] ss:$16 sps:$4 sm:$0xff]   ;;  %v18217_v48 = vld [vmem:[#allocation24 + $0x7e4] ss:$16 sps:$4 sm:$0xff]   ;;  %v18220_v5 = vld [vmem:[#allocation24 + $0x7ec] ss:$16 sps:$4 sm:$0xff]  }
0x1a21   :  { %13928 = vmatpush1.bf16.msra.mxu0 %v18179_v1  ;;  %v18215_v4 = vld [vmem:[#allocation24 + $0x7e0] ss:$16 sps:$4 sm:$0xff]   ;;  %v18218_v30 = vld [vmem:[#allocation24 + $0x7e8] ss:$16 sps:$4 sm:$0xff]   ;;  %v18223_v17 = vld [vmem:[#allocation24 + $0x804] ss:$16 sps:$4 sm:$0xff]  }
0x1a22   :  { %14352 = vmatpush1.bf16.msra.mxu1 %v18182_v12  ;;  %13929 = vmatprep.subr.bf16.mxu0 %v18187_v44  ;;  %v18226_v0 = vld [vmem:[#allocation24 + $0x80c] ss:$16 sps:$4 sm:$0xff]   ;;  %v18221_v35 = vld [vmem:[#allocation24 + $0x800] ss:$16 sps:$4 sm:$0xff]   ;;  %v18224_v46 = vld [vmem:[#allocation24 + $0x808] ss:$16 sps:$4 sm:$0xff]  }
0x1a23   :  { %14353 = vmatprep.subr.bf16.mxu1 %v18190_v16  ;;  %v18229_v47 = vld [vmem:[#allocation24 + $0x824] ss:$16 sps:$4 sm:$0xff]   ;;  %v18232_v1 = vld [vmem:[#allocation24 + $0x82c] ss:$16 sps:$4 sm:$0xff]   ;;  %v18227_v12 = vld [vmem:[#allocation24 + $0x820] ss:$16 sps:$4 sm:$0xff]  }
0x1a24   :  { %v18230_v44 = vld [vmem:[#allocation24 + $0x828] ss:$16 sps:$4 sm:$0xff]   ;;  %v18235_v16 = vld [vmem:[#allocation24 + $0x844] ss:$16 sps:$4 sm:$0xff]  }
0x1a25   :  { %13930 = vmatpush1.bf16.msra.mxu0 %v18185_v18  ;;  %v18238_v18 = vld [vmem:[#allocation24 + $0x84c] ss:$16 sps:$4 sm:$0xff]  }
0x1a26   :  { %14354 = vmatpush1.bf16.msra.mxu1 %v18188_v49  ;;  %13931 = vmatprep.subr.bf16.mxu0 %v18193_v23  ;;  %v18233_v49 = vld [vmem:[#allocation24 + $0x840] ss:$16 sps:$4 sm:$0xff]   ;;  %v18236_v23 = vld [vmem:[#allocation24 + $0x848] ss:$16 sps:$4 sm:$0xff]  }
0x1a27   :  { %14355 = vmatprep.subr.bf16.mxu1 %v18196_v58  ;;  %v18241_v58 = vld [vmem:[#allocation24 + $0x864] ss:$16 sps:$4 sm:$0xff]  }
0x1a29   :  { %13932 = vmatpush1.bf16.msra.mxu0 %v18191_v36  ;;  %v18242_v36 = vld [vmem:[#allocation24 + $0x868] ss:$16 sps:$4 sm:$0xff]  }
0x1a2a   :  { %14356 = vmatpush1.bf16.msra.mxu1 %v18194_v53  ;;  %13933 = vmatprep.subr.bf16.mxu0 %v18199_v45  ;;  %v18247_v53 = vld [vmem:[#allocation24 + $0x884] ss:$16 sps:$4 sm:$0xff]   ;;  %v18250_v45 = vld [vmem:[#allocation24 + $0x88c] ss:$16 sps:$4 sm:$0xff]  }
0x1a2b   :  { %14357 = vmatprep.subr.bf16.mxu1 %v18202_v31  ;;  %v18245_v31 = vld [vmem:[#allocation24 + $0x880] ss:$16 sps:$4 sm:$0xff]  }
0x1a2d   :  { %13934 = vmatpush1.bf16.msra.mxu0 %v18197_v27  ;;  %v18248_v27 = vld [vmem:[#allocation24 + $0x888] ss:$16 sps:$4 sm:$0xff]  }
0x1a2e   :  { %14358 = vmatpush1.bf16.msra.mxu1 %v18200_v11  ;;  %13935 = vmatprep.subr.bf16.mxu0 %v18205_v10  ;;  %v18253_v11 = vld [vmem:[#allocation24 + $0x8a4] ss:$16 sps:$4 sm:$0xff]   ;;  %v18251_v10 = vld [vmem:[#allocation24 + $0x8a0] ss:$16 sps:$4 sm:$0xff]  }
0x1a2f   :  { %14359 = vmatprep.subr.bf16.mxu1 %v18208_v13  ;;  %v18259_v13 = vld [vmem:[#allocation24 + $0x8c4] ss:$16 sps:$4 sm:$0xff]  }
0x1a31   :  { %13936 = vmatpush1.bf16.msra.mxu0 %v18203_v43  ;;  %v18262_v43 = vld [vmem:[#allocation24 + $0x8cc] ss:$16 sps:$4 sm:$0xff]  }
0x1a32   :  { %14360 = vmatpush1.bf16.msra.mxu1 %v18206_v41  ;;  %13937 = vmatprep.subr.bf16.mxu0 %v18211_v19  ;;  %v18257_v41 = vld [vmem:[#allocation24 + $0x8c0] ss:$16 sps:$4 sm:$0xff]   ;;  %v18260_v19 = vld [vmem:[#allocation24 + $0x8c8] ss:$16 sps:$4 sm:$0xff]  }
0x1a33   :  { %14361 = vmatprep.subr.bf16.mxu1 %v18214_v37  ;;  %v18265_v37 = vld [vmem:[#allocation24 + $0x8e4] ss:$16 sps:$4 sm:$0xff]  }
0x1a35   :  { %13938 = vmatpush1.bf16.msra.mxu0 %v18209_v50  ;;  %v18268_v50 = vld [vmem:[#allocation24 + $0x8ec] ss:$16 sps:$4 sm:$0xff]  }
0x1a36   :  { %14362 = vmatpush1.bf16.msra.mxu1 %v18212_v57  ;;  %13939 = vmatprep.subr.bf16.mxu0 %v18217_v48  ;;  %v18263_v57 = vld [vmem:[#allocation24 + $0x8e0] ss:$16 sps:$4 sm:$0xff]   ;;  %v18266_v48 = vld [vmem:[#allocation24 + $0x8e8] ss:$16 sps:$4 sm:$0xff]  }
0x1a37   :  { %14363 = vmatprep.subr.bf16.mxu1 %v18220_v5  ;;  %v18271_v5 = vld [vmem:[#allocation24 + $0x904] ss:$16 sps:$4 sm:$0xff]  }
0x1a39   :  { %13940 = vmatpush1.bf16.msra.mxu0 %v18215_v4  ;;  %v18274_v4 = vld [vmem:[#allocation24 + $0x90c] ss:$16 sps:$4 sm:$0xff]  }
0x1a3a   :  { %14364 = vmatpush1.bf16.msra.mxu1 %v18218_v30  ;;  %13962 = vmatprep.subr.bf16.mxu0 %v18223_v17  ;;  %v18269_v30 = vld [vmem:[#allocation24 + $0x900] ss:$16 sps:$4 sm:$0xff]   ;;  %v18272_v17 = vld [vmem:[#allocation24 + $0x908] ss:$16 sps:$4 sm:$0xff]  }
0x1a3b   :  { %14386 = vmatprep.subr.bf16.mxu1 %v18226_v0  ;;  %v18277_v0 = vld [vmem:[#allocation24 + $0x924] ss:$16 sps:$4 sm:$0xff]  }
0x1a3c   :  { %13942 = vmatmul.mubr.bf16.vlgmr.msra.gmra.mrb[128].mxu0 %v20513_v32 }
0x1a3d   :  { %14366 = vmatmul.mubr.bf16.vlgmr.msra.gmra.mrb[128].mxu1 %v20513_v32  ;;  %13951 = vmatprep.mubr.bf16.mxu0 %v20534_v28  ;;  %v18244_v32 = vld [vmem:[#allocation24 + $0x86c] ss:$16 sps:$4 sm:$0xff]  }
0x1a3e   :  { %13963 = vmatpush1.bf16.msra.mxu0 %v18221_v35  ;;  %14375 = vmatprep.mubr.bf16.mxu1 %v20534_v28  ;;  %v18239_v28 = vld [vmem:[#allocation24 + $0x860] ss:$16 sps:$4 sm:$0xff]   ;;  %v18280_v35 = vld [vmem:[#allocation24 + $0x92c] ss:$16 sps:$4 sm:$0xff]  }
0x1a3f   :  { %14387 = vmatpush1.bf16.msra.mxu1 %v18224_v46  ;;  %13964 = vmatprep.subr.bf16.mxu0 %v18229_v47  ;;  %v18275_v46 = vld [vmem:[#allocation24 + $0x920] ss:$16 sps:$4 sm:$0xff]   ;;  %v18278_v47 = vld [vmem:[#allocation24 + $0x928] ss:$16 sps:$4 sm:$0xff]  }
0x1a40   :  { %14388 = vmatprep.subr.bf16.mxu1 %v18232_v1  ;;  %v18283_v1 = vld [vmem:[#allocation24 + $0x944] ss:$16 sps:$4 sm:$0xff]  }
0x1a42   :  { %13965 = vmatpush1.bf16.msra.mxu0 %v18227_v12  ;;  %v18286_v12 = vld [vmem:[#allocation24 + $0x94c] ss:$16 sps:$4 sm:$0xff]  }
0x1a43   :  { %14389 = vmatpush1.bf16.msra.mxu1 %v18230_v44  ;;  %13966 = vmatprep.subr.bf16.mxu0 %v18235_v16  ;;  %v18281_v44 = vld [vmem:[#allocation24 + $0x940] ss:$16 sps:$4 sm:$0xff]   ;;  %v18284_v16 = vld [vmem:[#allocation24 + $0x948] ss:$16 sps:$4 sm:$0xff]  }
0x1a44   :  { %13952 = vmatmul.mubr.bf16.gmra.mrb[132].mxu0 %v20530_v59  ;;  %14390 = vmatprep.subr.bf16.mxu1 %v18238_v18  ;;  %v18289_v18 = vld [vmem:[#allocation24 + $0x964] ss:$16 sps:$4 sm:$0xff]  }
0x1a45   :  { %14376 = vmatmul.mubr.bf16.gmra.mrb[132].mxu1 %v20530_v59  ;;  %13994 = vmatprep.mubr.bf16.mxu0 %v20582_v40  ;;  %v18256_v59 = vld [vmem:[#allocation24 + $0x8ac] ss:$16 sps:$4 sm:$0xff]  }
0x1a46   :  { %13967 = vmatpush1.bf16.msra.mxu0 %v18233_v49  ;;  %14418 = vmatprep.mubr.bf16.mxu1 %v20582_v40  ;;  %v18254_v40 = vld [vmem:[#allocation24 + $0x8a8] ss:$16 sps:$4 sm:$0xff]   ;;  %v18292_v49 = vld [vmem:[#allocation24 + $0x96c] ss:$16 sps:$4 sm:$0xff]  }
0x1a47   :  { %14391 = vmatpush1.bf16.msra.mxu1 %v18236_v23  ;;  %13968 = vmatprep.subr.bf16.mxu0 %v18241_v58  ;;  %v18287_v23 = vld [vmem:[#allocation24 + $0x960] ss:$16 sps:$4 sm:$0xff]   ;;  %v18290_v58 = vld [vmem:[#allocation24 + $0x968] ss:$16 sps:$4 sm:$0xff]  }
0x1a48   :  { %14392 = vmatprep.subr.bf16.mxu1 %v18244_v32  ;;  %v18295_v32 = vld [vmem:[#allocation24 + $0x984] ss:$16 sps:$4 sm:$0xff]  }
0x1a4a   :  { %13969 = vmatpush1.bf16.msra.mxu0 %v18239_v28  ;;  %v18298_v28 = vld [vmem:[#allocation24 + $0x98c] ss:$16 sps:$4 sm:$0xff]  }
0x1a4b   :  { %14393 = vmatpush1.bf16.msra.mxu1 %v18242_v36  ;;  %13970 = vmatprep.subr.bf16.mxu0 %v18247_v53  ;;  %v18293_v36 = vld [vmem:[#allocation24 + $0x980] ss:$16 sps:$4 sm:$0xff]   ;;  %v18296_v53 = vld [vmem:[#allocation24 + $0x988] ss:$16 sps:$4 sm:$0xff]  }
0x1a4c   :  { %14394 = vmatprep.subr.bf16.mxu1 %v18250_v45  ;;  %v18301_v45 = vld [vmem:[#allocation24 + $0x9a4] ss:$16 sps:$4 sm:$0xff]  }
0x1a4e   :  { %13971 = vmatpush1.bf16.msra.mxu0 %v18245_v31  ;;  %v18304_v31 = vld [vmem:[#allocation24 + $0x9ac] ss:$16 sps:$4 sm:$0xff]  }
0x1a4f   :  { %14395 = vmatpush1.bf16.msra.mxu1 %v18248_v27  ;;  %13972 = vmatprep.subr.bf16.mxu0 %v18253_v11  ;;  %v18299_v27 = vld [vmem:[#allocation24 + $0x9a0] ss:$16 sps:$4 sm:$0xff]   ;;  %v18302_v11 = vld [vmem:[#allocation24 + $0x9a8] ss:$16 sps:$4 sm:$0xff]  }
0x1a50   :  { %14396 = vmatprep.subr.bf16.mxu1 %v18256_v59  ;;  %v18307_v59 = vld [vmem:[#allocation24 + $0x9c4] ss:$16 sps:$4 sm:$0xff]  }
0x1a52   :  { %13973 = vmatpush1.bf16.msra.mxu0 %v18251_v10  ;;  %v18310_v10 = vld [vmem:[#allocation24 + $0x9cc] ss:$16 sps:$4 sm:$0xff]  }
0x1a53   :  { %14397 = vmatpush1.bf16.msra.mxu1 %v18254_v40  ;;  %13974 = vmatprep.subr.bf16.mxu0 %v18259_v13  ;;  %v18305_v40 = vld [vmem:[#allocation24 + $0x9c0] ss:$16 sps:$4 sm:$0xff]   ;;  %v18308_v13 = vld [vmem:[#allocation24 + $0x9c8] ss:$16 sps:$4 sm:$0xff]  }
0x1a54   :  { %14398 = vmatprep.subr.bf16.mxu1 %v18262_v43  ;;  %v18313_v43 = vld [vmem:[#allocation24 + $0x9e4] ss:$16 sps:$4 sm:$0xff]  }
0x1a56   :  { %13975 = vmatpush1.bf16.msra.mxu0 %v18257_v41  ;;  %v18316_v41 = vld [vmem:[#allocation24 + $0x9ec] ss:$16 sps:$4 sm:$0xff]  }
0x1a57   :  { %14399 = vmatpush1.bf16.msra.mxu1 %v18260_v19  ;;  %13976 = vmatprep.subr.bf16.mxu0 %v18265_v37  ;;  %v18311_v19 = vld [vmem:[#allocation24 + $0x9e0] ss:$16 sps:$4 sm:$0xff]   ;;  %v18314_v37 = vld [vmem:[#allocation24 + $0x9e8] ss:$16 sps:$4 sm:$0xff]  }
0x1a58   :  { %14400 = vmatprep.subr.bf16.mxu1 %v18268_v50  ;;  %v18319_v50 = vld [vmem:[#allocation24 + $0xa04] ss:$16 sps:$4 sm:$0xff]  }
0x1a5a   :  { %13977 = vmatpush1.bf16.msra.mxu0 %v18263_v57  ;;  %v18322_v57 = vld [vmem:[#allocation24 + $0xa0c] ss:$16 sps:$4 sm:$0xff]  }
0x1a5b   :  { %14401 = vmatpush1.bf16.msra.mxu1 %v18266_v48  ;;  %13978 = vmatprep.subr.bf16.mxu0 %v18271_v5  ;;  %v18317_v48 = vld [vmem:[#allocation24 + $0xa00] ss:$16 sps:$4 sm:$0xff]   ;;  %v18320_v5 = vld [vmem:[#allocation24 + $0xa08] ss:$16 sps:$4 sm:$0xff]  }
0x1a5c   :  { %14402 = vmatprep.subr.bf16.mxu1 %v18274_v4  ;;  %v18325_v4 = vld [vmem:[#allocation24 + $0xa24] ss:$16 sps:$4 sm:$0xff]  }
0x1a5e   :  { %13979 = vmatpush1.bf16.msra.mxu0 %v18269_v30  ;;  %v18328_v30 = vld [vmem:[#allocation24 + $0xa2c] ss:$16 sps:$4 sm:$0xff]  }
0x1a5f   :  { %14403 = vmatpush1.bf16.msra.mxu1 %v18272_v17  ;;  %13980 = vmatprep.subr.bf16.mxu0 %v18277_v0  ;;  %v18323_v17 = vld [vmem:[#allocation24 + $0xa20] ss:$16 sps:$4 sm:$0xff]   ;;  %v18326_v0 = vld [vmem:[#allocation24 + $0xa28] ss:$16 sps:$4 sm:$0xff]  }
0x1a60   :  { %14404 = vmatprep.subr.bf16.mxu1 %v18280_v35  ;;  %v18331_v35 = vld [vmem:[#allocation24 + $0xa44] ss:$16 sps:$4 sm:$0xff]  }
0x1a62   :  { %13981 = vmatpush1.bf16.msra.mxu0 %v18275_v46  ;;  %v18334_v46 = vld [vmem:[#allocation24 + $0xa4c] ss:$16 sps:$4 sm:$0xff]  }
0x1a63   :  { %14405 = vmatpush1.bf16.msra.mxu1 %v18278_v47  ;;  %13982 = vmatprep.subr.bf16.mxu0 %v18283_v1  ;;  %v18329_v47 = vld [vmem:[#allocation24 + $0xa40] ss:$16 sps:$4 sm:$0xff]   ;;  %v18332_v1 = vld [vmem:[#allocation24 + $0xa48] ss:$16 sps:$4 sm:$0xff]  }
0x1a64   :  { %14406 = vmatprep.subr.bf16.mxu1 %v18286_v12  ;;  %v18337_v12 = vld [vmem:[#allocation24 + $0xa64] ss:$16 sps:$4 sm:$0xff]  }
0x1a66   :  { %13983 = vmatpush1.bf16.msra.mxu0 %v18281_v44  ;;  %v18338_v44 = vld [vmem:[#allocation24 + $0xa68] ss:$16 sps:$4 sm:$0xff]  }
0x1a67   :  { %14407 = vmatpush1.bf16.msra.mxu1 %v18284_v16  ;;  %13984 = vmatprep.subr.bf16.mxu0 %v18289_v18  ;;  %v18343_v16 = vld [vmem:[#allocation24 + $0xa84] ss:$16 sps:$4 sm:$0xff]   ;;  %v18346_v18 = vld [vmem:[#allocation24 + $0xa8c] ss:$16 sps:$4 sm:$0xff]  }
0x1a68   :  { %14408 = vmatprep.subr.bf16.mxu1 %v18292_v49  ;;  %v18341_v49 = vld [vmem:[#allocation24 + $0xa80] ss:$16 sps:$4 sm:$0xff]  }
0x1a6a   :  { %13985 = vmatpush1.bf16.msra.mxu0 %v18287_v23  ;;  %v18344_v23 = vld [vmem:[#allocation24 + $0xa88] ss:$16 sps:$4 sm:$0xff]  }
0x1a6b   :  { %14409 = vmatpush1.bf16.msra.mxu1 %v18290_v58  ;;  %13986 = vmatprep.subr.bf16.mxu0 %v18295_v32  ;;  %v18349_v58 = vld [vmem:[#allocation24 + $0xaa4] ss:$16 sps:$4 sm:$0xff]   ;;  %v18347_v32 = vld [vmem:[#allocation24 + $0xaa0] ss:$16 sps:$4 sm:$0xff]  }
0x1a6c   :  { %14410 = vmatprep.subr.bf16.mxu1 %v18298_v28  ;;  %v18355_v28 = vld [vmem:[#allocation24 + $0xac4] ss:$16 sps:$4 sm:$0xff]  }
0x1a6e   :  { %13987 = vmatpush1.bf16.msra.mxu0 %v18293_v36  ;;  %v18358_v36 = vld [vmem:[#allocation24 + $0xacc] ss:$16 sps:$4 sm:$0xff]  }
0x1a6f   :  { %14411 = vmatpush1.bf16.msra.mxu1 %v18296_v53  ;;  %13988 = vmatprep.subr.bf16.mxu0 %v18301_v45  ;;  %v18353_v53 = vld [vmem:[#allocation24 + $0xac0] ss:$16 sps:$4 sm:$0xff]   ;;  %v18356_v45 = vld [vmem:[#allocation24 + $0xac8] ss:$16 sps:$4 sm:$0xff]  }
0x1a70   :  { %14412 = vmatprep.subr.bf16.mxu1 %v18304_v31  ;;  %v18361_v31 = vld [vmem:[#allocation24 + $0xae4] ss:$16 sps:$4 sm:$0xff]  }
0x1a72   :  { %13989 = vmatpush1.bf16.msra.mxu0 %v18299_v27  ;;  %v18364_v27 = vld [vmem:[#allocation24 + $0xaec] ss:$16 sps:$4 sm:$0xff]  }
0x1a73   :  { %14413 = vmatpush1.bf16.msra.mxu1 %v18302_v11  ;;  %13990 = vmatprep.subr.bf16.mxu0 %v18307_v59  ;;  %v18359_v11 = vld [vmem:[#allocation24 + $0xae0] ss:$16 sps:$4 sm:$0xff]   ;;  %v18362_v59 = vld [vmem:[#allocation24 + $0xae8] ss:$16 sps:$4 sm:$0xff]  }
0x1a74   :  { %14414 = vmatprep.subr.bf16.mxu1 %v18310_v10  ;;  %v18367_v10 = vld [vmem:[#allocation24 + $0xb04] ss:$16 sps:$4 sm:$0xff]  }
0x1a76   :  { %13991 = vmatpush1.bf16.msra.mxu0 %v18305_v40  ;;  %v18370_v40 = vld [vmem:[#allocation24 + $0xb0c] ss:$16 sps:$4 sm:$0xff]  }
0x1a77   :  { %14415 = vmatpush1.bf16.msra.mxu1 %v18308_v13  ;;  %13992 = vmatprep.subr.bf16.mxu0 %v18313_v43  ;;  %v18365_v13 = vld [vmem:[#allocation24 + $0xb00] ss:$16 sps:$4 sm:$0xff]   ;;  %v18368_v43 = vld [vmem:[#allocation24 + $0xb08] ss:$16 sps:$4 sm:$0xff]  }
0x1a78   :  { %14416 = vmatprep.subr.bf16.mxu1 %v18316_v41  ;;  %v18373_v41 = vld [vmem:[#allocation24 + $0xb24] ss:$16 sps:$4 sm:$0xff]  }
0x1a7a   :  { %13993 = vmatpush1.bf16.msra.mxu0 %v18311_v19  ;;  %v18376_v19 = vld [vmem:[#allocation24 + $0xb2c] ss:$16 sps:$4 sm:$0xff]  }
0x1a7b   :  { %14417 = vmatpush1.bf16.msra.mxu1 %v18314_v37  ;;  %14015 = vmatprep.subr.bf16.mxu0 %v18319_v50  ;;  %v18371_v37 = vld [vmem:[#allocation24 + $0xb20] ss:$16 sps:$4 sm:$0xff]   ;;  %v18374_v50 = vld [vmem:[#allocation24 + $0xb28] ss:$16 sps:$4 sm:$0xff]  }
0x1a7c   :  { %14439 = vmatprep.subr.bf16.mxu1 %v18322_v57  ;;  %v18379_v57 = vld [vmem:[#allocation24 + $0xb44] ss:$16 sps:$4 sm:$0xff]  }
0x1a7d   :  { %13995 = vmatmul.mubr.bf16.vlgmr.msra.gmra.mrb[128].mxu0 %v20578_v38 }
0x1a7e   :  { %14419 = vmatmul.mubr.bf16.vlgmr.msra.gmra.mrb[128].mxu1 %v20578_v38  ;;  %14004 = vmatprep.mubr.bf16.mxu0 %v20598_v8  ;;  %v18340_v38 = vld [vmem:[#allocation24 + $0xa6c] ss:$16 sps:$4 sm:$0xff]  }
0x1a7f   :  { %14016 = vmatpush1.bf16.msra.mxu0 %v18317_v48  ;;  %14428 = vmatprep.mubr.bf16.mxu1 %v20598_v8  ;;  %v18335_v8 = vld [vmem:[#allocation24 + $0xa60] ss:$16 sps:$4 sm:$0xff]   ;;  %v18382_v48 = vld [vmem:[#allocation24 + $0xb4c] ss:$16 sps:$4 sm:$0xff]  }
0x1a80   :  { %14440 = vmatpush1.bf16.msra.mxu1 %v18320_v5  ;;  %14017 = vmatprep.subr.bf16.mxu0 %v18325_v4  ;;  %v18377_v5 = vld [vmem:[#allocation24 + $0xb40] ss:$16 sps:$4 sm:$0xff]   ;;  %v18380_v4 = vld [vmem:[#allocation24 + $0xb48] ss:$16 sps:$4 sm:$0xff]  }
0x1a81   :  { %14441 = vmatprep.subr.bf16.mxu1 %v18328_v30  ;;  %v18385_v30 = vld [vmem:[#allocation24 + $0xb64] ss:$16 sps:$4 sm:$0xff]  }
0x1a83   :  { %14018 = vmatpush1.bf16.msra.mxu0 %v18323_v17  ;;  %v18388_v17 = vld [vmem:[#allocation24 + $0xb6c] ss:$16 sps:$4 sm:$0xff]  }
0x1a84   :  { %14442 = vmatpush1.bf16.msra.mxu1 %v18326_v0  ;;  %14019 = vmatprep.subr.bf16.mxu0 %v18331_v35  ;;  %v18383_v0 = vld [vmem:[#allocation24 + $0xb60] ss:$16 sps:$4 sm:$0xff]   ;;  %v18386_v35 = vld [vmem:[#allocation24 + $0xb68] ss:$16 sps:$4 sm:$0xff]  }
0x1a85   :  { %14005 = vmatmul.mubr.bf16.gmra.mrb[132].mxu0 %v20594_v54  ;;  %14443 = vmatprep.subr.bf16.mxu1 %v18334_v46  ;;  %v18391_v46 = vld [vmem:[#allocation24 + $0xb84] ss:$16 sps:$4 sm:$0xff]  }
0x1a86   :  { %14429 = vmatmul.mubr.bf16.gmra.mrb[132].mxu1 %v20594_v54  ;;  %14047 = vmatprep.mubr.bf16.mxu0 %v20584_v29  ;;  %v18352_v54 = vld [vmem:[#allocation24 + $0xaac] ss:$16 sps:$4 sm:$0xff]  }
0x1a87   :  { %14020 = vmatpush1.bf16.msra.mxu0 %v18329_v47  ;;  %14471 = vmatprep.mubr.bf16.mxu1 %v20584_v29  ;;  %v18350_v29 = vld [vmem:[#allocation24 + $0xaa8] ss:$16 sps:$4 sm:$0xff]   ;;  %v18394_v47 = vld [vmem:[#allocation24 + $0xb8c] ss:$16 sps:$4 sm:$0xff]  }
0x1a88   :  { %14444 = vmatpush1.bf16.msra.mxu1 %v18332_v1  ;;  %14021 = vmatprep.subr.bf16.mxu0 %v18337_v12  ;;  %v18389_v1 = vld [vmem:[#allocation24 + $0xb80] ss:$16 sps:$4 sm:$0xff]   ;;  %v18392_v12 = vld [vmem:[#allocation24 + $0xb88] ss:$16 sps:$4 sm:$0xff]  }
0x1a89   :  { %14445 = vmatprep.subr.bf16.mxu1 %v18340_v38  ;;  %v18397_v38 = vld [vmem:[#allocation24 + $0xba4] ss:$16 sps:$4 sm:$0xff]  }
0x1a8b   :  { %14022 = vmatpush1.bf16.msra.mxu0 %v18335_v8  ;;  %v18400_v8 = vld [vmem:[#allocation24 + $0xbac] ss:$16 sps:$4 sm:$0xff]  }
0x1a8c   :  { %14446 = vmatpush1.bf16.msra.mxu1 %v18338_v44  ;;  %14023 = vmatprep.subr.bf16.mxu0 %v18343_v16  ;;  %v18395_v44 = vld [vmem:[#allocation24 + $0xba0] ss:$16 sps:$4 sm:$0xff]   ;;  %v18398_v16 = vld [vmem:[#allocation24 + $0xba8] ss:$16 sps:$4 sm:$0xff]  }
0x1a8d   :  { %14447 = vmatprep.subr.bf16.mxu1 %v18346_v18  ;;  %v18403_v18 = vld [vmem:[#allocation24 + $0xbc4] ss:$16 sps:$4 sm:$0xff]  }
0x1a8f   :  { %14024 = vmatpush1.bf16.msra.mxu0 %v18341_v49  ;;  %v18406_v49 = vld [vmem:[#allocation24 + $0xbcc] ss:$16 sps:$4 sm:$0xff]  }
0x1a90   :  { %14448 = vmatpush1.bf16.msra.mxu1 %v18344_v23  ;;  %14025 = vmatprep.subr.bf16.mxu0 %v18349_v58  ;;  %v18401_v23 = vld [vmem:[#allocation24 + $0xbc0] ss:$16 sps:$4 sm:$0xff]   ;;  %v18404_v58 = vld [vmem:[#allocation24 + $0xbc8] ss:$16 sps:$4 sm:$0xff]  }
0x1a91   :  { %14449 = vmatprep.subr.bf16.mxu1 %v18352_v54  ;;  %v18409_v54 = vld [vmem:[#allocation24 + $0xbe4] ss:$16 sps:$4 sm:$0xff]  }
0x1a93   :  { %14026 = vmatpush1.bf16.msra.mxu0 %v18347_v32  ;;  %v18412_v32 = vld [vmem:[#allocation24 + $0xbec] ss:$16 sps:$4 sm:$0xff]  }
0x1a94   :  { %14450 = vmatpush1.bf16.msra.mxu1 %v18350_v29  ;;  %14027 = vmatprep.subr.bf16.mxu0 %v18355_v28  ;;  %v18407_v29 = vld [vmem:[#allocation24 + $0xbe0] ss:$16 sps:$4 sm:$0xff]   ;;  %v18410_v28 = vld [vmem:[#allocation24 + $0xbe8] ss:$16 sps:$4 sm:$0xff]  }
0x1a95   :  { %14451 = vmatprep.subr.bf16.mxu1 %v18358_v36  ;;  %v18415_v36 = vld [vmem:[#allocation24 + $0xc04] ss:$16 sps:$4 sm:$0xff]  }
0x1a97   :  { %14028 = vmatpush1.bf16.msra.mxu0 %v18353_v53  ;;  %v18418_v53 = vld [vmem:[#allocation24 + $0xc0c] ss:$16 sps:$4 sm:$0xff]  }
0x1a98   :  { %14452 = vmatpush1.bf16.msra.mxu1 %v18356_v45  ;;  %14029 = vmatprep.subr.bf16.mxu0 %v18361_v31  ;;  %v18413_v45 = vld [vmem:[#allocation24 + $0xc00] ss:$16 sps:$4 sm:$0xff]   ;;  %v18416_v31 = vld [vmem:[#allocation24 + $0xc08] ss:$16 sps:$4 sm:$0xff]  }
0x1a99   :  { %14453 = vmatprep.subr.bf16.mxu1 %v18364_v27  ;;  %v18421_v27 = vld [vmem:[#allocation24 + $0xc24] ss:$16 sps:$4 sm:$0xff]  }
0x1a9b   :  { %14030 = vmatpush1.bf16.msra.mxu0 %v18359_v11  ;;  %v18424_v11 = vld [vmem:[#allocation24 + $0xc2c] ss:$16 sps:$4 sm:$0xff]  }
0x1a9c   :  { %14454 = vmatpush1.bf16.msra.mxu1 %v18362_v59  ;;  %14031 = vmatprep.subr.bf16.mxu0 %v18367_v10  ;;  %v18419_v59 = vld [vmem:[#allocation24 + $0xc20] ss:$16 sps:$4 sm:$0xff]   ;;  %v18422_v10 = vld [vmem:[#allocation24 + $0xc28] ss:$16 sps:$4 sm:$0xff]  }
0x1a9d   :  { %14455 = vmatprep.subr.bf16.mxu1 %v18370_v40  ;;  %v18427_v40 = vld [vmem:[#allocation24 + $0xc44] ss:$16 sps:$4 sm:$0xff]  }
0x1a9f   :  { %14032 = vmatpush1.bf16.msra.mxu0 %v18365_v13  ;;  %v18430_v13 = vld [vmem:[#allocation24 + $0xc4c] ss:$16 sps:$4 sm:$0xff]  }
0x1aa0   :  { %14456 = vmatpush1.bf16.msra.mxu1 %v18368_v43  ;;  %14033 = vmatprep.subr.bf16.mxu0 %v18373_v41  ;;  %v18425_v43 = vld [vmem:[#allocation24 + $0xc40] ss:$16 sps:$4 sm:$0xff]   ;;  %v18428_v41 = vld [vmem:[#allocation24 + $0xc48] ss:$16 sps:$4 sm:$0xff]  }
0x1aa1   :  { %14457 = vmatprep.subr.bf16.mxu1 %v18376_v19  ;;  %v18433_v19 = vld [vmem:[#allocation24 + $0xc64] ss:$16 sps:$4 sm:$0xff]  }
0x1aa3   :  { %14034 = vmatpush1.bf16.msra.mxu0 %v18371_v37  ;;  %v18434_v37 = vld [vmem:[#allocation24 + $0xc68] ss:$16 sps:$4 sm:$0xff]  }
0x1aa4   :  { %14458 = vmatpush1.bf16.msra.mxu1 %v18374_v50  ;;  %14035 = vmatprep.subr.bf16.mxu0 %v18379_v57  ;;  %v18439_v50 = vld [vmem:[#allocation24 + $0xc84] ss:$16 sps:$4 sm:$0xff]   ;;  %v18442_v57 = vld [vmem:[#allocation24 + $0xc8c] ss:$16 sps:$4 sm:$0xff]  }
0x1aa5   :  { %14459 = vmatprep.subr.bf16.mxu1 %v18382_v48  ;;  %v18437_v48 = vld [vmem:[#allocation24 + $0xc80] ss:$16 sps:$4 sm:$0xff]  }
0x1aa7   :  { %14036 = vmatpush1.bf16.msra.mxu0 %v18377_v5  ;;  %v18440_v5 = vld [vmem:[#allocation24 + $0xc88] ss:$16 sps:$4 sm:$0xff]  }
0x1aa8   :  { %14460 = vmatpush1.bf16.msra.mxu1 %v18380_v4  ;;  %14037 = vmatprep.subr.bf16.mxu0 %v18385_v30  ;;  %v18445_v4 = vld [vmem:[#allocation24 + $0xca4] ss:$16 sps:$4 sm:$0xff]   ;;  %v18443_v30 = vld [vmem:[#allocation24 + $0xca0] ss:$16 sps:$4 sm:$0xff]  }
0x1aa9   :  { %14461 = vmatprep.subr.bf16.mxu1 %v18388_v17  ;;  %v18451_v17 = vld [vmem:[#allocation24 + $0xcc4] ss:$16 sps:$4 sm:$0xff]  }
0x1aab   :  { %14038 = vmatpush1.bf16.msra.mxu0 %v18383_v0  ;;  %v18454_v0 = vld [vmem:[#allocation24 + $0xccc] ss:$16 sps:$4 sm:$0xff]  }
0x1aac   :  { %14462 = vmatpush1.bf16.msra.mxu1 %v18386_v35  ;;  %14039 = vmatprep.subr.bf16.mxu0 %v18391_v46  ;;  %v18449_v35 = vld [vmem:[#allocation24 + $0xcc0] ss:$16 sps:$4 sm:$0xff]   ;;  %v18452_v46 = vld [vmem:[#allocation24 + $0xcc8] ss:$16 sps:$4 sm:$0xff]  }
0x1aad   :  { %14463 = vmatprep.subr.bf16.mxu1 %v18394_v47  ;;  %v18457_v47 = vld [vmem:[#allocation24 + $0xce4] ss:$16 sps:$4 sm:$0xff]  }
0x1aaf   :  { %14040 = vmatpush1.bf16.msra.mxu0 %v18389_v1  ;;  %v18460_v1 = vld [vmem:[#allocation24 + $0xcec] ss:$16 sps:$4 sm:$0xff]  }
0x1ab0   :  { %14464 = vmatpush1.bf16.msra.mxu1 %v18392_v12  ;;  %14041 = vmatprep.subr.bf16.mxu0 %v18397_v38  ;;  %v18455_v12 = vld [vmem:[#allocation24 + $0xce0] ss:$16 sps:$4 sm:$0xff]   ;;  %v18458_v38 = vld [vmem:[#allocation24 + $0xce8] ss:$16 sps:$4 sm:$0xff]  }
0x1ab1   :  { %14465 = vmatprep.subr.bf16.mxu1 %v18400_v8  ;;  %v18463_v8 = vld [vmem:[#allocation24 + $0xd04] ss:$16 sps:$4 sm:$0xff]  }
0x1ab3   :  { %14042 = vmatpush1.bf16.msra.mxu0 %v18395_v44  ;;  %v18466_v44 = vld [vmem:[#allocation24 + $0xd0c] ss:$16 sps:$4 sm:$0xff]  }
0x1ab4   :  { %14466 = vmatpush1.bf16.msra.mxu1 %v18398_v16  ;;  %14043 = vmatprep.subr.bf16.mxu0 %v18403_v18  ;;  %v18461_v16 = vld [vmem:[#allocation24 + $0xd00] ss:$16 sps:$4 sm:$0xff]   ;;  %v18464_v18 = vld [vmem:[#allocation24 + $0xd08] ss:$16 sps:$4 sm:$0xff]  }
0x1ab5   :  { %14467 = vmatprep.subr.bf16.mxu1 %v18406_v49  ;;  %v18469_v49 = vld [vmem:[#allocation24 + $0xd24] ss:$16 sps:$4 sm:$0xff]  }
0x1ab7   :  { %14044 = vmatpush1.bf16.msra.mxu0 %v18401_v23  ;;  %v18472_v23 = vld [vmem:[#allocation24 + $0xd2c] ss:$16 sps:$4 sm:$0xff]  }
0x1ab8   :  { %14468 = vmatpush1.bf16.msra.mxu1 %v18404_v58  ;;  %14045 = vmatprep.subr.bf16.mxu0 %v18409_v54  ;;  %v18467_v58 = vld [vmem:[#allocation24 + $0xd20] ss:$16 sps:$4 sm:$0xff]   ;;  %v18470_v54 = vld [vmem:[#allocation24 + $0xd28] ss:$16 sps:$4 sm:$0xff]  }
0x1ab9   :  { %14469 = vmatprep.subr.bf16.mxu1 %v18412_v32  ;;  %v18475_v32 = vld [vmem:[#allocation24 + $0xd44] ss:$16 sps:$4 sm:$0xff]  }
0x1abb   :  { %14046 = vmatpush1.bf16.msra.mxu0 %v18407_v29  ;;  %v18478_v29 = vld [vmem:[#allocation24 + $0xd4c] ss:$16 sps:$4 sm:$0xff]  }
0x1abc   :  { %14470 = vmatpush1.bf16.msra.mxu1 %v18410_v28  ;;  %14068 = vmatprep.subr.bf16.mxu0 %v18415_v36  ;;  %v18473_v28 = vld [vmem:[#allocation24 + $0xd40] ss:$16 sps:$4 sm:$0xff]   ;;  %v18476_v36 = vld [vmem:[#allocation24 + $0xd48] ss:$16 sps:$4 sm:$0xff]  }
0x1abd   :  { %14492 = vmatprep.subr.bf16.mxu1 %v18418_v53  ;;  %v18481_v53 = vld [vmem:[#allocation24 + $0xd64] ss:$16 sps:$4 sm:$0xff]  }
0x1abe   :  { %14048 = vmatmul.mubr.bf16.vlgmr.msra.gmra.mrb[128].mxu0 %v20580_v15 }
0x1abf   :  { %14472 = vmatmul.mubr.bf16.vlgmr.msra.gmra.mrb[128].mxu1 %v20580_v15  ;;  %14057 = vmatprep.mubr.bf16.mxu0 %v20600_v25  ;;  %v18436_v15 = vld [vmem:[#allocation24 + $0xc6c] ss:$16 sps:$4 sm:$0xff]  }
0x1ac0   :  { %14069 = vmatpush1.bf16.msra.mxu0 %v18413_v45  ;;  %14481 = vmatprep.mubr.bf16.mxu1 %v20600_v25  ;;  %v18431_v25 = vld [vmem:[#allocation24 + $0xc60] ss:$16 sps:$4 sm:$0xff]   ;;  %v18484_v45 = vld [vmem:[#allocation24 + $0xd6c] ss:$16 sps:$4 sm:$0xff]  }
0x1ac1   :  { %14493 = vmatpush1.bf16.msra.mxu1 %v18416_v31  ;;  %14070 = vmatprep.subr.bf16.mxu0 %v18421_v27  ;;  %v18479_v31 = vld [vmem:[#allocation24 + $0xd60] ss:$16 sps:$4 sm:$0xff]   ;;  %v18482_v27 = vld [vmem:[#allocation24 + $0xd68] ss:$16 sps:$4 sm:$0xff]  }
0x1ac2   :  { %14494 = vmatprep.subr.bf16.mxu1 %v18424_v11  ;;  %v18487_v11 = vld [vmem:[#allocation24 + $0xd84] ss:$16 sps:$4 sm:$0xff]  }
0x1ac4   :  { %14071 = vmatpush1.bf16.msra.mxu0 %v18419_v59  ;;  %v18490_v59 = vld [vmem:[#allocation24 + $0xd8c] ss:$16 sps:$4 sm:$0xff]  }
0x1ac5   :  { %14495 = vmatpush1.bf16.msra.mxu1 %v18422_v10  ;;  %14072 = vmatprep.subr.bf16.mxu0 %v18427_v40  ;;  %v18485_v10 = vld [vmem:[#allocation24 + $0xd80] ss:$16 sps:$4 sm:$0xff]   ;;  %v18488_v40 = vld [vmem:[#allocation24 + $0xd88] ss:$16 sps:$4 sm:$0xff]  }
0x1ac6   :  { %14058 = vmatmul.mubr.bf16.gmra.mrb[132].mxu0 %v20596_v56  ;;  %14496 = vmatprep.subr.bf16.mxu1 %v18430_v13  ;;  %v18493_v13 = vld [vmem:[#allocation24 + $0xda4] ss:$16 sps:$4 sm:$0xff]  }
0x1ac7   :  { %14482 = vmatmul.mubr.bf16.gmra.mrb[132].mxu1 %v20596_v56  ;;  %14100 = vmatprep.mubr.bf16.mxu0 %v20650_v22  ;;  %v18448_v56 = vld [vmem:[#allocation24 + $0xcac] ss:$16 sps:$4 sm:$0xff]  }
0x1ac8   :  { %14073 = vmatpush1.bf16.msra.mxu0 %v18425_v43  ;;  %14524 = vmatprep.mubr.bf16.mxu1 %v20650_v22  ;;  %v18446_v22 = vld [vmem:[#allocation24 + $0xca8] ss:$16 sps:$4 sm:$0xff]   ;;  %v18496_v43 = vld [vmem:[#allocation24 + $0xdac] ss:$16 sps:$4 sm:$0xff]  }
0x1ac9   :  { %14497 = vmatpush1.bf16.msra.mxu1 %v18428_v41  ;;  %14074 = vmatprep.subr.bf16.mxu0 %v18433_v19  ;;  %v18491_v41 = vld [vmem:[#allocation24 + $0xda0] ss:$16 sps:$4 sm:$0xff]   ;;  %v18494_v19 = vld [vmem:[#allocation24 + $0xda8] ss:$16 sps:$4 sm:$0xff]  }
0x1aca   :  { %14498 = vmatprep.subr.bf16.mxu1 %v18436_v15  ;;  %v18499_v15 = vld [vmem:[#allocation24 + $0xdc4] ss:$16 sps:$4 sm:$0xff]  }
0x1acc   :  { %14075 = vmatpush1.bf16.msra.mxu0 %v18431_v25  ;;  %v18502_v25 = vld [vmem:[#allocation24 + $0xdcc] ss:$16 sps:$4 sm:$0xff]  }
0x1acd   :  { %14499 = vmatpush1.bf16.msra.mxu1 %v18434_v37  ;;  %14076 = vmatprep.subr.bf16.mxu0 %v18439_v50  ;;  %v18497_v37 = vld [vmem:[#allocation24 + $0xdc0] ss:$16 sps:$4 sm:$0xff]   ;;  %v18500_v50 = vld [vmem:[#allocation24 + $0xdc8] ss:$16 sps:$4 sm:$0xff]  }
0x1ace   :  { %14500 = vmatprep.subr.bf16.mxu1 %v18442_v57  ;;  %v18505_v57 = vld [vmem:[#allocation24 + $0xde4] ss:$16 sps:$4 sm:$0xff]  }
0x1ad0   :  { %14077 = vmatpush1.bf16.msra.mxu0 %v18437_v48  ;;  %v18508_v48 = vld [vmem:[#allocation24 + $0xdec] ss:$16 sps:$4 sm:$0xff]  }
0x1ad1   :  { %14501 = vmatpush1.bf16.msra.mxu1 %v18440_v5  ;;  %14078 = vmatprep.subr.bf16.mxu0 %v18445_v4  ;;  %v18503_v5 = vld [vmem:[#allocation24 + $0xde0] ss:$16 sps:$4 sm:$0xff]   ;;  %v18506_v4 = vld [vmem:[#allocation24 + $0xde8] ss:$16 sps:$4 sm:$0xff]  }
0x1ad2   :  { %14502 = vmatprep.subr.bf16.mxu1 %v18448_v56  ;;  %v18511_v56 = vld [vmem:[#allocation24 + $0xe04] ss:$16 sps:$4 sm:$0xff]  }
0x1ad4   :  { %14079 = vmatpush1.bf16.msra.mxu0 %v18443_v30  ;;  %v18514_v30 = vld [vmem:[#allocation24 + $0xe0c] ss:$16 sps:$4 sm:$0xff]  }
0x1ad5   :  { %14503 = vmatpush1.bf16.msra.mxu1 %v18446_v22  ;;  %14080 = vmatprep.subr.bf16.mxu0 %v18451_v17  ;;  %v18509_v22 = vld [vmem:[#allocation24 + $0xe00] ss:$16 sps:$4 sm:$0xff]   ;;  %v18512_v17 = vld [vmem:[#allocation24 + $0xe08] ss:$16 sps:$4 sm:$0xff]  }
0x1ad6   :  { %14504 = vmatprep.subr.bf16.mxu1 %v18454_v0  ;;  %v18517_v0 = vld [vmem:[#allocation24 + $0xe24] ss:$16 sps:$4 sm:$0xff]  }
0x1ad8   :  { %14081 = vmatpush1.bf16.msra.mxu0 %v18449_v35  ;;  %v18520_v35 = vld [vmem:[#allocation24 + $0xe2c] ss:$16 sps:$4 sm:$0xff]  }
0x1ad9   :  { %14505 = vmatpush1.bf16.msra.mxu1 %v18452_v46  ;;  %14082 = vmatprep.subr.bf16.mxu0 %v18457_v47  ;;  %v18515_v46 = vld [vmem:[#allocation24 + $0xe20] ss:$16 sps:$4 sm:$0xff]   ;;  %v18518_v47 = vld [vmem:[#allocation24 + $0xe28] ss:$16 sps:$4 sm:$0xff]  }
0x1ada   :  { %14506 = vmatprep.subr.bf16.mxu1 %v18460_v1  ;;  %v18523_v1 = vld [vmem:[#allocation24 + $0xe44] ss:$16 sps:$4 sm:$0xff]  }
0x1adc   :  { %14083 = vmatpush1.bf16.msra.mxu0 %v18455_v12  ;;  %v18526_v12 = vld [vmem:[#allocation24 + $0xe4c] ss:$16 sps:$4 sm:$0xff]  }
0x1add   :  { %14507 = vmatpush1.bf16.msra.mxu1 %v18458_v38  ;;  %14084 = vmatprep.subr.bf16.mxu0 %v18463_v8  ;;  %v18521_v38 = vld [vmem:[#allocation24 + $0xe40] ss:$16 sps:$4 sm:$0xff]   ;;  %v18524_v8 = vld [vmem:[#allocation24 + $0xe48] ss:$16 sps:$4 sm:$0xff]  }
0x1ade   :  { %14508 = vmatprep.subr.bf16.mxu1 %v18466_v44  ;;  %v18529_v44 = vld [vmem:[#allocation24 + $0xe64] ss:$16 sps:$4 sm:$0xff]  }
0x1ae0   :  { %14085 = vmatpush1.bf16.msra.mxu0 %v18461_v16  ;;  %v18530_v16 = vld [vmem:[#allocation24 + $0xe68] ss:$16 sps:$4 sm:$0xff]  }
0x1ae1   :  { %14509 = vmatpush1.bf16.msra.mxu1 %v18464_v18  ;;  %14086 = vmatprep.subr.bf16.mxu0 %v18469_v49  ;;  %v18535_v18 = vld [vmem:[#allocation24 + $0xe84] ss:$16 sps:$4 sm:$0xff]   ;;  %v18538_v49 = vld [vmem:[#allocation24 + $0xe8c] ss:$16 sps:$4 sm:$0xff]  }
0x1ae2   :  { %14510 = vmatprep.subr.bf16.mxu1 %v18472_v23  ;;  %v18533_v23 = vld [vmem:[#allocation24 + $0xe80] ss:$16 sps:$4 sm:$0xff]  }
0x1ae4   :  { %14087 = vmatpush1.bf16.msra.mxu0 %v18467_v58  ;;  %v18536_v58 = vld [vmem:[#allocation24 + $0xe88] ss:$16 sps:$4 sm:$0xff]  }
0x1ae5   :  { %14511 = vmatpush1.bf16.msra.mxu1 %v18470_v54  ;;  %14088 = vmatprep.subr.bf16.mxu0 %v18475_v32  ;;  %v18541_v54 = vld [vmem:[#allocation24 + $0xea4] ss:$16 sps:$4 sm:$0xff]   ;;  %v18539_v32 = vld [vmem:[#allocation24 + $0xea0] ss:$16 sps:$4 sm:$0xff]  }
0x1ae6   :  { %14512 = vmatprep.subr.bf16.mxu1 %v18478_v29  ;;  %v18547_v29 = vld [vmem:[#allocation24 + $0xec4] ss:$16 sps:$4 sm:$0xff]  }
0x1ae8   :  { %14089 = vmatpush1.bf16.msra.mxu0 %v18473_v28  ;;  %v18550_v28 = vld [vmem:[#allocation24 + $0xecc] ss:$16 sps:$4 sm:$0xff]  }
0x1ae9   :  { %14513 = vmatpush1.bf16.msra.mxu1 %v18476_v36  ;;  %14090 = vmatprep.subr.bf16.mxu0 %v18481_v53  ;;  %v18545_v36 = vld [vmem:[#allocation24 + $0xec0] ss:$16 sps:$4 sm:$0xff]   ;;  %v18548_v53 = vld [vmem:[#allocation24 + $0xec8] ss:$16 sps:$4 sm:$0xff]  }
0x1aea   :  { %14514 = vmatprep.subr.bf16.mxu1 %v18484_v45  ;;  %v18553_v45 = vld [vmem:[#allocation24 + $0xee4] ss:$16 sps:$4 sm:$0xff]  }
0x1aec   :  { %14091 = vmatpush1.bf16.msra.mxu0 %v18479_v31  ;;  %v18556_v31 = vld [vmem:[#allocation24 + $0xeec] ss:$16 sps:$4 sm:$0xff]  }
0x1aed   :  { %14515 = vmatpush1.bf16.msra.mxu1 %v18482_v27  ;;  %14092 = vmatprep.subr.bf16.mxu0 %v18487_v11  ;;  %v18551_v27 = vld [vmem:[#allocation24 + $0xee0] ss:$16 sps:$4 sm:$0xff]   ;;  %v18554_v11 = vld [vmem:[#allocation24 + $0xee8] ss:$16 sps:$4 sm:$0xff]  }
0x1aee   :  { %14516 = vmatprep.subr.bf16.mxu1 %v18490_v59  ;;  %v18559_v59 = vld [vmem:[#allocation24 + $0xf04] ss:$16 sps:$4 sm:$0xff]  }
0x1af0   :  { %14093 = vmatpush1.bf16.msra.mxu0 %v18485_v10  ;;  %v18562_v10 = vld [vmem:[#allocation24 + $0xf0c] ss:$16 sps:$4 sm:$0xff]  }
0x1af1   :  { %14517 = vmatpush1.bf16.msra.mxu1 %v18488_v40  ;;  %14094 = vmatprep.subr.bf16.mxu0 %v18493_v13  ;;  %v18557_v40 = vld [vmem:[#allocation24 + $0xf00] ss:$16 sps:$4 sm:$0xff]   ;;  %v18560_v13 = vld [vmem:[#allocation24 + $0xf08] ss:$16 sps:$4 sm:$0xff]  }
0x1af2   :  { %14518 = vmatprep.subr.bf16.mxu1 %v18496_v43  ;;  %v18565_v43 = vld [vmem:[#allocation24 + $0xf24] ss:$16 sps:$4 sm:$0xff]  }
0x1af4   :  { %14095 = vmatpush1.bf16.msra.mxu0 %v18491_v41  ;;  %v18568_v41 = vld [vmem:[#allocation24 + $0xf2c] ss:$16 sps:$4 sm:$0xff]  }
0x1af5   :  { %14519 = vmatpush1.bf16.msra.mxu1 %v18494_v19  ;;  %14096 = vmatprep.subr.bf16.mxu0 %v18499_v15  ;;  %v18563_v19 = vld [vmem:[#allocation24 + $0xf20] ss:$16 sps:$4 sm:$0xff]   ;;  %v18566_v15 = vld [vmem:[#allocation24 + $0xf28] ss:$16 sps:$4 sm:$0xff]  }
0x1af6   :  { %14520 = vmatprep.subr.bf16.mxu1 %v18502_v25  ;;  %v18571_v25 = vld [vmem:[#allocation24 + $0xf44] ss:$16 sps:$4 sm:$0xff]  }
0x1af8   :  { %14097 = vmatpush1.bf16.msra.mxu0 %v18497_v37  ;;  %v18574_v37 = vld [vmem:[#allocation24 + $0xf4c] ss:$16 sps:$4 sm:$0xff]  }
0x1af9   :  { %14521 = vmatpush1.bf16.msra.mxu1 %v18500_v50  ;;  %14098 = vmatprep.subr.bf16.mxu0 %v18505_v57  ;;  %v18569_v50 = vld [vmem:[#allocation24 + $0xf40] ss:$16 sps:$4 sm:$0xff]   ;;  %v18572_v57 = vld [vmem:[#allocation24 + $0xf48] ss:$16 sps:$4 sm:$0xff]  }
0x1afa   :  { %14522 = vmatprep.subr.bf16.mxu1 %v18508_v48  ;;  %v18577_v48 = vld [vmem:[#allocation24 + $0xf64] ss:$16 sps:$4 sm:$0xff]  }
0x1afc   :  { %14099 = vmatpush1.bf16.msra.mxu0 %v18503_v5  ;;  %v18580_v5 = vld [vmem:[#allocation24 + $0xf6c] ss:$16 sps:$4 sm:$0xff]  }
0x1afd   :  { %14523 = vmatpush1.bf16.msra.mxu1 %v18506_v4  ;;  %14121 = vmatprep.subr.bf16.mxu0 %v18511_v56  ;;  %v18575_v4 = vld [vmem:[#allocation24 + $0xf60] ss:$16 sps:$4 sm:$0xff]   ;;  %v18578_v56 = vld [vmem:[#allocation24 + $0xf68] ss:$16 sps:$4 sm:$0xff]  }
0x1afe   :  { %14545 = vmatprep.subr.bf16.mxu1 %v18514_v30  ;;  %v18583_v30 = vld [vmem:[#allocation24 + $0xf84] ss:$16 sps:$4 sm:$0xff]  }
0x1aff   :  { %14101 = vmatmul.mubr.bf16.vlgmr.msra.gmra.mrb[128].mxu0 %v20646_v61 }
0x1b00   :  { %14525 = vmatmul.mubr.bf16.vlgmr.msra.gmra.mrb[128].mxu1 %v20646_v61  ;;  %14110 = vmatprep.mubr.bf16.mxu0 %v20666_v42  ;;  %v18532_v61 = vld [vmem:[#allocation24 + $0xe6c] ss:$16 sps:$4 sm:$0xff]  }
0x1b01   :  { %14122 = vmatpush1.bf16.msra.mxu0 %v18509_v22  ;;  %14534 = vmatprep.mubr.bf16.mxu1 %v20666_v42  ;;  %v18527_v42 = vld [vmem:[#allocation24 + $0xe60] ss:$16 sps:$4 sm:$0xff]   ;;  %v18586_v22 = vld [vmem:[#allocation24 + $0xf8c] ss:$16 sps:$4 sm:$0xff]  }
0x1b02   :  { %14546 = vmatpush1.bf16.msra.mxu1 %v18512_v17  ;;  %14123 = vmatprep.subr.bf16.mxu0 %v18517_v0  ;;  %v18581_v17 = vld [vmem:[#allocation24 + $0xf80] ss:$16 sps:$4 sm:$0xff]   ;;  %v18584_v0 = vld [vmem:[#allocation24 + $0xf88] ss:$16 sps:$4 sm:$0xff]  }
0x1b03   :  { %14547 = vmatprep.subr.bf16.mxu1 %v18520_v35  ;;  %v18589_v35 = vld [vmem:[#allocation24 + $0xfa4] ss:$16 sps:$4 sm:$0xff]  }
0x1b05   :  { %14124 = vmatpush1.bf16.msra.mxu0 %v18515_v46  ;;  %v18592_v46 = vld [vmem:[#allocation24 + $0xfac] ss:$16 sps:$4 sm:$0xff]  }
0x1b06   :  { %14548 = vmatpush1.bf16.msra.mxu1 %v18518_v47  ;;  %14125 = vmatprep.subr.bf16.mxu0 %v18523_v1  ;;  %v18587_v47 = vld [vmem:[#allocation24 + $0xfa0] ss:$16 sps:$4 sm:$0xff]   ;;  %v18590_v1 = vld [vmem:[#allocation24 + $0xfa8] ss:$16 sps:$4 sm:$0xff]  }
0x1b07   :  { %14111 = vmatmul.mubr.bf16.gmra.mrb[132].mxu0 %v20662_v63  ;;  %14549 = vmatprep.subr.bf16.mxu1 %v18526_v12  ;;  %v18595_v12 = vld [vmem:[#allocation24 + $0xfc4] ss:$16 sps:$4 sm:$0xff]  }
0x1b08   :  { %14535 = vmatmul.mubr.bf16.gmra.mrb[132].mxu1 %v20662_v63  ;;  %14153 = vmatprep.mubr.bf16.mxu0 %v20652_v14  ;;  %v18544_v63 = vld [vmem:[#allocation24 + $0xeac] ss:$16 sps:$4 sm:$0xff]  }
0x1b09   :  { %14126 = vmatpush1.bf16.msra.mxu0 %v18521_v38  ;;  %14577 = vmatprep.mubr.bf16.mxu1 %v20652_v14  ;;  %v18542_v14 = vld [vmem:[#allocation24 + $0xea8] ss:$16 sps:$4 sm:$0xff]   ;;  %v18598_v38 = vld [vmem:[#allocation24 + $0xfcc] ss:$16 sps:$4 sm:$0xff]  }
0x1b0a   :  { %14550 = vmatpush1.bf16.msra.mxu1 %v18524_v8  ;;  %14127 = vmatprep.subr.bf16.mxu0 %v18529_v44  ;;  %v18593_v8 = vld [vmem:[#allocation24 + $0xfc0] ss:$16 sps:$4 sm:$0xff]   ;;  %v18596_v44 = vld [vmem:[#allocation24 + $0xfc8] ss:$16 sps:$4 sm:$0xff]  }
0x1b0b   :  { %14551 = vmatprep.subr.bf16.mxu1 %v18532_v61  ;;  %v18601_v61 = vld [vmem:[#allocation24 + $0xfe4] ss:$16 sps:$4 sm:$0xff]  }
0x1b0d   :  { %14128 = vmatpush1.bf16.msra.mxu0 %v18527_v42  ;;  %v18604_v42 = vld [vmem:[#allocation24 + $0xfec] ss:$16 sps:$4 sm:$0xff]  }
0x1b0e   :  { %14552 = vmatpush1.bf16.msra.mxu1 %v18530_v16  ;;  %14129 = vmatprep.subr.bf16.mxu0 %v18535_v18  ;;  %v18599_v16 = vld [vmem:[#allocation24 + $0xfe0] ss:$16 sps:$4 sm:$0xff]   ;;  %v18602_v18 = vld [vmem:[#allocation24 + $0xfe8] ss:$16 sps:$4 sm:$0xff]  }
0x1b0f   :  { %14553 = vmatprep.subr.bf16.mxu1 %v18538_v49  ;;  %v11168_v49 = vld [vmem:[#allocation26] sm:$0xf] }
0x1b11   :  { %14130 = vmatpush1.bf16.msra.mxu0 %v18533_v23  ;;  %v11173_v23 = vrot.slane %v11168_v49, %v19582_v3 }
0x1b12   :  { %14554 = vmatpush1.bf16.msra.mxu1 %v18536_v58  ;;  %14131 = vmatprep.subr.bf16.mxu0 %v18541_v54  ;;  %v11181_v58 = vrot.slane %v11168_v49, %v19601_v55  ;;  %v11177_v54 = vrot.slane %v11168_v49, %v19579_v2 }
0x1b13   :  { %14555 = vmatprep.subr.bf16.mxu1 %v18544_v63 }
0x1b15   :  { %14132 = vmatpush1.bf16.msra.mxu0 %v18539_v32  ;;  %v11185_v32 = vrot.slane %v11168_v49, %v19604_v60  ;;  %v20882_v49 = vld [vmem:[#allocation43_spill] sm:$0xff] }
0x1b16   :  { %14556 = vmatpush1.bf16.msra.mxu1 %v18542_v14  ;;  %14133 = vmatprep.subr.bf16.mxu0 %v18547_v29 }
0x1b17   :  { %14557 = vmatprep.subr.bf16.mxu1 %v18550_v28 }
0x1b19   :  { %14134 = vmatpush1.bf16.msra.mxu0 %v18545_v36 }
0x1b1a   :  { %14558 = vmatpush1.bf16.msra.mxu1 %v18548_v53  ;;  %14135 = vmatprep.subr.bf16.mxu0 %v18553_v45 }
0x1b1b   :  { %14559 = vmatprep.subr.bf16.mxu1 %v18556_v31 }
0x1b1d   :  { %14136 = vmatpush1.bf16.msra.mxu0 %v18551_v27 }
0x1b1e   :  { %14560 = vmatpush1.bf16.msra.mxu1 %v18554_v11  ;;  %14137 = vmatprep.subr.bf16.mxu0 %v18559_v59 }
0x1b1f   :  { %14561 = vmatprep.subr.bf16.mxu1 %v18562_v10 }
0x1b21   :  { %14138 = vmatpush1.bf16.msra.mxu0 %v18557_v40 }
0x1b22   :  { %14562 = vmatpush1.bf16.msra.mxu1 %v18560_v13  ;;  %14139 = vmatprep.subr.bf16.mxu0 %v18565_v43 }
0x1b23   :  { %14563 = vmatprep.subr.bf16.mxu1 %v18568_v41 }
0x1b25   :  { %14140 = vmatpush1.bf16.msra.mxu0 %v18563_v19 }
0x1b26   :  { %14564 = vmatpush1.bf16.msra.mxu1 %v18566_v15  ;;  %14141 = vmatprep.subr.bf16.mxu0 %v18571_v25 }
0x1b27   :  { %14565 = vmatprep.subr.bf16.mxu1 %v18574_v37 }
0x1b29   :  { %14142 = vmatpush1.bf16.msra.mxu0 %v18569_v50 }
0x1b2a   :  { %14566 = vmatpush1.bf16.msra.mxu1 %v18572_v57  ;;  %14143 = vmatprep.subr.bf16.mxu0 %v18577_v48 }
0x1b2b   :  { %14567 = vmatprep.subr.bf16.mxu1 %v18580_v5 }
0x1b2d   :  { %14144 = vmatpush1.bf16.msra.mxu0 %v18575_v4 }
0x1b2e   :  { %14568 = vmatpush1.bf16.msra.mxu1 %v18578_v56  ;;  %14145 = vmatprep.subr.bf16.mxu0 %v18583_v30 }
0x1b2f   :  { %14569 = vmatprep.subr.bf16.mxu1 %v18586_v22 }
0x1b31   :  { %14146 = vmatpush1.bf16.msra.mxu0 %v18581_v17 }
0x1b32   :  { %14570 = vmatpush1.bf16.msra.mxu1 %v18584_v0  ;;  %14147 = vmatprep.subr.bf16.mxu0 %v18589_v35 }
0x1b33   :  { %14571 = vmatprep.subr.bf16.mxu1 %v18592_v46 }
0x1b35   :  { %14148 = vmatpush1.bf16.msra.mxu0 %v18587_v47 }
0x1b36   :  { %14572 = vmatpush1.bf16.msra.mxu1 %v18590_v1  ;;  %14149 = vmatprep.subr.bf16.mxu0 %v18595_v12 }
0x1b37   :  { %14573 = vmatprep.subr.bf16.mxu1 %v18598_v38 }
0x1b39   :  { %14150 = vmatpush1.bf16.msra.mxu0 %v18593_v8  ;;  %v20880_v8 = vld [vmem:[#allocation44_spill] sm:$0xff] }
0x1b3a   :  { %14574 = vmatpush1.bf16.msra.mxu1 %v18596_v44  ;;  %14151 = vmatprep.subr.bf16.mxu0 %v18601_v61 }
0x1b3b   :  { %14575 = vmatprep.subr.bf16.mxu1 %v18604_v42  ;;  %v20881_v42 = vld [vmem:[#allocation42_spill] sm:$0xff] }
0x1b3d   :  { %14152 = vmatpush1.bf16.msra.mxu0 %v18599_v16 }
0x1b3e   :  { %14576 = vmatpush1.bf16.msra.mxu1 %v18602_v18 }
0x1b40   :  { %14154 = vmatmul.mubr.bf16.vlgmr.msra.gmra.mrb[128].mxu0 %v20648_v62 }
0x1b41   :  { %14578 = vmatmul.mubr.bf16.vlgmr.msra.gmra.mrb[128].mxu1 %v20648_v62  ;;  %14163 = vmatprep.mubr.bf16.mxu0 %v20668_v26 }
0x1b42   :  { %14587 = vmatprep.mubr.bf16.mxu1 %v20668_v26 }
0x1b48   :  { %14164 = vmatmul.mubr.bf16.gmra.mrb[132].mxu0 %v20664_v51 }
0x1b49   :  { %14588 = vmatmul.mubr.bf16.gmra.mrb[132].mxu1 %v20664_v51 }
0x1c13   :  { %v14155_v63 = vpop.f32.mrb[128].mxu0 }
0x1c14   :  { %v16787_v14 = vadd.f32 %v14155_v63, %v11173_v23  ;;  %v14579_v62 = vpop.f32.mrb[128].mxu1  ;;  %v14157_v29 = vpop.f32.mrb[129].mxu0 }
0x1c15   :  { %v16795_v28 = vadd.f32 %v14579_v62, %v11181_v58  ;;  %v16788_v36 = vadd.f32 %v14157_v29, %v11177_v54  ;;  %v14581_v26 = vpop.f32.mrb[129].mxu1  ;;  %v14159_v53 = vpop.f32.mrb[130].mxu0 }
0x1c16   :  { %v14598_v45 = vadd.f32 %v16787_v14, %v20238_v20  ;;  %v16789_v51 = vadd.f32 %v14159_v53, %v11173_v23  ;;  %v14583_v31 = vpop.f32.mrb[130].mxu1  ;;  %v14161_v27 = vpop.f32.mrb[131].mxu0  ;;  %v16796_v59 = vadd.f32 %v14581_v26, %v11185_v32  ;;  %v20884_v14 = vld [vmem:[#allocation46_spill] sm:$0xff] }
0x1c17   :  { %v14599_v11 = vadd.f32 %v16788_v36, %v20235_v52  ;;  %v16797_v10 = vadd.f32 %v14583_v31, %v11181_v58  ;;  %v16790_v40 = vadd.f32 %v14161_v27, %v11177_v54  ;;  %v14585_v13 = vpop.f32.mrb[131].mxu1  ;;  %v14600_v41 = vadd.f32 %v16795_v28, %v20244_v9 }
0x1c18   :  { %v14602_v43 = vadd.f32 %v16789_v51, %v20250_v7  ;;  %v16798_v25 = vadd.f32 %v14585_v13, %v11185_v32  ;;  %v14601_v37 = vadd.f32 %v16796_v59, %v20241_v24 }
0x1c19   :  { %v14616_v19 = vadd.f32 %v14599_v11, %v14598_v45  ;;  %v14603_v15 = vadd.f32 %v16790_v40, %v20247_v33  ;;  %v14604_v20 = vadd.f32 %v16797_v10, %v20256_v21 }
0x1c1a   :  { %v14605_v0 = vadd.f32 %v16798_v25, %v20253_v34 }
0x1c1b   :  { %v14621_v50 = vadd.f32 %v14603_v15, %v14602_v43  ;;  %v14165_v57 = vpop.f32.mrb[132].mxu0  ;;  %v14617_v48 = vadd.f32 %v14616_v19, %v14600_v41 }
0x1c1c   :  { %v16791_v52 = vadd.f32 %v14165_v57, %v11173_v23  ;;  %v14589_v5 = vpop.f32.mrb[132].mxu1  ;;  %v14167_v4 = vpop.f32.mrb[133].mxu0 }
0x1c1d   :  { %v16799_v56 = vadd.f32 %v14589_v5, %v11181_v58  ;;  %v16792_v30 = vadd.f32 %v14167_v4, %v11177_v54  ;;  %v14591_v22 = vpop.f32.mrb[133].mxu1  ;;  %v14169_v7 = vpop.f32.mrb[134].mxu0  ;;  %v14618_v17 = vadd.f32 %v14617_v48, %v14601_v37  ;;  %v14622_v9 = vadd.f32 %v14621_v50, %v14604_v20 }
0x1c1e   :  { %v14606_v33 = vadd.f32 %v16791_v52, %v20317_v6  ;;  %v16793_v35 = vadd.f32 %v14169_v7, %v11173_v23  ;;  %v14593_v24 = vpop.f32.mrb[134].mxu1  ;;  %v14171_v46 = vpop.f32.mrb[135].mxu0  ;;  %v16800_v47 = vadd.f32 %v14591_v22, %v11185_v32  ;;  %v20883_v6 = vld [vmem:[#allocation41_spill] sm:$0xff] }
0x1c1f   :  { %v14607_v21 = vadd.f32 %v16792_v30, %v20311_v39  ;;  %v16801_v1 = vadd.f32 %v14593_v24, %v11181_v58  ;;  %v16794_v12 = vadd.f32 %v14171_v46, %v11177_v54  ;;  %v14595_v38 = vpop.f32.mrb[135].mxu1  ;;  %14619 = vadd.xlane.f32.xlu0 %v14618_v17  ;;  %v14623_v61 = vadd.f32 %v14622_v9, %v14605_v0  ;;  %v20885_v58 = vld [vmem:[#allocation45_spill] sm:$0xff] }
0x1c20   :  { %v14610_v44 = vadd.f32 %v16793_v35, %v20880_v8  ;;  %v14608_v16 = vadd.f32 %v16799_v56, %v20881_v42  ;;  %v16802_v63 = vadd.f32 %v14595_v38, %v11185_v32  ;;  %v14609_v23 = vadd.f32 %v16800_v47, %v20883_v6 }
0x1c21   :  { %v14626_v18 = vadd.f32 %v14607_v21, %v14606_v33  ;;  %v14611_v34 = vadd.f32 %v16794_v12, %v20882_v49  ;;  %14624 = vadd.xlane.f32.xlu1 %v14623_v61  ;;  %v14612_v62 = vadd.f32 %v16801_v1, %v20884_v14 }
0x1c22   :  { %v14613_v54 = vadd.f32 %v16802_v63, %v20885_v58 }
0x1c23   :  { %v14631_v39 = vadd.f32 %v14611_v34, %v14610_v44  ;;  %v14627_v29 = vadd.f32 %v14626_v18, %v14608_v16 }
0x1c25   :  { %v14628_v28 = vadd.f32 %v14627_v29, %v14609_v23  ;;  %v14632_v36 = vadd.f32 %v14631_v39, %v14612_v62 }
0x1c27   :  { %14629 = vadd.xlane.f32.xlu0 %v14628_v28  ;;  %v14633_v26 = vadd.f32 %v14632_v36, %v14613_v54 }
0x1c29   :  { %14634 = vadd.xlane.f32.xlu1 %v14633_v26 }
0x1cac   :  { %v14620_v53 = vpop.xlane.xlu0 %14619 }
0x1cad   :  { %v14636_v51 = vmul.f32 0.001953125, %v14620_v53 }
0x1cae   :  { %v14625_v59 = vpop.xlane.xlu1 %14624 }
0x1caf   :  { %v20728_v31 = vsub.f32 %v14598_v45, %v14636_v51  ;;  %v20730_v27 = vsub.f32 %v14599_v11, %v14636_v51  ;;  %v20732_v32 = vsub.f32 %v14600_v41, %v14636_v51  ;;  %v14637_v10 = vmul.f32 0.001953125, %v14625_v59 }
0x1cb0   :  { %v20744_v45 = vsub.f32 %v14601_v37, %v14636_v51  ;;  %v14614_v51 = vld [vmem:[#allocation27] sm:$0xf] }
0x1cb1   :  { %v14656_v40 = vmul.f32 %v20728_v31, %v20728_v31  ;;  %v14657_v13 = vmul.f32 %v20730_v27, %v20730_v27  ;;  %v20738_v19 = vsub.f32 %v14602_v43, %v14637_v10  ;;  %v20740_v25 = vsub.f32 %v14603_v15, %v14637_v10 }
0x1cb2   :  { %v20742_v50 = vsub.f32 %v14604_v20, %v14637_v10  ;;  %v14658_v11 = vmul.f32 %v20732_v32, %v20732_v32  ;;  %v20748_v48 = vsub.f32 %v14605_v0, %v14637_v10  ;;  %v14659_v37 = vmul.f32 %v20744_v45, %v20744_v45 }
0x1cb3   :  { %v14672_v41 = vadd.f32 %v14657_v13, %v14656_v40  ;;  %v14660_v52 = vmul.f32 %v20738_v19, %v20738_v19  ;;  %v14661_v43 = vmul.f32 %v20740_v25, %v20740_v25  ;;  %v14615_v40 = vld [vmem:[#allocation29] sm:$0xf] }
0x1cb4   :  { %v14630_v57 = vpop.xlane.xlu0 %14629  ;;  %v14662_v20 = vmul.f32 %v20742_v50, %v20742_v50  ;;  %v14663_v0 = vmul.f32 %v20748_v48, %v20748_v48 }
0x1cb5   :  { %v14638_v5 = vmul.f32 0.001953125, %v14630_v57  ;;  %v14673_v15 = vadd.f32 %v14672_v41, %v14658_v11  ;;  %v14677_v56 = vadd.f32 %v14661_v43, %v14660_v52  ;;  %v14724_v11 = vrot.slane %v14614_v51, %v19582_v3 }
0x1cb6   :  { %v14635_v4 = vpop.xlane.xlu1 %14634  ;;  %v14728_v41 = vrot.slane %v14614_v51, %v19579_v2  ;;  %v14732_v57 = vrot.slane %v14614_v51, %v19601_v55  ;;  %v14736_v52 = vrot.slane %v14614_v51, %v19604_v60 }
0x1cb7   :  { %v20758_v30 = vsub.f32 %v14606_v33, %v14638_v5  ;;  %v20760_v22 = vsub.f32 %v14607_v21, %v14638_v5  ;;  %v14639_v7 = vmul.f32 0.001953125, %v14635_v4  ;;  %v20762_v17 = vsub.f32 %v14608_v16, %v14638_v5 }
0x1cb8   :  { %v14674_v9 = vadd.f32 %v14673_v15, %v14659_v37  ;;  %v14678_v35 = vadd.f32 %v14677_v56, %v14662_v20  ;;  %v20774_v1 = vsub.f32 %v14609_v23, %v14638_v5  ;;  %v14761_v5 = vrot.slane %v14615_v40, %v19582_v3 }
0x1cb9   :  { %v20766_v24 = vsub.f32 %v14610_v44, %v14639_v7  ;;  %v20768_v46 = vsub.f32 %v14611_v34, %v14639_v7  ;;  %v20770_v47 = vsub.f32 %v14612_v62, %v14639_v7  ;;  %v14664_v33 = vmul.f32 %v20758_v30, %v20758_v30 }
0x1cba   :  { %14675 = vadd.xlane.f32.xlu0 %v14674_v9  ;;  %v14679_v21 = vadd.f32 %v14678_v35, %v14663_v0  ;;  %v14665_v12 = vmul.f32 %v20760_v22, %v20760_v22  ;;  %v20778_v38 = vsub.f32 %v14613_v54, %v14639_v7  ;;  %v14666_v61 = vmul.f32 %v20762_v17, %v20762_v17 }
0x1cbb   :  { %v14668_v8 = vmul.f32 %v20766_v24, %v20766_v24  ;;  %v14669_v44 = vmul.f32 %v20768_v46, %v20768_v46  ;;  %v14670_v16 = vmul.f32 %v20770_v47, %v20770_v47  ;;  %v14667_v49 = vmul.f32 %v20774_v1, %v20774_v1 }
0x1cbc   :  { %14680 = vadd.xlane.f32.xlu1 %v14679_v21  ;;  %v14682_v42 = vadd.f32 %v14665_v12, %v14664_v33  ;;  %v14671_v63 = vmul.f32 %v20778_v38, %v20778_v38  ;;  %v14765_v15 = vrot.slane %v14615_v40, %v19579_v2  ;;  %v14769_v4 = vrot.slane %v14615_v40, %v19601_v55 }
0x1cbd   :  { %v14687_v18 = vadd.f32 %v14669_v44, %v14668_v8  ;;  %v14773_v37 = vrot.slane %v14615_v40, %v19604_v60 }
0x1cbe   :  { %v14683_v34 = vadd.f32 %v14682_v42, %v14666_v61 }
0x1cbf   :  { %v14688_v6 = vadd.f32 %v14687_v18, %v14670_v16 }
0x1cc0   :  { %v14684_v23 = vadd.f32 %v14683_v34, %v14667_v49 }
0x1cc1   :  { %v14689_v14 = vadd.f32 %v14688_v6, %v14671_v63 }
0x1cc2   :  { %14685 = vadd.xlane.f32.xlu0 %v14684_v23 }
0x1cc3   :  { %14690 = vadd.xlane.f32.xlu1 %v14689_v14 }
0x1d47   :  { %v14676_v62 = vpop.xlane.xlu0 %14675 }
0x1d48   :  { %v14692_v39 = vmul.f32 0.001953125, %v14676_v62 }
0x1d49   :  { %v14681_v29 = vpop.xlane.xlu1 %14680 }
0x1d4a   :  { %v14696_v58 = vadd.f32 1e-05, %v14692_v39  ;;  %v14693_v54 = vmul.f32 0.001953125, %v14681_v29 }
0x1d4c   :  { %18741 = vrsqrt.f32 %v14696_v58  ;;  %v14697_v28 = vadd.f32 1e-05, %v14693_v54 }
0x1d4e   :  { %18743 = vrsqrt.f32 %v14697_v28 }
0x1d4f   :  { %v14686_v36 = vpop.xlane.xlu0 %14685 }
0x1d50   :  { %v14694_v26 = vmul.f32 0.001953125, %v14686_v36  ;;  %v14691_v53 = vpop.xlane.xlu1 %14690 }
0x1d51   :  { %v14695_v59 = vmul.f32 0.001953125, %v14691_v53 }
0x1d52   :  { %v14698_v10 = vadd.f32 1e-05, %v14694_v26 }
0x1d53   :  { %v14699_v13 = vadd.f32 1e-05, %v14695_v59 }
0x1d54   :  { %18745 = vrsqrt.f32 %v14698_v10 }
0x1d55   :  { %18747 = vrsqrt.f32 %v14699_v13 }
0x1d56   :  { %v18742_v43 = vpop.eup %18741 }
0x1d57   :  { %v14704_v20 = vmul.f32 %v18742_v43, %v20728_v31  ;;  %v14705_v56 = vmul.f32 %v18742_v43, %v20730_v27  ;;  %v14706_v7 = vmul.f32 %v18742_v43, %v20732_v32  ;;  %v14707_v9 = vmul.f32 %v18742_v43, %v20744_v45 }
0x1d58   :  { %v18744_v0 = vpop.eup %18743 }
0x1d59   :  { %v14741_v35 = vmul.f32 %v14724_v11, %v14704_v20  ;;  %v14742_v33 = vmul.f32 %v14728_v41, %v14705_v56  ;;  %v14743_v21 = vmul.f32 %v14732_v57, %v14706_v7  ;;  %v14744_v12 = vmul.f32 %v14736_v52, %v14707_v9 }
0x1d5a   :  { %v14708_v3 = vmul.f32 %v18744_v0, %v20738_v19  ;;  %v14709_v2 = vmul.f32 %v18744_v0, %v20740_v25  ;;  %v14710_v55 = vmul.f32 %v18744_v0, %v20742_v50  ;;  %v14711_v60 = vmul.f32 %v18744_v0, %v20748_v48 }
0x1d5b   :  { %v14778_v31 = vadd.f32 %v14761_v5, %v14741_v35  ;;  %v14779_v8 = vadd.f32 %v14765_v15, %v14742_v33  ;;  %v14780_v27 = vadd.f32 %v14769_v4, %v14743_v21  ;;  %v14781_v44 = vadd.f32 %v14773_v37, %v14744_v12 }
0x1d5c   :  { %v14745_v32 = vmul.f32 %v14724_v11, %v14708_v3  ;;  %v14746_v61 = vmul.f32 %v14728_v41, %v14709_v2  ;;  %v14747_v45 = vmul.f32 %v14732_v57, %v14710_v55  ;;  %v14748_v42 = vmul.f32 %v14736_v52, %v14711_v60 }
0x1d5d   :  { %14794 = vst [vmem:[#allocation30] sm:$0xff] %v14778_v31  ;;  %14795 = vst [vmem:[#allocation30 + $0x8] sm:$0xff] %v14779_v8 }
0x1d5e   :  { %14796 = vst [vmem:[#allocation30 + $0x10] sm:$0xff] %v14780_v27  ;;  %14797 = vst [vmem:[#allocation30 + $0x18] sm:$0xff] %v14781_v44  ;;  %v18746_v16 = vpop.eup %18745  ;;  %v14782_v19 = vadd.f32 %v14761_v5, %v14745_v32  ;;  %v14783_v18 = vadd.f32 %v14765_v15, %v14746_v61  ;;  %v14784_v25 = vadd.f32 %v14769_v4, %v14747_v45 }
0x1d5f   :  { %v14785_v49 = vadd.f32 %v14773_v37, %v14748_v42  ;;  %v18748_v50 = vpop.eup %18747  ;;  %v14712_v48 = vmul.f32 %v18746_v16, %v20758_v30  ;;  %v14713_v34 = vmul.f32 %v18746_v16, %v20760_v22  ;;  %v14714_v63 = vmul.f32 %v18746_v16, %v20762_v17 }
0x1d60   :  { %v14715_v6 = vmul.f32 %v18746_v16, %v20774_v1  ;;  %14798 = vst [vmem:[#allocation30 + $0x20] sm:$0xff] %v14782_v19  ;;  %14799 = vst [vmem:[#allocation30 + $0x28] sm:$0xff] %v14783_v18  ;;  %v14716_v23 = vmul.f32 %v18748_v50, %v20766_v24  ;;  %v14717_v14 = vmul.f32 %v18748_v50, %v20768_v46 }
0x1d61   :  { %14800 = vst [vmem:[#allocation30 + $0x30] sm:$0xff] %v14784_v25  ;;  %14801 = vst [vmem:[#allocation30 + $0x38] sm:$0xff] %v14785_v49  ;;  %v14718_v62 = vmul.f32 %v18748_v50, %v20770_v47  ;;  %v14719_v39 = vmul.f32 %v18748_v50, %v20778_v38  ;;  %v14749_v29 = vmul.f32 %v14724_v11, %v14712_v48 }
0x1d62   :  { %v14750_v30 = vmul.f32 %v14728_v41, %v14713_v34  ;;  %v14751_v58 = vmul.f32 %v14732_v57, %v14714_v63  ;;  %v14752_v22 = vmul.f32 %v14736_v52, %v14715_v6  ;;  %v14753_v17 = vmul.f32 %v14724_v11, %v14716_v23 }
0x1d63   :  { %v14754_v1 = vmul.f32 %v14728_v41, %v14717_v14  ;;  %v14755_v54 = vmul.f32 %v14732_v57, %v14718_v62  ;;  %v14756_v28 = vmul.f32 %v14736_v52, %v14719_v39  ;;  %v14786_v36 = vadd.f32 %v14761_v5, %v14749_v29 }
0x1d64   :  { %v14787_v26 = vadd.f32 %v14765_v15, %v14750_v30  ;;  %v14788_v53 = vadd.f32 %v14769_v4, %v14751_v58  ;;  %v14789_v24 = vadd.f32 %v14773_v37, %v14752_v22  ;;  %v14790_v51 = vadd.f32 %v14761_v5, %v14753_v17 }
0x1d65   :  { %v14791_v46 = vadd.f32 %v14765_v15, %v14754_v1  ;;  %v14792_v59 = vadd.f32 %v14769_v4, %v14755_v54  ;;  %v14793_v47 = vadd.f32 %v14773_v37, %v14756_v28  ;;  %14802 = vst [vmem:[#allocation30 + $0x40] sm:$0xff] %v14786_v36 }
0x1d66   :  { %14803 = vst [vmem:[#allocation30 + $0x48] sm:$0xff] %v14787_v26  ;;  %14804 = vst [vmem:[#allocation30 + $0x50] sm:$0xff] %v14788_v53 }
0x1d67   :  { %14805 = vst [vmem:[#allocation30 + $0x58] sm:$0xff] %v14789_v24  ;;  %14806 = vst [vmem:[#allocation30 + $0x60] sm:$0xff] %v14790_v51 }
0x1d68   :  { %14807 = vst [vmem:[#allocation30 + $0x68] sm:$0xff] %v14791_v46  ;;  %14808 = vst [vmem:[#allocation30 + $0x70] sm:$0xff] %v14792_v59 }
0x1d69   :  { %14809 = vst [vmem:[#allocation30 + $0x78] sm:$0xff] %v14793_v47 }
0x1d6a   :  { %19150 = shalt.err (!%p19147_p0)
}
0x1d6b   :  { %s20886_s20 = sld [smem:[#allocation50_spill]] }
0x1d71   :  { %s19151_s21 = scalar_lea.hbm %s20886_s20, 2048 }
0x1d72   :  { %p19152_p1 = scmp.ne.s32.totalorder %s20886_s20, %s19151_s21  ;;  %p19155_p2 = scmp.lt.u32.totalorder %s19151_s21, %s20886_s20 }
0x1d74   :  { %p19157_p3 = pnand %p19155_p2, %p19152_p1 }
0x1d76   :  { %19160 = shalt.err (!%p19157_p3)
}
0x1d77   :  { %14821 = dma.vmem_to_hbm [thread:$0]  %s14816_s13, 2048, %s20886_s20, [#allocation5], %s19194_s15, %s19194_s15, %s19195_s7  }
0x1d78   :  { %19179 = dma.done.wait [#allocation5], 2048  }
0x1d79   :  { %19180 = vsyncadd [#allocation5], 4294965248 }
0x1d7a   :  { %14825 = vsyncpa [#allocation4], 1 }
0x1d7b   :  { %14826 = vsyncpa [#allocation7], 1 }
0x1d7c   :  { %14827 = vsyncpa [#allocation10], 1 }
0x1d7d   :  { %14828 = vsyncpa [#allocation13], 1 }
0x1d7e   :  { %14829 = vsyncpa [#allocation16], 1 }
0x1d7f   :  { %14830 = vsyncpa [#allocation19], 1 }
0x1d80   :  { %14831 = vsyncpa [#allocation22], 1 }
0x1d81   :  { %14832 = vsyncpa [#allocation25], 1 }
0x1d82   :  { %14833 = vsyncpa [#allocation28], 1 }
0x1d83   :  { %14834 = vsyncpa [#allocation5], 1 }

</bundles_post_ra>
